<compile_context>
chip_gen: v7x
topology: tpu7x:2x2x1
jax: 0.10.0
libtpu: 0.0.40
codegen_flags: <defaults>
</compile_context>

<pallas_src>
import functools

import jax
import jax.numpy as jnp
from jax import lax
from jax.experimental import pallas as pl
from jax.experimental.pallas import tpu as pltpu

SELU_ALPHA = 1.6732632423543772
SELU_SCALE = 1.0507009873554805

L_REF, L_FRAG, L_PRE = 500, 2449, 34
L_TOTAL = L_REF + L_FRAG + L_PRE                # 2983
P_REF = (L_REF - 2) // 2                        # 249
P1_FRAG = (L_FRAG - 2) // 2                     # 1223
P2_FRAG = (P1_FRAG - 2) // 2                    # 610
NPH = P2_FRAG + 1                               # 611 phase samples needed
FLAT_K = 5 + 30 * P2_FRAG + 30 * P_REF          # 25775
FC2_KP = ((FLAT_K + 127) // 128) * 128          # 25856 (lane-aligned K)


def _selu(x):
    # F.selu; exp only on the clamped-negative branch (no overflow).
    neg = SELU_ALPHA * (jnp.exp(jnp.minimum(x, 0.0)) - 1.0)
    return SELU_SCALE * jnp.where(x > 0, x, neg)


def _selu2(x):
    # selu(maxpool(selu(y))) == selu(selu(maxpool(y)))  (selu is monotone),
    # so both SELUs are applied after pooling on the smaller tile.
    return _selu(_selu(x))


# ---------------------------------------------------------------------------
# Kernel A: "pre" branch MLP  (fc1_1 -> SELU -> fc1_2 -> SELU), whole batch.
# ---------------------------------------------------------------------------
def _pre_mlp_kernel(x_ref, w1_ref, b1_ref, w2_ref, b2_ref, o_ref):
    h = _selu(
        jnp.dot(x_ref[...], w1_ref[...], preferred_element_type=jnp.float32)
        + b1_ref[...]
    )
    o_ref[...] = _selu(
        jnp.dot(h, w2_ref[...], preferred_element_type=jnp.float32) + b2_ref[...]
    )


def pre_mlp(x, w1t, b1, w2t, b2):
    B = x.shape[0]
    return pl.pallas_call(
        _pre_mlp_kernel,
        out_shape=jax.ShapeDtypeStruct((B, w2t.shape[1]), jnp.float32),
        in_specs=[pl.BlockSpec(memory_space=pltpu.MemorySpace.VMEM)] * 5,
        out_specs=pl.BlockSpec(memory_space=pltpu.MemorySpace.VMEM),
    )(x, w1t, b1, w2t, b2)


# ---------------------------------------------------------------------------
# Kernel B: fused frag branch
#   Conv1d(1,30,3) -> SELU -> MaxPool(2) -> SELU -> Conv1d(30,30,3) -> SELU
#   -> MaxPool(2) -> SELU, all in one kernel.
# Host passes stride-4 phases of the raw input: xp[:, s, i] = x[:, 4i + s],
# s in [0,5], i in [0, NPH).  Then (with y1 = dense conv1 output, h1 = pooled):
#   he[i] = h1[2i]   = selu2(max(y1[4i],   y1[4i+1]))
#   ho[i] = h1[2i+1] = selu2(max(y1[4i+2], y1[4i+3]))
# and conv2 even/odd outputs only ever need he/ho and their shift-by-1, so the
# 1223-long intermediate never leaves VMEM and is never interleaved.
# ---------------------------------------------------------------------------
def _frag_kernel(xp_ref, w1_ref, b1_ref, w2_ref, b2_ref, o_ref):
    xp = xp_ref[0]                       # (6, NPH)
    w1 = w1_ref[...]                     # (30, 3)
    b1 = b1_ref[...]                     # (30, 1)

    def y1(s):                           # conv1 output at positions 4i+s
        return (
            b1
            + w1[:, 0:1] * xp[s:s + 1, :]
            + w1[:, 1:2] * xp[s + 1:s + 2, :]
            + w1[:, 2:3] * xp[s + 2:s + 3, :]
        )

    he = _selu2(jnp.maximum(y1(0), y1(1)))     # h1[2i],   (30, NPH)
    ho = _selu2(jnp.maximum(y1(2), y1(3)))     # h1[2i+1], (30, NPH)

    he_a = he[:, :P2_FRAG]               # h1[2j]
    ho_a = ho[:, :P2_FRAG]               # h1[2j+1]
    he_b = he[:, 1:P2_FRAG + 1]          # h1[2j+2]
    ho_b = ho[:, 1:P2_FRAG + 1]          # h1[2j+3]

    w20, w21, w22 = w2_ref[0], w2_ref[1], w2_ref[2]    # (30, 30) each
    b2 = b2_ref[...]                                   # (30, 1)
    dot = lambda a, b: jnp.dot(a, b, preferred_element_type=jnp.float32)
    y2e = b2 + dot(w20, he_a) + dot(w21, ho_a) + dot(w22, he_b)
    y2o = b2 + dot(w20, ho_a) + dot(w21, he_b) + dot(w22, ho_b)
    o_ref[0] = _selu2(jnp.maximum(y2e, y2o))           # (30, P2_FRAG)


def frag_path(x, w1, b1, w2k, b2):
    # x: (B, 2449); w1: (30, 3); b1: (30, 1); w2k: (3, 30, 30); b2: (30, 1)
    B = x.shape[0]
    xp = jnp.stack([x[:, s::4][:, :NPH] for s in range(6)], axis=1)   # (B, 6, NPH)
    return pl.pallas_call(
        _frag_kernel,
        out_shape=jax.ShapeDtypeStruct((B, 30, P2_FRAG), jnp.float32),
        grid=(B,),
        in_specs=[
            pl.BlockSpec((1, 6, NPH), lambda i: (i, 0, 0)),
            pl.BlockSpec((30, 3), lambda i: (0, 0)),
            pl.BlockSpec((30, 1), lambda i: (0, 0)),
            pl.BlockSpec((3, 30, 30), lambda i: (0, 0, 0)),
            pl.BlockSpec((30, 1), lambda i: (0, 0)),
        ],
        out_specs=pl.BlockSpec((1, 30, P2_FRAG), lambda i: (i, 0, 0)),
        compiler_params=pltpu.CompilerParams(dimension_semantics=("parallel",)),
    )(xp, w1, b1, w2k, b2)


# ---------------------------------------------------------------------------
# Kernel C: ref branch  Conv1d(1,30,3) -> SELU -> MaxPool(2) -> SELU (fused).
# Host passes stride-2 phases: xs[:, m, j] = x[:, 2j + m].
# ---------------------------------------------------------------------------
def _ref_kernel(xs_ref, w_ref, b_ref, o_ref):
    xs = xs_ref[0]                       # (4, P_REF)
    w = w_ref[...]                       # (30, 3)
    b = b_ref[...]                       # (30, 1)
    ce = b + w[:, 0:1] * xs[0:1, :] + w[:, 1:2] * xs[1:2, :] + w[:, 2:3] * xs[2:3, :]
    co = b + w[:, 0:1] * xs[1:2, :] + w[:, 1:2] * xs[2:3, :] + w[:, 2:3] * xs[3:4, :]
    o_ref[0] = _selu2(jnp.maximum(ce, co))


def ref_path(x, w, b):
    # x: (B, 500); w: (30, 3); b: (30, 1)
    B = x.shape[0]
    xs = jnp.stack([x[:, m::2][:, :P_REF] for m in range(4)], axis=1)  # (B, 4, P_REF)
    return pl.pallas_call(
        _ref_kernel,
        out_shape=jax.ShapeDtypeStruct((B, 30, P_REF), jnp.float32),
        grid=(B,),
        in_specs=[
            pl.BlockSpec((1, 4, P_REF), lambda i: (i, 0, 0)),
            pl.BlockSpec((30, 3), lambda i: (0, 0)),
            pl.BlockSpec((30, 1), lambda i: (0, 0)),
        ],
        out_specs=pl.BlockSpec((1, 30, P_REF), lambda i: (i, 0, 0)),
        compiler_params=pltpu.CompilerParams(dimension_semantics=("parallel",)),
    )(xs, w, b)


# ---------------------------------------------------------------------------
# Kernel D: fc2.  x: (B, 25856), w: (32, 25856) lane-dense (pre-padded once),
# contraction over K of both operands (A @ B^T), everything VMEM-resident.
# ---------------------------------------------------------------------------
def _fc2_kernel(x_ref, w_ref, b_ref, o_ref):
    o_ref[...] = (
        lax.dot_general(
            x_ref[...],
            w_ref[...],
            dimension_numbers=(((1,), (1,)), ((), ())),
            preferred_element_type=jnp.float32,
        )
        + b_ref[...]
    )


def fc2(x, w, b):
    B = x.shape[0]
    return pl.pallas_call(
        _fc2_kernel,
        out_shape=jax.ShapeDtypeStruct((B, w.shape[0]), jnp.float32),
        in_specs=[pl.BlockSpec(memory_space=pltpu.MemorySpace.VMEM)] * 3,
        out_specs=pl.BlockSpec(memory_space=pltpu.MemorySpace.VMEM),
    )(x, w, b)


# ---------------------------------------------------------------------------
# Parameters (deterministic, PyTorch-default-style uniform init) + one-time
# kernel-layout preparation (transposes, K padding) done OUTSIDE jit.
# ---------------------------------------------------------------------------
def init_params(key):
    ks = jax.random.split(key, 12)

    def lin(kw, kb, out_f, in_f):
        bound = float(in_f) ** -0.5
        w = jax.random.uniform(kw, (out_f, in_f), jnp.float32, -bound, bound)
        b = jax.random.uniform(kb, (out_f,), jnp.float32, -bound, bound)
        return w, b

    def conv(kw, kb, out_c, in_c, ksz):
        bound = float(in_c * ksz) ** -0.5
        w = jax.random.uniform(kw, (out_c, in_c, ksz), jnp.float32, -bound, bound)
        b = jax.random.uniform(kb, (out_c,), jnp.float32, -bound, bound)
        return w, b

    return {
        "fc1_1": lin(ks[0], ks[1], 32, 34),
        "fc1_2": lin(ks[2], ks[3], 5, 32),
        "cnn11": conv(ks[4], ks[5], 30, 1, 3),
        "cnn21": conv(ks[6], ks[7], 30, 1, 3),
        "cnn22": conv(ks[8], ks[9], 30, 30, 3),
        "fc2": lin(ks[10], ks[11], 32, 25775),
    }


def prepare_params(p):
    w11, b11 = p["fc1_1"]
    w12, b12 = p["fc1_2"]
    w21, b21 = p["cnn21"]
    w22, b22 = p["cnn22"]
    wc11, bc11 = p["cnn11"]
    w2, b2 = p["fc2"]
    return {
        "fc1_w1t": w11.T, "fc1_b1": b11[None, :],
        "fc1_w2t": w12.T, "fc1_b2": b12[None, :],
        "cnn21_w": w21[:, 0, :], "cnn21_b": b21[:, None],
        "cnn22_wk": jnp.transpose(w22, (2, 0, 1)), "cnn22_b": b22[:, None],
        "cnn11_w": wc11[:, 0, :], "cnn11_b": bc11[:, None],
        # fc2 weight kept (out=32, in=K): lane-dense; K padded once to 25856.
        "fc2_w": jnp.pad(w2, ((0, 0), (0, FC2_KP - FLAT_K))),
        "fc2_b": b2[None, :],
    }


# ---------------------------------------------------------------------------
# forward_once / forward
# ---------------------------------------------------------------------------
def forward_once(pp, pre, frag, ref):
    # pre: (B, 34) -> fc branch; frag: (B, 2449) -> cnn21/cnn22; ref: (B, 500) -> cnn11
    B = pre.shape[0]
    pre_out = pre_mlp(pre, pp["fc1_w1t"], pp["fc1_b1"], pp["fc1_w2t"], pp["fc1_b2"])
    h2 = frag_path(frag, pp["cnn21_w"], pp["cnn21_b"], pp["cnn22_wk"], pp["cnn22_b"])
    r1 = ref_path(ref, pp["cnn11_w"], pp["cnn11_b"])
    # torch.cat((pre, frag_flat, ref_flat), 1); zero-pad K to the lane-aligned 25856.
    flat = jnp.concatenate(
        [pre_out, h2.reshape(B, -1), r1.reshape(B, -1),
         jnp.zeros((B, FC2_KP - FLAT_K), jnp.float32)],
        axis=1,
    )
    return fc2(flat, pp["fc2_w"], pp["fc2_b"])                       # (B, 32)


def siamese_forward(pp, spectrum01, spectrum02):
    # Both spectra share weights -> run them as one batched pass (halves launch
    # count and streams each weight from HBM once).
    B = spectrum01.shape[0]
    s = jnp.concatenate([spectrum01, spectrum02], axis=0)            # (2B, 2983)
    # SiameseNetwork2.forward routes the LAST slice (34) to the fc branch, the
    # middle (2449) to cnn21/cnn22 and the FIRST (500) to cnn11 (argument swap
    # in the original code).
    ref = s[:, :L_REF]
    frag = s[:, L_REF:L_REF + L_FRAG]
    pre = s[:, L_REF + L_FRAG:]
    out = forward_once(pp, pre, frag, ref)
    return out[:B], out[B:]


# ---------------------------------------------------------------------------
# Pure-jnp reference (mirrors the PyTorch module literally) for a self-check.
# ---------------------------------------------------------------------------
def _reference_forward(p, s1, s2):
    selu = jax.nn.selu
    hi = jax.lax.Precision.HIGHEST

    def conv1d(x, w, b):     # x (B,Cin,L), w (Cout,Cin,K), b (Cout,)
        K = w.shape[-1]
        Lo = x.shape[-1] - K + 1
        y = b[None, :, None]
        for k in range(K):
            y = y + jnp.einsum("bcl,oc->bol", x[:, :, k:k + Lo], w[:, :, k],
                               precision=hi)
        return y

    def pool2(y):
        Pn = y.shape[-1] // 2
        return jnp.max(y[..., :2 * Pn].reshape(y.shape[0], y.shape[1], Pn, 2), axis=-1)

    def once(pre, frag, ref):
        w11, b11 = p["fc1_1"]; w12, b12 = p["fc1_2"]
        po = selu(selu(pre @ w11.T + b11) @ w12.T + b12)
        w21, b21 = p["cnn21"]; w22, b22 = p["cnn22"]; wc, bc = p["cnn11"]
        h = selu(pool2(selu(conv1d(frag[:, None, :], w21, b21))))
        h = selu(pool2(selu(conv1d(h, w22, b22))))
        r = selu(pool2(selu(conv1d(ref[:, None, :], wc, bc))))
        Bn = pre.shape[0]
        flat = jnp.concatenate([po, h.reshape(Bn, -1), r.reshape(Bn, -1)], axis=1)
        w2, b2 = p["fc2"]
        return jnp.einsum("bk,nk->bn", flat, w2, precision=hi) + b2

    def split(s):
        return s[:, L_REF + L_FRAG:], s[:, L_REF:L_REF + L_FRAG], s[:, :L_REF]

    return once(*split(s1)), once(*split(s2))


if __name__ == "__main__":
    key = jax.random.PRNGKey(0)
    pkey, k1, k2 = jax.random.split(key, 3)
    raw_params = init_params(pkey)
    pp = prepare_params(raw_params)      # one-time layout prep, outside jit

    B = 2
    spectrum01 = jax.random.normal(k1, (B, L_TOTAL), jnp.float32)
    spectrum02 = jax.random.normal(k2, (B, L_TOTAL), jnp.float32)

    fwd = jax.jit(functools.partial(siamese_forward, pp))
    out01, out02 = fwd(spectrum01, spectrum02)
    jax.block_until_ready((out01, out02))

    assert out01.shape == (B, 32) and out02.shape == (B, 32)
    assert out01.dtype == jnp.float32 and out02.dtype == jnp.float32

    # Numerical check against a plain-XLA reference of the original module.
    ref_fn = jax.jit(functools.partial(_reference_forward, raw_params))
    r01, r02 = ref_fn(spectrum01, spectrum02)
    jax.block_until_ready((r01, r02))
    err = max(float(jnp.max(jnp.abs(out01 - r01))),
              float(jnp.max(jnp.abs(out02 - r02))))
    assert err < 3e-2, f"mismatch vs reference: {err}"

    print("KERNEL_OK")
</pallas_src>

<mosaic_0001>
module attributes {stable_mosaic.version = 11 : i64} {
  func.func @_pre_mlp_kernel(%arg0: memref<4x34xf32, #tpu.memory_space<vmem>>, %arg1: memref<34x32xf32, #tpu.memory_space<vmem>>, %arg2: memref<1x32xf32, #tpu.memory_space<vmem>>, %arg3: memref<32x5xf32, #tpu.memory_space<vmem>>, %arg4: memref<1x5xf32, #tpu.memory_space<vmem>>, %arg5: memref<4x5xf32, #tpu.memory_space<vmem>>) attributes {dimension_semantics = [], scalar_prefetch = 0 : i64, scratch_operands = 0 : i64, tpu.core_type = #tpu.core_type<tc>} {
    %c0 = arith.constant 0 : index
    %c0_0 = arith.constant 0 : index
    %0 = vector.load %arg0[%c0, %c0_0] : memref<4x34xf32, #tpu.memory_space<vmem>>, vector<4x34xf32>
    %c0_1 = arith.constant 0 : index
    %c0_2 = arith.constant 0 : index
    %1 = vector.load %arg1[%c0_1, %c0_2] : memref<34x32xf32, #tpu.memory_space<vmem>>, vector<34x32xf32>
    %cst = arith.constant dense<0.000000e+00> : vector<4x32xf32>
    %2 = tpu.matmul %0, %1, %cst {dimension_numbers = #tpu.dot_dimension_numbers<[1], [0], [0], [1], [0, 0, 1, 1], [], []>} : vector<4x34xf32>, vector<34x32xf32>, vector<4x32xf32> -> vector<4x32xf32>
    %c0_3 = arith.constant 0 : index
    %c0_4 = arith.constant 0 : index
    %3 = vector.load %arg2[%c0_3, %c0_4] : memref<1x32xf32, #tpu.memory_space<vmem>>, vector<1x32xf32>
    %4 = vector.broadcast %3 : vector<1x32xf32> to vector<4x32xf32>
    %5 = arith.addf %2, %4 : vector<4x32xf32>
    %cst_5 = arith.constant 0.000000e+00 : f32
    %6 = vector.broadcast %cst_5 : f32 to vector<4x32xf32>
    %7 = arith.minimumf %5, %6 : vector<4x32xf32>
    %8 = math.exp %7 : vector<4x32xf32>
    %cst_6 = arith.constant 1.000000e+00 : f32
    %9 = vector.broadcast %cst_6 : f32 to vector<4x32xf32>
    %10 = arith.subf %8, %9 : vector<4x32xf32>
    %cst_7 = arith.constant 1.67326319 : f32
    %11 = vector.broadcast %cst_7 : f32 to vector<4x32xf32>
    %12 = arith.mulf %11, %10 : vector<4x32xf32>
    %cst_8 = arith.constant 0.000000e+00 : f32
    %13 = vector.broadcast %cst_8 : f32 to vector<4x32xf32>
    %14 = arith.cmpf ogt, %5, %13 : vector<4x32xf32>
    %15 = arith.select %14, %5, %12 : vector<4x32xi1>, vector<4x32xf32>
    %cst_9 = arith.constant 1.05070102 : f32
    %16 = vector.broadcast %cst_9 : f32 to vector<4x32xf32>
    %17 = arith.mulf %16, %15 : vector<4x32xf32>
    %c0_10 = arith.constant 0 : index
    %c0_11 = arith.constant 0 : index
    %18 = vector.load %arg3[%c0_10, %c0_11] : memref<32x5xf32, #tpu.memory_space<vmem>>, vector<32x5xf32>
    %cst_12 = arith.constant dense<0.000000e+00> : vector<4x5xf32>
    %19 = tpu.matmul %17, %18, %cst_12 {dimension_numbers = #tpu.dot_dimension_numbers<[1], [0], [0], [1], [0, 0, 1, 1], [], []>} : vector<4x32xf32>, vector<32x5xf32>, vector<4x5xf32> -> vector<4x5xf32>
    %c0_13 = arith.constant 0 : index
    %c0_14 = arith.constant 0 : index
    %20 = vector.load %arg4[%c0_13, %c0_14] : memref<1x5xf32, #tpu.memory_space<vmem>>, vector<1x5xf32>
    %21 = vector.broadcast %20 : vector<1x5xf32> to vector<4x5xf32>
    %22 = arith.addf %19, %21 : vector<4x5xf32>
    %cst_15 = arith.constant 0.000000e+00 : f32
    %23 = vector.broadcast %cst_15 : f32 to vector<4x5xf32>
    %24 = arith.minimumf %22, %23 : vector<4x5xf32>
    %25 = math.exp %24 : vector<4x5xf32>
    %cst_16 = arith.constant 1.000000e+00 : f32
    %26 = vector.broadcast %cst_16 : f32 to vector<4x5xf32>
    %27 = arith.subf %25, %26 : vector<4x5xf32>
    %cst_17 = arith.constant 1.67326319 : f32
    %28 = vector.broadcast %cst_17 : f32 to vector<4x5xf32>
    %29 = arith.mulf %28, %27 : vector<4x5xf32>
    %cst_18 = arith.constant 0.000000e+00 : f32
    %30 = vector.broadcast %cst_18 : f32 to vector<4x5xf32>
    %31 = arith.cmpf ogt, %22, %30 : vector<4x5xf32>
    %32 = arith.select %31, %22, %29 : vector<4x5xi1>, vector<4x5xf32>
    %cst_19 = arith.constant 1.05070102 : f32
    %33 = vector.broadcast %cst_19 : f32 to vector<4x5xf32>
    %34 = arith.mulf %33, %32 : vector<4x5xf32>
    %c0_20 = arith.constant 0 : index
    %c0_21 = arith.constant 0 : index
    %35 = vector.load %arg5[%c0_20, %c0_21] : memref<4x5xf32, #tpu.memory_space<vmem>>, vector<4x5xf32>
    tpu.vector_store %arg5[%c0_20, %c0_21], %34 {strides = array<i32>} : memref<4x5xf32, #tpu.memory_space<vmem>>, vector<4x5xf32>,
    return
  }
}

module attributes {stable_mosaic.version = 11 : i64} {
  func.func @_ref_kernel(%arg0: i32, %arg1: memref<1x4x249xf32, #tpu.memory_space<vmem>>, %arg2: memref<30x3xf32, #tpu.memory_space<vmem>>, %arg3: memref<30x1xf32, #tpu.memory_space<vmem>>, %arg4: memref<1x30x249xf32, #tpu.memory_space<vmem>>) attributes {dimension_semantics = [#tpu.dimension_semantics<parallel>], iteration_bounds = array<i64: 4>, scalar_prefetch = 0 : i64, scratch_operands = 0 : i64, tpu.core_type = #tpu.core_type<tc>, window_params = [{transform_indices = @transform_0, window_bounds = array<i64: 1, 4, 249>}, {pipeline_mode = #tpu.pipeline_mode<synchronous>, transform_indices = @transform_1, window_bounds = array<i64: 30, 3>}, {pipeline_mode = #tpu.pipeline_mode<synchronous>, transform_indices = @transform_2, window_bounds = array<i64: 30, 1>}, {transform_indices = @transform_3, window_bounds = array<i64: 1, 30, 249>}]} {
    %c0 = arith.constant 0 : index
    %c0_0 = arith.constant 0 : index
    %c0_1 = arith.constant 0 : index
    %0 = vector.load %arg1[%c0, %c0_0, %c0_1] : memref<1x4x249xf32, #tpu.memory_space<vmem>>, vector<1x4x249xf32>
    %1 = vector.shape_cast %0 : vector<1x4x249xf32> to vector<4x249xf32>
    %c0_2 = arith.constant 0 : index
    %c0_3 = arith.constant 0 : index
    %2 = vector.load %arg2[%c0_2, %c0_3] : memref<30x3xf32, #tpu.memory_space<vmem>>, vector<30x3xf32>
    %c0_4 = arith.constant 0 : index
    %c0_5 = arith.constant 0 : index
    %3 = vector.load %arg3[%c0_4, %c0_5] : memref<30x1xf32, #tpu.memory_space<vmem>>, vector<30x1xf32>
    %4 = vector.extract_strided_slice %2 {offsets = [0, 0], sizes = [30, 1], strides = [1, 1]} : vector<30x3xf32> to vector<30x1xf32>
    %5 = vector.extract_strided_slice %1 {offsets = [0, 0], sizes = [1, 249], strides = [1, 1]} : vector<4x249xf32> to vector<1x249xf32>
    %6 = vector.broadcast %4 : vector<30x1xf32> to vector<30x249xf32>
    %7 = vector.broadcast %5 : vector<1x249xf32> to vector<30x249xf32>
    %8 = arith.mulf %6, %7 : vector<30x249xf32>
    %9 = vector.broadcast %3 : vector<30x1xf32> to vector<30x249xf32>
    %10 = arith.addf %9, %8 : vector<30x249xf32>
    %11 = vector.extract_strided_slice %2 {offsets = [0, 1], sizes = [30, 1], strides = [1, 1]} : vector<30x3xf32> to vector<30x1xf32>
    %12 = vector.extract_strided_slice %1 {offsets = [1, 0], sizes = [1, 249], strides = [1, 1]} : vector<4x249xf32> to vector<1x249xf32>
    %13 = vector.broadcast %11 : vector<30x1xf32> to vector<30x249xf32>
    %14 = vector.broadcast %12 : vector<1x249xf32> to vector<30x249xf32>
    %15 = arith.mulf %13, %14 : vector<30x249xf32>
    %16 = arith.addf %10, %15 : vector<30x249xf32>
    %17 = vector.extract_strided_slice %2 {offsets = [0, 2], sizes = [30, 1], strides = [1, 1]} : vector<30x3xf32> to vector<30x1xf32>
    %18 = vector.extract_strided_slice %1 {offsets = [2, 0], sizes = [1, 249], strides = [1, 1]} : vector<4x249xf32> to vector<1x249xf32>
    %19 = vector.broadcast %17 : vector<30x1xf32> to vector<30x249xf32>
    %20 = vector.broadcast %18 : vector<1x249xf32> to vector<30x249xf32>
    %21 = arith.mulf %19, %20 : vector<30x249xf32>
    %22 = arith.addf %16, %21 : vector<30x249xf32>
    %23 = vector.extract_strided_slice %2 {offsets = [0, 0], sizes = [30, 1], strides = [1, 1]} : vector<30x3xf32> to vector<30x1xf32>
    %24 = vector.extract_strided_slice %1 {offsets = [1, 0], sizes = [1, 249], strides = [1, 1]} : vector<4x249xf32> to vector<1x249xf32>
    %25 = vector.broadcast %23 : vector<30x1xf32> to vector<30x249xf32>
    %26 = vector.broadcast %24 : vector<1x249xf32> to vector<30x249xf32>
    %27 = arith.mulf %25, %26 : vector<30x249xf32>
    %28 = vector.broadcast %3 : vector<30x1xf32> to vector<30x249xf32>
    %29 = arith.addf %28, %27 : vector<30x249xf32>
    %30 = vector.extract_strided_slice %2 {offsets = [0, 1], sizes = [30, 1], strides = [1, 1]} : vector<30x3xf32> to vector<30x1xf32>
    %31 = vector.extract_strided_slice %1 {offsets = [2, 0], sizes = [1, 249], strides = [1, 1]} : vector<4x249xf32> to vector<1x249xf32>
    %32 = vector.broadcast %30 : vector<30x1xf32> to vector<30x249xf32>
    %33 = vector.broadcast %31 : vector<1x249xf32> to vector<30x249xf32>
    %34 = arith.mulf %32, %33 : vector<30x249xf32>
    %35 = arith.addf %29, %34 : vector<30x249xf32>
    %36 = vector.extract_strided_slice %2 {offsets = [0, 2], sizes = [30, 1], strides = [1, 1]} : vector<30x3xf32> to vector<30x1xf32>
    %37 = vector.extract_strided_slice %1 {offsets = [3, 0], sizes = [1, 249], strides = [1, 1]} : vector<4x249xf32> to vector<1x249xf32>
    %38 = vector.broadcast %36 : vector<30x1xf32> to vector<30x249xf32>
    %39 = vector.broadcast %37 : vector<1x249xf32> to vector<30x249xf32>
    %40 = arith.mulf %38, %39 : vector<30x249xf32>
    %41 = arith.addf %35, %40 : vector<30x249xf32>
    %42 = arith.maximumf %22, %41 : vector<30x249xf32>
    %cst = arith.constant 0.000000e+00 : f32
    %43 = vector.broadcast %cst : f32 to vector<30x249xf32>
    %44 = arith.minimumf %42, %43 : vector<30x249xf32>
    %45 = math.exp %44 : vector<30x249xf32>
    %cst_6 = arith.constant 1.000000e+00 : f32
    %46 = vector.broadcast %cst_6 : f32 to vector<30x249xf32>
    %47 = arith.subf %45, %46 : vector<30x249xf32>
    %cst_7 = arith.constant 1.67326319 : f32
    %48 = vector.broadcast %cst_7 : f32 to vector<30x249xf32>
    %49 = arith.mulf %48, %47 : vector<30x249xf32>
    %cst_8 = arith.constant 0.000000e+00 : f32
    %50 = vector.broadcast %cst_8 : f32 to vector<30x249xf32>
    %51 = arith.cmpf ogt, %42, %50 : vector<30x249xf32>
    %52 = arith.select %51, %42, %49 : vector<30x249xi1>, vector<30x249xf32>
    %cst_9 = arith.constant 1.05070102 : f32
    %53 = vector.broadcast %cst_9 : f32 to vector<30x249xf32>
    %54 = arith.mulf %53, %52 : vector<30x249xf32>
    %cst_10 = arith.constant 0.000000e+00 : f32
    %55 = vector.broadcast %cst_10 : f32 to vector<30x249xf32>
    %56 = arith.minimumf %54, %55 : vector<30x249xf32>
    %57 = math.exp %56 : vector<30x249xf32>
    %cst_11 = arith.constant 1.000000e+00 : f32
    %58 = vector.broadcast %cst_11 : f32 to vector<30x249xf32>
    %59 = arith.subf %57, %58 : vector<30x249xf32>
    %cst_12 = arith.constant 1.67326319 : f32
    %60 = vector.broadcast %cst_12 : f32 to vector<30x249xf32>
    %61 = arith.mulf %60, %59 : vector<30x249xf32>
    %cst_13 = arith.constant 0.000000e+00 : f32
    %62 = vector.broadcast %cst_13 : f32 to vector<30x249xf32>
    %63 = arith.cmpf ogt, %54, %62 : vector<30x249xf32>
    %64 = arith.select %63, %54, %61 : vector<30x249xi1>, vector<30x249xf32>
    %cst_14 = arith.constant 1.05070102 : f32
    %65 = vector.broadcast %cst_14 : f32 to vector<30x249xf32>
    %66 = arith.mulf %65, %64 : vector<30x249xf32>
    %c0_15 = arith.constant 0 : index
    %c0_16 = arith.constant 0 : index
    %c0_17 = arith.constant 0 : index
    %67 = vector.load %arg4[%c0_15, %c0_16, %c0_17] : memref<1x30x249xf32, #tpu.memory_space<vmem>>, vector<1x30x249xf32>
    %68 = vector.shape_cast %67 : vector<1x30x249xf32> to vector<30x249xf32>
    %69 = vector.shape_cast %66 : vector<30x249xf32> to vector<1x30x249xf32>
    tpu.vector_store %arg4[%c0_15, %c0_16, %c0_17], %69 {strides = array<i32>} : memref<1x30x249xf32, #tpu.memory_space<vmem>>, vector<1x30x249xf32>,
    return
  }
  func.func @transform_0(%arg0: i32) -> (i32, i32, i32) {
    %c0_i32 = arith.constant 0 : i32
    %c0_i32_0 = arith.constant 0 : i32
    %c0_i32_1 = arith.constant 0 : i32
    return %arg0, %c0_i32, %c0_i32_0 : i32, i32, i32
  }
  func.func @transform_1(%arg0: i32) -> (i32, i32) {
    %c0_i32 = arith.constant 0 : i32
    %c0_i32_0 = arith.constant 0 : i32
    %c0_i32_1 = arith.constant 0 : i32
    return %c0_i32, %c0_i32_0 : i32, i32
  }
  func.func @transform_2(%arg0: i32) -> (i32, i32) {
    %c0_i32 = arith.constant 0 : i32
    %c0_i32_0 = arith.constant 0 : i32
    %c0_i32_1 = arith.constant 0 : i32
    return %c0_i32, %c0_i32_0 : i32, i32
  }
  func.func @transform_3(%arg0: i32) -> (i32, i32, i32) {
    %c0_i32 = arith.constant 0 : i32
    %c0_i32_0 = arith.constant 0 : i32
    %c0_i32_1 = arith.constant 0 : i32
    return %arg0, %c0_i32, %c0_i32_0 : i32, i32, i32
  }
}

module attributes {stable_mosaic.version = 11 : i64} {
  func.func @_frag_kernel(%arg0: i32, %arg1: memref<1x6x611xf32, #tpu.memory_space<vmem>>, %arg2: memref<30x3xf32, #tpu.memory_space<vmem>>, %arg3: memref<30x1xf32, #tpu.memory_space<vmem>>, %arg4: memref<3x30x30xf32, #tpu.memory_space<vmem>>, %arg5: memref<30x1xf32, #tpu.memory_space<vmem>>, %arg6: memref<1x30x610xf32, #tpu.memory_space<vmem>>) attributes {dimension_semantics = [#tpu.dimension_semantics<parallel>], iteration_bounds = array<i64: 4>, scalar_prefetch = 0 : i64, scratch_operands = 0 : i64, tpu.core_type = #tpu.core_type<tc>, window_params = [{transform_indices = @transform_0, window_bounds = array<i64: 1, 6, 611>}, {pipeline_mode = #tpu.pipeline_mode<synchronous>, transform_indices = @transform_1, window_bounds = array<i64: 30, 3>}, {pipeline_mode = #tpu.pipeline_mode<synchronous>, transform_indices = @transform_2, window_bounds = array<i64: 30, 1>}, {pipeline_mode = #tpu.pipeline_mode<synchronous>, transform_indices = @transform_3, window_bounds = array<i64: 3, 30, 30>}, {pipeline_mode = #tpu.pipeline_mode<synchronous>, transform_indices = @transform_4, window_bounds = array<i64: 30, 1>}, {transform_indices = @transform_5, window_bounds = array<i64: 1, 30, 610>}]} {
    %c0 = arith.constant 0 : index
    %c0_0 = arith.constant 0 : index
    %c0_1 = arith.constant 0 : index
    %0 = vector.load %arg1[%c0, %c0_0, %c0_1] : memref<1x6x611xf32, #tpu.memory_space<vmem>>, vector<1x6x611xf32>
    %1 = vector.shape_cast %0 : vector<1x6x611xf32> to vector<6x611xf32>
    %c0_2 = arith.constant 0 : index
    %c0_3 = arith.constant 0 : index
    %2 = vector.load %arg2[%c0_2, %c0_3] : memref<30x3xf32, #tpu.memory_space<vmem>>, vector<30x3xf32>
    %c0_4 = arith.constant 0 : index
    %c0_5 = arith.constant 0 : index
    %3 = vector.load %arg3[%c0_4, %c0_5] : memref<30x1xf32, #tpu.memory_space<vmem>>, vector<30x1xf32>
    %4 = vector.extract_strided_slice %2 {offsets = [0, 0], sizes = [30, 1], strides = [1, 1]} : vector<30x3xf32> to vector<30x1xf32>
    %5 = vector.extract_strided_slice %1 {offsets = [0, 0], sizes = [1, 611], strides = [1, 1]} : vector<6x611xf32> to vector<1x611xf32>
    %6 = vector.broadcast %4 : vector<30x1xf32> to vector<30x611xf32>
    %7 = vector.broadcast %5 : vector<1x611xf32> to vector<30x611xf32>
    %8 = arith.mulf %6, %7 : vector<30x611xf32>
    %9 = vector.broadcast %3 : vector<30x1xf32> to vector<30x611xf32>
    %10 = arith.addf %9, %8 : vector<30x611xf32>
    %11 = vector.extract_strided_slice %2 {offsets = [0, 1], sizes = [30, 1], strides = [1, 1]} : vector<30x3xf32> to vector<30x1xf32>
    %12 = vector.extract_strided_slice %1 {offsets = [1, 0], sizes = [1, 611], strides = [1, 1]} : vector<6x611xf32> to vector<1x611xf32>
    %13 = vector.broadcast %11 : vector<30x1xf32> to vector<30x611xf32>
    %14 = vector.broadcast %12 : vector<1x611xf32> to vector<30x611xf32>
    %15 = arith.mulf %13, %14 : vector<30x611xf32>
    %16 = arith.addf %10, %15 : vector<30x611xf32>
    %17 = vector.extract_strided_slice %2 {offsets = [0, 2], sizes = [30, 1], strides = [1, 1]} : vector<30x3xf32> to vector<30x1xf32>
    %18 = vector.extract_strided_slice %1 {offsets = [2, 0], sizes = [1, 611], strides = [1, 1]} : vector<6x611xf32> to vector<1x611xf32>
    %19 = vector.broadcast %17 : vector<30x1xf32> to vector<30x611xf32>
    %20 = vector.broadcast %18 : vector<1x611xf32> to vector<30x611xf32>
    %21 = arith.mulf %19, %20 : vector<30x611xf32>
    %22 = arith.addf %16, %21 : vector<30x611xf32>
    %23 = vector.extract_strided_slice %2 {offsets = [0, 0], sizes = [30, 1], strides = [1, 1]} : vector<30x3xf32> to vector<30x1xf32>
    %24 = vector.extract_strided_slice %1 {offsets = [1, 0], sizes = [1, 611], strides = [1, 1]} : vector<6x611xf32> to vector<1x611xf32>
    %25 = vector.broadcast %23 : vector<30x1xf32> to vector<30x611xf32>
    %26 = vector.broadcast %24 : vector<1x611xf32> to vector<30x611xf32>
    %27 = arith.mulf %25, %26 : vector<30x611xf32>
    %28 = vector.broadcast %3 : vector<30x1xf32> to vector<30x611xf32>
    %29 = arith.addf %28, %27 : vector<30x611xf32>
    %30 = vector.extract_strided_slice %2 {offsets = [0, 1], sizes = [30, 1], strides = [1, 1]} : vector<30x3xf32> to vector<30x1xf32>
    %31 = vector.extract_strided_slice %1 {offsets = [2, 0], sizes = [1, 611], strides = [1, 1]} : vector<6x611xf32> to vector<1x611xf32>
    %32 = vector.broadcast %30 : vector<30x1xf32> to vector<30x611xf32>
    %33 = vector.broadcast %31 : vector<1x611xf32> to vector<30x611xf32>
    %34 = arith.mulf %32, %33 : vector<30x611xf32>
    %35 = arith.addf %29, %34 : vector<30x611xf32>
    %36 = vector.extract_strided_slice %2 {offsets = [0, 2], sizes = [30, 1], strides = [1, 1]} : vector<30x3xf32> to vector<30x1xf32>
    %37 = vector.extract_strided_slice %1 {offsets = [3, 0], sizes = [1, 611], strides = [1, 1]} : vector<6x611xf32> to vector<1x611xf32>
    %38 = vector.broadcast %36 : vector<30x1xf32> to vector<30x611xf32>
    %39 = vector.broadcast %37 : vector<1x611xf32> to vector<30x611xf32>
    %40 = arith.mulf %38, %39 : vector<30x611xf32>
    %41 = arith.addf %35, %40 : vector<30x611xf32>
    %42 = arith.maximumf %22, %41 : vector<30x611xf32>
    %cst = arith.constant 0.000000e+00 : f32
    %43 = vector.broadcast %cst : f32 to vector<30x611xf32>
    %44 = arith.minimumf %42, %43 : vector<30x611xf32>
    %45 = math.exp %44 : vector<30x611xf32>
    %cst_6 = arith.constant 1.000000e+00 : f32
    %46 = vector.broadcast %cst_6 : f32 to vector<30x611xf32>
    %47 = arith.subf %45, %46 : vector<30x611xf32>
    %cst_7 = arith.constant 1.67326319 : f32
    %48 = vector.broadcast %cst_7 : f32 to vector<30x611xf32>
    %49 = arith.mulf %48, %47 : vector<30x611xf32>
    %cst_8 = arith.constant 0.000000e+00 : f32
    %50 = vector.broadcast %cst_8 : f32 to vector<30x611xf32>
    %51 = arith.cmpf ogt, %42, %50 : vector<30x611xf32>
    %52 = arith.select %51, %42, %49 : vector<30x611xi1>, vector<30x611xf32>
    %cst_9 = arith.constant 1.05070102 : f32
    %53 = vector.broadcast %cst_9 : f32 to vector<30x611xf32>
    %54 = arith.mulf %53, %52 : vector<30x611xf32>
    %cst_10 = arith.constant 0.000000e+00 : f32
    %55 = vector.broadcast %cst_10 : f32 to vector<30x611xf32>
    %56 = arith.minimumf %54, %55 : vector<30x611xf32>
    %57 = math.exp %56 : vector<30x611xf32>
    %cst_11 = arith.constant 1.000000e+00 : f32
    %58 = vector.broadcast %cst_11 : f32 to vector<30x611xf32>
    %59 = arith.subf %57, %58 : vector<30x611xf32>
    %cst_12 = arith.constant 1.67326319 : f32
    %60 = vector.broadcast %cst_12 : f32 to vector<30x611xf32>
    %61 = arith.mulf %60, %59 : vector<30x611xf32>
    %cst_13 = arith.constant 0.000000e+00 : f32
    %62 = vector.broadcast %cst_13 : f32 to vector<30x611xf32>
    %63 = arith.cmpf ogt, %54, %62 : vector<30x611xf32>
    %64 = arith.select %63, %54, %61 : vector<30x611xi1>, vector<30x611xf32>
    %cst_14 = arith.constant 1.05070102 : f32
    %65 = vector.broadcast %cst_14 : f32 to vector<30x611xf32>
    %66 = arith.mulf %65, %64 : vector<30x611xf32>
    %67 = vector.extract_strided_slice %2 {offsets = [0, 0], sizes = [30, 1], strides = [1, 1]} : vector<30x3xf32> to vector<30x1xf32>
    %68 = vector.extract_strided_slice %1 {offsets = [2, 0], sizes = [1, 611], strides = [1, 1]} : vector<6x611xf32> to vector<1x611xf32>
    %69 = vector.broadcast %67 : vector<30x1xf32> to vector<30x611xf32>
    %70 = vector.broadcast %68 : vector<1x611xf32> to vector<30x611xf32>
    %71 = arith.mulf %69, %70 : vector<30x611xf32>
    %72 = vector.broadcast %3 : vector<30x1xf32> to vector<30x611xf32>
    %73 = arith.addf %72, %71 : vector<30x611xf32>
    %74 = vector.extract_strided_slice %2 {offsets = [0, 1], sizes = [30, 1], strides = [1, 1]} : vector<30x3xf32> to vector<30x1xf32>
    %75 = vector.extract_strided_slice %1 {offsets = [3, 0], sizes = [1, 611], strides = [1, 1]} : vector<6x611xf32> to vector<1x611xf32>
    %76 = vector.broadcast %74 : vector<30x1xf32> to vector<30x611xf32>
    %77 = vector.broadcast %75 : vector<1x611xf32> to vector<30x611xf32>
    %78 = arith.mulf %76, %77 : vector<30x611xf32>
    %79 = arith.addf %73, %78 : vector<30x611xf32>
    %80 = vector.extract_strided_slice %2 {offsets = [0, 2], sizes = [30, 1], strides = [1, 1]} : vector<30x3xf32> to vector<30x1xf32>
    %81 = vector.extract_strided_slice %1 {offsets = [4, 0], sizes = [1, 611], strides = [1, 1]} : vector<6x611xf32> to vector<1x611xf32>
    %82 = vector.broadcast %80 : vector<30x1xf32> to vector<30x611xf32>
    %83 = vector.broadcast %81 : vector<1x611xf32> to vector<30x611xf32>
    %84 = arith.mulf %82, %83 : vector<30x611xf32>
    %85 = arith.addf %79, %84 : vector<30x611xf32>
    %86 = vector.extract_strided_slice %2 {offsets = [0, 0], sizes = [30, 1], strides = [1, 1]} : vector<30x3xf32> to vector<30x1xf32>
    %87 = vector.extract_strided_slice %1 {offsets = [3, 0], sizes = [1, 611], strides = [1, 1]} : vector<6x611xf32> to vector<1x611xf32>
    %88 = vector.broadcast %86 : vector<30x1xf32> to vector<30x611xf32>
    %89 = vector.broadcast %87 : vector<1x611xf32> to vector<30x611xf32>
    %90 = arith.mulf %88, %89 : vector<30x611xf32>
    %91 = vector.broadcast %3 : vector<30x1xf32> to vector<30x611xf32>
    %92 = arith.addf %91, %90 : vector<30x611xf32>
    %93 = vector.extract_strided_slice %2 {offsets = [0, 1], sizes = [30, 1], strides = [1, 1]} : vector<30x3xf32> to vector<30x1xf32>
    %94 = vector.extract_strided_slice %1 {offsets = [4, 0], sizes = [1, 611], strides = [1, 1]} : vector<6x611xf32> to vector<1x611xf32>
    %95 = vector.broadcast %93 : vector<30x1xf32> to vector<30x611xf32>
    %96 = vector.broadcast %94 : vector<1x611xf32> to vector<30x611xf32>
    %97 = arith.mulf %95, %96 : vector<30x611xf32>
    %98 = arith.addf %92, %97 : vector<30x611xf32>
    %99 = vector.extract_strided_slice %2 {offsets = [0, 2], sizes = [30, 1], strides = [1, 1]} : vector<30x3xf32> to vector<30x1xf32>
    %100 = vector.extract_strided_slice %1 {offsets = [5, 0], sizes = [1, 611], strides = [1, 1]} : vector<6x611xf32> to vector<1x611xf32>
    %101 = vector.broadcast %99 : vector<30x1xf32> to vector<30x611xf32>
    %102 = vector.broadcast %100 : vector<1x611xf32> to vector<30x611xf32>
    %103 = arith.mulf %101, %102 : vector<30x611xf32>
    %104 = arith.addf %98, %103 : vector<30x611xf32>
    %105 = arith.maximumf %85, %104 : vector<30x611xf32>
    %cst_15 = arith.constant 0.000000e+00 : f32
    %106 = vector.broadcast %cst_15 : f32 to vector<30x611xf32>
    %107 = arith.minimumf %105, %106 : vector<30x611xf32>
    %108 = math.exp %107 : vector<30x611xf32>
    %cst_16 = arith.constant 1.000000e+00 : f32
    %109 = vector.broadcast %cst_16 : f32 to vector<30x611xf32>
    %110 = arith.subf %108, %109 : vector<30x611xf32>
    %cst_17 = arith.constant 1.67326319 : f32
    %111 = vector.broadcast %cst_17 : f32 to vector<30x611xf32>
    %112 = arith.mulf %111, %110 : vector<30x611xf32>
    %cst_18 = arith.constant 0.000000e+00 : f32
    %113 = vector.broadcast %cst_18 : f32 to vector<30x611xf32>
    %114 = arith.cmpf ogt, %105, %113 : vector<30x611xf32>
    %115 = arith.select %114, %105, %112 : vector<30x611xi1>, vector<30x611xf32>
    %cst_19 = arith.constant 1.05070102 : f32
    %116 = vector.broadcast %cst_19 : f32 to vector<30x611xf32>
    %117 = arith.mulf %116, %115 : vector<30x611xf32>
    %cst_20 = arith.constant 0.000000e+00 : f32
    %118 = vector.broadcast %cst_20 : f32 to vector<30x611xf32>
    %119 = arith.minimumf %117, %118 : vector<30x611xf32>
    %120 = math.exp %119 : vector<30x611xf32>
    %cst_21 = arith.constant 1.000000e+00 : f32
    %121 = vector.broadcast %cst_21 : f32 to vector<30x611xf32>
    %122 = arith.subf %120, %121 : vector<30x611xf32>
    %cst_22 = arith.constant 1.67326319 : f32
    %123 = vector.broadcast %cst_22 : f32 to vector<30x611xf32>
    %124 = arith.mulf %123, %122 : vector<30x611xf32>
    %cst_23 = arith.constant 0.000000e+00 : f32
    %125 = vector.broadcast %cst_23 : f32 to vector<30x611xf32>
    %126 = arith.cmpf ogt, %117, %125 : vector<30x611xf32>
    %127 = arith.select %126, %117, %124 : vector<30x611xi1>, vector<30x611xf32>
    %cst_24 = arith.constant 1.05070102 : f32
    %128 = vector.broadcast %cst_24 : f32 to vector<30x611xf32>
    %129 = arith.mulf %128, %127 : vector<30x611xf32>
    %130 = vector.extract_strided_slice %66 {offsets = [0, 0], sizes = [30, 610], strides = [1, 1]} : vector<30x611xf32> to vector<30x610xf32>
    %131 = vector.extract_strided_slice %129 {offsets = [0, 0], sizes = [30, 610], strides = [1, 1]} : vector<30x611xf32> to vector<30x610xf32>
    %132 = vector.extract_strided_slice %66 {offsets = [0, 1], sizes = [30, 610], strides = [1, 1]} : vector<30x611xf32> to vector<30x610xf32>
    %133 = vector.extract_strided_slice %129 {offsets = [0, 1], sizes = [30, 610], strides = [1, 1]} : vector<30x611xf32> to vector<30x610xf32>
    %c0_25 = arith.constant 0 : index
    %c0_26 = arith.constant 0 : index
    %c0_27 = arith.constant 0 : index
    %134 = vector.load %arg4[%c0_25, %c0_26, %c0_27] : memref<3x30x30xf32, #tpu.memory_space<vmem>>, vector<1x30x30xf32>
    %135 = vector.shape_cast %134 : vector<1x30x30xf32> to vector<30x30xf32>
    %c1 = arith.constant 1 : index
    %c0_28 = arith.constant 0 : index
    %c0_29 = arith.constant 0 : index
    %136 = vector.load %arg4[%c1, %c0_28, %c0_29] : memref<3x30x30xf32, #tpu.memory_space<vmem>>, vector<1x30x30xf32>
    %137 = vector.shape_cast %136 : vector<1x30x30xf32> to vector<30x30xf32>
    %c2 = arith.constant 2 : index
    %c0_30 = arith.constant 0 : index
    %c0_31 = arith.constant 0 : index
    %138 = vector.load %arg4[%c2, %c0_30, %c0_31] : memref<3x30x30xf32, #tpu.memory_space<vmem>>, vector<1x30x30xf32>
    %139 = vector.shape_cast %138 : vector<1x30x30xf32> to vector<30x30xf32>
    %c0_32 = arith.constant 0 : index
    %c0_33 = arith.constant 0 : index
    %140 = vector.load %arg5[%c0_32, %c0_33] : memref<30x1xf32, #tpu.memory_space<vmem>>, vector<30x1xf32>
    %cst_34 = arith.constant dense<0.000000e+00> : vector<30x610xf32>
    %141 = tpu.matmul %135, %130, %cst_34 {dimension_numbers = #tpu.dot_dimension_numbers<[1], [0], [0], [1], [0, 0, 1, 1], [], []>} : vector<30x30xf32>, vector<30x610xf32>, vector<30x610xf32> -> vector<30x610xf32>
    %142 = vector.broadcast %140 : vector<30x1xf32> to vector<30x610xf32>
    %143 = arith.addf %142, %141 : vector<30x610xf32>
    %cst_35 = arith.constant dense<0.000000e+00> : vector<30x610xf32>
    %144 = tpu.matmul %137, %131, %cst_35 {dimension_numbers = #tpu.dot_dimension_numbers<[1], [0], [0], [1], [0, 0, 1, 1], [], []>} : vector<30x30xf32>, vector<30x610xf32>, vector<30x610xf32> -> vector<30x610xf32>
    %145 = arith.addf %143, %144 : vector<30x610xf32>
    %cst_36 = arith.constant dense<0.000000e+00> : vector<30x610xf32>
    %146 = tpu.matmul %139, %132, %cst_36 {dimension_numbers = #tpu.dot_dimension_numbers<[1], [0], [0], [1], [0, 0, 1, 1], [], []>} : vector<30x30xf32>, vector<30x610xf32>, vector<30x610xf32> -> vector<30x610xf32>
    %147 = arith.addf %145, %146 : vector<30x610xf32>
    %cst_37 = arith.constant dense<0.000000e+00> : vector<30x610xf32>
    %148 = tpu.matmul %135, %131, %cst_37 {dimension_numbers = #tpu.dot_dimension_numbers<[1], [0], [0], [1], [0, 0, 1, 1], [], []>} : vector<30x30xf32>, vector<30x610xf32>, vector<30x610xf32> -> vector<30x610xf32>
    %149 = vector.broadcast %140 : vector<30x1xf32> to vector<30x610xf32>
    %150 = arith.addf %149, %148 : vector<30x610xf32>
    %cst_38 = arith.constant dense<0.000000e+00> : vector<30x610xf32>
    %151 = tpu.matmul %137, %132, %cst_38 {dimension_numbers = #tpu.dot_dimension_numbers<[1], [0], [0], [1], [0, 0, 1, 1], [], []>} : vector<30x30xf32>, vector<30x610xf32>, vector<30x610xf32> -> vector<30x610xf32>
    %152 = arith.addf %150, %151 : vector<30x610xf32>
    %cst_39 = arith.constant dense<0.000000e+00> : vector<30x610xf32>
    %153 = tpu.matmul %139, %133, %cst_39 {dimension_numbers = #tpu.dot_dimension_numbers<[1], [0], [0], [1], [0, 0, 1, 1], [], []>} : vector<30x30xf32>, vector<30x610xf32>, vector<30x610xf32> -> vector<30x610xf32>
    %154 = arith.addf %152, %153 : vector<30x610xf32>
    %155 = arith.maximumf %147, %154 : vector<30x610xf32>
    %cst_40 = arith.constant 0.000000e+00 : f32
    %156 = vector.broadcast %cst_40 : f32 to vector<30x610xf32>
    %157 = arith.minimumf %155, %156 : vector<30x610xf32>
    %158 = math.exp %157 : vector<30x610xf32>
    %cst_41 = arith.constant 1.000000e+00 : f32
    %159 = vector.broadcast %cst_41 : f32 to vector<30x610xf32>
    %160 = arith.subf %158, %159 : vector<30x610xf32>
    %cst_42 = arith.constant 1.67326319 : f32
    %161 = vector.broadcast %cst_42 : f32 to vector<30x610xf32>
    %162 = arith.mulf %161, %160 : vector<30x610xf32>
    %cst_43 = arith.constant 0.000000e+00 : f32
    %163 = vector.broadcast %cst_43 : f32 to vector<30x610xf32>
    %164 = arith.cmpf ogt, %155, %163 : vector<30x610xf32>
    %165 = arith.select %164, %155, %162 : vector<30x610xi1>, vector<30x610xf32>
    %cst_44 = arith.constant 1.05070102 : f32
    %166 = vector.broadcast %cst_44 : f32 to vector<30x610xf32>
    %167 = arith.mulf %166, %165 : vector<30x610xf32>
    %cst_45 = arith.constant 0.000000e+00 : f32
    %168 = vector.broadcast %cst_45 : f32 to vector<30x610xf32>
    %169 = arith.minimumf %167, %168 : vector<30x610xf32>
    %170 = math.exp %169 : vector<30x610xf32>
    %cst_46 = arith.constant 1.000000e+00 : f32
    %171 = vector.broadcast %cst_46 : f32 to vector<30x610xf32>
    %172 = arith.subf %170, %171 : vector<30x610xf32>
    %cst_47 = arith.constant 1.67326319 : f32
    %173 = vector.broadcast %cst_47 : f32 to vector<30x610xf32>
    %174 = arith.mulf %173, %172 : vector<30x610xf32>
    %cst_48 = arith.constant 0.000000e+00 : f32
    %175 = vector.broadcast %cst_48 : f32 to vector<30x610xf32>
    %176 = arith.cmpf ogt, %167, %175 : vector<30x610xf32>
    %177 = arith.select %176, %167, %174 : vector<30x610xi1>, vector<30x610xf32>
    %cst_49 = arith.constant 1.05070102 : f32
    %178 = vector.broadcast %cst_49 : f32 to vector<30x610xf32>
    %179 = arith.mulf %178, %177 : vector<30x610xf32>
    %c0_50 = arith.constant 0 : index
    %c0_51 = arith.constant 0 : index
    %c0_52 = arith.constant 0 : index
    %180 = vector.load %arg6[%c0_50, %c0_51, %c0_52] : memref<1x30x610xf32, #tpu.memory_space<vmem>>, vector<1x30x610xf32>
    %181 = vector.shape_cast %180 : vector<1x30x610xf32> to vector<30x610xf32>
    %182 = vector.shape_cast %179 : vector<30x610xf32> to vector<1x30x610xf32>
    tpu.vector_store %arg6[%c0_50, %c0_51, %c0_52], %182 {strides = array<i32>} : memref<1x30x610xf32, #tpu.memory_space<vmem>>, vector<1x30x610xf32>,
    return
  }
  func.func @transform_0(%arg0: i32) -> (i32, i32, i32) {
    %c0_i32 = arith.constant 0 : i32
    %c0_i32_0 = arith.constant 0 : i32
    %c0_i32_1 = arith.constant 0 : i32
    return %arg0, %c0_i32, %c0_i32_0 : i32, i32, i32
  }
  func.func @transform_1(%arg0: i32) -> (i32, i32) {
    %c0_i32 = arith.constant 0 : i32
    %c0_i32_0 = arith.constant 0 : i32
    %c0_i32_1 = arith.constant 0 : i32
    return %c0_i32, %c0_i32_0 : i32, i32
  }
  func.func @transform_2(%arg0: i32) -> (i32, i32) {
    %c0_i32 = arith.constant 0 : i32
    %c0_i32_0 = arith.constant 0 : i32
    %c0_i32_1 = arith.constant 0 : i32
    return %c0_i32, %c0_i32_0 : i32, i32
  }
  func.func @transform_3(%arg0: i32) -> (i32, i32, i32) {
    %c0_i32 = arith.constant 0 : i32
    %c0_i32_0 = arith.constant 0 : i32
    %c0_i32_1 = arith.constant 0 : i32
    %c0_i32_2 = arith.constant 0 : i32
    return %c0_i32, %c0_i32_0, %c0_i32_1 : i32, i32, i32
  }
  func.func @transform_4(%arg0: i32) -> (i32, i32) {
    %c0_i32 = arith.constant 0 : i32
    %c0_i32_0 = arith.constant 0 : i32
    %c0_i32_1 = arith.constant 0 : i32
    return %c0_i32, %c0_i32_0 : i32, i32
  }
  func.func @transform_5(%arg0: i32) -> (i32, i32, i32) {
    %c0_i32 = arith.constant 0 : i32
    %c0_i32_0 = arith.constant 0 : i32
    %c0_i32_1 = arith.constant 0 : i32
    return %arg0, %c0_i32, %c0_i32_0 : i32, i32, i32
  }
}

module attributes {stable_mosaic.version = 11 : i64} {
  func.func @_fc2_kernel(%arg0: memref<4x25856xf32, #tpu.memory_space<vmem>>, %arg1: memref<32x25856xf32, #tpu.memory_space<vmem>>, %arg2: memref<1x32xf32, #tpu.memory_space<vmem>>, %arg3: memref<4x32xf32, #tpu.memory_space<vmem>>) attributes {dimension_semantics = [], scalar_prefetch = 0 : i64, scratch_operands = 0 : i64, tpu.core_type = #tpu.core_type<tc>} {
    %c0 = arith.constant 0 : index
    %c0_0 = arith.constant 0 : index
    %0 = vector.load %arg0[%c0, %c0_0] : memref<4x25856xf32, #tpu.memory_space<vmem>>, vector<4x25856xf32>
    %c0_1 = arith.constant 0 : index
    %c0_2 = arith.constant 0 : index
    %1 = vector.load %arg1[%c0_1, %c0_2] : memref<32x25856xf32, #tpu.memory_space<vmem>>, vector<32x25856xf32>
    %cst = arith.constant dense<0.000000e+00> : vector<4x32xf32>
    %2 = tpu.matmul %0, %1, %cst {dimension_numbers = #tpu.dot_dimension_numbers<[1], [1], [0], [0], [0, 0, 1, 0], [], []>} : vector<4x25856xf32>, vector<32x25856xf32>, vector<4x32xf32> -> vector<4x32xf32>
    %c0_3 = arith.constant 0 : index
    %c0_4 = arith.constant 0 : index
    %3 = vector.load %arg2[%c0_3, %c0_4] : memref<1x32xf32, #tpu.memory_space<vmem>>, vector<1x32xf32>
    %4 = vector.broadcast %3 : vector<1x32xf32> to vector<4x32xf32>
    %5 = arith.addf %2, %4 : vector<4x32xf32>
    %c0_5 = arith.constant 0 : index
    %c0_6 = arith.constant 0 : index
    %6 = vector.load %arg3[%c0_5, %c0_6] : memref<4x32xf32, #tpu.memory_space<vmem>>, vector<4x32xf32>
    tpu.vector_store %arg3[%c0_5, %c0_6], %5 {strides = array<i32>} : memref<4x32xf32, #tpu.memory_space<vmem>>, vector<4x32xf32>,
    return
  }
}

</mosaic_0001>

<bundles_post_ra>
// kernel: siamese_forward.4
= control target key start
LH: loop header
LB: loop body
LE: loop exit
PB: predicated region body
PF: predicated region fallthrough
CT: control target
= control target key end

     0   :  { %10 = vsyncpa [#allocation3], 0  ;;  %s533_s0 = inlined_call_operand.vmem [shape: f32[4,34], index: 0, kind: input, shape index: {}]   ;;  %s534_s1 = inlined_call_operand.hbm [shape: f32[34,32], index: 1, kind: input, shape index: {}]   ;;  %s535_s2 = inlined_call_operand.hbm [shape: f32[1,32], index: 2, kind: input, shape index: {}]   ;;  %s536_s3 = inlined_call_operand.hbm [shape: f32[32,5], index: 3, kind: input, shape index: {}]   ;;  %s537_s4 = inlined_call_operand.hbm [shape: f32[1,5], index: 4, kind: input, shape index: {}]   ;;  %s538_s5 = inlined_call_operand.vmem [shape: f32[4,5], index: 5, kind: output, shape index: {}]  }
   0x1   :  { %11 = vsyncpa [#allocation5], 0 }
   0x2   :  { %12 = vsyncpa [#allocation8], 0  ;;  %s433_s18 = smov [#allocation4]   ;;  %s434_s20 = smov [#allocation2]  }
   0x3   :  { %s33_s19 = sshll.u32 %s433_s18, 4  ;;  %s20_s21 = sshll.u32 %s434_s20, 4  ;;  %s34_s19 = int_to_ptr.vmem [resolvable:$true] %s33_s19  ;;  %s472_s21 = int_to_ptr.vmem [resolvable:$true] %s20_s21 }
   0x4   :  { %s339_s24 = scalar_lea.hbm %s535_s2, 16 }
   0x5   :  { %p340_p0 = scmp.ne.s32.totalorder %s535_s2, %s339_s24  ;;  %p343_p1 = scmp.lt.u32.totalorder %s339_s24, %s535_s2 }
   0x7   :  { %p345_p2 = pnand %p343_p1, %p340_p0 }
   0x9   :  { %348 = shalt.err (!%p345_p2)
}
   0xa   :  { %s349_s29 = scalar_lea.vmem %s34_s19, 16  ;;  %s353_s30 = scalar_lea.vmem %s34_s19, 32 }
   0xb   :  { %p350_p3 = scmp.ne.s32.totalorder %s34_s19, %s349_s29  ;;  %p354_p4 = scmp.lt.s32.totalorder %s34_s19, %s34_s19 }
   0xc   :  { %p355_p5 = scmp.lt.s32.totalorder %s353_s30, %s349_s29 }
   0xe   :  { %p356_p6 = por %p355_p5, %p354_p4 }
  0x10   :  { %p357_p7 = pnand %p356_p6, %p350_p3 }
  0x12   :  { %360 = shalt.err (!%p357_p7)
}
  0x13   :  { %36 = dma.hbm_to_vmem [thread:$0]  %s535_s2, 16, %s34_s19, [#allocation5]  }
  0x14   :  { %s361_s10 = scalar_lea.hbm %s534_s1, 640 }
  0x15   :  { %p362_p8 = scmp.ne.s32.totalorder %s534_s1, %s361_s10  ;;  %p365_p9 = scmp.lt.u32.totalorder %s361_s10, %s534_s1 }
  0x17   :  { %p367_p10 = pnand %p365_p9, %p362_p8 }
  0x19   :  { %370 = shalt.err (!%p367_p10)
}
  0x1a   :  { %s371_s15 = scalar_lea.vmem %s472_s21, 640  ;;  %p376_p12 = scmp.lt.s32.totalorder %s472_s21, %s472_s21 }
  0x1b   :  { %p372_p11 = scmp.ne.s32.totalorder %s472_s21, %s371_s15  ;;  %p377_p13 = scmp.lt.s32.totalorder %s371_s15, %s371_s15 }
  0x1d   :  { %p378_p0 = por %p377_p13, %p376_p12 }
  0x1f   :  { %p379_p1 = pnand %p378_p0, %p372_p11 }
  0x21   :  { %382 = shalt.err (!%p379_p1)
}
  0x22   :  { %s435_s2 = smov 128   ;;  %s436_s16 = smov 8  }
  0x23   :  { %26 = dma.hbm_to_vmem [thread:$0]  %s534_s1, 640, %s472_s21, [#allocation3], %s435_s2, %s435_s2, %s436_s16  }
  0x24   :  { %s437_s19 = smov [#allocation6]   ;;  %s438_s22 = smov [#allocation7]  }
  0x25   :  { %s42_s20 = sshll.u32 %s437_s19, 4  ;;  %s55_s23 = sshll.u32 %s438_s22, 4  ;;  %s43_s20 = int_to_ptr.vmem [resolvable:$true] %s42_s20  ;;  %s56_s23 = int_to_ptr.vmem [resolvable:$true] %s55_s23 }
  0x26   :  { %s383_s26 = scalar_lea.hbm %s536_s3, 512 }
  0x27   :  { %p384_p2 = scmp.ne.s32.totalorder %s536_s3, %s383_s26  ;;  %p387_p3 = scmp.lt.u32.totalorder %s383_s26, %s536_s3 }
  0x29   :  { %p389_p4 = pnand %p387_p3, %p384_p2 }
  0x2b   :  { %392 = shalt.err (!%p389_p4)
}
  0x2c   :  { %s393_s1 = scalar_lea.vmem %s43_s20, 512  ;;  %p398_p6 = scmp.lt.s32.totalorder %s43_s20, %s43_s20 }
  0x2d   :  { %p394_p5 = scmp.ne.s32.totalorder %s43_s20, %s393_s1  ;;  %p399_p7 = scmp.lt.s32.totalorder %s393_s1, %s393_s1 }
  0x2f   :  { %p400_p8 = por %p399_p7, %p398_p6 }
  0x31   :  { %p401_p9 = pnand %p400_p8, %p394_p5 }
  0x33   :  { %404 = shalt.err (!%p401_p9)
}
  0x34   :  { %48 = dma.hbm_to_vmem [thread:$0]  %s536_s3, 512, %s43_s20, [#allocation5], %s435_s2, %s435_s2, %s436_s16  }
  0x35   :  { %s405_s9 = scalar_lea.hbm %s537_s4, 16 }
  0x36   :  { %p406_p10 = scmp.ne.s32.totalorder %s537_s4, %s405_s9  ;;  %p409_p11 = scmp.lt.u32.totalorder %s405_s9, %s537_s4 }
  0x38   :  { %p411_p12 = pnand %p409_p11, %p406_p10 }
  0x3a   :  { %414 = shalt.err (!%p411_p12)
}
  0x3b   :  { %s415_s14 = scalar_lea.vmem %s56_s23, 16  ;;  %s419_s15 = scalar_lea.vmem %s56_s23, 32 }
  0x3c   :  { %p416_p13 = scmp.ne.s32.totalorder %s56_s23, %s415_s14  ;;  %p420_p0 = scmp.lt.s32.totalorder %s56_s23, %s56_s23 }
  0x3d   :  { %p421_p1 = scmp.lt.s32.totalorder %s419_s15, %s415_s14 }
  0x3f   :  { %p422_p2 = por %p421_p1, %p420_p0 }
  0x41   :  { %p423_p3 = pnand %p422_p2, %p416_p13 }
  0x43   :  { %426 = shalt.err (!%p423_p3)
}
  0x44   :  { %58 = dma.hbm_to_vmem [thread:$0]  %s537_s4, 16, %s56_s23, [#allocation8]  }
  0x45   :  { %427 = dma.done.wait [#allocation3], 640  }
  0x46   :  { %428 = vsyncadd [#allocation3], 4294966656 }
  0x47   :  { %429 = dma.done.wait [#allocation5], 528  }
  0x48   :  { %430 = vsyncadd [#allocation5], 4294966768 }
  0x49   :  { %431 = dma.done.wait [#allocation8], 16  }
  0x4a   :  { %432 = vsyncadd [#allocation8], 4294967280  ;;  %v439_v0 = vmov 0.0|0.0   ;;  %vm440_vm0 = vmmov 0   ;;  %v441_v1 = vmov 0.0   ;;  %v72_v2 = vld [vmem:[#allocation2] sm:$0xff] }
  0x4b   :  { %314 = vmatprep.subr.bf16.mxu0 %v439_v0  ;;  %300 = vmatprep.mubr.msk.f32.mxu0 %vm440_vm0, %v441_v1  ;;  %v73_v3 = vld [vmem:[#allocation2 + $0x8] sm:$0xff]  ;;  %v74_v4 = vld [vmem:[#allocation2 + $0x10] sm:$0xff]  ;;  %v75_v6 = vld [vmem:[#allocation2 + $0x18] sm:$0xff]  ;;  %vm88_vm1 = vcmask 1041408   ;;  %vm84_vm2 = vcmask 277504   ;;  %vm181_vm4 = vcmask 261120  }
  0x4c   :  { %320 = vmatprep.subr.bf16.mxu1 %v439_v0  ;;  %311 = vmatprep.mubr.msk.f32.mxu1 %vm440_vm0, %v441_v1  ;;  %v315_v5 = vpack.c.bf16 %v73_v3, %v72_v2  ;;  %v318_v7 = vpack.c.bf16 %v75_v6, %v74_v4  ;;  %v76_v8 = vld [vmem:[#allocation2 + $0x20] sm:$0x3]  ;;  %v170_v10 = vld [vmem:[#allocation6] sm:$0xff]  ;;  %v171_v11 = vld [vmem:[#allocation6 + $0x8] sm:$0xff]  ;;  %vm263_vm6 = vcmask 35840  }
  0x4d   :  { %v71_v9 = vld [vmem:[%s533_s0] sm:$0xf]  ;;  %v321_v12 = vpack.c.bf16 %v171_v11, %v170_v10  ;;  %v272_v16 = vld [vmem:[#allocation4] ss:$0 sm:$0xff]  ;;  %v276_v27 = vld [vmem:[#allocation7] ss:$0 sm:$0xff] }
  0x4e   :  { %316 = vmatpush3.bf16.msra.mxu0 %v315_v5  ;;  %v172_v13 = vld [vmem:[#allocation6 + $0x10] sm:$0xff]  ;;  %v173_v14 = vld [vmem:[#allocation6 + $0x18] sm:$0xff] }
  0x4f   :  { %317 = vmatprep.subr.bf16.mxu0 %v439_v0  ;;  %322 = vmatpush3.bf16.msra.mxu1 %v321_v12  ;;  %v324_v15 = vpack.c.bf16 %v173_v14, %v172_v13 }
  0x50   :  { %323 = vmatprep.subr.bf16.mxu1 %v439_v0 }
  0x52   :  { %319 = vmatpush3.bf16.msra.mxu0 %v318_v7 }
  0x53   :  { %298 = vmatprep.subr.mxu0 %v441_v1  ;;  %325 = vmatpush3.bf16.msra.mxu1 %v324_v15 }
  0x56   :  { %299 = vmatpush3.msk.msra.mxu0 %vm88_vm1, %v76_v8 }
  0x57   :  { %301 = vmatmul.mubr.msk.f32.vlgmr.msra.gmra.mrb[0].mxu0 %vm84_vm2, %v71_v9 }
 0x12a   :  { %v158_v17 = vpop.f32.mrb[0].mxu0 }
 0x12b   :  { %v159_v18 = vadd.f32 %v272_v16, %v158_v17  ;;  %v302_v19 = vpop.f32.mrb[1].mxu0 }
 0x12d   :  { %v162_v20 = vmin.f32 %v159_v18, 0.0  ;;  %vm167_vm3 = vcmp.gt.f32.partialorder %v159_v18, 0.0 }
 0x12f   :  { %v163_v21 = vmul.f32 1.442695, %v162_v20 }
 0x131   :  { %335 = vpow2.f32 %v163_v21 }
 0x13b   :  { %v336_v22 = vpop.eup %335 }
 0x13c   :  { %v275_v23 = vadd.f32 -1.0, %v336_v22 }
 0x13e   :  { %v166_v24 = vmul.f32 1.6732632, %v275_v23 }
 0x140   :  { %v168_v25 = vsel %vm167_vm3, %v159_v18, %v166_v24 }
 0x141   :  { %v169_v26 = vmul.f32 1.050701, %v168_v25 }
 0x143   :  { %312 = vmatmul.mubr.msk.f32.vlgmr.msra.gmra.mrb[0].mxu1 %vm181_vm4, %v169_v26 }
 0x216   :  { %v251_v28 = vpop.f32.mrb[0].mxu1 }
 0x217   :  { %v252_v29 = vadd.f32 %v276_v27, %v251_v28  ;;  %v313_v30 = vpop.f32.mrb[1].mxu1 }
 0x219   :  { %v255_v31 = vmin.f32 %v252_v29, 0.0  ;;  %vm260_vm5 = vcmp.gt.f32.partialorder %v252_v29, 0.0 }
 0x21b   :  { %v256_v32 = vmul.f32 1.442695, %v255_v31 }
 0x21d   :  { %337 = vpow2.f32 %v256_v32 }
 0x227   :  { %v338_v33 = vpop.eup %337 }
 0x228   :  { %v278_v34 = vadd.f32 -1.0, %v338_v33 }
 0x22a   :  { %v259_v35 = vmul.f32 1.6732632, %v278_v34 }
 0x22c   :  { %v261_v36 = vsel %vm260_vm5, %v252_v29, %v259_v35 }
 0x22d   :  { %v262_v37 = vmul.f32 1.050701, %v261_v36 }
 0x22f   :  { %264 = vst.msk [vmem:[%s538_s5] sm:$0xf] %vm263_vm6, %v262_v37 }
 0x230   :  { %269 = vsyncpa [#allocation3], 1 }
 0x231   :  { %270 = vsyncpa [#allocation5], 1 }
 0x232   :  { %271 = vsyncpa [#allocation8], 1 }

// kernel: siamese_forward.6
= control target key start
LH: loop header
LB: loop body
LE: loop exit
PB: predicated region body
PF: predicated region fallthrough
CT: control target
= control target key end

     0   :  { %8 = vsyncpa [#allocation3], 0  ;;  %s1132_s0 = inlined_call_operand.vmem [shape: f32[4,4,249], index: 0, kind: input, shape index: {}]   ;;  %s1133_s1 = inlined_call_operand.hbm [shape: f32[30,3], index: 1, kind: input, shape index: {}]   ;;  %s1134_s2 = inlined_call_operand.hbm [shape: f32[30,1], index: 2, kind: input, shape index: {}]   ;;  %s1135_s3 = inlined_call_operand.vmem [shape: f32[4,30,249], index: 3, kind: output, shape index: {}]  }
   0x1   :  { %9 = vsyncpa [#allocation5], 0  ;;  %s878_s12 = smov 0  }
   0x2 LB: > { %s884_s13 = sadd.s32 4294967295, %s849_s12   ;;  %p676_p0 = scmp.ge.s32.totalorder %s849_s12, 1  ;;  %s849_s12 = sphi %s878_s12, %s15_s12  }
   0x3   : > { %p114_p1 = scmp.lt.s32.totalorder %s849_s12, 5  ;;  %s851_s14 = smov [#allocation2]  }
   0x4   : > { %s126_s15 = sshll.u32 %s851_s14, 4  ;;  %p1136_p3 = scmp.eq.s32.totalorder %s884_s13, 0  ;;  %s127_s15 = int_to_ptr.vmem [resolvable:$true] %s126_s15 }
   0x5   : > { %p888_p2 = pnand %p676_p0, %p114_p1  ;;  %s852_s17 = smov [#allocation4]  }
   0x6   : > { %s139_s18 = sshll.u32 %s852_s17, 4  ;;  %s779_s22 = scalar_lea.hbm %s1133_s1, 512  ;;  %s901_s18 = int_to_ptr.vmem [resolvable:$true] %s139_s18 }
   0x7   : > { %s1138_s16 = scalar_select %p888_p2, 1, 0 }
   0x8   : > { %p715_p4 = pneg %p888_p2  ;;  %p780_p6 = scmp.ne.s32.totalorder %s1133_s1, %s779_s22 }
   0x9   : > { %p786_p10 = scmp.lt.u32.totalorder %s779_s22, %s1133_s1 }
   0xa   : > { %p897_p5 = pnand %p1136_p3, %p715_p4 }
   0xc   : > { %p781_p7 = pneg %p897_p5 }
   0xe   : > { %p782_p8 = pnand %p781_p7, %p780_p6 }
  0x10   : > { %p783_p9 = pneg %p782_p8 }
  0x12   : > { %p788_p11 = pnand %p786_p10, %p783_p9 }
  0x14   : > { %791 = shalt.err (!%p788_p11)
}
  0x15   : > { %s792_s27 = scalar_lea.vmem %s127_s15, 512  ;;  %p800_p1 = scmp.lt.s32.totalorder %s127_s15, %s127_s15 }
  0x16   : > { %p793_p12 = scmp.ne.s32.totalorder %s127_s15, %s792_s27  ;;  %p801_p4 = scmp.lt.s32.totalorder %s792_s27, %s792_s27 }
  0x18   : > { %p795_p13 = pnand %p793_p12, %p781_p7  ;;  %p802_p3 = por %p801_p4, %p800_p1 }
  0x1a   : > { %p796_p0 = pneg %p795_p13 }
  0x1c   : > { %p803_p2 = pnand %p802_p3, %p796_p0 }
  0x1e   : > { %806 = shalt.err (!%p803_p2)
}
  0x1f   : > { %s853_s28 = smov 128   ;;  %s854_s29 = smov 8  }
  0x20   : > { %718 = dma.hbm_to_vmem [thread:$0]  (!%p897_p5), %s1133_s1, 512, %s127_s15, [#allocation3], %s853_s28, %s853_s28, %s854_s29  }
  0x21   : > { %s807_s7 = scalar_lea.hbm %s1134_s2, 512 }
  0x22   : > { %p808_p6 = scmp.ne.s32.totalorder %s1134_s2, %s807_s7  ;;  %p814_p8 = scmp.lt.u32.totalorder %s807_s7, %s1134_s2 }
  0x24   : > { %p810_p2 = pnand %p808_p6, %p781_p7 }
  0x26   : > { %p811_p3 = pneg %p810_p2 }
  0x28   : > { %p816_p9 = pnand %p814_p8, %p811_p3 }
  0x2a   : > { %819 = shalt.err (!%p816_p9)
}
  0x2b   : > { %s820_s14 = scalar_lea.vmem %s901_s18, 512  ;;  %p828_p13 = scmp.lt.s32.totalorder %s901_s18, %s901_s18 }
  0x2c   : > { %p821_p10 = scmp.ne.s32.totalorder %s901_s18, %s820_s14  ;;  %p829_p0 = scmp.lt.s32.totalorder %s820_s14, %s820_s14 }
  0x2e   : > { %p823_p11 = pnand %p821_p10, %p781_p7  ;;  %p830_p1 = por %p829_p0, %p828_p13 }
  0x30   : > { %p824_p12 = pneg %p823_p11 }
  0x32   : > { %p831_p4 = pnand %p830_p1, %p824_p12 }
  0x34   : > { %834 = shalt.err (!%p831_p4)
}
  0x35   : > { %721 = dma.hbm_to_vmem [thread:$0]  (!%p897_p5), %s1134_s2, 512, %s901_s18, [#allocation5], %s853_s28, %s853_s28, %s854_s29  }
  0x36   : > { %p1140_p6 = scmp.ne.s32.totalorder %s1138_s16, 0 }
  0x37   : > { %p1141_p2 = scmp.eq.s32.totalorder (!%p1140_p6), %s884_s13, 0 }
  0x38   : > { %163 = sbr.rel (%p1140_p6) target bundleno = 284 (0x11c), region = 32 }
  0x3f   : > { %840 = dma.done.wait (%p1141_p2), [#allocation3], 512   ;;  %p1142_p7 = pmov %p1141_p2 }
  0x40   : > { %p1143_p3 = pmov %p1141_p2 }
  0x41   : > { %842 = vsyncadd (%p1142_p7), [#allocation3], 4294966784 }
  0x42   : > { %844 = dma.done.wait (%p1143_p3), [#allocation5], 512   ;;  %p1144_p8 = pmov %p1141_p2 }
  0x43   : > { %v855_v0 = vmov 0   ;;  %v204_v1 = vld [vmem:[#allocation2 + $0x10] sm:$0xff]  ;;  %v202_v2 = vld [vmem:[#allocation2] sm:$0xff]  ;;  %v205_v3 = vld [vmem:[#allocation2 + $0x18] sm:$0x3f]  ;;  %v856_v9 = vmov 1   ;;  %v231_v11 = vlaneseq }
  0x44   : > { %846 = vsyncadd (%p1144_p8), [#allocation5], 4294966784  ;;  %742 = vset.pattern.permute.xlu1 %v855_v0  ;;  %741 = vset.pattern.permute.xlu0 %v855_v0  ;;  %v203_v4 = vld [vmem:[#allocation2 + $0x8] sm:$0xff]  ;;  %v206_v6 = vld [vmem:[#allocation4] sm:$0xff]  ;;  %v857_v10 = vmov 2   ;;  %p191_p5 = scmp.lt.s32.totalorder %s884_s13, 3 }
  0x45   : > { %222 = vperm.xlu1 %742, %v204_v1   ;;  %212 = vperm.xlu0 %741, %v202_v2   ;;  %v207_v5 = vld [vmem:[#allocation4 + $0x8] sm:$0xff]  ;;  %v209_v7 = vld [vmem:[#allocation4 + $0x18] sm:$0x3f]  ;;  %v208_v8 = vld [vmem:[#allocation4 + $0x10] sm:$0xff]  ;;  %v232_v12 = vshrl.u32 %v231_v11, 7  ;;  %vm588_vm9 = vcmask 990208  }
  0x46   : > { %s1146_s13 = smov (!%p191_p5, %s884_s13), 3 }
  0x47   : > { %s705_s16 = sshll.u32 %s1146_s13, 3  ;;  %v233_v15 = vsub.s32 0, %v232_v12  ;;  %v237_v16 = vsub.s32 4, %v232_v12  ;;  %v303_v17 = vsub.s32 1, %v232_v12  ;;  %v307_v18 = vsub.s32 5, %v232_v12  ;;  %s706_s21 = sshll.u32 %s1146_s13, 6 }
  0x48   : > { %s195_s20 = scalar_lea.vmem %s1132_s0, %s705_s16  ;;  %v353_v20 = vsub.s32 2, %v232_v12  ;;  %v357_v21 = vsub.s32 6, %v232_v12  ;;  %v419_v22 = vsub.s32 3, %v232_v12  ;;  %v423_v23 = vsub.s32 7, %v232_v12  ;;  %s1101_s24 = scalar_lea.vmem %s1135_s3, %s706_s21 }
  0x49   : > { %227 = vperm.xlu1 %742, %v205_v3   ;;  %217 = vperm.xlu0 %741, %v203_v4   ;;  %v201_v19 = vld [vmem:[%s195_s20] sm:$0xff] }
  0x4a   : > { %v234_v26 = vrot.slane %v201_v19, %v233_v15  ;;  %v238_v27 = vrot.slane %v201_v19, %v237_v16  ;;  %v304_v28 = vrot.slane %v201_v19, %v303_v17  ;;  %v308_v29 = vrot.slane %v201_v19, %v307_v18 }
  0x4b   : > { %v354_v30 = vrot.slane %v201_v19, %v353_v20  ;;  %v358_v31 = vrot.slane %v201_v19, %v357_v21  ;;  %v420_v32 = vrot.slane %v201_v19, %v419_v22  ;;  %v424_v33 = vrot.slane %v201_v19, %v423_v23 }
  0x4c   : > { %v244_v36 = vrot.slane %v234_v26, %v233_v15  ;;  %v248_v37 = vrot.slane %v238_v27, %v233_v15  ;;  %v968_v38 = vrot.slane %v304_v28, %v303_v17  ;;  %v970_v39 = vrot.slane %v308_v29, %v303_v17 }
  0x4d   : > { %264 = vperm.xlu1 %742, %v207_v5   ;;  %259 = vperm.xlu0 %741, %v206_v6   ;;  %v972_v40 = vrot.slane %v354_v30, %v353_v20  ;;  %v974_v41 = vrot.slane %v358_v31, %v353_v20  ;;  %v976_v42 = vrot.slane %v420_v32, %v419_v22 }
  0x4e   : > { %v978_v43 = vrot.slane %v424_v33, %v419_v22 }
  0x51   : > { %274 = vperm.xlu1 %742, %v209_v7   ;;  %269 = vperm.xlu0 %741, %v208_v8  }
  0x55   : > { %744 = vset.pattern.permute.xlu1 %v856_v9  ;;  %743 = vset.pattern.permute.xlu0 %v856_v9 }
  0x56   : > { %290 = vperm.xlu1 %744, %v203_v4   ;;  %286 = vperm.xlu0 %743, %v202_v2  }
  0x5a   : > { %294 = vperm.xlu1 %744, %v204_v1   ;;  %298 = vperm.xlu0 %743, %v205_v3  }
  0x5e   : > { %745 = vset.pattern.permute.xlu1 %v857_v10  ;;  %746 = vset.pattern.permute.xlu0 %v857_v10 }
  0x5f   : > { %336 = vperm.xlu1 %745, %v202_v2   ;;  %340 = vperm.xlu0 %746, %v203_v4  }
  0x63   : > { %344 = vperm.xlu1 %745, %v204_v1  }
  0x67   : > { %348 = vperm.xlu1 %745, %v205_v3  }
  0xc4   : > { %v223_v13 = vpop.permute.xlu1 %222  ;;  %v213_v14 = vpop.permute.xlu0 %212 }
  0xc5   : > { %v249_v50 = vmul.f32 %v244_v36, %v213_v14  ;;  %v250_v51 = vmul.f32 %v248_v37, %v213_v14  ;;  %v385_v52 = vmul.f32 %v968_v38, %v213_v14  ;;  %v386_v53 = vmul.f32 %v970_v39, %v213_v14 }
  0xc6   : > { %v253_v54 = vmul.f32 %v244_v36, %v223_v13  ;;  %v254_v55 = vmul.f32 %v248_v37, %v223_v13  ;;  %v389_v56 = vmul.f32 %v968_v38, %v223_v13  ;;  %v390_v57 = vmul.f32 %v970_v39, %v223_v13 }
  0xc8   : > { %v228_v24 = vpop.permute.xlu1 %227  ;;  %v218_v25 = vpop.permute.xlu0 %217 }
  0xc9   : > { %v251_v44 = vmul.f32 %v244_v36, %v218_v25  ;;  %v252_v45 = vmul.f32 %v248_v37, %v218_v25  ;;  %v387_v46 = vmul.f32 %v968_v38, %v218_v25  ;;  %v388_v47 = vmul.f32 %v970_v39, %v218_v25 }
  0xca   : > { %v255_v58 = vmul.f32 %v244_v36, %v228_v24  ;;  %v256_v59 = vmul.f32 %v248_v37, %v228_v24  ;;  %v391_v60 = vmul.f32 %v968_v38, %v228_v24  ;;  %v392_v61 = vmul.f32 %v970_v39, %v228_v24 }
  0xcc   : > { %v265_v34 = vpop.permute.xlu1 %264  ;;  %v260_v35 = vpop.permute.xlu0 %259 }
  0xcd   : > { %v279_v62 = vadd.f32 %v265_v34, %v251_v44  ;;  %v280_v63 = vadd.f32 %v265_v34, %v252_v45  ;;  %v395_v0 = vadd.f32 %v387_v46, %v265_v34  ;;  %v396_v1 = vadd.f32 %v388_v47, %v265_v34 }
  0xce   : > { %v277_v2 = vadd.f32 %v260_v35, %v249_v50  ;;  %v278_v3 = vadd.f32 %v260_v35, %v250_v51  ;;  %v393_v4 = vadd.f32 %v385_v52, %v260_v35  ;;  %v394_v5 = vadd.f32 %v386_v53, %v260_v35 }
  0xd0   : > { %v275_v48 = vpop.permute.xlu1 %274  ;;  %v270_v49 = vpop.permute.xlu0 %269 }
  0xd1   : > { %v988_v8 = vadd.f32 %v275_v48, %v255_v58  ;;  %v990_v9 = vadd.f32 %v275_v48, %v256_v59  ;;  %v992_v10 = vadd.f32 %v391_v60, %v275_v48  ;;  %v994_v11 = vadd.f32 %v392_v61, %v275_v48 }
  0xd2   : > { %v281_v20 = vadd.f32 %v270_v49, %v253_v54  ;;  %v282_v21 = vadd.f32 %v270_v49, %v254_v55  ;;  %v397_v22 = vadd.f32 %v389_v56, %v270_v49  ;;  %v398_v23 = vadd.f32 %v390_v57, %v270_v49 }
  0xd5   : > { %v291_v6 = vpop.permute.xlu1 %290  ;;  %v287_v7 = vpop.permute.xlu0 %286 }
  0xd6   : > { %v321_v12 = vmul.f32 %v968_v38, %v291_v6  ;;  %v322_v13 = vmul.f32 %v970_v39, %v291_v6  ;;  %v403_v14 = vmul.f32 %v972_v40, %v291_v6  ;;  %v404_v15 = vmul.f32 %v974_v41, %v291_v6 }
  0xd7   : > { %v319_v16 = vmul.f32 %v968_v38, %v287_v7  ;;  %v320_v17 = vmul.f32 %v970_v39, %v287_v7  ;;  %v401_v18 = vmul.f32 %v972_v40, %v287_v7  ;;  %v402_v19 = vmul.f32 %v974_v41, %v287_v7 }
  0xd8   : > { %v329_v30 = vadd.f32 %v321_v12, %v279_v62  ;;  %v330_v31 = vadd.f32 %v322_v13, %v280_v63  ;;  %v411_v32 = vadd.f32 %v403_v14, %v395_v0  ;;  %v412_v33 = vadd.f32 %v404_v15, %v396_v1 }
  0xd9   : > { %v295_v24 = vpop.permute.xlu1 %294  ;;  %v299_v25 = vpop.permute.xlu0 %298  ;;  %v327_v34 = vadd.f32 %v319_v16, %v277_v2  ;;  %v328_v35 = vadd.f32 %v320_v17, %v278_v3  ;;  %v409_v36 = vadd.f32 %v401_v18, %v393_v4  ;;  %v410_v37 = vadd.f32 %v402_v19, %v394_v5 }
  0xda   : > { %v323_v26 = vmul.f32 %v968_v38, %v295_v24  ;;  %v324_v27 = vmul.f32 %v970_v39, %v295_v24  ;;  %v405_v28 = vmul.f32 %v972_v40, %v295_v24  ;;  %v406_v29 = vmul.f32 %v974_v41, %v295_v24 }
  0xdb   : > { %v325_v44 = vmul.f32 %v968_v38, %v299_v25  ;;  %v326_v45 = vmul.f32 %v970_v39, %v299_v25  ;;  %v407_v46 = vmul.f32 %v972_v40, %v299_v25  ;;  %v408_v47 = vmul.f32 %v974_v41, %v299_v25 }
  0xdc   : > { %v331_v48 = vadd.f32 %v323_v26, %v281_v20  ;;  %v332_v49 = vadd.f32 %v324_v27, %v282_v21  ;;  %v413_v50 = vadd.f32 %v405_v28, %v397_v22  ;;  %v414_v51 = vadd.f32 %v406_v29, %v398_v23 }
  0xdd   : > { %v333_v19 = vadd.f32 %v325_v44, %v988_v8  ;;  %v334_v20 = vadd.f32 %v326_v45, %v990_v9  ;;  %v415_v24 = vadd.f32 %v407_v46, %v992_v10  ;;  %v416_v25 = vadd.f32 %v408_v47, %v994_v11 }
  0xde   : > { %v337_v52 = vpop.permute.xlu1 %336  ;;  %v341_v53 = vpop.permute.xlu0 %340 }
  0xdf   : > { %v369_v54 = vmul.f32 %v972_v40, %v337_v52  ;;  %v370_v55 = vmul.f32 %v974_v41, %v337_v52  ;;  %v435_v56 = vmul.f32 %v976_v42, %v337_v52  ;;  %v436_v38 = vmul.f32 %v978_v43, %v337_v52 }
  0xe0   : > { %v371_v39 = vmul.f32 %v972_v40, %v341_v53  ;;  %v372_v57 = vmul.f32 %v974_v41, %v341_v53  ;;  %v437_v58 = vmul.f32 %v976_v42, %v341_v53  ;;  %v438_v59 = vmul.f32 %v978_v43, %v341_v53 }
  0xe1   : > { %v377_v60 = vadd.f32 %v369_v54, %v327_v34  ;;  %v378_v61 = vadd.f32 %v370_v55, %v328_v35  ;;  %v443_v62 = vadd.f32 %v435_v56, %v409_v36  ;;  %v444_v63 = vadd.f32 %v436_v38, %v410_v37 }
  0xe2   : > { %v379_v0 = vadd.f32 %v371_v39, %v329_v30  ;;  %v380_v1 = vadd.f32 %v372_v57, %v330_v31  ;;  %v445_v2 = vadd.f32 %v437_v58, %v411_v32  ;;  %v446_v3 = vadd.f32 %v438_v59, %v412_v33  ;;  %v345_v4 = vpop.permute.xlu1 %344 }
  0xe3   : > { %v1020_v5 = vmax.f32 %v377_v60, %v443_v62  ;;  %v1022_v6 = vmax.f32 %v378_v61, %v444_v63  ;;  %v373_v7 = vmul.f32 %v972_v40, %v345_v4  ;;  %v374_v12 = vmul.f32 %v974_v41, %v345_v4 }
  0xe4   : > { %v1026_v13 = vmax.f32 %v379_v0, %v445_v2  ;;  %v1028_v14 = vmax.f32 %v380_v1, %v446_v3  ;;  %v439_v15 = vmul.f32 %v976_v42, %v345_v4  ;;  %v440_v16 = vmul.f32 %v978_v43, %v345_v4 }
  0xe5   : > { %v459_v17 = vmin.f32 %v1020_v5, 0.0  ;;  %v460_v18 = vmin.f32 %v1022_v6, 0.0  ;;  %v381_v28 = vadd.f32 %v373_v7, %v331_v48  ;;  %v382_v29 = vadd.f32 %v374_v12, %v332_v49 }
  0xe6   : > { %v461_v21 = vmin.f32 %v1026_v13, 0.0  ;;  %v462_v22 = vmin.f32 %v1028_v14, 0.0  ;;  %v349_v23 = vpop.permute.xlu1 %348  ;;  %v447_v32 = vadd.f32 %v439_v15, %v413_v50  ;;  %v448_v33 = vadd.f32 %v440_v16, %v414_v51 }
  0xe7   : > { %v467_v26 = vmul.f32 1.442695, %v459_v17  ;;  %v469_v27 = vmul.f32 1.442695, %v460_v18  ;;  %v375_v8 = vmul.f32 %v972_v40, %v349_v23  ;;  %v376_v9 = vmul.f32 %v974_v41, %v349_v23 }
  0xe8   : > { %v471_v30 = vmul.f32 1.442695, %v461_v21  ;;  %v473_v31 = vmul.f32 1.442695, %v462_v22  ;;  %v441_v34 = vmul.f32 %v976_v42, %v349_v23  ;;  %v1043_v35 = vmax.f32 %v381_v28, %v447_v32 }
  0xe9   : > { %747 = vpow2.f32 %v467_v26  ;;  %v1045_v10 = vmax.f32 %v382_v29, %v448_v33  ;;  %v442_v11 = vmul.f32 %v978_v43, %v349_v23  ;;  %v383_v36 = vadd.f32 %v375_v8, %v333_v19 }
  0xea   : > { %749 = vpow2.f32 %v469_v27  ;;  %v384_v37 = vadd.f32 %v376_v9, %v334_v20  ;;  %v449_v44 = vadd.f32 %v441_v34, %v415_v24  ;;  %v463_v45 = vmin.f32 %v1043_v35, 0.0 }
  0xeb   : > { %751 = vpow2.f32 %v471_v30  ;;  %v464_v40 = vmin.f32 %v1045_v10, 0.0  ;;  %v450_v46 = vadd.f32 %v442_v11, %v416_v25  ;;  %vm499_vm0 = vcmp.gt.f32.partialorder %v1020_v5, 0.0 }
  0xec   : > { %753 = vpow2.f32 %v473_v31  ;;  %v1050_v41 = vmax.f32 %v383_v36, %v449_v44  ;;  %v475_v42 = vmul.f32 1.442695, %v463_v45  ;;  %vm500_vm1 = vcmp.gt.f32.partialorder %v1022_v6, 0.0 }
  0xed   : > { %v477_v47 = vmul.f32 1.442695, %v464_v40  ;;  %v1052_v48 = vmax.f32 %v384_v37, %v450_v46  ;;  %vm501_vm2 = vcmp.gt.f32.partialorder %v1026_v13, 0.0  ;;  %vm502_vm3 = vcmp.gt.f32.partialorder %v1028_v14, 0.0 }
  0xee   : > { %v465_v49 = vmin.f32 %v1050_v41, 0.0  ;;  %755 = vpow2.f32 %v475_v42  ;;  %vm503_vm4 = vcmp.gt.f32.partialorder %v1043_v35, 0.0  ;;  %vm504_vm5 = vcmp.gt.f32.partialorder %v1045_v10, 0.0 }
  0xef   : > { %757 = vpow2.f32 %v477_v47  ;;  %v466_v43 = vmin.f32 %v1052_v48, 0.0  ;;  %vm505_vm6 = vcmp.gt.f32.partialorder %v1050_v41, 0.0  ;;  %vm506_vm7 = vcmp.gt.f32.partialorder %v1052_v48, 0.0 }
  0xf0   : > { %v479_v50 = vmul.f32 1.442695, %v465_v49 }
  0xf1   : > { %v481_v52 = vmul.f32 1.442695, %v466_v43 }
  0xf2   : > { %759 = vpow2.f32 %v479_v50 }
  0xf3   : > { %v748_v51 = vpop.eup %747  ;;  %761 = vpow2.f32 %v481_v52 }
  0xf4   : > { %v750_v53 = vpop.eup %749  ;;  %v687_v54 = vadd.f32 -1.0, %v748_v51 }
  0xf5   : > { %v752_v55 = vpop.eup %751  ;;  %v688_v56 = vadd.f32 -1.0, %v750_v53 }
  0xf6   : > { %v754_v38 = vpop.eup %753  ;;  %v491_v39 = vmul.f32 1.6732632, %v687_v54  ;;  %v689_v57 = vadd.f32 -1.0, %v752_v55 }
  0xf7   : > { %v492_v58 = vmul.f32 1.6732632, %v688_v56  ;;  %v690_v59 = vadd.f32 -1.0, %v754_v38 }
  0xf8   : > { %v507_v60 = vsel %vm499_vm0, %v1020_v5, %v491_v39  ;;  %v493_v61 = vmul.f32 1.6732632, %v689_v57  ;;  %v756_v1 = vpop.eup %755 }
  0xf9   : > { %v508_v62 = vsel %vm500_vm1, %v1022_v6, %v492_v58  ;;  %v1060_v63 = vmul.f32 1.050701, %v507_v60  ;;  %v494_v0 = vmul.f32 1.6732632, %v690_v59  ;;  %v758_v4 = vpop.eup %757  ;;  %v691_v16 = vadd.f32 -1.0, %v756_v1 }
  0xfa   : > { %v1063_v2 = vmul.f32 1.050701, %v508_v62  ;;  %v509_v3 = vsel %vm501_vm2, %v1026_v13, %v493_v61  ;;  %v692_v20 = vadd.f32 -1.0, %v758_v4  ;;  %vm595_vm1 = vcmask 988160  }
  0xfb   : > { %v523_v7 = vmin.f32 %v1060_v63, 0.0  ;;  %v510_v5 = vsel %vm502_vm3, %v1028_v14, %v494_v0  ;;  %v1069_v12 = vmul.f32 1.050701, %v509_v3  ;;  %v495_v22 = vmul.f32 1.6732632, %v691_v16 }
  0xfc   : > { %v524_v6 = vmin.f32 %v1063_v2, 0.0  ;;  %v1072_v15 = vmul.f32 1.050701, %v510_v5  ;;  %v760_v17 = vpop.eup %759  ;;  %v496_v24 = vmul.f32 1.6732632, %v692_v20  ;;  %vm563_vm8 = vcmp.gt.f32.partialorder %v1060_v63, 0.0 }
  0xfd   : > { %v531_v18 = vmul.f32 1.442695, %v523_v7  ;;  %v525_v19 = vmin.f32 %v1069_v12, 0.0  ;;  %v762_v14 = vpop.eup %761  ;;  %v693_v25 = vadd.f32 -1.0, %v760_v17  ;;  %v511_v27 = vsel %vm503_vm4, %v1043_v35, %v495_v22 }
  0xfe   : > { %v533_v13 = vmul.f32 1.442695, %v524_v6  ;;  %v526_v21 = vmin.f32 %v1072_v15, 0.0  ;;  %v694_v28 = vadd.f32 -1.0, %v762_v14  ;;  %v512_v29 = vsel %vm504_vm5, %v1045_v10, %v496_v24 }
  0xff   : > { %763 = vpow2.f32 %v531_v18  ;;  %v535_v23 = vmul.f32 1.442695, %v525_v19  ;;  %v1080_v30 = vmul.f32 1.050701, %v511_v27  ;;  %v497_v31 = vmul.f32 1.6732632, %v693_v25 }
 0x100   : > { %765 = vpow2.f32 %v533_v13  ;;  %v537_v26 = vmul.f32 1.442695, %v526_v21  ;;  %v1082_v32 = vmul.f32 1.050701, %v512_v29  ;;  %v498_v33 = vmul.f32 1.6732632, %v694_v28 }
 0x101   : > { %767 = vpow2.f32 %v535_v23  ;;  %v527_v8 = vmin.f32 %v1080_v30, 0.0  ;;  %v513_v9 = vsel %vm505_vm6, %v1050_v41, %v497_v31  ;;  %vm564_vm10 = vcmp.gt.f32.partialorder %v1063_v2, 0.0 }
 0x102   : > { %769 = vpow2.f32 %v537_v26  ;;  %v528_v34 = vmin.f32 %v1082_v32, 0.0  ;;  %v514_v35 = vsel %vm506_vm7, %v1052_v48, %v498_v33  ;;  %v1090_v10 = vmul.f32 1.050701, %v513_v9 }
 0x103   : > { %v539_v11 = vmul.f32 1.442695, %v527_v8  ;;  %v1092_v36 = vmul.f32 1.050701, %v514_v35  ;;  %vm565_vm11 = vcmp.gt.f32.partialorder %v1069_v12, 0.0  ;;  %vm566_vm12 = vcmp.gt.f32.partialorder %v1072_v15, 0.0 }
 0x104   : > { %v541_v37 = vmul.f32 1.442695, %v528_v34  ;;  %v529_v44 = vmin.f32 %v1090_v10, 0.0  ;;  %vm567_vm13 = vcmp.gt.f32.partialorder %v1080_v30, 0.0  ;;  %vm568_vm14 = vcmp.gt.f32.partialorder %v1082_v32, 0.0 }
 0x105   : > { %771 = vpow2.f32 %v539_v11  ;;  %v530_v45 = vmin.f32 %v1092_v36, 0.0  ;;  %vm569_vm15 = vcmp.gt.f32.partialorder %v1090_v10, 0.0  ;;  %vm570_vm0 = vcmp.gt.f32.partialorder %v1092_v36, 0.0 }
 0x106   : > { %773 = vpow2.f32 %v541_v37  ;;  %v543_v40 = vmul.f32 1.442695, %v529_v44 }
 0x107   : > { %v545_v41 = vmul.f32 1.442695, %v530_v45 }
 0x108   : > { %775 = vpow2.f32 %v543_v40 }
 0x109   : > { %v764_v46 = vpop.eup %763  ;;  %777 = vpow2.f32 %v545_v41 }
 0x10a   : > { %v766_v42 = vpop.eup %765  ;;  %v695_v47 = vadd.f32 -1.0, %v764_v46 }
 0x10b   : > { %v768_v48 = vpop.eup %767  ;;  %v696_v49 = vadd.f32 -1.0, %v766_v42 }
 0x10c   : > { %v770_v43 = vpop.eup %769  ;;  %v555_v50 = vmul.f32 1.6732632, %v695_v47  ;;  %v697_v51 = vadd.f32 -1.0, %v768_v48 }
 0x10d   : > { %v556_v52 = vmul.f32 1.6732632, %v696_v49  ;;  %v698_v53 = vadd.f32 -1.0, %v770_v43 }
 0x10e   : > { %v571_v54 = vsel %vm563_vm8, %v1060_v63, %v555_v50  ;;  %v557_v55 = vmul.f32 1.6732632, %v697_v51 }
 0x10f   : > { %v572_v56 = vsel %vm564_vm10, %v1063_v2, %v556_v52  ;;  %v579_v38 = vmul.f32 1.050701, %v571_v54  ;;  %v558_v39 = vmul.f32 1.6732632, %v698_v53  ;;  %v772_v59 = vpop.eup %771 }
 0x110   : > { %v580_v57 = vmul.f32 1.050701, %v572_v56  ;;  %v573_v58 = vsel %vm565_vm11, %v1069_v12, %v557_v55  ;;  %v774_v62 = vpop.eup %773  ;;  %v699_v0 = vadd.f32 -1.0, %v772_v59 }
 0x111   : > { %587 = vst [vmem:[%s1101_s24] sm:$0xff] %v579_v38  ;;  %v574_v60 = vsel %vm566_vm12, %v1072_v15, %v558_v39  ;;  %v581_v61 = vmul.f32 1.050701, %v573_v58  ;;  %v700_v1 = vadd.f32 -1.0, %v774_v62 }
 0x112   : > { %589 = vst.msk [vmem:[%s1101_s24 + $0x8] sm:$0xff] %vm588_vm9, %v580_v57  ;;  %v582_v63 = vmul.f32 1.050701, %v574_v60  ;;  %v776_v2 = vpop.eup %775  ;;  %v559_v3 = vmul.f32 1.6732632, %v699_v0 }
 0x113   : > { %590 = vst [vmem:[%s1101_s24 + $0x10] sm:$0xff] %v581_v61  ;;  %v778_v4 = vpop.eup %777  ;;  %v560_v7 = vmul.f32 1.6732632, %v700_v1  ;;  %v701_v5 = vadd.f32 -1.0, %v776_v2 }
 0x114   : > { %591 = vst.msk [vmem:[%s1101_s24 + $0x18] sm:$0xff] %vm588_vm9, %v582_v63  ;;  %v575_v12 = vsel %vm567_vm13, %v1080_v30, %v559_v3  ;;  %v702_v6 = vadd.f32 -1.0, %v778_v4 }
 0x115   : > { %v576_v15 = vsel %vm568_vm14, %v1082_v32, %v560_v7  ;;  %v583_v16 = vmul.f32 1.050701, %v575_v12  ;;  %v561_v17 = vmul.f32 1.6732632, %v701_v5 }
 0x116   : > { %v584_v18 = vmul.f32 1.050701, %v576_v15  ;;  %v562_v19 = vmul.f32 1.6732632, %v702_v6 }
 0x117   : > { %592 = vst [vmem:[%s1101_s24 + $0x20] sm:$0xff] %v583_v16  ;;  %v577_v20 = vsel %vm569_vm15, %v1090_v10, %v561_v17 }
 0x118   : > { %593 = vst.msk [vmem:[%s1101_s24 + $0x28] sm:$0xff] %vm588_vm9, %v584_v18  ;;  %v578_v13 = vsel %vm570_vm0, %v1092_v36, %v562_v19  ;;  %v585_v21 = vmul.f32 1.050701, %v577_v20 }
 0x119   : > { %v586_v22 = vmul.f32 1.050701, %v578_v13 }
 0x11a   : > { %594 = vst [vmem:[%s1101_s24 + $0x30] sm:$0x3f] %v585_v21 }
 0x11b   : > { %596 = vst.msk [vmem:[%s1101_s24 + $0x38] sm:$0x3f] %vm595_vm1, %v586_v22 }
 0x11c PF: > { %s15_s12 = sadd.s32 1, %s849_s12  }
 0x11d   : > { %p12_p9 = scmp.ge.s32.totalorder %s15_s12, 6  }
 0x11f   :  { %14 = sbr.rel (!%p12_p9) target bundleno = 2 (0x2), region = 71 }
 0x126   :  { %618 = vsyncpa [#allocation3], 1 }
 0x127   :  { %620 = vsyncpa [#allocation3 + $0x1], 1 }
 0x128   :  { %621 = vsyncpa [#allocation5], 1 }

// kernel: siamese_forward.5
= control target key start
LH: loop header
LB: loop body
LE: loop exit
PB: predicated region body
PF: predicated region fallthrough
CT: control target
= control target key end

     0   :  { %10 = vsyncpa [#allocation3], 0  ;;  %s7755_s0 = inlined_call_operand.vmem [shape: f32[4,6,611], index: 0, kind: input, shape index: {}]   ;;  %s7756_s1 = inlined_call_operand.hbm [shape: f32[30,3], index: 1, kind: input, shape index: {}]   ;;  %s7757_s2 = inlined_call_operand.hbm [shape: f32[30,1], index: 2, kind: input, shape index: {}]   ;;  %s7758_s3 = inlined_call_operand.hbm [shape: f32[3,30,30], index: 3, kind: input, shape index: {}]   ;;  %s7759_s4 = inlined_call_operand.hbm [shape: f32[30,1], index: 4, kind: input, shape index: {}]   ;;  %s7760_s5 = inlined_call_operand.vmem [shape: f32[4,30,610], index: 5, kind: output, shape index: {}]  }
   0x1   :  { %11 = vsyncpa [#allocation5], 0 }
   0x2   :  { %12 = vsyncpa [#allocation8], 0  ;;  %s5371_s18 = smov 0  }
   0x3 LB: > { %s5377_s19 = sadd.s32 4294967295, %s5327_s18   ;;  %p4106_p0 = scmp.ge.s32.totalorder %s5327_s18, 1  ;;  %s5327_s18 = sphi %s5371_s18, %s18_s18  }
   0x4   : > { %p159_p1 = scmp.lt.s32.totalorder %s5327_s18, 5  ;;  %p7761_p2 = scmp.eq.s32.totalorder %s5377_s19, 0 }
   0x5   : > { %s5329_s21 = smov [#allocation4]   ;;  %s5330_s23 = smov [#allocation2]  }
   0x6   : > { %p5382_p3 = pnand %p4106_p0, %p159_p1  ;;  %s184_s22 = sshll.u32 %s5329_s21, 4  ;;  %s5386_s22 = int_to_ptr.vmem [resolvable:$true] %s184_s22 }
   0x7   : > { %s171_s24 = sshll.u32 %s5330_s23, 4  ;;  %s5331_s26 = smov [#allocation6]   ;;  %s5390_s24 = int_to_ptr.vmem [resolvable:$true] %s171_s24 }
   0x8   : > { %s7830_s20 = scalar_select %p5382_p3, 1, 0 }
   0x9   : > { %p4797_p4 = pneg %p5382_p3  ;;  %s197_s27 = sshll.u32 %s5331_s26, 4  ;;  %s5398_s27 = int_to_ptr.vmem [resolvable:$true] %s197_s27 }
   0xa   : > { %s5332_s28 = smov [#allocation7]   ;;  %s5197_s7 = scalar_lea.hbm %s7757_s2, 512 }
   0xb   : > { %p5394_p5 = pnand %p7761_p2, %p4797_p4  ;;  %s5400_s29 = sshll.u32 %s5332_s28, 4  ;;  %s211_s29 = int_to_ptr.vmem [resolvable:$true] %s5400_s29 }
   0xc   : > { %p5198_p6 = scmp.ne.s32.totalorder %s7757_s2, %s5197_s7  ;;  %p5204_p10 = scmp.lt.u32.totalorder %s5197_s7, %s7757_s2 }
   0xd   : > { %p5410_p7 = pneg %p5394_p5 }
   0xf   : > { %p5200_p8 = pnand %p5410_p7, %p5198_p6 }
  0x11   : > { %p5201_p9 = pneg %p5200_p8 }
  0x13   : > { %p5206_p11 = pnand %p5204_p10, %p5201_p9 }
  0x15   : > { %5209 = shalt.err (!%p5206_p11)
}
  0x16   : > { %s5210_s13 = scalar_lea.vmem %s5386_s22, 512  ;;  %p5218_p1 = scmp.lt.s32.totalorder %s5386_s22, %s5386_s22 }
  0x17   : > { %p5211_p12 = scmp.ne.s32.totalorder %s5386_s22, %s5210_s13  ;;  %p5219_p4 = scmp.lt.s32.totalorder %s5210_s13, %s5210_s13 }
  0x19   : > { %p5213_p13 = pnand %p5211_p12, %p5410_p7  ;;  %p5220_p6 = por %p5219_p4, %p5218_p1 }
  0x1b   : > { %p5214_p0 = pneg %p5213_p13 }
  0x1d   : > { %p5221_p8 = pnand %p5220_p6, %p5214_p0 }
  0x1f   : > { %5224 = shalt.err (!%p5221_p8)
}
  0x20   : > { %s5333_s14 = smov 128   ;;  %s5334_s15 = smov 8  }
  0x21   : > { %4803 = dma.hbm_to_vmem [thread:$0]  (!%p5394_p5), %s7757_s2, 512, %s5386_s22, [#allocation5], %s5333_s14, %s5333_s14, %s5334_s15  }
  0x22   : > { %s5225_s26 = scalar_lea.hbm %s7756_s1, 512 }
  0x23   : > { %p5226_p9 = scmp.ne.s32.totalorder %s7756_s1, %s5225_s26  ;;  %p5232_p12 = scmp.lt.u32.totalorder %s5225_s26, %s7756_s1 }
  0x25   : > { %p5228_p10 = pnand %p5226_p9, %p5410_p7 }
  0x27   : > { %p5229_p11 = pneg %p5228_p10 }
  0x29   : > { %p5234_p13 = pnand %p5232_p12, %p5229_p11 }
  0x2b   : > { %5237 = shalt.err (!%p5234_p13)
}
  0x2c   : > { %s5238_s22 = scalar_lea.vmem %s5390_s24, 512  ;;  %p5246_p6 = scmp.lt.s32.totalorder %s5390_s24, %s5390_s24 }
  0x2d   : > { %p5239_p0 = scmp.ne.s32.totalorder %s5390_s24, %s5238_s22  ;;  %p5247_p8 = scmp.lt.s32.totalorder %s5238_s22, %s5238_s22 }
  0x2f   : > { %p5241_p1 = pnand %p5239_p0, %p5410_p7  ;;  %p5248_p9 = por %p5247_p8, %p5246_p6 }
  0x31   : > { %p5242_p4 = pneg %p5241_p1 }
  0x33   : > { %p5249_p10 = pnand %p5248_p9, %p5242_p4 }
  0x35   : > { %5252 = shalt.err (!%p5249_p10)
}
  0x36   : > { %4800 = dma.hbm_to_vmem [thread:$0]  (!%p5394_p5), %s7756_s1, 512, %s5390_s24, [#allocation3], %s5333_s14, %s5333_s14, %s5334_s15  }
  0x37   : > { %s5253_s13 = scalar_lea.hbm %s7758_s3, 1536 }
  0x38   : > { %p5254_p11 = scmp.ne.s32.totalorder %s7758_s3, %s5253_s13  ;;  %p5260_p0 = scmp.lt.u32.totalorder %s5253_s13, %s7758_s3 }
  0x3a   : > { %p5256_p12 = pnand %p5254_p11, %p5410_p7 }
  0x3c   : > { %p5257_p13 = pneg %p5256_p12 }
  0x3e   : > { %p5262_p1 = pnand %p5260_p0, %p5257_p13 }
  0x40   : > { %5265 = shalt.err (!%p5262_p1)
}
  0x41   : > { %s5266_s24 = scalar_lea.vmem %s5398_s27, 1536  ;;  %p5274_p9 = scmp.lt.s32.totalorder %s5398_s27, %s5398_s27 }
  0x42   : > { %p5267_p4 = scmp.ne.s32.totalorder %s5398_s27, %s5266_s24  ;;  %p5275_p10 = scmp.lt.s32.totalorder %s5266_s24, %s5266_s24 }
  0x44   : > { %p5269_p6 = pnand %p5267_p4, %p5410_p7  ;;  %p5276_p11 = por %p5275_p10, %p5274_p9 }
  0x46   : > { %p5270_p8 = pneg %p5269_p6 }
  0x48   : > { %p5277_p12 = pnand %p5276_p11, %p5270_p8 }
  0x4a   : > { %5280 = shalt.err (!%p5277_p12)
}
  0x4b   : > { %4806 = dma.hbm_to_vmem [thread:$0]  (!%p5394_p5), %s7758_s3, 1536, %s5398_s27, [#allocation5], %s5333_s14, %s5333_s14, %s5334_s15  }
  0x4c   : > { %s5281_s7 = scalar_lea.hbm %s7759_s4, 512 }
  0x4d   : > { %p5282_p13 = scmp.ne.s32.totalorder %s7759_s4, %s5281_s7  ;;  %p5288_p4 = scmp.lt.u32.totalorder %s5281_s7, %s7759_s4 }
  0x4f   : > { %p5284_p0 = pnand %p5282_p13, %p5410_p7 }
  0x51   : > { %p5285_p1 = pneg %p5284_p0 }
  0x53   : > { %p5290_p6 = pnand %p5288_p4, %p5285_p1 }
  0x55   : > { %5293 = shalt.err (!%p5290_p6)
}
  0x56   : > { %s5294_s12 = scalar_lea.vmem %s211_s29, 512  ;;  %p5302_p11 = scmp.lt.s32.totalorder %s211_s29, %s211_s29 }
  0x57   : > { %p5295_p8 = scmp.ne.s32.totalorder %s211_s29, %s5294_s12  ;;  %p5303_p12 = scmp.lt.s32.totalorder %s5294_s12, %s5294_s12 }
  0x59   : > { %p5297_p9 = pnand %p5295_p8, %p5410_p7  ;;  %p5304_p2 = por %p5303_p12, %p5302_p11 }
  0x5b   : > { %p5298_p10 = pneg %p5297_p9 }
  0x5d   : > { %p5305_p3 = pnand %p5304_p2, %p5298_p10 }
  0x5f   : > { %5308 = shalt.err (!%p5305_p3)
}
  0x60   : > { %4809 = dma.hbm_to_vmem [thread:$0]  (!%p5394_p5), %s7759_s4, 512, %s211_s29, [#allocation8], %s5333_s14, %s5333_s14, %s5334_s15  }
  0x61   : > { %p7833_p13 = scmp.ne.s32.totalorder %s7830_s20, 0 }
  0x63   : > { %234 = sbr.rel (%p7833_p13) target bundleno = 1020 (0x3fc), region = 40 }
  0x6a   : > { %p7834_p7 = scmp.eq.s32.totalorder %s5377_s19, 0 }
  0x6c   : > { %5314 = dma.done.wait (%p7834_p7), [#allocation3], 512   ;;  %p7835_p0 = pmov %p7834_p7 }
  0x6e   : > { %5316 = vsyncadd (%p7835_p0), [#allocation3], 4294966784  ;;  %p7836_p2 = pmov %p7835_p0 }
  0x6f   : > { %p7837_p3 = pmov %p7835_p0 }
  0x70   : > { %5318 = dma.done.wait (%p7836_p2), [#allocation5], 2048  }
  0x71   : > { %5320 = vsyncadd (%p7837_p3), [#allocation5], 4294965248  ;;  %p7838_p1 = pmov %p7835_p0 }
  0x72   : > { %p7839_p5 = pmov %p7835_p0 }
  0x73   : > { %5322 = dma.done.wait (%p7838_p1), [#allocation8], 512  }
  0x74   : > { %5324 = vsyncadd (%p7839_p5), [#allocation8], 4294966784  ;;  %v5335_v0 = vmov 0   ;;  %v293_v1 = vld [vmem:[#allocation4] sm:$0xff]  ;;  %v294_v3 = vld [vmem:[#allocation4 + $0x8] sm:$0xff]  ;;  %v5336_v6 = vmov 1   ;;  %v317_v11 = vlaneseq }
  0x75   : > { %4839 = vset.pattern.permute.xlu1 %v5335_v0  ;;  %4838 = vset.pattern.permute.xlu0 %v5335_v0  ;;  %v289_v2 = vld [vmem:[#allocation2] sm:$0xff]  ;;  %v290_v4 = vld [vmem:[#allocation2 + $0x8] sm:$0xff]  ;;  %v292_v5 = vld [vmem:[#allocation2 + $0x18] sm:$0x3f]  ;;  %v5337_v9 = vmov 2   ;;  %p274_p4 = scmp.lt.s32.totalorder %s5377_s19, 3 }
  0x76   : > { %359 = vperm.xlu1 %4839, %v293_v1   ;;  %299 = vperm.xlu0 %4838, %v289_v2   ;;  %v295_v7 = vld [vmem:[#allocation4 + $0x10] sm:$0xff]  ;;  %v296_v10 = vld [vmem:[#allocation4 + $0x18] sm:$0x3f]  ;;  %v318_v12 = vshrl.u32 %v317_v11, 7  ;;  %s5338_s14 = smov 127  }
  0x77   : > { %v291_v8 = vld [vmem:[#allocation2 + $0x10] sm:$0xff]  ;;  %s7929_s19 = smov (!%p274_p4, %s5377_s19), 3 }
  0x78   : > { %s4779_s20 = smul.u32 40, %s7929_s19  ;;  %v319_v13 = vsub.s32 0, %v318_v12  ;;  %v415_v14 = vsub.s32 1, %v318_v12  ;;  %v491_v16 = vsub.s32 2, %v318_v12  ;;  %v631_v17 = vsub.s32 3, %v318_v12 }
  0x79   : > { %v5534_v19 = vsub.s32 4, %v318_v12  ;;  %v5541_v23 = vsub.s32 5, %v318_v12  ;;  %s4780_s15 = smul.u32 160, %s7929_s19 }
  0x7a   : > { %364 = vperm.xlu1 %4839, %v294_v3   ;;  %304 = vperm.xlu0 %4838, %v290_v4   ;;  %s5530_s10 = scalar_lea.vmem %s7755_s0, %s4779_s20 }
  0x7b   : > { %v287_v15 = vld [vmem:[%s5530_s10 + $0x18] sm:$0x3f]  ;;  %v288_v18 = vld [vmem:[%s5530_s10 + $0x20] sm:$0x3f]  ;;  %7840 = vst [vmem:[#allocation12_spill] sm:$0xff] %v5534_v19  ;;  %7843 = vst [vmem:[#allocation15_spill] sm:$0xff] %v5541_v23  ;;  %s7601_s17 = scalar_lea.vmem %s7760_s5, %s4780_s15 }
  0x7c   : > { %v286_v20 = vld [vmem:[%s5530_s10 + $0x10] sm:$0x3f]  ;;  %v5537_v21 = vrot.slane %v287_v15, %v319_v13  ;;  %v5539_v22 = vrot.slane %v287_v15, %v415_v14  ;;  %v285_v24 = vld [vmem:[%s5530_s10 + $0x8] sm:$0x3f]  ;;  %v5544_v25 = vrot.slane %v288_v18, %v319_v13  ;;  %v5546_v26 = vrot.slane %v288_v18, %v415_v14  ;;  %v284_v33 = vld [vmem:[%s5530_s10] sm:$0x3f] }
  0x7d   : > { %v5548_v27 = vrot.slane %v287_v15, %v491_v16  ;;  %v5550_v28 = vrot.slane %v287_v15, %v631_v17  ;;  %v5552_v29 = vrot.slane %v288_v18, %v491_v16  ;;  %v5554_v30 = vrot.slane %v288_v18, %v631_v17 }
  0x7e   : > { %4840 = vset.pattern.permute.xlu1 %v5336_v6  ;;  %314 = vperm.xlu0 %4838, %v292_v5   ;;  %7841 = vst [vmem:[#allocation13_spill] sm:$0xff] %v5537_v21  ;;  %7842 = vst [vmem:[#allocation14_spill] sm:$0xff] %v5539_v22  ;;  %v5556_v31 = vrot.slane %v286_v20, %v319_v13  ;;  %v5558_v32 = vrot.slane %v286_v20, %v415_v14 }
  0x7f   : > { %402 = vperm.xlu1 %4840, %v290_v4   ;;  %7844 = vst [vmem:[#allocation16_spill] sm:$0xff] %v5544_v25  ;;  %7845 = vst [vmem:[#allocation17_spill] sm:$0xff] %v5546_v26  ;;  %v5566_v36 = vrot.slane %v287_v15, %v5534_v19  ;;  %v5568_v37 = vrot.slane %v286_v20, %v491_v16  ;;  %v5570_v38 = vrot.slane %v286_v20, %v631_v17 }
  0x80   : > { %7846 = vst [vmem:[#allocation18_spill] sm:$0xff] %v5552_v29  ;;  %7847 = vst [vmem:[#allocation19_spill] sm:$0xff] %v5556_v31  ;;  %v5572_v39 = vrot.slane %v285_v24, %v319_v13  ;;  %v5575_v40 = vrot.slane %v287_v15, %v5541_v23  ;;  %v5577_v41 = vrot.slane %v285_v24, %v415_v14 }
  0x81   : > { %v5579_v42 = vrot.slane %v285_v24, %v491_v16  ;;  %v5581_v43 = vrot.slane %v285_v24, %v631_v17  ;;  %v5588_v46 = vrot.slane %v286_v20, %v5534_v19  ;;  %v5590_v47 = vrot.slane %v284_v33, %v319_v13 }
  0x82   : > { %369 = vperm.xlu0 %4838, %v295_v7   ;;  %7849 = vst [vmem:[#allocation21_spill] sm:$0xff] %v5572_v39  ;;  %v5608_v56 = vrot.slane %v284_v33, %v415_v14  ;;  %v5610_v57 = vrot.slane %v284_v33, %v491_v16  ;;  %v5616_v60 = vrot.slane %v284_v33, %v631_v17 }
  0x83   : > { %4841 = vset.pattern.permute.xlu1 %v5335_v0  ;;  %7850 = vst [vmem:[#allocation22_spill] sm:$0xff] %v5590_v47  ;;  %v5619_v61 = vrot.slane %v286_v20, %v5541_v23 }
  0x84   : > { %309 = vperm.xlu1 %4841, %v291_v8   ;;  %7853 = vst [vmem:[#allocation25_spill] sm:$0xff] %v5610_v57 }
  0x85   : > { %7854 = vst [vmem:[#allocation26_spill] sm:$0xff] %v5619_v61 }
  0x86   : > { %4843 = vset.pattern.permute.xlu0 %v5336_v6 }
  0x87   : > { %398 = vperm.xlu0 %4843, %v289_v2  }
  0x88   : > { %4842 = vset.pattern.permute.xlu1 %v5337_v9 }
  0x89   : > { %474 = vperm.xlu1 %4842, %v289_v2  }
  0x8b   : > { %406 = vperm.xlu0 %4843, %v291_v8  }
  0x8d   : > { %478 = vperm.xlu1 %4842, %v290_v4  }
  0x8f   : > { %4847 = vset.pattern.permute.xlu0 %v5337_v9 }
  0x90   : > { %486 = vperm.xlu0 %4847, %v292_v5  }
  0x91   : > { %4844 = vset.pattern.permute.xlu1 %v5335_v0 }
  0x92   : > { %374 = vperm.xlu1 %4844, %v296_v10  }
  0x94   : > { %4948 = vset.pattern.permute.xlu0 %v5335_v0 }
  0x96   : > { %4845 = vset.pattern.permute.xlu1 %v5336_v6 }
  0x97   : > { %410 = vperm.xlu1 %4845, %v292_v5  }
  0x9b   : > { %4846 = vset.pattern.permute.xlu1 %v5337_v9 }
  0x9c   : > { %482 = vperm.xlu1 %4846, %v291_v8  }
  0xa0   : > { %4949 = vset.pattern.permute.xlu1 %v5335_v0 }
  0xf5   : > { %v5561_v34 = vpop.permute.xlu1 %359  ;;  %v5563_v35 = vpop.permute.xlu0 %299 }
  0xf6   : > { %7848 = vst [vmem:[#allocation20_spill] sm:$0xff] %v5561_v34  ;;  %v340_v44 = vmul.f32 %v5537_v21, %v5563_v35  ;;  %v341_v45 = vmul.f32 %v5544_v25, %v5563_v35  ;;  %v552_v48 = vmul.f32 %v5539_v22, %v5563_v35  ;;  %v553_v49 = vmul.f32 %v5546_v26, %v5563_v35 }
  0xf7   : > { %v1032_v50 = vmul.f32 %v5548_v27, %v5563_v35  ;;  %v1172_v51 = vmul.f32 %v5550_v28, %v5563_v35  ;;  %v339_v54 = vmul.f32 %v5556_v31, %v5563_v35  ;;  %v551_v55 = vmul.f32 %v5558_v32, %v5563_v35 }
  0xf8   : > { %v380_v62 = vadd.f32 %v5561_v34, %v340_v44  ;;  %v381_v63 = vadd.f32 %v5561_v34, %v341_v45  ;;  %v572_v2 = vadd.f32 %v552_v48, %v5561_v34  ;;  %v573_v3 = vadd.f32 %v553_v49, %v5561_v34 }
  0xf9   : > { %v5600_v52 = vpop.permute.xlu1 %364  ;;  %v5602_v53 = vpop.permute.xlu0 %304  ;;  %v5630_v4 = vadd.f32 %v1032_v50, %v5561_v34  ;;  %v5633_v5 = vadd.f32 %v1172_v51, %v5561_v34  ;;  %v5642_v9 = vadd.f32 %v5561_v34, %v339_v54  ;;  %v5645_v10 = vadd.f32 %v551_v55, %v5561_v34 }
  0xfa   : > { %7851 = vst [vmem:[#allocation23_spill] sm:$0xff] %v5600_v52  ;;  %7852 = vst [vmem:[#allocation24_spill] sm:$0xff] %v5602_v53  ;;  %v1037_v58 = vmul.f32 %v5548_v27, %v5602_v53  ;;  %v1177_v59 = vmul.f32 %v5550_v28, %v5602_v53  ;;  %v345_v0 = vmul.f32 %v5537_v21, %v5602_v53 }
  0xfb   : > { %v346_v1 = vmul.f32 %v5544_v25, %v5602_v53  ;;  %v557_v7 = vmul.f32 %v5539_v22, %v5602_v53  ;;  %v558_v8 = vmul.f32 %v5546_v26, %v5602_v53  ;;  %v344_v14 = vmul.f32 %v5556_v31, %v5602_v53 }
  0xfc   : > { %v1057_v12 = vadd.f32 %v1037_v58, %v5600_v52  ;;  %v1197_v13 = vadd.f32 %v1177_v59, %v5600_v52  ;;  %v556_v15 = vmul.f32 %v5558_v32, %v5602_v53  ;;  %v385_v18 = vadd.f32 %v5600_v52, %v345_v0 }
  0xfd   : > { %v5635_v6 = vpop.permute.xlu0 %314  ;;  %v386_v20 = vadd.f32 %v5600_v52, %v346_v1  ;;  %v338_v51 = vmul.f32 %v5572_v39, %v5563_v35  ;;  %v343_v54 = vmul.f32 %v5572_v39, %v5602_v53  ;;  %v577_v55 = vadd.f32 %v557_v7, %v5600_v52 }
  0xfe   : > { %7855 = vst [vmem:[#allocation27_spill] sm:$0xff] %v5635_v6  ;;  %v5647_v11 = vpop.permute.xlu1 %402  ;;  %v578_v58 = vadd.f32 %v558_v8, %v5600_v52  ;;  %v550_v59 = vmul.f32 %v5577_v41, %v5563_v35  ;;  %v555_v0 = vmul.f32 %v5577_v41, %v5602_v53  ;;  %v384_v31 = vadd.f32 %v5600_v52, %v344_v14 }
  0xff   : > { %7856 = vst [vmem:[#allocation28_spill] sm:$0xff] %v5647_v11  ;;  %v1077_v16 = vmul.f32 %v5550_v28, %v5647_v11  ;;  %v1217_v17 = vmul.f32 %v5566_v36, %v5647_v11  ;;  %v441_v24 = vmul.f32 %v5539_v22, %v5647_v11  ;;  %v442_v33 = vmul.f32 %v5546_v26, %v5647_v11 }
 0x100   : > { %v597_v44 = vmul.f32 %v5548_v27, %v5647_v11  ;;  %v598_v45 = vmul.f32 %v5552_v29, %v5647_v11  ;;  %v440_v49 = vmul.f32 %v5558_v32, %v5647_v11  ;;  %v596_v50 = vmul.f32 %v5568_v37, %v5647_v11 }
 0x101   : > { %v5669_v48 = vpop.permute.xlu0 %369  ;;  %v1097_v23 = vadd.f32 %v1077_v16, %v1057_v12  ;;  %v1237_v19 = vadd.f32 %v1217_v17, %v1197_v13  ;;  %v461_v25 = vadd.f32 %v441_v24, %v385_v18  ;;  %v462_v39 = vadd.f32 %v442_v33, %v386_v20 }
 0x102   : > { %7857 = vst [vmem:[#allocation29_spill] sm:$0xff] %v5669_v48  ;;  %v576_v48 = vadd.f32 %v556_v15, %v5600_v52  ;;  %v617_v21 = vadd.f32 %v597_v44, %v577_v55  ;;  %v5689_v7 = vadd.f32 %v598_v45, %v578_v58  ;;  %v5691_v8 = vadd.f32 %v440_v49, %v384_v31 }
 0x103   : > { %v5685_v1 = vpop.permute.xlu1 %309  ;;  %v5696_v61 = vadd.f32 %v5561_v34, %v338_v51  ;;  %v439_v13 = vmul.f32 %v5577_v41, %v5647_v11  ;;  %v5704_v14 = vadd.f32 %v550_v59, %v5561_v34  ;;  %v5707_v15 = vadd.f32 %v555_v0, %v5600_v52 }
 0x104   : > { %7858 = vst [vmem:[#allocation30_spill] sm:$0xff] %v5685_v1  ;;  %v5693_v6 = vadd.f32 %v596_v50, %v576_v48  ;;  %v383_v1 = vadd.f32 %v5600_v52, %v343_v54  ;;  %v5711_v31 = vmul.f32 %v5579_v42, %v5647_v11  ;;  %v5729_v45 = vmul.f32 %v5590_v47, %v5563_v35 }
 0x105   : > { %v5733_v48 = vmul.f32 %v5590_v47, %v5602_v53 }
 0x106   : > { %v5699_v12 = vpop.permute.xlu0 %398 }
 0x107   : > { %v436_v16 = vmul.f32 %v5539_v22, %v5699_v12  ;;  %v437_v17 = vmul.f32 %v5546_v26, %v5699_v12  ;;  %v592_v18 = vmul.f32 %v5548_v27, %v5699_v12  ;;  %v593_v20 = vmul.f32 %v5552_v29, %v5699_v12 }
 0x108   : > { %v5721_v24 = vpop.permute.xlu1 %474  ;;  %v1072_v33 = vmul.f32 %v5550_v28, %v5699_v12  ;;  %v1212_v44 = vmul.f32 %v5566_v36, %v5699_v12 }
 0x109   : > { %v456_v49 = vadd.f32 %v436_v16, %v380_v62  ;;  %v457_v50 = vadd.f32 %v437_v17, %v381_v63  ;;  %v512_v51 = vmul.f32 %v5548_v27, %v5721_v24  ;;  %v513_v54 = vmul.f32 %v5552_v29, %v5721_v24 }
 0x10a   : > { %v612_v55 = vadd.f32 %v592_v18, %v572_v2  ;;  %v613_v58 = vadd.f32 %v593_v20, %v573_v3  ;;  %v652_v59 = vmul.f32 %v5550_v28, %v5721_v24  ;;  %v653_v0 = vmul.f32 %v5554_v30, %v5721_v24 }
 0x10b   : > { %v532_v26 = vadd.f32 %v512_v51, %v456_v49  ;;  %v533_v22 = vadd.f32 %v513_v54, %v457_v50  ;;  %v1092_v47 = vadd.f32 %v1072_v33, %v5630_v4  ;;  %v1132_v62 = vmul.f32 %v5566_v36, %v5721_v24 }
 0x10c   : > { %v5746_v63 = vpop.permute.xlu1 %478  ;;  %v672_v16 = vadd.f32 %v652_v59, %v612_v55  ;;  %v673_v17 = vadd.f32 %v653_v0, %v613_v58  ;;  %v1232_v2 = vadd.f32 %v1212_v44, %v5633_v5  ;;  %v1272_v3 = vmul.f32 %v5575_v40, %v5721_v24 }
 0x10d   : > { %7859 = vst [vmem:[#allocation31_spill] sm:$0xff] %v5746_v63  ;;  %v1137_v18 = vmul.f32 %v5566_v36, %v5746_v63  ;;  %v1152_v20 = vadd.f32 %v1132_v62, %v1092_v47  ;;  %v1277_v49 = vmul.f32 %v5575_v40, %v5746_v63  ;;  %v517_v4 = vmul.f32 %v5548_v27, %v5746_v63 }
 0x10e   : > { %v5757_v33 = vmax.f32 %v532_v26, %v672_v16  ;;  %v5759_v50 = vmax.f32 %v533_v22, %v673_v17  ;;  %v1292_v51 = vadd.f32 %v1272_v3, %v1232_v2  ;;  %v518_v5 = vmul.f32 %v5552_v29, %v5746_v63 }
 0x10f   : > { %v1157_v44 = vadd.f32 %v1137_v18, %v1097_v23  ;;  %v1297_v54 = vadd.f32 %v1277_v49, %v1237_v19  ;;  %v657_v55 = vmul.f32 %v5550_v28, %v5746_v63  ;;  %v435_v47 = vmul.f32 %v5558_v32, %v5699_v12 }
 0x110   : > { %v712_v58 = vmin.f32 %v5757_v33, 0.0  ;;  %v713_v59 = vmin.f32 %v5759_v50, 0.0  ;;  %v537_v26 = vadd.f32 %v517_v4, %v461_v25  ;;  %v459_v0 = vadd.f32 %v439_v13, %v383_v1 }
 0x111   : > { %v5769_v22 = vmax.f32 %v1152_v20, %v1292_v51  ;;  %v5771_v62 = vmax.f32 %v1157_v44, %v1297_v54  ;;  %v658_v23 = vmul.f32 %v5554_v30, %v5746_v63  ;;  %v5777_v19 = vmul.f32 %v5608_v56, %v5647_v11 }
 0x112   : > { %v735_v16 = vmul.f32 1.442695, %v712_v58  ;;  %v737_v17 = vmul.f32 1.442695, %v713_v59  ;;  %v538_v2 = vadd.f32 %v518_v5, %v462_v39  ;;  %v677_v3 = vadd.f32 %v657_v55, %v617_v21 }
 0x113   : > { %v1332_v18 = vmin.f32 %v5769_v22, 0.0  ;;  %v1337_v25 = vmin.f32 %v5771_v62, 0.0  ;;  %v455_v1 = vadd.f32 %v435_v47, %v5642_v9  ;;  %v591_v13 = vmul.f32 %v5568_v37, %v5699_v12 }
 0x114   : > { %4950 = vpow2.f32 %v735_v16  ;;  %v678_v20 = vadd.f32 %v658_v23, %v5689_v7  ;;  %v5785_v49 = vmax.f32 %v537_v26, %v677_v3  ;;  %v511_v4 = vmul.f32 %v5568_v37, %v5721_v24 }
 0x115   : > { %4952 = vpow2.f32 %v737_v17  ;;  %v1355_v39 = vmul.f32 1.442695, %v1332_v18  ;;  %v1365_v21 = vmul.f32 1.442695, %v1337_v25  ;;  %v516_v51 = vmul.f32 %v5568_v37, %v5746_v63 }
 0x116   : > { %v5791_v5 = vmax.f32 %v538_v2, %v678_v20  ;;  %v717_v9 = vmin.f32 %v5785_v49, 0.0  ;;  %v5796_v44 = vmul.f32 %v5608_v56, %v5563_v35  ;;  %v5800_v7 = vmul.f32 %v5608_v56, %v5602_v53 }
 0x117   : > { %4954 = vpow2.f32 %v1355_v39  ;;  %v531_v54 = vadd.f32 %v511_v4, %v455_v1  ;;  %v611_v55 = vadd.f32 %v591_v13, %v5645_v10  ;;  %v651_v47 = vmul.f32 %v5570_v38, %v5721_v24 }
 0x118   : > { %4956 = vpow2.f32 %v1365_v21  ;;  %v718_v58 = vmin.f32 %v5791_v5, 0.0  ;;  %v745_v59 = vmul.f32 1.442695, %v717_v9  ;;  %v536_v26 = vadd.f32 %v516_v51, %v5691_v8 }
 0x119   : > { %v656_v23 = vmul.f32 %v5570_v38, %v5746_v63  ;;  %v671_v16 = vadd.f32 %v651_v47, %v611_v55  ;;  %v434_v17 = vmul.f32 %v5577_v41, %v5699_v12  ;;  %v510_v2 = vmul.f32 %v5579_v42, %v5721_v24 }
 0x11a   : > { %4958 = vpow2.f32 %v745_v59  ;;  %v747_v10 = vmul.f32 1.442695, %v718_v58  ;;  %v515_v3 = vmul.f32 %v5579_v42, %v5746_v63  ;;  %v590_v18 = vmul.f32 %v5579_v42, %v5699_v12 }
 0x11b   : > { %v676_v8 = vadd.f32 %v656_v23, %v5693_v6  ;;  %v5818_v25 = vmax.f32 %v531_v54, %v671_v16  ;;  %v454_v1 = vadd.f32 %v434_v17, %v5696_v61  ;;  %v650_v13 = vmul.f32 %v5581_v43, %v5721_v24 }
 0x11c   : > { %4960 = vpow2.f32 %v747_v10  ;;  %v610_v20 = vadd.f32 %v590_v18, %v5704_v14  ;;  %v615_v4 = vadd.f32 %v5711_v31, %v5707_v15  ;;  %v655_v39 = vmul.f32 %v5581_v43, %v5746_v63 }
 0x11d   : > { %v5828_v21 = vmax.f32 %v536_v26, %v676_v8  ;;  %v711_v6 = vmin.f32 %v5818_v25, 0.0  ;;  %v530_v51 = vadd.f32 %v510_v2, %v454_v1  ;;  %v5833_v61 = vadd.f32 %v5561_v34, %v5729_v45 }
 0x11e   : > { %v4951_v9 = vpop.eup %4950  ;;  %v535_v54 = vadd.f32 %v515_v3, %v459_v0  ;;  %v670_v55 = vadd.f32 %v650_v13, %v610_v20  ;;  %v382_v14 = vadd.f32 %v5600_v52, %v5733_v48  ;;  %v5839_v15 = vmul.f32 %v5610_v57, %v5647_v11 }
 0x11f   : > { %v4953_v31 = vpop.eup %4952  ;;  %v4122_v47 = vadd.f32 -1.0, %v4951_v9  ;;  %v716_v58 = vmin.f32 %v5828_v21, 0.0  ;;  %v733_v59 = vmul.f32 1.442695, %v711_v6  ;;  %v675_v26 = vadd.f32 %v655_v39, %v615_v4 }
 0x120   : > { %v4123_v23 = vadd.f32 -1.0, %v4953_v31  ;;  %vm812_vm0 = vcmp.gt.f32.partialorder %v5757_v33, 0.0  ;;  %vm813_vm1 = vcmp.gt.f32.partialorder %v5759_v50, 0.0  ;;  %v5844_v45 = vmax.f32 %v530_v51, %v670_v55 }
 0x121   : > { %v4955_v0 = vpop.eup %4954  ;;  %v792_v16 = vmul.f32 1.6732632, %v4122_v47  ;;  %vm1432_vm2 = vcmp.gt.f32.partialorder %v5769_v22, 0.0  ;;  %4962 = vpow2.f32 %v733_v59  ;;  %v743_v48 = vmul.f32 1.442695, %v716_v58 }
 0x122   : > { %v4957_v17 = vpop.eup %4956  ;;  %v793_v2 = vmul.f32 1.6732632, %v4123_v23  ;;  %v4162_v10 = vadd.f32 -1.0, %v4955_v0  ;;  %vm1437_vm3 = vcmp.gt.f32.partialorder %v5771_v62, 0.0  ;;  %v710_v3 = vmin.f32 %v5844_v45, 0.0 }
 0x123   : > { %v832_v18 = vsel %vm812_vm0, %v5757_v33, %v792_v16  ;;  %v4167_v8 = vadd.f32 -1.0, %v4957_v17  ;;  %4964 = vpow2.f32 %v743_v48  ;;  %v5850_v1 = vmax.f32 %v535_v54, %v675_v26 }
 0x124   : > { %v4959_v13 = vpop.eup %4958  ;;  %v833_v20 = vsel %vm813_vm1, %v5759_v50, %v793_v2  ;;  %v5855_v4 = vmul.f32 1.050701, %v832_v18  ;;  %v1412_v39 = vmul.f32 1.6732632, %v4162_v10  ;;  %v731_v6 = vmul.f32 1.442695, %v710_v3 }
 0x125   : > { %v5857_v51 = vmul.f32 1.050701, %v833_v20  ;;  %v1417_v9 = vmul.f32 1.6732632, %v4167_v8  ;;  %v4127_v55 = vadd.f32 -1.0, %v4959_v13  ;;  %vm817_vm4 = vcmp.gt.f32.partialorder %v5785_v49, 0.0 }
 0x126   : > { %v4961_v33 = vpop.eup %4960  ;;  %v872_v31 = vmin.f32 %v5855_v4, 0.0  ;;  %v1452_v54 = vsel %vm1432_vm2, %v5769_v22, %v1412_v39  ;;  %vm818_vm5 = vcmp.gt.f32.partialorder %v5791_v5, 0.0  ;;  %4966 = vpow2.f32 %v731_v6 }
 0x127   : > { %v873_v50 = vmin.f32 %v5857_v51, 0.0  ;;  %v1457_v47 = vsel %vm1437_vm3, %v5771_v62, %v1417_v9  ;;  %v5869_v58 = vmul.f32 1.050701, %v1452_v54  ;;  %v715_v59 = vmin.f32 %v5850_v1, 0.0 }
 0x128   : > { %v895_v26 = vmul.f32 1.442695, %v872_v31  ;;  %v5872_v23 = vmul.f32 1.050701, %v1457_v47  ;;  %v4128_v0 = vadd.f32 -1.0, %v4961_v33  ;;  %vm811_vm6 = vcmp.gt.f32.partialorder %v5818_v25, 0.0 }
 0x129   : > { %v897_v22 = vmul.f32 1.442695, %v873_v50  ;;  %v1492_v16 = vmin.f32 %v5869_v58, 0.0  ;;  %v797_v48 = vmul.f32 1.6732632, %v4127_v55  ;;  %v433_v17 = vmul.f32 %v5608_v56, %v5699_v12 }
 0x12a   : > { %4968 = vpow2.f32 %v895_v26  ;;  %v1497_v62 = vmin.f32 %v5872_v23, 0.0  ;;  %v798_v2 = vmul.f32 1.6732632, %v4128_v0  ;;  %v458_v10 = vadd.f32 %v5777_v19, %v382_v14 }
 0x12b   : > { %v4963_v3 = vpop.eup %4962  ;;  %4970 = vpow2.f32 %v897_v22  ;;  %v1515_v18 = vmul.f32 1.442695, %v1492_v16  ;;  %v837_v8 = vsel %vm817_vm4, %v5785_v49, %v797_v48  ;;  %v741_v13 = vmul.f32 1.442695, %v715_v59 }
 0x12c   : > { %v1525_v20 = vmul.f32 1.442695, %v1497_v62  ;;  %v838_v39 = vsel %vm818_vm5, %v5791_v5, %v798_v2  ;;  %v5886_v6 = vmul.f32 1.050701, %v837_v8  ;;  %v4121_v9 = vadd.f32 -1.0, %v4963_v3 }
 0x12d   : > { %v4965_v55 = vpop.eup %4964  ;;  %4972 = vpow2.f32 %v1515_v18  ;;  %v5888_v33 = vmul.f32 1.050701, %v838_v39  ;;  %vm816_vm7 = vcmp.gt.f32.partialorder %v5828_v21, 0.0  ;;  %v453_v19 = vadd.f32 %v433_v17, %v5833_v61 }
 0x12e   : > { %4974 = vpow2.f32 %v1525_v20  ;;  %v877_v49 = vmin.f32 %v5886_v6, 0.0  ;;  %v4126_v14 = vadd.f32 -1.0, %v4965_v55  ;;  %v509_v31 = vmul.f32 %v5610_v57, %v5721_v24 }
 0x12f   : > { %v878_v5 = vmin.f32 %v5888_v33, 0.0  ;;  %v791_v54 = vmul.f32 1.6732632, %v4121_v9  ;;  %4976 = vpow2.f32 %v741_v13  ;;  %vm810_vm8 = vcmp.gt.f32.partialorder %v5844_v45, 0.0 }
 0x130   : > { %v4967_v50 = vpop.eup %4966  ;;  %vm972_vm9 = vcmp.gt.f32.partialorder %v5855_v4, 0.0  ;;  %v905_v47 = vmul.f32 1.442695, %v877_v49  ;;  %v796_v59 = vmul.f32 1.6732632, %v4126_v14  ;;  %v514_v61 = vmul.f32 %v5610_v57, %v5746_v63 }
 0x131   : > { %v569_v26 = vadd.f32 %v5796_v44, %v5561_v34  ;;  %vm973_vm10 = vcmp.gt.f32.partialorder %v5857_v51, 0.0  ;;  %v907_v0 = vmul.f32 1.442695, %v878_v5  ;;  %v831_v22 = vsel %vm811_vm6, %v5818_v25, %v791_v54 }
 0x132   : > { %v4120_v16 = vadd.f32 -1.0, %v4967_v50  ;;  %v589_v48 = vmul.f32 %v5610_v57, %v5699_v12  ;;  %4978 = vpow2.f32 %v905_v47  ;;  %v836_v17 = vsel %vm816_vm7, %v5828_v21, %v796_v59 }
 0x133   : > { %v5911_v62 = vmul.f32 1.050701, %v831_v22  ;;  %v574_v44 = vadd.f32 %v5800_v7, %v5600_v52  ;;  %vm1592_vm11 = vcmp.gt.f32.partialorder %v5869_v58, 0.0  ;;  %4980 = vpow2.f32 %v907_v0 }
 0x134   : > { %v5916_v2 = vmul.f32 1.050701, %v836_v17  ;;  %v790_v25 = vmul.f32 1.6732632, %v4120_v16  ;;  %v609_v3 = vadd.f32 %v589_v48, %v569_v26  ;;  %v4969_v18 = vpop.eup %4968  ;;  %vm1597_vm12 = vcmp.gt.f32.partialorder %v5872_v23, 0.0 }
 0x135   : > { %v871_v8 = vmin.f32 %v5911_v62, 0.0  ;;  %v529_v13 = vadd.f32 %v509_v31, %v453_v19  ;;  %v649_v21 = vmul.f32 %v5616_v60, %v5721_v24  ;;  %v654_v20 = vmul.f32 %v5616_v60, %v5746_v63  ;;  %v4971_v7 = vpop.eup %4970 }
 0x136   : > { %v4142_v39 = vadd.f32 -1.0, %v4969_v18  ;;  %v876_v9 = vmin.f32 %v5916_v2, 0.0  ;;  %vm815_vm13 = vcmp.gt.f32.partialorder %v5850_v1, 0.0  ;;  %v830_v55 = vsel %vm810_vm8, %v5844_v45, %v790_v25 }
 0x137   : > { %v614_v49 = vadd.f32 %v5839_v15, %v574_v44  ;;  %v4143_v14 = vadd.f32 -1.0, %v4971_v7  ;;  %v893_v19 = vmul.f32 1.442695, %v871_v8  ;;  %v5930_v31 = vmul.f32 1.050701, %v830_v55  ;;  %v4973_v54 = vpop.eup %4972 }
 0x138   : > { %v534_v5 = vadd.f32 %v514_v61, %v458_v10  ;;  %v952_v50 = vmul.f32 1.6732632, %v4142_v39  ;;  %v903_v47 = vmul.f32 1.442695, %v876_v9  ;;  %v669_v59 = vadd.f32 %v649_v21, %v609_v3  ;;  %v4975_v0 = vpop.eup %4974 }
 0x139   : > { %v674_v26 = vadd.f32 %v654_v20, %v614_v49  ;;  %v953_v22 = vmul.f32 1.6732632, %v4143_v14  ;;  %v4182_v16 = vadd.f32 -1.0, %v4973_v54  ;;  %4982 = vpow2.f32 %v893_v19  ;;  %v4977_v17 = vpop.eup %4976 }
 0x13a   : > { %v870_v48 = vmin.f32 %v5930_v31, 0.0  ;;  %v992_v15 = vsel %vm972_vm9, %v5855_v4, %v952_v50  ;;  %v4187_v45 = vadd.f32 -1.0, %v4975_v0  ;;  %vm977_vm14 = vcmp.gt.f32.partialorder %v5886_v6, 0.0 }
 0x13b   : > { %4984 = vpow2.f32 %v903_v47  ;;  %v993_v10 = vsel %vm973_vm10, %v5857_v51, %v953_v22  ;;  %v5940_v61 = vmul.f32 1.050701, %v992_v15  ;;  %v1572_v44 = vmul.f32 1.6732632, %v4182_v16 }
 0x13c   : > { %v4125_v25 = vadd.f32 -1.0, %v4977_v17  ;;  %v5942_v3 = vmul.f32 1.050701, %v993_v10  ;;  %v1577_v18 = vmul.f32 1.6732632, %v4187_v45  ;;  %v5944_v21 = vmax.f32 %v529_v13, %v669_v59  ;;  %v4979_v20 = vpop.eup %4978 }
 0x13d   : > { %v891_v8 = vmul.f32 1.442695, %v870_v48  ;;  %v1612_v4 = vsel %vm1592_vm11, %v5869_v58, %v1572_v44  ;;  %vm978_vm15 = vcmp.gt.f32.partialorder %v5888_v33, 0.0  ;;  %v5950_v39 = vmax.f32 %v534_v5, %v674_v26  ;;  %v4981_v51 = vpop.eup %4980 }
 0x13e   : > { %7860 = vst [vmem:[#allocation32_spill] sm:$0xff] %v5942_v3  ;;  %v795_v7 = vmul.f32 1.6732632, %v4125_v25  ;;  %v4848_v9 = vpack.i.bf16 %v5942_v3, %v5940_v61  ;;  %v1617_v55 = vsel %vm1597_vm12, %v5872_v23, %v1577_v18  ;;  %v5957_v13 = vmul.f32 1.050701, %v1612_v4 }
 0x13f   : > { %v4147_v49 = vadd.f32 -1.0, %v4979_v20  ;;  %v5959_v14 = vmul.f32 1.050701, %v1617_v55  ;;  %v4148_v19 = vadd.f32 -1.0, %v4981_v51  ;;  %4986 = vpow2.f32 %v891_v8 }
 0x140   : > { %7861 = vst [vmem:[#allocation33_spill] sm:$0xff] %v5957_v13  ;;  %v835_v58 = vsel %vm815_vm13, %v5850_v1, %v795_v7  ;;  %4849 = vrot.lane.b32.xlu1 %v4848_v9, %s5338_s14  ;;  %v709_v50 = vmin.f32 %v5944_v21, 0.0  ;;  %v714_v23 = vmin.f32 %v5950_v39, 0.0  ;;  %vm971_vm0 = vcmp.gt.f32.partialorder %v5911_v62, 0.0 }
 0x141   : > { %7862 = vst [vmem:[#allocation34_spill] sm:$0xff] %v5959_v14  ;;  %v957_v5 = vmul.f32 1.6732632, %v4147_v49  ;;  %v5965_v54 = vmul.f32 1.050701, %v835_v58  ;;  %v5971_v47 = vpack.c.bf16 %v5959_v14, %v5957_v13  ;;  %v1031_v1 = vmul.f32 %v5568_v37, %v5563_v35 }
 0x142   : > { %v958_v59 = vmul.f32 1.6732632, %v4148_v19  ;;  %vm976_vm1 = vcmp.gt.f32.partialorder %v5916_v2, 0.0  ;;  %v729_v22 = vmul.f32 1.442695, %v709_v50  ;;  %v1036_v45 = vmul.f32 %v5568_v37, %v5602_v53 }
 0x143   : > { %7863 = vst [vmem:[#allocation35_spill] sm:$0xff] %v5971_v47  ;;  %v997_v26 = vsel %vm977_vm14, %v5886_v6, %v957_v5  ;;  %v875_v0 = vmin.f32 %v5965_v54, 0.0  ;;  %v4983_v16 = vpop.eup %4982  ;;  %4655 = vmatprep.subr.bf16.mxu1 %v5971_v47  ;;  %v739_v15 = vmul.f32 1.442695, %v714_v23  ;;  %v5989_v6 = vpop.permute.xlu1 %374  ;;  %v1051_v20 = vadd.f32 %v1031_v1, %v5561_v34 }
 0x144   : > { %v998_v48 = vsel %vm978_vm15, %v5888_v33, %v958_v59  ;;  %v5985_v17 = vmul.f32 1.050701, %v997_v26  ;;  %v4141_v25 = vadd.f32 -1.0, %v4983_v16  ;;  %4988 = vpow2.f32 %v729_v22  ;;  %v6012_v59 = vpop.permute.xlu0 %406 }
 0x145   : > { %v4985_v10 = vpop.eup %4984  ;;  %v5991_v44 = vmul.f32 1.050701, %v998_v48  ;;  %v901_v18 = vmul.f32 1.442695, %v875_v0  ;;  %4990 = vpow2.f32 %v739_v15  ;;  %v1071_v33 = vmul.f32 %v5570_v38, %v5699_v12 }
 0x146   : > { %v4146_v8 = vadd.f32 -1.0, %v4985_v10  ;;  %v951_v7 = vmul.f32 1.6732632, %v4141_v25  ;;  %v1076_v51 = vmul.f32 %v5570_v38, %v5647_v11  ;;  %vm970_vm2 = vcmp.gt.f32.partialorder %v5930_v31, 0.0  ;;  %v7867_v25 = vld [vmem:[#allocation26_spill] sm:$0xff] }
 0x147   : > { %7864 = vst [vmem:[#allocation36_spill] sm:$0xff] %v5991_v44  ;;  %v4853_v4 = vpack.i.bf16 %v5991_v44, %v5985_v17  ;;  %4992 = vpow2.f32 %v901_v18  ;;  %v1056_v55 = vadd.f32 %v1036_v45, %v5600_v52  ;;  %v1091_v49 = vadd.f32 %v1071_v33, %v1051_v20  ;;  %v6021_v22 = vpop.permute.xlu1 %410 }
 0x148   : > { %v956_v9 = vmul.f32 1.6732632, %v4146_v8  ;;  %v991_v19 = vsel %vm971_vm0, %v5911_v62, %v951_v7  ;;  %v1131_v58 = vmul.f32 %v5588_v46, %v5721_v24  ;;  %v1171_v5 = vmul.f32 %v5570_v38, %v5563_v35 }
 0x149   : > { %4854 = vrot.lane.b32.xlu1 %v4853_v4, %s5338_s14  ;;  %v1176_v50 = vmul.f32 %v5570_v38, %v5602_v53  ;;  %v4987_v23 = vpop.eup %4986  ;;  %v1096_v26 = vadd.f32 %v1076_v51, %v1056_v55  ;;  %v1136_v62 = vmul.f32 %v5588_v46, %v5746_v63  ;;  %v1211_v0 = vmul.f32 %v5588_v46, %v5699_v12  ;;  %v6038_v51 = vpop.permute.xlu0 %486 }
 0x14a   : > { %v996_v1 = vsel %vm976_vm1, %v5916_v2, %v956_v9  ;;  %v6023_v16 = vmul.f32 1.050701, %v991_v19  ;;  %v4140_v15 = vadd.f32 -1.0, %v4987_v23  ;;  %vm809_vm3 = vcmp.gt.f32.partialorder %v5944_v21, 0.0  ;;  %v7868_v19 = vld [vmem:[#allocation27_spill] sm:$0xff]  ;;  %v7870_v23 = vld [vmem:[#allocation14_spill] sm:$0xff] }
 0x14b   : > { %v6025_v48 = vmul.f32 1.050701, %v996_v1  ;;  %v1191_v45 = vadd.f32 %v1171_v5, %v5561_v34  ;;  %v1196_v2 = vadd.f32 %v1176_v50, %v5600_v52  ;;  %v1216_v10 = vmul.f32 %v5588_v46, %v5647_v11  ;;  %v7869_v5 = vld [vmem:[#allocation13_spill] sm:$0xff] }
 0x14c   : > { %7865 = vst [vmem:[#allocation37_spill] sm:$0xff] %v6023_v16  ;;  %v1271_v18 = vmul.f32 %v7867_v25, %v5721_v24  ;;  %v1276_v8 = vmul.f32 %v7867_v25, %v5746_v63  ;;  %v950_v33 = vmul.f32 1.6732632, %v4140_v15  ;;  %v1151_v4 = vadd.f32 %v1131_v58, %v1091_v49  ;;  %v7871_v15 = vld [vmem:[#allocation16_spill] sm:$0xff]  ;;  %v7872_v58 = vld [vmem:[#allocation17_spill] sm:$0xff] }
 0x14d   : > { %7866 = vst [vmem:[#allocation38_spill] sm:$0xff] %v6025_v48  ;;  %v4858_v20 = vpack.i.bf16 %v6025_v48, %v6023_v16  ;;  %v1231_v7 = vadd.f32 %v1211_v0, %v1191_v45  ;;  %v1156_v9 = vadd.f32 %v1136_v62, %v1096_v26  ;;  %v1236_v55 = vadd.f32 %v1216_v10, %v1196_v2 }
 0x14e   : > { %v355_v50 = vmul.f32 %v7869_v5, %v7868_v19  ;;  %v451_v1 = vmul.f32 %v7870_v23, %v6021_v22  ;;  %v4989_v14 = vpop.eup %4988  ;;  %vm814_vm4 = vcmp.gt.f32.partialorder %v5950_v39, 0.0  ;;  %v356_v49 = vmul.f32 %v7871_v15, %v7868_v19 }
 0x14f   : > { %4859 = vrot.lane.b32.xlu0 %v4858_v20, %s5338_s14  ;;  %v1291_v47 = vadd.f32 %v1271_v18, %v1231_v7  ;;  %v452_v0 = vmul.f32 %v7872_v58, %v6021_v22  ;;  %v4991_v26 = vpop.eup %4990  ;;  %v990_v62 = vsel %vm970_vm2, %v5930_v31, %v950_v33  ;;  %v4119_v45 = vadd.f32 -1.0, %v4989_v14 }
 0x150   : > { %v1296_v2 = vadd.f32 %v1276_v8, %v1236_v55  ;;  %v395_v10 = vadd.f32 %v5989_v6, %v355_v50  ;;  %v4124_v20 = vadd.f32 -1.0, %v4991_v26  ;;  %v396_v18 = vadd.f32 %v5989_v6, %v356_v49 }
 0x151   : > { %v4993_v13 = vpop.eup %4992  ;;  %v6054_v44 = vmax.f32 %v1151_v4, %v1291_v47  ;;  %v527_v7 = vmul.f32 %v5548_v27, %v6038_v51  ;;  %v789_v63 = vmul.f32 1.6732632, %v4119_v45  ;;  %vm975_vm5 = vcmp.gt.f32.partialorder %v5965_v54, 0.0 }
 0x152   : > { %v4145_v3 = vadd.f32 -1.0, %v4993_v13  ;;  %v6059_v11 = vmax.f32 %v1156_v9, %v1296_v2  ;;  %v471_v52 = vadd.f32 %v451_v1, %v395_v10  ;;  %v794_v31 = vmul.f32 1.6732632, %v4124_v20 }
 0x153   : > { %v1331_v14 = vmin.f32 %v6054_v44, 0.0  ;;  %v528_v8 = vmul.f32 %v5552_v29, %v6038_v51  ;;  %v829_v33 = vsel %vm809_vm3, %v5944_v21, %v789_v63  ;;  %v472_v13 = vadd.f32 %v452_v0, %v396_v18 }
 0x154   : > { %v955_v47 = vmul.f32 1.6732632, %v4145_v3  ;;  %v1336_v4 = vmin.f32 %v6059_v11, 0.0  ;;  %v6069_v55 = vmul.f32 1.050701, %v990_v62  ;;  %v834_v9 = vsel %vm814_vm4, %v5950_v39, %v794_v31 }
 0x155   : > { %v6074_v50 = vmul.f32 1.050701, %v829_v33  ;;  %v1353_v1 = vmul.f32 1.442695, %v1331_v14  ;;  %v6077_v26 = vmul.f32 1.050701, %v834_v9  ;;  %v547_v45 = vadd.f32 %v527_v7, %v471_v52 }
 0x156   : > { %v995_v49 = vsel %vm975_vm5, %v5965_v54, %v955_v47  ;;  %v1363_v3 = vmul.f32 1.442695, %v1336_v4  ;;  %v567_v21 = vmul.f32 %v7870_v23, %v7868_v19  ;;  %v548_v39 = vadd.f32 %v528_v8, %v472_v13  ;;  %v6097_v8 = vpop.permute.xlu1 %482  ;;  %v7873_v4 = vld [vmem:[#allocation30_spill] sm:$0xff] }
 0x157   : > { %v6079_v2 = vmul.f32 1.050701, %v995_v49  ;;  %v869_v63 = vmin.f32 %v6074_v50, 0.0  ;;  %4994 = vpow2.f32 %v1353_v1  ;;  %v874_v0 = vmin.f32 %v6077_v26, 0.0 }
 0x158   : > { %4996 = vpow2.f32 %v1363_v3  ;;  %v568_v62 = vmul.f32 %v7872_v58, %v7868_v19  ;;  %v587_v52 = vadd.f32 %v567_v21, %v5989_v6  ;;  %v607_v20 = vmul.f32 %v5548_v27, %v6021_v22 }
 0x159   : > { %v4475_v54 = vpack.c.bf16 %v6079_v2, %v6069_v55  ;;  %v889_v10 = vmul.f32 1.442695, %v869_v63  ;;  %v899_v18 = vmul.f32 1.442695, %v874_v0  ;;  %v608_v31 = vmul.f32 %v5552_v29, %v6021_v22  ;;  %v7874_v63 = vld [vmem:[#allocation29_spill] sm:$0xff] }
 0x15a   : > { %v588_v7 = vadd.f32 %v568_v62, %v5989_v6  ;;  %v667_v14 = vmul.f32 %v5550_v28, %v6038_v51  ;;  %v627_v47 = vadd.f32 %v607_v20, %v587_v52  ;;  %v668_v33 = vmul.f32 %v5554_v30, %v6038_v51 }
 0x15b   : > { %4476 = vmatprep.subr.bf16.mxu0 %v4475_v54  ;;  %4998 = vpow2.f32 %v889_v10  ;;  %v350_v13 = vmul.f32 %v7869_v5, %v7873_v4  ;;  %v351_v1 = vmul.f32 %v7871_v15, %v7873_v4  ;;  %v446_v49 = vmul.f32 %v7870_v23, %v6012_v59 }
 0x15c   : > { %5000 = vpow2.f32 %v899_v18  ;;  %v628_v9 = vadd.f32 %v608_v31, %v588_v7  ;;  %v687_v3 = vadd.f32 %v667_v14, %v627_v47  ;;  %v447_v62 = vmul.f32 %v7872_v58, %v6012_v59 }
 0x15d   : > { %v390_v21 = vadd.f32 %v7874_v63, %v350_v13  ;;  %v522_v54 = vmul.f32 %v5548_v27, %v6097_v8  ;;  %v562_v5 = vmul.f32 %v7870_v23, %v7873_v4  ;;  %vm1431_vm6 = vcmp.gt.f32.partialorder %v6054_v44, 0.0 }
 0x15e   : > { %v688_v0 = vadd.f32 %v668_v33, %v628_v9  ;;  %v6115_v10 = vmax.f32 %v547_v45, %v687_v3  ;;  %v563_v15 = vmul.f32 %v7872_v58, %v7873_v4  ;;  %v602_v52 = vmul.f32 %v5548_v27, %v6012_v59 }
 0x15f   : > { %vm1436_vm7 = vcmp.gt.f32.partialorder %v6059_v11, 0.0  ;;  %v391_v18 = vadd.f32 %v7874_v63, %v351_v1  ;;  %v466_v7 = vadd.f32 %v446_v49, %v390_v21  ;;  %vm969_vm8 = vcmp.gt.f32.partialorder %v6074_v50, 0.0 }
 0x160   : > { %v6122_v20 = vmax.f32 %v548_v39, %v688_v0  ;;  %v727_v23 = vmin.f32 %v6115_v10, 0.0  ;;  %v523_v45 = vmul.f32 %v5552_v29, %v6097_v8  ;;  %v582_v58 = vadd.f32 %v562_v5, %v7874_v63 }
 0x161   : > { %v4995_v31 = vpop.eup %4994  ;;  %v603_v14 = vmul.f32 %v5552_v29, %v6012_v59  ;;  %v467_v13 = vadd.f32 %v447_v62, %v391_v18  ;;  %v542_v9 = vadd.f32 %v522_v54, %v466_v7  ;;  %v583_v3 = vadd.f32 %v563_v15, %v7874_v63 }
 0x162   : > { %v4997_v47 = vpop.eup %4996  ;;  %v4161_v33 = vadd.f32 -1.0, %v4995_v31  ;;  %v728_v39 = vmin.f32 %v6122_v20, 0.0  ;;  %v765_v49 = vmul.f32 1.442695, %v727_v23  ;;  %v622_v21 = vadd.f32 %v602_v52, %v582_v58 }
 0x163   : > { %v4166_v1 = vadd.f32 -1.0, %v4997_v47  ;;  %v662_v16 = vmul.f32 %v5550_v28, %v6097_v8  ;;  %v663_v5 = vmul.f32 %v5554_v30, %v6097_v8  ;;  %v543_v31 = vadd.f32 %v523_v45, %v467_v13 }
 0x164   : > { %v1411_v0 = vmul.f32 1.6732632, %v4161_v33  ;;  %v767_v48 = vmul.f32 1.442695, %v728_v39  ;;  %5002 = vpow2.f32 %v765_v49  ;;  %v623_v34 = vadd.f32 %v603_v14, %v583_v3 }
 0x165   : > { %v4999_v29 = vpop.eup %4998  ;;  %v1416_v53 = vmul.f32 1.6732632, %v4166_v1  ;;  %v682_v52 = vadd.f32 %v662_v16, %v622_v21  ;;  %vm974_vm9 = vcmp.gt.f32.partialorder %v6077_v26, 0.0  ;;  %v7875_v16 = vld [vmem:[#allocation21_spill] sm:$0xff]  ;;  %vm827_vm10 = vcmp.gt.f32.partialorder %v6115_v10, 0.0 }
 0x166   : > { %v5001_v62 = vpop.eup %5000  ;;  %v4139_v54 = vadd.f32 -1.0, %v4999_v29  ;;  %v1451_v15 = vsel %vm1431_vm6, %v6054_v44, %v1411_v0  ;;  %5004 = vpow2.f32 %v767_v48  ;;  %v683_v58 = vadd.f32 %v663_v5, %v623_v34 }
 0x167   : > { %v4144_v18 = vadd.f32 -1.0, %v5001_v62  ;;  %v1456_v7 = vsel %vm1436_vm7, %v6059_v11, %v1416_v53  ;;  %v6144_v23 = vmul.f32 1.050701, %v1451_v15  ;;  %v6149_v29 = vmax.f32 %v542_v9, %v682_v52 }
 0x168   : > { %v949_v47 = vmul.f32 1.6732632, %v4139_v54  ;;  %v6147_v45 = vmul.f32 1.050701, %v1456_v7  ;;  %v6152_v48 = vmax.f32 %v543_v31, %v683_v58  ;;  %v348_v33 = vmul.f32 %v7875_v16, %v7873_v4 }
 0x169   : > { %v954_v14 = vmul.f32 1.6732632, %v4144_v18  ;;  %v1491_v44 = vmin.f32 %v6144_v23, 0.0  ;;  %v722_v11 = vmin.f32 %v6149_v29, 0.0  ;;  %v353_v39 = vmul.f32 %v7875_v16, %v7868_v19 }
 0x16a   : > { %v989_v53 = vsel %vm969_vm8, %v6074_v50, %v949_v47  ;;  %v1496_v34 = vmin.f32 %v6147_v45, 0.0  ;;  %v723_v49 = vmin.f32 %v6152_v48, 0.0  ;;  %v388_v5 = vadd.f32 %v7874_v63, %v348_v33 }
 0x16b   : > { %v994_v13 = vsel %vm974_vm9, %v6077_v26, %v954_v14  ;;  %v6164_v9 = vmul.f32 1.050701, %v989_v53  ;;  %v1513_v1 = vmul.f32 1.442695, %v1491_v44  ;;  %v755_v0 = vmul.f32 1.442695, %v722_v11 }
 0x16c   : > { %v6167_v3 = vmul.f32 1.050701, %v994_v13  ;;  %v1523_v21 = vmul.f32 1.442695, %v1496_v34  ;;  %v757_v50 = vmul.f32 1.442695, %v723_v49  ;;  %v393_v31 = vadd.f32 %v5989_v6, %v353_v39 }
 0x16d   : > { %5006 = vpow2.f32 %v1513_v1  ;;  %v444_v26 = vmul.f32 %v5577_v41, %v6012_v59  ;;  %v449_v54 = vmul.f32 %v5577_v41, %v6021_v22  ;;  %v520_v52 = vmul.f32 %v5579_v42, %v6097_v8 }
 0x16e   : > { %v4477_v62 = vpack.c.bf16 %v6167_v3, %v6164_v9  ;;  %5008 = vpow2.f32 %v1523_v21  ;;  %v5003_v15 = vpop.eup %5002  ;;  %v525_v18 = vmul.f32 %v5579_v42, %v6038_v51  ;;  %v560_v7 = vmul.f32 %v5577_v41, %v7873_v4 }
 0x16f   : > { %5010 = vpow2.f32 %v755_v0  ;;  %v4137_v47 = vadd.f32 -1.0, %v5003_v15  ;;  %v464_v14 = vadd.f32 %v444_v26, %v388_v5  ;;  %v469_v44 = vadd.f32 %v449_v54, %v393_v31 }
 0x170   : > { %v5005_v58 = vpop.eup %5004  ;;  %4478 = vmatpush1.bf16.msra.mxu0 %v4477_v62  ;;  %5012 = vpow2.f32 %v757_v50  ;;  %v565_v33 = vmul.f32 %v5577_v41, %v7868_v19  ;;  %v580_v53 = vadd.f32 %v560_v7, %v7874_v63  ;;  %v600_v34 = vmul.f32 %v5579_v42, %v6012_v59 }
 0x171   : > { %v4138_v16 = vadd.f32 -1.0, %v5005_v58  ;;  %v807_v11 = vmul.f32 1.6732632, %v4137_v47  ;;  %v540_v39 = vadd.f32 %v520_v52, %v464_v14  ;;  %v605_v13 = vmul.f32 %v5579_v42, %v6021_v22 }
 0x172   : > { %v585_v49 = vadd.f32 %v565_v33, %v5989_v6  ;;  %v620_v21 = vadd.f32 %v600_v34, %v580_v53  ;;  %v660_v0 = vmul.f32 %v5581_v43, %v6097_v8  ;;  %vm828_vm11 = vcmp.gt.f32.partialorder %v6122_v20, 0.0 }
 0x173   : > { %v808_v1 = vmul.f32 1.6732632, %v4138_v16  ;;  %v847_v41 = vsel %vm827_vm10, %v6115_v10, %v807_v11  ;;  %v545_v50 = vadd.f32 %v525_v18, %v469_v44  ;;  %v665_v5 = vmul.f32 %v5581_v43, %v6038_v51 }
 0x174   : > { %v6199_v62 = vmul.f32 1.050701, %v847_v41  ;;  %v625_v26 = vadd.f32 %v605_v13, %v585_v49  ;;  %v680_v54 = vadd.f32 %v660_v0, %v620_v21  ;;  %vm1591_vm12 = vcmp.gt.f32.partialorder %v6144_v23, 0.0 }
 0x175   : > { %v848_v31 = vsel %vm828_vm11, %v6122_v20, %v808_v1  ;;  %vm1596_vm13 = vcmp.gt.f32.partialorder %v6147_v45, 0.0  ;;  %vm822_vm14 = vcmp.gt.f32.partialorder %v6149_v29, 0.0  ;;  %vm823_vm15 = vcmp.gt.f32.partialorder %v6152_v48, 0.0 }
 0x176   : > { %v6201_v15 = vmul.f32 1.050701, %v848_v31  ;;  %v887_v7 = vmin.f32 %v6199_v62, 0.0  ;;  %v685_v58 = vadd.f32 %v665_v5, %v625_v26  ;;  %v6205_v47 = vmax.f32 %v540_v39, %v680_v54 }
 0x177   : > { %v5007_v52 = vpop.eup %5006  ;;  %v1042_v54 = vmul.f32 %v5548_v27, %v7873_v4  ;;  %vm987_vm0 = vcmp.gt.f32.partialorder %v6199_v62, 0.0  ;;  %vm1680_vm10 = vcmask 1045504   ;;  %vm5339_vm11 = vmmov 1  }
 0x178   : > { %v5009_v10 = vpop.eup %5008  ;;  %v4181_v18 = vadd.f32 -1.0, %v5007_v52  ;;  %v888_v20 = vmin.f32 %v6201_v15, 0.0  ;;  %v925_v16 = vmul.f32 1.442695, %v887_v7  ;;  %v6210_v33 = vmax.f32 %v545_v50, %v685_v58 }
 0x179   : > { %v5011_v14 = vpop.eup %5010  ;;  %v4186_v44 = vadd.f32 -1.0, %v5009_v10  ;;  %v720_v53 = vmin.f32 %v6205_v47, 0.0  ;;  %vm988_vm1 = vcmp.gt.f32.partialorder %v6201_v15, 0.0  ;;  %vm820_vm2 = vcmp.gt.f32.partialorder %v6205_v47, 0.0 }
 0x17a   : > { %v5013_v34 = vpop.eup %5012  ;;  %v1571_v11 = vmul.f32 1.6732632, %v4181_v18  ;;  %v927_v13 = vmul.f32 1.442695, %v888_v20  ;;  %v4132_v39 = vadd.f32 -1.0, %v5011_v14  ;;  %5014 = vpow2.f32 %v925_v16 }
 0x17b   : > { %v1576_v1 = vmul.f32 1.6732632, %v4186_v44  ;;  %v4133_v49 = vadd.f32 -1.0, %v5013_v34  ;;  %v725_v21 = vmin.f32 %v6210_v33, 0.0  ;;  %v751_v50 = vmul.f32 1.442695, %v720_v53 }
 0x17c   : > { %v1611_v0 = vsel %vm1591_vm12, %v6144_v23, %v1571_v11  ;;  %5016 = vpow2.f32 %v927_v13  ;;  %v802_v41 = vmul.f32 1.6732632, %v4132_v39  ;;  %v1087_v14 = vmul.f32 %v5550_v28, %v6021_v22  ;;  %vm6412_vm12 = vmpackc.low %vm1680_vm10, %vm5339_vm11 }
 0x17d   : > { %v1616_v5 = vsel %vm1596_vm13, %v6147_v45, %v1576_v1  ;;  %v803_v31 = vmul.f32 1.6732632, %v4133_v49  ;;  %v761_v26 = vmul.f32 1.442695, %v725_v21  ;;  %v6223_v52 = vmul.f32 1.050701, %v1611_v0 }
 0x17e   : > { %v6225_v7 = vmul.f32 1.050701, %v1616_v5  ;;  %v842_v23 = vsel %vm822_vm14, %v6149_v29, %v802_v41  ;;  %5018 = vpow2.f32 %v751_v50  ;;  %v1047_v45 = vmul.f32 %v5548_v27, %v7868_v19 }
 0x17f   : > { %7876 = vst [vmem:[#allocation26_spill] sm:$0xff] %v6223_v52  ;;  %v843_v58 = vsel %vm823_vm15, %v6152_v48, %v803_v31  ;;  %v6233_v10 = vmul.f32 1.050701, %v842_v23  ;;  %5020 = vpow2.f32 %v761_v26  ;;  %v1082_v29 = vmul.f32 %v5550_v28, %v6012_v59 }
 0x180   : > { %7877 = vst [vmem:[#allocation27_spill] sm:$0xff] %v6225_v7  ;;  %v6239_v18 = vpack.c.bf16 %v6225_v7, %v6223_v52  ;;  %v6241_v20 = vmul.f32 1.050701, %v843_v58  ;;  %v1062_v44 = vadd.f32 %v1042_v54, %v7874_v63  ;;  %v1067_v27 = vadd.f32 %v1047_v45, %v5989_v6 }
 0x181   : > { %v882_v48 = vmin.f32 %v6233_v10, 0.0  ;;  %v1142_v53 = vmul.f32 %v5566_v36, %v6097_v8  ;;  %v1147_v34 = vmul.f32 %v5566_v36, %v6038_v51  ;;  %v1182_v11 = vmul.f32 %v5550_v28, %v7873_v4 }
 0x182   : > { %7878 = vst [vmem:[#allocation13_spill] sm:$0xff] %v6239_v18  ;;  %4657 = vmatpush1.bf16.msra.mxu1 %v6239_v18  ;;  %v883_v16 = vmin.f32 %v6241_v20, 0.0  ;;  %v1107_v39 = vadd.f32 %v1087_v14, %v1067_v27  ;;  %v1187_v1 = vmul.f32 %v5550_v28, %v7868_v19  ;;  %v1222_v49 = vmul.f32 %v5566_v36, %v6012_v59  ;;  %v5191_v18 = vld [vmem:[%s5530_s10 + $0x8] sm:$0x3f] }
 0x183   : > { %v915_v13 = vmul.f32 1.442695, %v882_v48  ;;  %v1102_v0 = vadd.f32 %v1082_v29, %v1062_v44  ;;  %v1202_v41 = vadd.f32 %v1182_v11, %v7874_v63  ;;  %v1227_v50 = vmul.f32 %v5566_v36, %v6021_v22 }
 0x184   : > { %v917_v21 = vmul.f32 1.442695, %v883_v16  ;;  %v5015_v5 = vpop.eup %5014  ;;  %v1207_v31 = vadd.f32 %v1187_v1, %v5989_v6  ;;  %v1282_v26 = vmul.f32 %v5575_v40, %v6097_v8  ;;  %v1287_v28 = vmul.f32 %v5575_v40, %v6038_v51 }
 0x185   : > { %5022 = vpow2.f32 %v915_v13  ;;  %v4157_v23 = vadd.f32 -1.0, %v5015_v5  ;;  %v1162_v58 = vadd.f32 %v1142_v53, %v1102_v0  ;;  %v1242_v45 = vadd.f32 %v1222_v49, %v1202_v41 }
 0x186   : > { %v5017_v54 = vpop.eup %5016  ;;  %5024 = vpow2.f32 %v917_v21  ;;  %v1167_v14 = vadd.f32 %v1147_v34, %v1107_v39  ;;  %v1247_v36 = vadd.f32 %v1227_v50, %v1207_v31  ;;  %vm825_vm3 = vcmp.gt.f32.partialorder %v6210_v33, 0.0 }
 0x187   : > { %v4158_v29 = vadd.f32 -1.0, %v5017_v54  ;;  %v967_v44 = vmul.f32 1.6732632, %v4157_v23  ;;  %v1302_v27 = vadd.f32 %v1282_v26, %v1242_v45  ;;  %v1041_v53 = vmul.f32 %v5568_v37, %v7873_v4 }
 0x188   : > { %v5019_v48 = vpop.eup %5018  ;;  %v1307_v13 = vadd.f32 %v1287_v28, %v1247_v36  ;;  %v1046_v49 = vmul.f32 %v5568_v37, %v7868_v19  ;;  %vm982_vm4 = vcmp.gt.f32.partialorder %v6233_v10, 0.0  ;;  %v1081_v26 = vmul.f32 %v5570_v38, %v6012_v59 }
 0x189   : > { %v5021_v16 = vpop.eup %5020  ;;  %v968_v11 = vmul.f32 1.6732632, %v4158_v29  ;;  %v4130_v40 = vadd.f32 -1.0, %v5019_v48  ;;  %v1007_v1 = vsel %vm987_vm0, %v6199_v62, %v967_v44  ;;  %v6279_v39 = vmax.f32 %v1162_v58, %v1302_v27 }
 0x18a   : > { %v4135_v34 = vadd.f32 -1.0, %v5021_v16  ;;  %v6286_v0 = vmul.f32 1.050701, %v1007_v1  ;;  %v6289_v50 = vmax.f32 %v1167_v14, %v1307_v13  ;;  %v1061_v54 = vadd.f32 %v1041_v53, %v7874_v63 }
 0x18b   : > { %v1008_v21 = vsel %vm988_vm1, %v6201_v15, %v968_v11  ;;  %v800_v41 = vmul.f32 1.6732632, %v4130_v40  ;;  %v1342_v31 = vmin.f32 %v6279_v39, 0.0  ;;  %v1086_v23 = vmul.f32 %v5570_v38, %v6021_v22 }
 0x18c   : > { %v6291_v5 = vmul.f32 1.050701, %v1008_v21  ;;  %v805_v62 = vmul.f32 1.6732632, %v4135_v34  ;;  %v1347_v15 = vmin.f32 %v6289_v50, 0.0  ;;  %vm983_vm5 = vcmp.gt.f32.partialorder %v6241_v20, 0.0 }
 0x18d   : > { %v840_v28 = vsel %vm820_vm2, %v6205_v47, %v800_v41  ;;  %v1375_v14 = vmul.f32 1.442695, %v1342_v31  ;;  %v1066_v44 = vadd.f32 %v1046_v49, %v5989_v6  ;;  %v1101_v40 = vadd.f32 %v1081_v26, %v1061_v54 }
 0x18e   : > { %7879 = vst [vmem:[#allocation14_spill] sm:$0xff] %v6291_v5  ;;  %v4868_v58 = vpack.i.bf16 %v6291_v5, %v6286_v0  ;;  %v845_v45 = vsel %vm825_vm3, %v6210_v33, %v805_v62  ;;  %v6308_v29 = vmul.f32 1.050701, %v840_v28  ;;  %v1385_v48 = vmul.f32 1.442695, %v1347_v15  ;;  %v7898_v5 = vld [vmem:[#allocation31_spill] sm:$0xff] }
 0x18f   : > { %v5023_v36 = vpop.eup %5022  ;;  %v6311_v47 = vmul.f32 1.050701, %v845_v45  ;;  %5026 = vpow2.f32 %v1375_v14  ;;  %v1106_v53 = vadd.f32 %v1086_v23, %v1066_v44  ;;  %v1141_v21 = vmul.f32 %v5588_v46, %v6097_v8 }
 0x190   : > { %v5025_v27 = vpop.eup %5024  ;;  %4869 = vrot.lane.b32.xlu0 %v4868_v58, %s5338_s14  ;;  %v4152_v16 = vadd.f32 -1.0, %v5023_v36  ;;  %v880_v11 = vmin.f32 %v6308_v29, 0.0  ;;  %5028 = vpow2.f32 %v1385_v48  ;;  %v1146_v49 = vmul.f32 %v5588_v46, %v6038_v51 }
 0x191   : > { %v4153_v33 = vadd.f32 -1.0, %v5025_v27  ;;  %v885_v13 = vmin.f32 %v6311_v47, 0.0  ;;  %v1181_v31 = vmul.f32 %v5570_v38, %v7873_v4  ;;  %v1186_v26 = vmul.f32 %v5570_v38, %v7868_v19  ;;  %v7881_v27 = vld [vmem:[#allocation22_spill] sm:$0xff] }
 0x192   : > { %v962_v1 = vmul.f32 1.6732632, %v4152_v16  ;;  %v911_v34 = vmul.f32 1.442695, %v880_v11  ;;  %v1221_v15 = vmul.f32 %v5588_v46, %v6012_v59  ;;  %v1226_v54 = vmul.f32 %v5588_v46, %v6021_v22 }
 0x193   : > { %v963_v41 = vmul.f32 1.6732632, %v4153_v33  ;;  %v921_v62 = vmul.f32 1.442695, %v885_v13  ;;  %v1201_v45 = vadd.f32 %v1181_v31, %v7874_v63  ;;  %vm1442_vm6 = vcmp.gt.f32.partialorder %v6279_v39, 0.0 }
 0x194   : > { %v1002_v28 = vsel %vm982_vm4, %v6233_v10, %v962_v1  ;;  %5030 = vpow2.f32 %v911_v34  ;;  %v1206_v10 = vadd.f32 %v1186_v26, %v5989_v6  ;;  %v1281_v36 = vmul.f32 %v7867_v25, %v6097_v8 }
 0x195   : > { %v1003_v23 = vsel %vm983_vm5, %v6241_v20, %v963_v41  ;;  %v6335_v58 = vmul.f32 1.050701, %v1002_v28  ;;  %5032 = vpow2.f32 %v921_v62  ;;  %v1286_v46 = vmul.f32 %v7867_v25, %v6038_v51 }
 0x196   : > { %v6338_v14 = vmul.f32 1.050701, %v1003_v23  ;;  %v1161_v48 = vadd.f32 %v1141_v21, %v1101_v40  ;;  %v1241_v44 = vadd.f32 %v1221_v15, %v1201_v45  ;;  %v4878_v20 = vpack.i.bf16 %v6079_v2, %v6069_v55 }
 0x197   : > { %v347_v16 = vmul.f32 %v7881_v27, %v7873_v4  ;;  %vm1447_vm7 = vcmp.gt.f32.partialorder %v6289_v50, 0.0  ;;  %v1166_v33 = vadd.f32 %v1146_v49, %v1106_v53  ;;  %v1246_v13 = vadd.f32 %v1226_v54, %v1206_v10 }
 0x198   : > { %7880 = vst [vmem:[#allocation16_spill] sm:$0xff] %v6338_v14  ;;  %v4863_v11 = vpack.i.bf16 %v6338_v14, %v6335_v58  ;;  %v1301_v1 = vadd.f32 %v1281_v36, %v1241_v44  ;;  %4879 = vrot.lane.b32.xlu0 %v4878_v20, %s5338_s14  ;;  %v352_v25 = vmul.f32 %v7881_v27, %v7868_v19  ;;  %vm980_vm8 = vcmp.gt.f32.partialorder %v6308_v29, 0.0 }
 0x199   : > { %v443_v40 = vmul.f32 %v5608_v56, %v6012_v59  ;;  %v448_v55 = vmul.f32 %v5608_v56, %v6021_v22  ;;  %v5027_v2 = vpop.eup %5026  ;;  %v1306_v34 = vadd.f32 %v1286_v46, %v1246_v13  ;;  %v387_v53 = vadd.f32 %v7874_v63, %v347_v16 }
 0x19a   : > { %4864 = vrot.lane.b32.xlu1 %v4863_v11, %s5338_s14  ;;  %v559_v21 = vmul.f32 %v5608_v56, %v7873_v4  ;;  %v5029_v49 = vpop.eup %5028  ;;  %vm985_vm9 = vcmp.gt.f32.partialorder %v6311_v47, 0.0  ;;  %v4172_v41 = vadd.f32 -1.0, %v5027_v2  ;;  %v6366_v62 = vmax.f32 %v1161_v48, %v1301_v1 }
 0x19b   : > { %v392_v31 = vadd.f32 %v5989_v6, %v352_v25  ;;  %v519_v26 = vmul.f32 %v5610_v57, %v6097_v8  ;;  %v4177_v28 = vadd.f32 -1.0, %v5029_v49  ;;  %v6371_v15 = vmax.f32 %v1166_v33, %v1306_v34 }
 0x19c   : > { %v524_v54 = vmul.f32 %v5610_v57, %v6038_v51  ;;  %v564_v23 = vmul.f32 %v5608_v56, %v7868_v19  ;;  %v1422_v45 = vmul.f32 1.6732632, %v4172_v41  ;;  %v1341_v10 = vmin.f32 %v6366_v62, 0.0 }
 0x19d   : > { %v463_v36 = vadd.f32 %v443_v40, %v387_v53  ;;  %v468_v46 = vadd.f32 %v448_v55, %v392_v31  ;;  %v1427_v44 = vmul.f32 1.6732632, %v4177_v28  ;;  %v1346_v20 = vmin.f32 %v6371_v15, 0.0 }
 0x19e   : > { %v5031_v48 = vpop.eup %5030  ;;  %v579_v27 = vadd.f32 %v559_v21, %v7874_v63  ;;  %v584_v16 = vadd.f32 %v564_v23, %v5989_v6  ;;  %v1462_v13 = vsel %vm1442_vm6, %v6279_v39, %v1422_v45  ;;  %v1373_v56 = vmul.f32 1.442695, %v1341_v10 }
 0x19f   : > { %v5033_v11 = vpop.eup %5032  ;;  %v4150_v33 = vadd.f32 -1.0, %v5031_v48  ;;  %v599_v1 = vmul.f32 %v5610_v57, %v6012_v59  ;;  %v1467_v40 = vsel %vm1447_vm7, %v6289_v50, %v1427_v44  ;;  %v6389_v55 = vmul.f32 1.050701, %v1462_v13 }
 0x1a0   : > { %v4155_v25 = vadd.f32 -1.0, %v5033_v11  ;;  %v1383_v2 = vmul.f32 1.442695, %v1346_v20  ;;  %v6391_v53 = vmul.f32 1.050701, %v1467_v40  ;;  %5034 = vpow2.f32 %v1373_v56 }
 0x1a1   : > { %v960_v34 = vmul.f32 1.6732632, %v4150_v33  ;;  %v604_v21 = vmul.f32 %v5610_v57, %v6021_v22  ;;  %v1502_v49 = vmin.f32 %v6389_v55, 0.0  ;;  %v539_v41 = vadd.f32 %v519_v26, %v463_v36  ;;  %v6430_v40 = vld [vmem:[%s5530_s10 + $0x20] sm:$0x3f] }
 0x1a2   : > { %v965_v39 = vmul.f32 1.6732632, %v4155_v25  ;;  %5036 = vpow2.f32 %v1383_v2  ;;  %v1507_v50 = vmin.f32 %v6391_v53, 0.0  ;;  %v544_v28 = vadd.f32 %v524_v54, %v468_v46  ;;  %v7885_v2 = vld [vmem:[#allocation12_spill] sm:$0xff] }
 0x1a3   : > { %v1000_v31 = vsel %vm980_vm8, %v6308_v29, %v960_v34  ;;  %v619_v23 = vadd.f32 %v599_v1, %v579_v27  ;;  %v1535_v48 = vmul.f32 1.442695, %v1502_v49  ;;  %v624_v44 = vadd.f32 %v604_v21, %v584_v16 }
 0x1a4   : > { %v1005_v45 = vsel %vm985_vm9, %v6311_v47, %v965_v39  ;;  %v6403_v10 = vmul.f32 1.050701, %v1000_v31  ;;  %v1545_v11 = vmul.f32 1.442695, %v1507_v50  ;;  %v659_v26 = vmul.f32 %v5616_v60, %v6097_v8  ;;  %v7884_v47 = vld [vmem:[#allocation19_spill] sm:$0xff] }
 0x1a5   : > { %v6405_v20 = vmul.f32 1.050701, %v1005_v45  ;;  %v664_v29 = vmul.f32 %v5616_v60, %v6038_v51  ;;  %5038 = vpow2.f32 %v1535_v48  ;;  %v349_v36 = vmul.f32 %v7884_v47, %v7873_v4 }
 0x1a6   : > { %5040 = vpow2.f32 %v1545_v11  ;;  %v679_v27 = vadd.f32 %v659_v26, %v619_v23  ;;  %v7807_v33 = vmov 0.0   ;;  %v354_v13 = vmul.f32 %v7884_v47, %v7868_v19 }
 0x1a7   : > { %v4479_v46 = vpack.c.bf16 %v6405_v20, %v6403_v10  ;;  %v684_v16 = vadd.f32 %v664_v29, %v624_v44  ;;  %1760 = vmatprep.mubr.f32.mxu0 %v7807_v33  ;;  %2191 = vmatprep.mubr.f32.mxu1 %v7807_v33  ;;  %v389_v56 = vadd.f32 %v7874_v63, %v349_v36  ;;  %vm1441_vm13 = vcmp.gt.f32.partialorder %v6366_v62, 0.0 }
 0x1a8   : > { %v445_v1 = vmul.f32 %v5558_v32, %v6012_v59  ;;  %v450_v25 = vmul.f32 %v5558_v32, %v6021_v22  ;;  %v6434_v34 = vrot.slane %v6430_v40, %v7885_v2  ;;  %v6438_v21 = vmax.f32 %v539_v41, %v679_v27 }
 0x1a9   : > { %4481 = vmatprep.subr.msk.bf16.mxu0 %vm6412_vm12, %v4479_v46  ;;  %v6440_v39 = vmax.f32 %v544_v28, %v684_v16  ;;  %v521_v49 = vmul.f32 %v5568_v37, %v6097_v8  ;;  %v394_v31 = vadd.f32 %v5989_v6, %v354_v13  ;;  %v561_v23 = vmul.f32 %v5558_v32, %v7873_v4 }
 0x1aa   : > { %v465_v50 = vadd.f32 %v445_v1, %v389_v56  ;;  %v5035_v45 = vpop.eup %5034  ;;  %vm1446_vm14 = vcmp.gt.f32.partialorder %v6371_v15, 0.0  ;;  %v719_v48 = vmin.f32 %v6438_v21, 0.0  ;;  %v526_v28 = vmul.f32 %v5568_v37, %v6038_v51 }
 0x1ab   : > { %v724_v41 = vmin.f32 %v6440_v39, 0.0  ;;  %v4171_v11 = vadd.f32 -1.0, %v5035_v45  ;;  %v470_v26 = vadd.f32 %v450_v25, %v394_v31  ;;  %v566_v47 = vmul.f32 %v5558_v32, %v7868_v19 }
 0x1ac   : > { %v5037_v44 = vpop.eup %5036  ;;  %v541_v29 = vadd.f32 %v521_v49, %v465_v50  ;;  %v749_v46 = vmul.f32 1.442695, %v719_v48  ;;  %v581_v16 = vadd.f32 %v561_v23, %v7874_v63  ;;  %v601_v1 = vmul.f32 %v5568_v37, %v6012_v59 }
 0x1ad   : > { %v4176_v36 = vadd.f32 -1.0, %v5037_v44  ;;  %v759_v27 = vmul.f32 1.442695, %v724_v41  ;;  %v1421_v13 = vmul.f32 1.6732632, %v4171_v11  ;;  %v586_v56 = vadd.f32 %v566_v47, %v5989_v6 }
 0x1ae   : > { %v606_v33 = vmul.f32 %v5568_v37, %v6021_v22  ;;  %5042 = vpow2.f32 %v749_v46  ;;  %v661_v25 = vmul.f32 %v5570_v38, %v6097_v8  ;;  %v666_v32 = vmul.f32 %v5570_v38, %v6038_v51 }
 0x1af   : > { %v1426_v45 = vmul.f32 1.6732632, %v4176_v36  ;;  %v5039_v49 = vpop.eup %5038  ;;  %v1461_v31 = vsel %vm1441_vm13, %v6366_v62, %v1421_v13  ;;  %5044 = vpow2.f32 %v759_v27  ;;  %v621_v50 = vadd.f32 %v601_v1, %v581_v16 }
 0x1b0   : > { %v626_v23 = vadd.f32 %v606_v33, %v586_v56  ;;  %v5041_v48 = vpop.eup %5040  ;;  %v4192_v41 = vadd.f32 -1.0, %v5039_v49  ;;  %v6471_v44 = vmul.f32 1.050701, %v1461_v31  ;;  %v546_v11 = vadd.f32 %v526_v28, %v470_v26 }
 0x1b1   : > { %v1466_v37 = vsel %vm1446_vm14, %v6371_v15, %v1426_v45  ;;  %v4197_v47 = vadd.f32 -1.0, %v5041_v48  ;;  %v681_v38 = vadd.f32 %v661_v25, %v621_v50  ;;  %v6477_v62 = vrot.slane %v5191_v18, %v7885_v2 }
 0x1b2   : > { %v6473_v36 = vmul.f32 1.050701, %v1466_v37  ;;  %v686_v46 = vadd.f32 %v666_v32, %v626_v23  ;;  %v1582_v27 = vmul.f32 1.6732632, %v4192_v41  ;;  %v1501_v33 = vmin.f32 %v6471_v44, 0.0 }
 0x1b3   : > { %v4888_v16 = vpack.i.bf16 %v6405_v20, %v6403_v10  ;;  %v1587_v15 = vmul.f32 1.6732632, %v4197_v47  ;;  %vm1602_vm15 = vcmp.gt.f32.partialorder %v6389_v55, 0.0  ;;  %v6484_v26 = vmax.f32 %v541_v29, %v681_v38  ;;  %v6496_v32 = vld [vmem:[%s5530_s10] sm:$0x3f] }
 0x1b4   : > { %v1506_v28 = vmin.f32 %v6473_v36, 0.0  ;;  %vm1607_vm0 = vcmp.gt.f32.partialorder %v6391_v53, 0.0  ;;  %v1622_v13 = vsel %vm1602_vm15, %v6389_v55, %v1582_v27  ;;  %v1533_v56 = vmul.f32 1.442695, %v1501_v33  ;;  %v7889_v27 = vld [vmem:[#allocation20_spill] sm:$0xff] }
 0x1b5   : > { %v6488_v1 = vmax.f32 %v546_v11, %v686_v46  ;;  %4889 = vrot.lane.b32.xlu0 %v4888_v16, %s5338_s14  ;;  %v1627_v45 = vsel %vm1607_vm0, %v6391_v53, %v1587_v15  ;;  %v6492_v25 = vmul.f32 1.050701, %v1622_v13  ;;  %v721_v20 = vmin.f32 %v6484_v26, 0.0  ;;  %v7890_v13 = vld [vmem:[#allocation15_spill] sm:$0xff] }
 0x1b6   : > { %v1543_v10 = vmul.f32 1.442695, %v1506_v28  ;;  %v6500_v29 = vrot.slane %v6496_v32, %v7885_v2  ;;  %v6502_v49 = vmul.f32 1.050701, %v1627_v45  ;;  %5046 = vpow2.f32 %v1533_v56 }
 0x1b7   : > { %7886 = vst [vmem:[#allocation17_spill] sm:$0xff] %v6492_v25  ;;  %v726_v55 = vmin.f32 %v6488_v1, 0.0  ;;  %v753_v31 = vmul.f32 1.442695, %v721_v20  ;;  %vm819_vm1 = vcmp.gt.f32.partialorder %v6438_v21, 0.0  ;;  %v1030_v41 = vmul.f32 %v5579_v42, %v5563_v35 }
 0x1b8   : > { %7887 = vst [vmem:[#allocation30_spill] sm:$0xff] %v6502_v49  ;;  %5048 = vpow2.f32 %v1543_v10  ;;  %v5043_v23 = vpop.eup %5042  ;;  %v6511_v48 = vpack.c.bf16 %v6502_v49, %v6492_v25  ;;  %v1070_v47 = vmul.f32 %v5581_v43, %v5699_v12  ;;  %v1130_v38 = vmul.f32 %v6477_v62, %v5721_v24  ;;  %v7894_v49 = vld [vmem:[#allocation23_spill] sm:$0xff] }
 0x1b9   : > { %v763_v2 = vmul.f32 1.442695, %v726_v55  ;;  %v5045_v37 = vpop.eup %5044  ;;  %v4129_v11 = vadd.f32 -1.0, %v5043_v23  ;;  %5050 = vpow2.f32 %v753_v31  ;;  %v1050_v33 = vadd.f32 %v1030_v41, %v7889_v27 }
 0x1ba   : > { %7888 = vst [vmem:[#allocation29_spill] sm:$0xff] %v6511_v48  ;;  %4656 = vmatprep.subr.msk.bf16.mxu1 %vm6412_vm12, %v6511_v48  ;;  %v4134_v46 = vadd.f32 -1.0, %v5045_v37  ;;  %v1170_v16 = vmul.f32 %v5581_v43, %v5563_v35  ;;  %vm824_vm2 = vcmp.gt.f32.partialorder %v6440_v39, 0.0  ;;  %v1210_v28 = vmul.f32 %v6477_v62, %v5699_v12 }
 0x1bb   : > { %5052 = vpow2.f32 %v763_v2  ;;  %v799_v15 = vmul.f32 1.6732632, %v4129_v11  ;;  %v6530_v56 = vrot.slane %v5191_v18, %v7890_v13  ;;  %vm1601_vm3 = vcmp.gt.f32.partialorder %v6471_v44, 0.0  ;;  %v7891_v2 = vld [vmem:[#allocation24_spill] sm:$0xff] }
 0x1bc   : > { %v804_v45 = vmul.f32 1.6732632, %v4134_v46  ;;  %v1090_v10 = vadd.f32 %v1070_v47, %v1050_v33  ;;  %v1190_v20 = vadd.f32 %v1170_v16, %v7889_v27  ;;  %v1029_v23 = vmul.f32 %v5610_v57, %v5563_v35  ;;  %v7893_v33 = vld [vmem:[#allocation38_spill] sm:$0xff] }
 0x1bd   : > { %v839_v55 = vsel %vm819_vm1, %v6438_v21, %v799_v15  ;;  %v1270_v31 = vmul.f32 %v6530_v56, %v5721_v24  ;;  %v1034_v18 = vmul.f32 %v5610_v57, %v7891_v2  ;;  %vm1606_vm4 = vcmp.gt.f32.partialorder %v6473_v36, 0.0  ;;  %v7892_v21 = vld [vmem:[#allocation37_spill] sm:$0xff] }
 0x1be   : > { %v844_v41 = vsel %vm824_vm2, %v6440_v39, %v804_v45  ;;  %v6544_v37 = vmul.f32 1.050701, %v839_v55  ;;  %v1150_v11 = vadd.f32 %v1130_v38, %v1090_v10  ;;  %v1230_v47 = vadd.f32 %v1210_v28, %v1190_v20  ;;  %v7895_v39 = vld [vmem:[#allocation28_spill] sm:$0xff] }
 0x1bf   : > { %v6547_v46 = vmul.f32 1.050701, %v844_v41  ;;  %vm821_vm5 = vcmp.gt.f32.partialorder %v6484_v26, 0.0  ;;  %vm826_vm6 = vcmp.gt.f32.partialorder %v6488_v1, 0.0  ;;  %v1049_v20 = vadd.f32 %v1029_v23, %v7889_v27 }
 0x1c0   : > { %v5047_v15 = vpop.eup %5046  ;;  %v879_v50 = vmin.f32 %v6544_v37, 0.0  ;;  %v1290_v45 = vadd.f32 %v1270_v31, %v1230_v47  ;;  %v1069_v55 = vmul.f32 %v5616_v60, %v5699_v12  ;;  %v1054_v25 = vadd.f32 %v1034_v18, %v7894_v49 }
 0x1c1   : > { %v4191_v28 = vadd.f32 -1.0, %v5047_v15  ;;  %v884_v10 = vmin.f32 %v6547_v46, 0.0  ;;  %v1074_v31 = vmul.f32 %v5616_v60, %v7895_v39  ;;  %v1129_v47 = vmul.f32 %v6500_v29, %v5721_v24 }
 0x1c2   : > { %v5049_v38 = vpop.eup %5048  ;;  %v909_v16 = vmul.f32 1.442695, %v879_v50  ;;  %v6560_v53 = vmax.f32 %v1150_v11, %v1290_v45  ;;  %vm1667_vm7 = vcmask 244736   ;;  %v1089_v11 = vadd.f32 %v1069_v55, %v1049_v20 }
 0x1c3   : > { %v4196_v41 = vadd.f32 -1.0, %v5049_v38  ;;  %v5051_v48 = vpop.eup %5050  ;;  %v1581_v7 = vmul.f32 1.6732632, %v4191_v28  ;;  %v919_v52 = vmul.f32 1.442695, %v884_v10  ;;  %v1134_v14 = vmul.f32 %v6500_v29, %v7898_v5 }
 0x1c4   : > { %5054 = vpow2.f32 %v909_v16  ;;  %v4131_v57 = vadd.f32 -1.0, %v5051_v48  ;;  %v1330_v38 = vmin.f32 %v6560_v53, 0.0  ;;  %vm979_vm8 = vcmp.gt.f32.partialorder %v6544_v37, 0.0 }
 0x1c5   : > { %v5053_v15 = vpop.eup %5052  ;;  %v1586_v23 = vmul.f32 1.6732632, %v4196_v41  ;;  %v1621_v50 = vsel %vm1601_vm3, %v6471_v44, %v1581_v7  ;;  %5056 = vpow2.f32 %v919_v52  ;;  %v1169_v52 = vmul.f32 %v5616_v60, %v5563_v35 }
 0x1c6   : > { %v4136_v18 = vadd.f32 -1.0, %v5053_v15  ;;  %v6574_v28 = vmul.f32 1.050701, %v1621_v50  ;;  %v801_v10 = vmul.f32 1.6732632, %v4131_v57  ;;  %v1174_v44 = vmul.f32 %v5616_v60, %v7891_v2 }
 0x1c7   : > { %v1626_v45 = vsel %vm1606_vm4, %v6473_v36, %v1586_v23  ;;  %v1351_v41 = vmul.f32 1.442695, %v1330_v38  ;;  %v1209_v57 = vmul.f32 %v6500_v29, %v5699_v12  ;;  %v1189_v15 = vadd.f32 %v1169_v52, %v7889_v27 }
 0x1c8   : > { %7896 = vst [vmem:[#allocation21_spill] sm:$0xff] %v6574_v28  ;;  %v6576_v16 = vmul.f32 1.050701, %v1626_v45  ;;  %v806_v48 = vmul.f32 1.6732632, %v4136_v18  ;;  %v841_v7 = vsel %vm821_vm5, %v6484_v26, %v801_v10  ;;  %v1094_v23 = vadd.f32 %v1074_v31, %v1054_v25 }
 0x1c9   : > { %5058 = vpow2.f32 %v1351_v41  ;;  %v6596_v55 = vmul.f32 1.050701, %v841_v7  ;;  %v1214_v38 = vmul.f32 %v6500_v29, %v7895_v39  ;;  %v6606_v50 = vrot.slane %v6496_v32, %v7890_v13 }
 0x1ca   : > { %7897 = vst [vmem:[#allocation22_spill] sm:$0xff] %v6576_v16  ;;  %v6591_v36 = vpack.c.bf16 %v6576_v16, %v6574_v28  ;;  %v846_v20 = vsel %vm826_vm6, %v6488_v1, %v806_v48  ;;  %vm984_vm9 = vcmp.gt.f32.partialorder %v6547_v46, 0.0  ;;  %v1194_v18 = vadd.f32 %v1174_v44, %v7894_v49  ;;  %v6623_v44 = vld [vmem:[#allocation6 + $0x30] sm:$0xff]  ;;  %v7903_v16 = vld [vmem:[#allocation32_spill] sm:$0xff] }
 0x1cb   : > { %v6600_v26 = vmul.f32 1.050701, %v846_v20  ;;  %v881_v1 = vmin.f32 %v6596_v55, 0.0  ;;  %v1229_v45 = vadd.f32 %v1209_v57, %v1189_v15  ;;  %v1035_v25 = vmul.f32 %v5579_v42, %v7891_v2  ;;  %7900 = vst [vmem:[#allocation12_spill] sm:$0xff] %v6623_v44 }
 0x1cc   : > { %7899 = vst [vmem:[#allocation19_spill] sm:$0xff] %v6591_v36  ;;  %4658 = vmatpush1.bf16.msk.msra.mxu1 %vm6412_vm12, %v6591_v36  ;;  %v1149_v10 = vadd.f32 %v1129_v47, %v1089_v11  ;;  %v1154_v41 = vadd.f32 %v1134_v14, %v1094_v23  ;;  %v1269_v32 = vmul.f32 %v6606_v50, %v5721_v24  ;;  %vm1430_vm10 = vcmp.gt.f32.partialorder %v6560_v53, 0.0 }
 0x1cd   : > { %v886_v31 = vmin.f32 %v6600_v26, 0.0  ;;  %v913_v48 = vmul.f32 1.442695, %v881_v1  ;;  %v1234_v52 = vadd.f32 %v1214_v38, %v1194_v18  ;;  %v1274_v7 = vmul.f32 %v6606_v50, %v7898_v5 }
 0x1ce   : > { %v1075_v20 = vmul.f32 %v5581_v43, %v7895_v39  ;;  %v5055_v57 = vpop.eup %5054  ;;  %v1289_v36 = vadd.f32 %v1269_v32, %v1229_v45  ;;  %v1055_v28 = vadd.f32 %v1035_v25, %v7894_v49  ;;  %v1175_v14 = vmul.f32 %v5581_v43, %v7891_v2 }
 0x1cf   : > { %v923_v15 = vmul.f32 1.442695, %v886_v31  ;;  %4226 = vmatmul.mubr.msk.f32.vlgmr.msra.gmra.mrb[0].mxu1 %vm1667_vm7, %v6623_v44  ;;  %v5057_v47 = vpop.eup %5056  ;;  %v4149_v11 = vadd.f32 -1.0, %v5055_v57  ;;  %5060 = vpow2.f32 %v913_v48  ;;  %v1294_v23 = vadd.f32 %v1274_v7, %v1234_v52  ;;  %v6640_v48 = vld [vmem:[#allocation6 + $0x38] sm:$0x3f] }
 0x1d0   : > { %v1135_v38 = vmul.f32 %v6477_v62, %v7898_v5  ;;  %v7901_v1 = vmov 0.0   ;;  %v4154_v18 = vadd.f32 -1.0, %v5057_v47  ;;  %v6634_v45 = vmax.f32 %v1149_v10, %v1289_v36  ;;  %7902 = vst [vmem:[#allocation20_spill] sm:$0xff] %v6640_v48 }
 0x1d1   : > { %2197 = vmatprep.mubr.f32.mxu1 %v7901_v1  ;;  %5062 = vpow2.f32 %v923_v15  ;;  %v959_v25 = vmul.f32 1.6732632, %v4149_v11  ;;  %v6636_v31 = vmax.f32 %v1154_v41, %v1294_v23  ;;  %v1095_v32 = vadd.f32 %v1075_v20, %v1055_v28 }
 0x1d2   : > { %v1215_v57 = vmul.f32 %v6477_v62, %v7895_v39  ;;  %v964_v7 = vmul.f32 1.6732632, %v4154_v18  ;;  %v1329_v44 = vmin.f32 %v6634_v45, 0.0  ;;  %v1195_v47 = vadd.f32 %v1175_v14, %v7894_v49  ;;  %v7904_v49 = vld [vmem:[#allocation36_spill] sm:$0xff] }
 0x1d3   : > { %v5059_v52 = vpop.eup %5058  ;;  %v1275_v15 = vmul.f32 %v6530_v56, %v7898_v5  ;;  %4227 = vmatmul.mubr.msk.f32.gmra.mrb[2].mxu1 %vm1667_vm7, %v6640_v48  ;;  %v999_v28 = vsel %vm979_vm8, %v6544_v37, %v959_v25  ;;  %v1334_v10 = vmin.f32 %v6636_v31, 0.0  ;;  %v1155_v41 = vadd.f32 %v1135_v38, %v1095_v32 }
 0x1d4   : > { %v4160_v36 = vadd.f32 -1.0, %v5059_v52  ;;  %2571 = vmatprep.mubr.f32.mxu1 %v7901_v1  ;;  %v1004_v20 = vsel %vm984_vm9, %v6547_v46, %v964_v7  ;;  %v6656_v14 = vmul.f32 1.050701, %v999_v28  ;;  %v1349_v11 = vmul.f32 1.442695, %v1329_v44 }
 0x1d5   : > { %v1235_v23 = vadd.f32 %v1215_v57, %v1195_v47  ;;  %v6658_v18 = vmul.f32 1.050701, %v1004_v20  ;;  %v6662_v37 = vpack.c.bf16 %v7904_v49, %v7903_v16  ;;  %v1359_v25 = vmul.f32 1.442695, %v1334_v10  ;;  %v6683_v47 = vld [vmem:[#allocation6] sm:$0xff] }
 0x1d6   : > { %v1410_v48 = vmul.f32 1.6732632, %v4160_v36  ;;  %vm981_vm11 = vcmp.gt.f32.partialorder %v6596_v55, 0.0  ;;  %5064 = vpow2.f32 %v1349_v11  ;;  %v1045_v32 = vmul.f32 %v5579_v42, %v7868_v19 }
 0x1d7   : > { %v1295_v38 = vadd.f32 %v1275_v15, %v1235_v23  ;;  %v4482_v46 = vpack.c.bf16 %v6658_v18, %v6656_v14  ;;  %5066 = vpow2.f32 %v1359_v25  ;;  %v1085_v49 = vmul.f32 %v5581_v43, %v6021_v22 }
 0x1d8   : > { %v1450_v44 = vsel %vm1430_vm10, %v6560_v53, %v1410_v48  ;;  %vm986_vm13 = vcmp.gt.f32.partialorder %v6600_v26, 0.0  ;;  %v1145_v52 = vmul.f32 %v6477_v62, %v6038_v51  ;;  %v1065_v53 = vadd.f32 %v1045_v32, %v5989_v6 }
 0x1d9   : > { %v6675_v16 = vmul.f32 1.050701, %v1450_v44  ;;  %v6677_v57 = vmax.f32 %v1155_v41, %v1295_v38  ;;  %v5061_v7 = vpop.eup %5060  ;;  %4484 = vmatpush1.bf16.msk.msra.mxu0 %vm6412_vm12, %v4482_v46  ;;  %v1185_v48 = vmul.f32 %v5581_v43, %v7868_v19  ;;  %v1225_v15 = vmul.f32 %v6477_v62, %v6021_v22 }
 0x1da   : > { %v1040_v28 = vmul.f32 %v5579_v42, %v7873_v4  ;;  %v7905_v10 = vpack.c.bf16 %v5985_v17, %v5940_v61  ;;  %v4151_v41 = vadd.f32 -1.0, %v5061_v7  ;;  %v1080_v23 = vmul.f32 %v5581_v43, %v6012_v59 }
 0x1db   : > { %v5063_v36 = vpop.eup %5062  ;;  %v1490_v20 = vmin.f32 %v6675_v16, 0.0  ;;  %v1335_v11 = vmin.f32 %v6677_v57, 0.0  ;;  %v1105_v38 = vadd.f32 %v1085_v49, %v1065_v53  ;;  %v1205_v32 = vadd.f32 %v1185_v48, %v5989_v6  ;;  %v6709_v49 = vld [vmem:[#allocation6 + $0x8] sm:$0xff] }
 0x1dc   : > { %4486 = vmatprep.subr.bf16.mxu0 %v7905_v10  ;;  %v4156_v25 = vadd.f32 -1.0, %v5063_v36  ;;  %v1285_v42 = vmul.f32 %v6530_v56, %v6038_v51  ;;  %v961_v46 = vmul.f32 1.6732632, %v4151_v41  ;;  %4201 = vmatmul.mubr.msk.f32.vlgmr.msra.gmra.mrb[0].mxu0 %vm1667_vm7, %v6683_v47  ;;  %v1060_v44 = vadd.f32 %v1040_v28, %v7874_v63 }
 0x1dd   : > { %v1511_v61 = vmul.f32 1.442695, %v1490_v20  ;;  %v1361_v17 = vmul.f32 1.442695, %v1335_v11  ;;  %v7906_v10 = vpack.c.bf16 %v7893_v33, %v7892_v21  ;;  %1766 = vmatprep.mubr.f32.mxu0 %v7901_v1  ;;  %v1165_v53 = vadd.f32 %v1145_v52, %v1105_v38 }
 0x1de   : > { %v966_v7 = vmul.f32 1.6732632, %v4156_v25  ;;  %v1245_v48 = vadd.f32 %v1225_v15, %v1205_v32  ;;  %v1140_v36 = vmul.f32 %v6477_v62, %v6097_v8  ;;  %v1001_v41 = vsel %vm981_vm11, %v6596_v55, %v961_v46  ;;  %v7908_v32 = vld [vmem:[#allocation18_spill] sm:$0xff] }
 0x1df   : > { %4488 = vmatpush1.bf16.msra.mxu0 %v7906_v10  ;;  %v7907_v28 = vpack.c.bf16 %v6286_v0, %v6335_v58  ;;  %5068 = vpow2.f32 %v1511_v61  ;;  %v1100_v21 = vadd.f32 %v1080_v23, %v1060_v44  ;;  %v1180_v33 = vmul.f32 %v5581_v43, %v7873_v4 }
 0x1e0   : > { %v1006_v52 = vsel %vm986_vm13, %v6600_v26, %v966_v7  ;;  %v1021_v15 = vmul.f32 1.050701, %v1001_v41  ;;  %5070 = vpow2.f32 %v1361_v17  ;;  %v1305_v20 = vadd.f32 %v1285_v42, %v1245_v48  ;;  %v5065_v11 = vpop.eup %5064  ;;  %4202 = vmatmul.mubr.msk.f32.gmra.mrb[2].mxu0 %vm1667_vm7, %v6709_v49  ;;  %v6738_v17 = vld [vmem:[#allocation6 + $0x10] sm:$0xff] }
 0x1e1   : > { %4491 = vmatprep.subr.msk.bf16.mxu0 %vm6412_vm12, %v7907_v28  ;;  %v1026_v55 = vmul.f32 1.050701, %v1006_v52  ;;  %v1160_v0 = vadd.f32 %v1140_v36, %v1100_v21  ;;  %v1200_v58 = vadd.f32 %v1180_v33, %v7874_v63  ;;  %v1220_v23 = vmul.f32 %v6477_v62, %v6012_v59  ;;  %v5067_v25 = vpop.eup %5066  ;;  %1772 = vmatprep.mubr.f32.mxu0 %v7901_v1 }
 0x1e2   : > { %v4159_v43 = vadd.f32 -1.0, %v5065_v11  ;;  %v6732_v38 = vmax.f32 %v1165_v53, %v1305_v20  ;;  %v1280_v26 = vmul.f32 %v6530_v56, %v6097_v8  ;;  %v1033_v42 = vmul.f32 %v7908_v32, %v5563_v35  ;;  %v6761_v20 = vld [vmem:[#allocation6 + $0x18] sm:$0x3f] }
 0x1e3   : > { %v4873_v46 = vpack.i.bf16 %v1026_v55, %v1021_v15  ;;  %v4492_v61 = vpack.c.bf16 %v1026_v55, %v1021_v15  ;;  %v4164_v44 = vadd.f32 -1.0, %v5067_v25  ;;  %v1240_v7 = vadd.f32 %v1220_v23, %v1200_v58 }
 0x1e4   : > { %v1409_v10 = vmul.f32 1.6732632, %v4159_v43  ;;  %vm1429_vm14 = vcmp.gt.f32.partialorder %v6634_v45, 0.0  ;;  %vm1434_vm15 = vcmp.gt.f32.partialorder %v6636_v31, 0.0  ;;  %v1345_v62 = vmin.f32 %v6732_v38, 0.0  ;;  %4203 = vmatmul.mubr.msk.f32.gmra.mrb[4].mxu0 %vm1667_vm7, %v6738_v17 }
 0x1e5   : > { %4874 = vrot.lane.b32.xlu1 %v4873_v46, %s5338_s14  ;;  %4494 = vmatpush1.bf16.msk.msra.mxu0 %vm6412_vm12, %v4492_v61  ;;  %v1414_v56 = vmul.f32 1.6732632, %v4164_v44  ;;  %v1300_v53 = vadd.f32 %v1280_v26, %v1240_v7  ;;  %v1053_v48 = vadd.f32 %v1033_v42, %v7889_v27  ;;  %v1073_v36 = vmul.f32 %v5554_v30, %v5699_v12  ;;  %v7910_v7 = vld [vmem:[#allocation16_spill] sm:$0xff] }
 0x1e6   : > { %4496 = vmatprep.subr.bf16.mxu0 %v6662_v37  ;;  %v1449_v41 = vsel %vm1429_vm14, %v6634_v45, %v1409_v10  ;;  %v1381_v28 = vmul.f32 1.442695, %v1345_v62  ;;  %v1133_v21 = vmul.f32 %v6434_v34, %v5721_v24  ;;  %v1173_v33 = vmul.f32 %v5554_v30, %v5563_v35  ;;  %1778 = vmatprep.mubr.f32.mxu0 %v7901_v1  ;;  %v7911_v10 = vld [vmem:[#allocation14_spill] sm:$0xff] }
 0x1e7   : > { %v1454_v52 = vsel %vm1434_vm15, %v6636_v31, %v1414_v56  ;;  %v6758_v15 = vmul.f32 1.050701, %v1449_v41  ;;  %v6763_v11 = vmax.f32 %v1160_v0, %v1300_v53  ;;  %v1213_v45 = vmul.f32 %v6434_v34, %v5699_v12  ;;  %v7912_v56 = vld [vmem:[#allocation25_spill] sm:$0xff] }
 0x1e8   : > { %v6767_v55 = vmul.f32 1.050701, %v1454_v52  ;;  %5072 = vpow2.f32 %v1381_v28  ;;  %v1093_v58 = vadd.f32 %v1073_v36, %v1053_v48  ;;  %v6771_v35 = vrot.slane %v6430_v40, %v7890_v13  ;;  %4204 = vmatmul.mubr.msk.f32.gmra.mrb[6].mxu0 %vm1667_vm7, %v6761_v20 }
 0x1e9   : > { %v5069_v31 = vpop.eup %5068  ;;  %v7909_v23 = vpack.i.bf16 %v6167_v3, %v6164_v9  ;;  %v4893_v0 = vpack.i.bf16 %v6658_v18, %v6656_v14  ;;  %v1489_v25 = vmin.f32 %v6758_v15, 0.0  ;;  %v1340_v12 = vmin.f32 %v6763_v11, 0.0  ;;  %1849 = vmatprep.mubr.f32.mxu0 %v7901_v1 }
 0x1ea   : > { %v1193_v43 = vadd.f32 %v1173_v33, %v7889_v27  ;;  %v5071_v26 = vpop.eup %5070  ;;  %v4180_v42 = vadd.f32 -1.0, %v5069_v31  ;;  %vm1590_vm0 = vcmp.gt.f32.partialorder %v6675_v16, 0.0  ;;  %v1494_v40 = vmin.f32 %v6767_v55, 0.0 }
 0x1eb   : > { %4884 = vrot.lane.b32.xlu1 %v7909_v23, %s5338_s14  ;;  %vm1435_vm1 = vcmp.gt.f32.partialorder %v6677_v57, 0.0  ;;  %v1509_v9 = vmul.f32 1.442695, %v1489_v25  ;;  %v4165_v3 = vadd.f32 -1.0, %v5071_v26  ;;  %v1371_v13 = vmul.f32 1.442695, %v1340_v12 }
 0x1ec   : > { %v1233_v14 = vadd.f32 %v1213_v45, %v1193_v43  ;;  %v1570_v18 = vmul.f32 1.6732632, %v4180_v42  ;;  %v1519_v46 = vmul.f32 1.442695, %v1494_v40  ;;  %v1153_v27 = vadd.f32 %v1133_v21, %v1093_v58  ;;  %4207 = vmatmul.mubr.msk.f32.vlgmr.msra.gmra.mrb[8].mxu0 %vm1667_vm7, %v6683_v47  ;;  %v7913_v45 = vld [vmem:[#allocation26_spill] sm:$0xff] }
 0x1ed   : > { %v1273_v61 = vmul.f32 %v6771_v35, %v5721_v24  ;;  %5074 = vpow2.f32 %v1509_v9  ;;  %v1415_v44 = vmul.f32 1.6732632, %v4165_v3  ;;  %v4499_v62 = vpack.c.bf16 %v7911_v10, %v7910_v7  ;;  %4498 = vmatpush3.bf16.msra.mxu0 %v6662_v37  ;;  %1855 = vmatprep.mubr.f32.mxu0 %v7901_v1 }
 0x1ee   : > { %v1039_v53 = vmul.f32 %v7912_v56, %v7873_v4  ;;  %v1610_v48 = vsel %vm1590_vm0, %v6675_v16, %v1570_v18  ;;  %5076 = vpow2.f32 %v1519_v46  ;;  %v1079_v24 = vmul.f32 %v5616_v60, %v6012_v59 }
 0x1ef   : > { %4894 = vrot.lane.b32.xlu1 %v4893_v0, %s5338_s14  ;;  %v1293_v36 = vadd.f32 %v1273_v61, %v1233_v14  ;;  %v6802_v41 = vmul.f32 1.050701, %v1610_v48  ;;  %v1455_v28 = vsel %vm1435_vm1, %v6677_v57, %v1415_v44  ;;  %5078 = vpow2.f32 %v1371_v13  ;;  %4501 = vmatprep.subr.msk.bf16.mxu0 %vm6412_vm12, %v4499_v62 }
 0x1f0   : > { %v1044_v16 = vmul.f32 %v7912_v56, %v7868_v19  ;;  %v6811_v21 = vmul.f32 1.050701, %v1455_v28  ;;  %v1059_v52 = vadd.f32 %v1039_v53, %v7874_v63  ;;  %v1084_v57 = vmul.f32 %v5616_v60, %v6021_v22  ;;  %4208 = vmatmul.mubr.msk.f32.gmra.mrb[10].mxu0 %vm1667_vm7, %v6709_v49 }
 0x1f1   : > { %v6813_v33 = vmax.f32 %v1153_v27, %v1293_v36  ;;  %v4898_v37 = vpack.i.bf16 %v7913_v45, %v6802_v41  ;;  %v1139_v31 = vmul.f32 %v6500_v29, %v6097_v8  ;;  %vm1445_vm2 = vcmp.gt.f32.partialorder %v6732_v38, 0.0  ;;  %4504 = vmatpush3.bf16.msk.msra.mxu0 %vm6412_vm12, %v4499_v62  ;;  %1861 = vmatprep.mubr.f32.mxu0 %v7901_v1 }
 0x1f2   : > { %v1064_v58 = vadd.f32 %v1044_v16, %v5989_v6  ;;  %v5073_v23 = vpop.eup %5072  ;;  %v1495_v0 = vmin.f32 %v6811_v21, 0.0  ;;  %v1099_v12 = vadd.f32 %v1079_v24, %v1059_v52  ;;  %vm1589_vm3 = vcmp.gt.f32.partialorder %v6758_v15, 0.0 }
 0x1f3   : > { %v1333_v25 = vmin.f32 %v6813_v33, 0.0  ;;  %4899 = vrot.lane.b32.xlu0 %v4898_v37, %s5338_s14  ;;  %v4175_v43 = vadd.f32 -1.0, %v5073_v23  ;;  %v1144_v42 = vmul.f32 %v6500_v29, %v6038_v51  ;;  %v1179_v40 = vmul.f32 %v5616_v60, %v7873_v4 }
 0x1f4   : > { %v1104_v26 = vadd.f32 %v1084_v57, %v1064_v58  ;;  %v1521_v9 = vmul.f32 1.442695, %v1495_v0  ;;  %v1184_v13 = vmul.f32 %v5616_v60, %v7868_v19  ;;  %v1219_v14 = vmul.f32 %v6500_v29, %v6012_v59  ;;  %4209 = vmatmul.mubr.msk.f32.gmra.mrb[12].mxu0 %vm1667_vm7, %v6738_v17 }
 0x1f5   : > { %v1357_v3 = vmul.f32 1.442695, %v1333_v25  ;;  %v1425_v18 = vmul.f32 1.6732632, %v4175_v43  ;;  %v1159_v46 = vadd.f32 %v1139_v31, %v1099_v12  ;;  %v1199_v27 = vadd.f32 %v1179_v40, %v7874_v63  ;;  %1867 = vmatprep.mubr.f32.mxu0 %v7901_v1 }
 0x1f6   : > { %v1224_v61 = vmul.f32 %v6500_v29, %v6021_v22  ;;  %5080 = vpow2.f32 %v1521_v9  ;;  %v1204_v44 = vadd.f32 %v1184_v13, %v5989_v6  ;;  %v1279_v7 = vmul.f32 %v6606_v50, %v6097_v8 }
 0x1f7   : > { %v1284_v60 = vmul.f32 %v6606_v50, %v6038_v51  ;;  %v5075_v10 = vpop.eup %5074  ;;  %v1465_v62 = vsel %vm1445_vm2, %v6732_v38, %v1425_v18  ;;  %5082 = vpow2.f32 %v1357_v3  ;;  %v1239_v56 = vadd.f32 %v1219_v14, %v1199_v27 }
 0x1f8   : > { %v1043_v29 = vmul.f32 %v7908_v32, %v7873_v4  ;;  %v5077_v53 = vpop.eup %5076  ;;  %v4179_v48 = vadd.f32 -1.0, %v5075_v10  ;;  %v6859_v36 = vmul.f32 1.050701, %v1465_v62  ;;  %vm1440_vm4 = vcmp.gt.f32.partialorder %v6763_v11, 0.0  ;;  %4210 = vmatmul.mubr.msk.f32.gmra.mrb[14].mxu0 %vm1667_vm7, %v6761_v20 }
 0x1f9   : > { %v1244_v50 = vadd.f32 %v1224_v61, %v1204_v44  ;;  %v5079_v24 = vpop.eup %5078  ;;  %v4184_v28 = vadd.f32 -1.0, %v5077_v53  ;;  %vm1594_vm5 = vcmp.gt.f32.partialorder %v6767_v55, 0.0  ;;  %v1164_v16 = vadd.f32 %v1144_v42, %v1104_v26  ;;  %4399 = vmatprep.mubr.msk.f32.mxu0 %vm1667_vm7, %v6683_v47 }
 0x1fa   : > { %v1299_v38 = vadd.f32 %v1279_v7, %v1239_v56  ;;  %v1569_v52 = vmul.f32 1.6732632, %v4179_v48  ;;  %v1505_v57 = vmin.f32 %v6859_v36, 0.0  ;;  %v4170_v45 = vadd.f32 -1.0, %v5079_v24 }
 0x1fb   : > { %v1083_v37 = vmul.f32 %v5554_v30, %v6012_v59  ;;  %v1574_v58 = vmul.f32 1.6732632, %v4184_v28  ;;  %v1304_v31 = vadd.f32 %v1284_v60, %v1244_v50  ;;  %v1063_v0 = vadd.f32 %v1043_v29, %v7874_v63 }
 0x1fc   : > { %v6868_v23 = vmax.f32 %v1159_v46, %v1299_v38  ;;  %v1609_v25 = vsel %vm1589_vm3, %v6758_v15, %v1569_v52  ;;  %vm1595_vm6 = vcmp.gt.f32.partialorder %v6811_v21, 0.0  ;;  %v1541_v12 = vmul.f32 1.442695, %v1505_v57  ;;  %4400 = vmatmul.mubr.msk.f32.vlgmr.msra.gmra.mrb[16].mxu0 %vm1667_vm7, %v6709_v49  ;;  %v7914_v52 = vld [vmem:[#allocation23_spill] sm:$0xff] }
 0x1fd   : > { %v1420_v43 = vmul.f32 1.6732632, %v4170_v45  ;;  %v1183_v26 = vmul.f32 %v5554_v30, %v7873_v4  ;;  %v1614_v42 = vsel %vm1594_vm5, %v6767_v55, %v1574_v58  ;;  %v6882_v40 = vmax.f32 %v1164_v16, %v1304_v31  ;;  %4402 = vmatprep.mubr.msk.f32.mxu0 %vm1667_vm7, %v6738_v17 }
 0x1fe   : > { %v1339_v9 = vmin.f32 %v6868_v23, 0.0  ;;  %v1143_v3 = vmul.f32 %v6434_v34, %v6097_v8  ;;  %v6887_v13 = vmul.f32 1.050701, %v1609_v25  ;;  %v6889_v15 = vmul.f32 1.050701, %v1614_v42 }
 0x1ff   : > { %5084 = vpow2.f32 %v1541_v12  ;;  %v1460_v4 = vsel %vm1440_vm4, %v6763_v11, %v1420_v43  ;;  %v1344_v14 = vmin.f32 %v6882_v40, 0.0  ;;  %v1103_v46 = vadd.f32 %v1083_v37, %v1063_v0 }
 0x200   : > { %v6896_v55 = vmul.f32 1.050701, %v1460_v4  ;;  %v1369_v18 = vmul.f32 1.442695, %v1339_v9  ;;  %v5081_v27 = vpop.eup %5080  ;;  %v4908_v61 = vpack.i.bf16 %v6889_v15, %v6887_v13  ;;  %vm1433_vm8 = vcmp.gt.f32.partialorder %v6813_v33, 0.0  ;;  %4403 = vmatmul.mubr.msk.f32.gmra.mrb[18].mxu0 %vm1667_vm7, %v6761_v20 }
 0x201   : > { %v1203_v11 = vadd.f32 %v1183_v26, %v7874_v63  ;;  %v1223_v44 = vmul.f32 %v6434_v34, %v6012_v59  ;;  %v5083_v7 = vpop.eup %5082  ;;  %v4185_v60 = vadd.f32 -1.0, %v5081_v27  ;;  %v1163_v62 = vadd.f32 %v1143_v3, %v1103_v46  ;;  %2090 = vmatprep.mubr.f32.mxu0 %v7901_v1  ;;  %v7915_v26 = vld [vmem:[#allocation27_spill] sm:$0xff] }
 0x202   : > { %v1500_v10 = vmin.f32 %v6896_v55, 0.0  ;;  %5086 = vpow2.f32 %v1369_v18  ;;  %4909 = vrot.lane.b32.xlu0 %v4908_v61, %s5338_s14  ;;  %v4163_v56 = vadd.f32 -1.0, %v5083_v7  ;;  %v1379_v29 = vmul.f32 1.442695, %v1344_v14 }
 0x203   : > { %v1243_v53 = vadd.f32 %v1223_v44, %v1203_v11  ;;  %v1283_v48 = vmul.f32 %v6771_v35, %v6097_v8  ;;  %v1575_v63 = vmul.f32 1.6732632, %v4185_v60  ;;  %v1038_v59 = vmul.f32 %v7908_v32, %v7891_v2 }
 0x204   : > { %v1531_v50 = vmul.f32 1.442695, %v1500_v10  ;;  %v1078_v24 = vmul.f32 %v5554_v30, %v7895_v39  ;;  %v1413_v28 = vmul.f32 1.6732632, %v4163_v56  ;;  %5088 = vpow2.f32 %v1379_v29 }
 0x205   : > { %v1303_v16 = vadd.f32 %v1283_v48, %v1243_v53  ;;  %v1138_v38 = vmul.f32 %v6434_v34, %v7898_v5  ;;  %v1615_v8 = vsel %vm1595_vm6, %v6811_v21, %v1575_v63  ;;  %v1058_v57 = vadd.f32 %v1038_v59, %v7914_v52 }
 0x206   : > { %5090 = vpow2.f32 %v1531_v50  ;;  %v1178_v45 = vmul.f32 %v5554_v30, %v7891_v2  ;;  %v1635_v37 = vmul.f32 1.050701, %v1615_v8  ;;  %v1453_v58 = vsel %vm1433_vm8, %v6813_v33, %v1413_v28 }
 0x207   : > { %v6929_v31 = vmax.f32 %v1163_v62, %v1303_v16  ;;  %v1218_v0 = vmul.f32 %v6434_v34, %v7895_v39  ;;  %vm1605_vm9 = vcmp.gt.f32.partialorder %v6859_v36, 0.0  ;;  %v6934_v25 = vmul.f32 1.050701, %v1453_v58  ;;  %v6957_v62 = vpop.permute.xlu1 %4849 }
 0x208   : > { %v1098_v21 = vadd.f32 %v1078_v24, %v1058_v57  ;;  %v1198_v12 = vadd.f32 %v1178_v45, %v7914_v52  ;;  %v4903_v2 = vpack.i.bf16 %v7915_v26, %v1635_v37  ;;  %v6940_v9 = vpack.c.bf16 %v1635_v37, %v6802_v41 }
 0x209   : > { %v5085_v43 = vpop.eup %5084  ;;  %v1343_v42 = vmin.f32 %v6929_v31, 0.0  ;;  %v1278_v33 = vmul.f32 %v6771_v35, %v7898_v5  ;;  %v1493_v39 = vmin.f32 %v6934_v25, 0.0  ;;  %vm1439_vm10 = vcmp.gt.f32.partialorder %v6868_v23, 0.0 }
 0x20a   : > { %v4195_v3 = vadd.f32 -1.0, %v5085_v43  ;;  %v1158_v4 = vadd.f32 %v1138_v38, %v1098_v21  ;;  %4904 = vrot.lane.b32.xlu1 %v4903_v2, %s5338_s14  ;;  %4506 = vmatprep.subr.bf16.mxu0 %v6940_v9  ;;  %v1238_v18 = vadd.f32 %v1218_v0, %v1198_v12  ;;  %v1048_v46 = vmul.f32 %v7908_v32, %v7868_v19 }
 0x20b   : > { %v1377_v14 = vmul.f32 1.442695, %v1343_v42  ;;  %v1088_v41 = vmul.f32 %v5554_v30, %v6021_v22  ;;  %v1517_v61 = vmul.f32 1.442695, %v1493_v39  ;;  %v1148_v11 = vmul.f32 %v6434_v34, %v6038_v51  ;;  %v6997_v39 = vpop.permute.xlu0 %4859 }
 0x20c   : > { %v5087_v27 = vpop.eup %5086  ;;  %v1585_v5 = vmul.f32 1.6732632, %v4195_v3  ;;  %v1188_v44 = vmul.f32 %v5554_v30, %v7868_v19  ;;  %v1298_v60 = vadd.f32 %v1278_v33, %v1238_v18  ;;  %v1068_v10 = vadd.f32 %v1048_v46, %v5989_v6 }
 0x20d   : > { %v4169_v7 = vadd.f32 -1.0, %v5087_v27  ;;  %5092 = vpow2.f32 %v1377_v14  ;;  %v1228_v29 = vmul.f32 %v6434_v34, %v6021_v22  ;;  %v1288_v28 = vmul.f32 %v6771_v35, %v6038_v51 }
 0x20e   : > { %v1625_v32 = vsel %vm1605_vm9, %v6859_v36, %v1585_v5  ;;  %5094 = vpow2.f32 %v1517_v61  ;;  %v1208_v56 = vadd.f32 %v1188_v44, %v5989_v6  ;;  %v5089_v53 = vpop.eup %5088  ;;  %v6965_v19 = vmax.f32 %v1158_v4, %v1298_v60  ;;  %v7916_v6 = vld [vmem:[#allocation22_spill] sm:$0xff]  ;;  %v7917_v4 = vld [vmem:[#allocation21_spill] sm:$0xff] }
 0x20f   : > { %v1645_v48 = vmul.f32 1.050701, %v1625_v32  ;;  %v1419_v30 = vmul.f32 1.6732632, %v4169_v7  ;;  %v1108_v63 = vadd.f32 %v1088_v41, %v1068_v10  ;;  %v4174_v59 = vadd.f32 -1.0, %v5089_v53  ;;  %v7012_v32 = vpop.permute.xlu0 %4869 }
 0x210   : > { %v5091_v50 = vpop.eup %5090  ;;  %v1248_v24 = vadd.f32 %v1228_v29, %v1208_v56  ;;  %v6971_v36 = vpack.c.bf16 %v6889_v15, %v6887_v13  ;;  %v1338_v34 = vmin.f32 %v6965_v19, 0.0  ;;  %vm1444_vm11 = vcmp.gt.f32.partialorder %v6882_v40, 0.0  ;;  %v4855_v15 = vpop.permute.xlu1 %4854 }
 0x211   : > { %v4918_v16 = vpack.i.bf16 %v7916_v6, %v1645_v48  ;;  %v4190_v38 = vadd.f32 -1.0, %v5091_v50  ;;  %v1459_v22 = vsel %vm1439_vm10, %v6868_v23, %v1419_v30  ;;  %v1424_v8 = vmul.f32 1.6732632, %v4174_v59 }
 0x212   : > { %v6979_v52 = vmul.f32 1.050701, %v1459_v22  ;;  %v1168_v57 = vadd.f32 %v1148_v11, %v1108_v63  ;;  %4508 = vmatpush1.bf16.msra.mxu0 %v6971_v36  ;;  %vm1600_vm13 = vcmp.gt.f32.partialorder %v6896_v55, 0.0  ;;  %v1367_v35 = vmul.f32 1.442695, %v1338_v34 }
 0x213   : > { %4919 = vrot.lane.b32.xlu0 %v4918_v16, %s5338_s14  ;;  %v1580_v51 = vmul.f32 1.6732632, %v4190_v38  ;;  %v1308_v13 = vadd.f32 %v1288_v28, %v1248_v24  ;;  %vm1593_vm14 = vcmp.gt.f32.partialorder %v6934_v25, 0.0  ;;  %v1464_v23 = vsel %vm1444_vm11, %v6882_v40, %v1424_v8 }
 0x214   : > { %v1499_v45 = vmin.f32 %v6979_v52, 0.0  ;;  %vm1443_vm15 = vcmp.gt.f32.partialorder %v6929_v31, 0.0  ;;  %v6989_v58 = vmul.f32 1.050701, %v1464_v23  ;;  %5096 = vpow2.f32 %v1367_v35  ;;  %v7014_v56 = vpop.permute.xlu1 %4864 }
 0x215   : > { %v1620_v37 = vsel %vm1600_vm13, %v6896_v55, %v1580_v51  ;;  %v6991_v0 = vmax.f32 %v1168_v57, %v1308_v13  ;;  %v4852_v43 = vunpack.i.h.bf16 %v6957_v62  ;;  %v4857_v26 = vunpack.i.h.bf16 %v4855_v15 }
 0x216   : > { %v1640_v21 = vmul.f32 1.050701, %v1620_v37  ;;  %v1529_v12 = vmul.f32 1.442695, %v1499_v45  ;;  %v1504_v42 = vmin.f32 %v6989_v58, 0.0  ;;  %v4851_v33 = vunpack.i.l.bf16 %v6957_v62 }
 0x217   : > { %v5093_v2 = vpop.eup %5092  ;;  %v1348_v40 = vmin.f32 %v6991_v0, 0.0  ;;  %v4856_v3 = vunpack.i.l.bf16 %v4855_v15  ;;  %v7002_v61 = vpack.c.bf16 %v4857_v26, %v4852_v43  ;;  %vm2364_vm0 = vcmask 1039360  }
 0x218   : > { %v5095_v55 = vpop.eup %5094  ;;  %v4913_v14 = vpack.i.bf16 %v7917_v4, %v1640_v21  ;;  %5098 = vpow2.f32 %v1529_v12  ;;  %v4173_v18 = vadd.f32 -1.0, %v5093_v2  ;;  %v7000_v46 = vpack.c.bf16 %v1645_v48, %v1640_v21 }
 0x219   : > { %v4183_v41 = vadd.f32 -1.0, %v5095_v55  ;;  %v1539_v27 = vmul.f32 1.442695, %v1504_v42  ;;  %v1387_v5 = vmul.f32 1.442695, %v1348_v40  ;;  %v4862_v44 = vunpack.i.h.bf16 %v6997_v39 }
 0x21a   : > { %4914 = vrot.lane.b32.xlu1 %v4913_v14, %s5338_s14  ;;  %v1423_v11 = vmul.f32 1.6732632, %v4173_v18  ;;  %4511 = vmatprep.subr.msk.bf16.mxu0 %vm6412_vm12, %v7000_v46  ;;  %v4861_v7 = vunpack.i.l.bf16 %v6997_v39  ;;  %v2368_v10 = vsel %vm2364_vm0, %v4851_v33, %v4852_v43  ;;  %v2372_v62 = vsel %vm2364_vm0, %v4856_v3, %v4857_v26  ;;  %v1664_v39 = vld [vmem:[#allocation7 + $0x8] sm:$0xff] }
 0x21b   : > { %v1573_v60 = vmul.f32 1.6732632, %v4183_v41  ;;  %5100 = vpow2.f32 %v1539_v27  ;;  %v2371_v53 = vsel %vm2364_vm0, %v4862_v44, %v4856_v3  ;;  %v7030_v59 = vpack.c.bf16 %v2372_v62, %v2368_v10 }
 0x21c   : > { %v1463_v29 = vsel %vm1443_vm15, %v6929_v31, %v1423_v11  ;;  %5102 = vpow2.f32 %v1387_v5  ;;  %v2367_v48 = vsel %vm2364_vm0, %v4861_v7, %v4851_v33  ;;  %v4872_v31 = vunpack.i.h.bf16 %v7012_v32 }
 0x21d   : > { %v1613_v30 = vsel %vm1593_vm14, %v6934_v25, %v1573_v60  ;;  %v1483_v63 = vmul.f32 1.050701, %v1463_v29  ;;  %v7028_v50 = vpack.c.bf16 %v2371_v53, %v2367_v48  ;;  %v4871_v28 = vunpack.i.l.bf16 %v7012_v32  ;;  %4546 = vmatprep.subr.bf16.mxu1 %v7030_v59  ;;  %v7918_v25 = vld [vmem:[#allocation33_spill] sm:$0xff]  ;;  %v7919_v48 = vld [vmem:[#allocation35_spill] sm:$0xff] }
 0x21e   : > { %v7032_v24 = vmul.f32 1.050701, %v1613_v30  ;;  %v4867_v6 = vunpack.i.h.bf16 %v7014_v56  ;;  %v5097_v16 = vpop.eup %5096  ;;  %v4866_v22 = vunpack.i.l.bf16 %v7014_v56  ;;  %vm1438_vm1 = vcmp.gt.f32.partialorder %v6965_v19, 0.0  ;;  %v7153_v56 = vld [vmem:[#allocation6 + $0x40] sm:$0xff] }
 0x21f   : > { %v1503_v38 = vmin.f32 %v1483_v63, 0.0  ;;  %v4168_v8 = vadd.f32 -1.0, %v5097_v16  ;;  %4548 = vmatpush1.bf16.msra.mxu1 %v7028_v50  ;;  %v2380_v35 = vsel %vm2364_vm0, %v4871_v28, %v4872_v31  ;;  %vm1599_vm2 = vcmp.gt.f32.partialorder %v6979_v52, 0.0  ;;  %v7921_v16 = vld [vmem:[#allocation29_spill] sm:$0xff] }
 0x220   : > { %v4928_v34 = vpack.i.bf16 %v7032_v24, %v7918_v25  ;;  %v7042_v57 = vpack.c.bf16 %v4872_v31, %v4867_v6  ;;  %v2376_v13 = vsel %vm2364_vm0, %v4866_v22, %v4867_v6  ;;  %vm1604_vm3 = vcmp.gt.f32.partialorder %v6989_v58, 0.0  ;;  %v7920_v31 = vld [vmem:[#allocation13_spill] sm:$0xff] }
 0x221   : > { %v1537_v51 = vmul.f32 1.442695, %v1503_v38  ;;  %v1418_v23 = vmul.f32 1.6732632, %v4168_v8  ;;  %v7051_v45 = vpack.c.bf16 %v2380_v35, %v2376_v13  ;;  %vm1448_vm4 = vcmp.gt.f32.partialorder %v6991_v0, 0.0  ;;  %v7077_v6 = vld [vmem:[#allocation6 + $0x28] sm:$0xff]  ;;  %v7090_v35 = vpop.permute.xlu0 %4879 }
 0x222   : > { %v5099_v15 = vpop.eup %5098  ;;  %4929 = vrot.lane.b32.xlu0 %v4928_v34, %s5338_s14  ;;  %vm1603_vm5 = vcmp.gt.f32.partialorder %v1483_v63, 0.0  ;;  %v7922_v25 = vld [vmem:[#allocation17_spill] sm:$0xff] }
 0x223   : > { %v4189_v37 = vadd.f32 -1.0, %v5099_v15  ;;  %5104 = vpow2.f32 %v1537_v51  ;;  %v1458_v21 = vsel %vm1438_vm1, %v6965_v19, %v1418_v23  ;;  %4551 = vmatprep.subr.msk.bf16.mxu1 %vm6412_vm12, %v7051_v45  ;;  %v7924_v15 = vld [vmem:[#allocation12_spill] sm:$0xff] }
 0x224   : > { %v1478_v26 = vmul.f32 1.050701, %v1458_v21  ;;  %v4882_v21 = vunpack.i.h.bf16 %v7090_v35 }
 0x225   : > { %v5101_v12 = vpop.eup %5100  ;;  %v1579_v43 = vmul.f32 1.6732632, %v4189_v37 }
 0x226   : > { %v5103_v2 = vpop.eup %5102  ;;  %v4194_v42 = vadd.f32 -1.0, %v5101_v12  ;;  %v1498_v33 = vmin.f32 %v1478_v26, 0.0  ;;  %vm1598_vm6 = vcmp.gt.f32.partialorder %v1478_v26, 0.0  ;;  %v7925_v12 = vld [vmem:[#allocation34_spill] sm:$0xff] }
 0x227   : > { %v1619_v40 = vsel %vm1599_vm2, %v6979_v52, %v1579_v43  ;;  %v4178_v3 = vadd.f32 -1.0, %v5103_v2 }
 0x228   : > { %v1584_v55 = vmul.f32 1.6732632, %v4194_v42  ;;  %v1639_v4 = vmul.f32 1.050701, %v1619_v40  ;;  %v1527_v19 = vmul.f32 1.442695, %v1498_v33  ;;  %v4881_v40 = vunpack.i.l.bf16 %v7090_v35 }
 0x229   : > { %v1428_v14 = vmul.f32 1.6732632, %v4178_v3  ;;  %v7926_v33 = vld [vmem:[#allocation20_spill] sm:$0xff] }
 0x22a   : > { %v1624_v18 = vsel %vm1604_vm3, %v6989_v58, %v1584_v55  ;;  %5106 = vpow2.f32 %v1527_v19  ;;  %v7070_v58 = vld [vmem:[#allocation6 + $0x20] sm:$0xff]  ;;  %v2366_v55 = vsel %vm2364_vm0, %v4881_v40, %v4861_v7  ;;  %v7927_v19 = vld [vmem:[#allocation30_spill] sm:$0xff] }
 0x22b   : > { %v1644_v41 = vmul.f32 1.050701, %v1624_v18  ;;  %v1468_v27 = vsel %vm1448_vm4, %v6991_v0, %v1428_v14  ;;  %v1665_v7 = vld [vmem:[#allocation7 + $0x10] sm:$0xff] }
 0x22c   : > { %v1488_v5 = vmul.f32 1.050701, %v1468_v27  ;;  %v1663_v27 = vld [vmem:[#allocation7] sm:$0xff] }
 0x22d   : > { %v5105_v11 = vpop.eup %5104  ;;  %v4923_v60 = vpack.i.bf16 %v1644_v41, %v1639_v4  ;;  %v7064_v52 = vpack.c.bf16 %v1644_v41, %v1639_v4 }
 0x22e   : > { %v4193_v10 = vadd.f32 -1.0, %v5105_v11  ;;  %v1508_v62 = vmin.f32 %v1488_v5, 0.0  ;;  %vm1608_vm8 = vcmp.gt.f32.partialorder %v1488_v5, 0.0 }
 0x22f   : > { %4924 = vrot.lane.b32.xlu1 %v4923_v60, %s5338_s14  ;;  %4514 = vmatpush1.bf16.msk.msra.mxu0 %vm6412_vm12, %v7064_v52 }
 0x230   : > { %v1583_v29 = vmul.f32 1.6732632, %v4193_v10  ;;  %v1547_v53 = vmul.f32 1.442695, %v1508_v62  ;;  %4516 = vmatprep.subr.bf16.mxu0 %v7919_v48 }
 0x232   : > { %v1623_v0 = vsel %vm1603_vm5, %v1483_v63, %v1583_v29  ;;  %5108 = vpow2.f32 %v1547_v53  ;;  %4218 = vmatmul.mubr.msk.f32.vlgmr.msra.gmra.mrb[0].mxu0 %vm1667_vm7, %v7070_v58  ;;  %v7923_v63 = vld [vmem:[#allocation19_spill] sm:$0xff] }
 0x233   : > { %v1643_v30 = vmul.f32 1.050701, %v1623_v0  ;;  %4518 = vmatpush1.bf16.msra.mxu0 %v7920_v31  ;;  %2096 = vmatprep.mubr.f32.mxu0 %v7901_v1 }
 0x234   : > { %4521 = vmatprep.subr.msk.bf16.mxu0 %vm6412_vm12, %v7921_v16  ;;  %v5107_v38 = vpop.eup %5106 }
 0x235   : > { %v4938_v34 = vpack.i.bf16 %v1643_v30, %v7922_v25  ;;  %v4188_v8 = vadd.f32 -1.0, %v5107_v38 }
 0x236   : > { %4219 = vmatmul.mubr.msk.f32.gmra.mrb[2].mxu0 %vm1667_vm7, %v7077_v6 }
 0x237   : > { %4939 = vrot.lane.b32.xlu0 %v4938_v34, %s5338_s14  ;;  %4524 = vmatpush1.bf16.msk.msra.mxu0 %vm6412_vm12, %v7923_v63  ;;  %v1578_v51 = vmul.f32 1.6732632, %v4188_v8 }
 0x238   : > { %2102 = vmatprep.mubr.f32.mxu0 %v7901_v1 }
 0x239   : > { %v1618_v13 = vsel %vm1598_vm6, %v1478_v26, %v1578_v51 }
 0x23a   : > { %4220 = vmatmul.mubr.msk.f32.gmra.mrb[4].mxu0 %vm1667_vm7, %v7924_v15  ;;  %v1638_v23 = vmul.f32 1.050701, %v1618_v13 }
 0x23b   : > { %2108 = vmatprep.mubr.f32.mxu0 %v7901_v1  ;;  %1961 = vperm.xlu0 %4948, %v1663_v27  }
 0x23c   : > { %v5109_v37 = vpop.eup %5108  ;;  %v4933_v43 = vpack.i.bf16 %v1638_v23, %v7925_v12  ;;  %v7098_v42 = vpack.c.bf16 %v1638_v23, %v7032_v24  ;;  %v2370_v24 = vsel %vm2364_vm0, %v4882_v21, %v4862_v44  ;;  %v1666_v44 = vld [vmem:[#allocation7 + $0x18] sm:$0x3f] }
 0x23d   : > { %v4198_v2 = vadd.f32 -1.0, %v5109_v37  ;;  %v7119_v41 = vpack.c.bf16 %v2370_v24, %v2366_v55  ;;  %v7161_v37 = vld [vmem:[#allocation6 + $0x48] sm:$0xff] }
 0x23e   : > { %4221 = vmatmul.mubr.msk.f32.gmra.mrb[6].mxu0 %vm1667_vm7, %v7926_v33  ;;  %4934 = vrot.lane.b32.xlu1 %v4933_v43, %s5338_s14 }
 0x23f   : > { %v1588_v26 = vmul.f32 1.6732632, %v4198_v2  ;;  %4526 = vmatprep.subr.bf16.mxu0 %v7098_v42  ;;  %2179 = vmatprep.mubr.f32.mxu0 %v7901_v1 }
 0x240   : > { %1976 = vperm.xlu0 %4948, %v1666_v44  }
 0x241   : > { %v1628_v3 = vsel %vm1608_vm8, %v1488_v5, %v1588_v26  ;;  %v4890_v5 = vpop.permute.xlu0 %4889 }
 0x242   : > { %v1648_v4 = vmul.f32 1.050701, %v1628_v3  ;;  %4224 = vmatmul.mubr.msk.f32.vlgmr.msra.gmra.mrb[8].mxu0 %vm1667_vm7, %v7070_v58  ;;  %v4892_v62 = vunpack.i.h.bf16 %v4890_v5  ;;  %v4891_v29 = vunpack.i.l.bf16 %v4890_v5 }
 0x243   : > { %4528 = vmatpush3.bf16.msra.mxu0 %v7098_v42  ;;  %2185 = vmatprep.mubr.f32.mxu0 %v7901_v1 }
 0x244   : > { %v4943_v14 = vpack.i.bf16 %v1648_v4, %v7927_v19  ;;  %v7117_v18 = vpack.c.bf16 %v1648_v4, %v1643_v30 }
 0x246   : > { %4944 = vrot.lane.b32.xlu1 %v4943_v14, %s5338_s14  ;;  %4531 = vmatprep.subr.msk.bf16.mxu0 %vm6412_vm12, %v7117_v18 }
 0x247   : > { %4534 = vmatpush3.bf16.msk.msra.mxu0 %vm6412_vm12, %v7117_v18 }
 0x248   : > { %4536 = vmatprep.subr.bf16.mxu0 %v7119_v41  ;;  %4225 = vmatmul.mubr.msk.f32.gmra.mrb[10].mxu0 %vm1667_vm7, %v7077_v6 }
 0x249   : > { %4413 = vmatprep.mubr.msk.f32.mxu0 %vm1667_vm7, %v7070_v58 }
 0x24a   : > { %1966 = vperm.xlu1 %4949, %v1664_v39  }
 0x24c   : > { %4414 = vmatmul.mubr.msk.f32.vlgmr.msra.gmra.mrb[16].mxu0 %vm1667_vm7, %v7077_v6 }
 0x24d   : > { %4416 = vmatprep.mubr.msk.f32.mxu0 %vm1667_vm7, %v7924_v15 }
 0x24e   : > { %1971 = vperm.xlu1 %4949, %v1665_v7  }
 0x250   : > { %4417 = vmatmul.mubr.msk.f32.gmra.mrb[18].mxu0 %vm1667_vm7, %v7926_v33 }
 0x251   : > { %2482 = vmatprep.mubr.f32.mxu0 %v7901_v1 }
 0x257   : > { %v4875_v11 = vpop.permute.xlu1 %4874 }
 0x258   : > { %v4877_v60 = vunpack.i.h.bf16 %v4875_v11  ;;  %v4876_v10 = vunpack.i.l.bf16 %v4875_v11 }
 0x25a   : > { %v2375_v53 = vsel %vm2364_vm0, %v4876_v10, %v4866_v22  ;;  %v2379_v0 = vsel %vm2364_vm0, %v4877_v60, %v4871_v28  ;;  %v2378_v8 = vsel %vm2364_vm0, %v4892_v62, %v4877_v60  ;;  %v2374_v51 = vsel %vm2364_vm0, %v4891_v29, %v4876_v10 }
 0x25b   : > { %v7146_v30 = vpack.c.bf16 %v2379_v0, %v2375_v53  ;;  %v4539_v13 = vpack.c.bf16 %v2378_v8, %v2374_v51 }
 0x25d   : > { %v4885_v38 = vpop.permute.xlu1 %4884  ;;  %4554 = vmatpush1.bf16.msk.msra.mxu1 %vm6412_vm12, %v7146_v30 }
 0x25e   : > { %v4887_v25 = vunpack.i.h.bf16 %v4885_v38  ;;  %v4886_v34 = vunpack.i.l.bf16 %v4885_v38  ;;  %4566 = vmatprep.subr.bf16.mxu1 %v6940_v9 }
 0x260   : > { %v2369_v22 = vsel %vm2364_vm0, %v4887_v25, %v4882_v21  ;;  %v2365_v32 = vsel %vm2364_vm0, %v4886_v34, %v4881_v40  ;;  %4241 = vmatmul.mubr.msk.f32.vlgmr.msra.gmra.mrb[4].mxu1 %vm1667_vm7, %v7153_v56 }
 0x261   : > { %v4537_v28 = vpack.c.bf16 %v2369_v22, %v2365_v32  ;;  %v4895_v35 = vpop.permute.xlu1 %4894  ;;  %4568 = vmatpush1.bf16.msra.mxu1 %v6971_v36  ;;  %2577 = vmatprep.mubr.f32.mxu1 %v7901_v1  ;;  %v7178_v36 = vld [vmem:[#allocation6 + $0x50] sm:$0xff] }
 0x262   : > { %v4897_v15 = vunpack.i.h.bf16 %v4895_v35  ;;  %v4896_v23 = vunpack.i.l.bf16 %v4895_v35  ;;  %4571 = vmatprep.subr.msk.bf16.mxu1 %vm6412_vm12, %v7000_v46  ;;  %v7189_v46 = vld [vmem:[#allocation6 + $0x58] sm:$0x3f] }
 0x263   : > { %4538 = vmatpush1.bf16.msra.mxu0 %v4537_v28 }
 0x264   : > { %v2377_v12 = vsel %vm2364_vm0, %v4897_v15, %v4892_v62  ;;  %v2373_v21 = vsel %vm2364_vm0, %v4896_v23, %v4891_v29  ;;  %4541 = vmatprep.subr.msk.bf16.mxu0 %vm6412_vm12, %v4539_v13  ;;  %4242 = vmatmul.mubr.msk.f32.gmra.mrb[6].mxu1 %vm1667_vm7, %v7161_v37 }
 0x265   : > { %v4542_v9 = vpack.c.bf16 %v2377_v12, %v2373_v21  ;;  %4574 = vmatpush1.bf16.msk.msra.mxu1 %vm6412_vm12, %v7064_v52  ;;  %2583 = vmatprep.mubr.f32.mxu1 %v7901_v1  ;;  %v5194_v52 = vld [vmem:[#allocation6 + $0x8] sm:$0xff] }
 0x266   : > { %4576 = vmatprep.subr.bf16.mxu1 %v7919_v48 }
 0x267   : > { %4544 = vmatpush1.bf16.msk.msra.mxu0 %vm6412_vm12, %v4542_v9 }
 0x268   : > { %4556 = vmatprep.subr.bf16.mxu0 %v7002_v61  ;;  %4243 = vmatmul.mubr.msk.f32.gmra.mrb[0].mxu1 %vm1667_vm7, %v7178_v36 }
 0x269   : > { %2589 = vmatprep.mubr.f32.mxu1 %v7901_v1 }
 0x26a   : > { %4235 = vmatmul.mubr.msk.f32.vlgmr.msra.gmra.mrb[0].mxu0 %vm1667_vm7, %v7153_v56 }
 0x26b   : > { %4558 = vmatpush3.bf16.msra.mxu0 %v7002_v61  ;;  %2488 = vmatprep.mubr.f32.mxu0 %v7901_v1 }
 0x26c   : > { %4561 = vmatprep.subr.msk.bf16.mxu0 %vm6412_vm12, %v7042_v57  ;;  %4244 = vmatmul.mubr.msk.f32.gmra.mrb[2].mxu1 %vm1667_vm7, %v7189_v46 }
 0x26d   : > { %2765 = vmatprep.mubr.f32.mxu1 %v7901_v1 }
 0x26e   : > { %4236 = vmatmul.mubr.msk.f32.gmra.mrb[2].mxu0 %vm1667_vm7, %v7161_v37 }
 0x26f   : > { %4564 = vmatpush3.bf16.msk.msra.mxu0 %vm6412_vm12, %v7042_v57  ;;  %2494 = vmatprep.mubr.f32.mxu0 %v7901_v1 }
 0x270   : > { %4586 = vmatprep.subr.bf16.mxu0 %v7098_v42  ;;  %4252 = vmatmul.mubr.msk.f32.vlgmr.msra.gmra.mrb[8].mxu1 %vm1667_vm7, %v6683_v47  ;;  %v5193_v47 = vld [vmem:[#allocation6] sm:$0xff] }
 0x271   : > { %4578 = vmatpush1.bf16.msra.mxu1 %v7920_v31  ;;  %2771 = vmatprep.mubr.f32.mxu1 %v7901_v1 }
 0x272   : > { %4237 = vmatmul.mubr.msk.f32.gmra.mrb[4].mxu0 %vm1667_vm7, %v7178_v36  ;;  %4581 = vmatprep.subr.msk.bf16.mxu1 %vm6412_vm12, %v7921_v16 }
 0x273   : > { %2500 = vmatprep.mubr.f32.mxu0 %v7901_v1 }
 0x274   : > { %4253 = vmatmul.mubr.msk.f32.gmra.mrb[10].mxu1 %vm1667_vm7, %v6709_v49 }
 0x275   : > { %4584 = vmatpush1.bf16.msk.msra.mxu1 %vm6412_vm12, %v7923_v63  ;;  %2777 = vmatprep.mubr.f32.mxu1 %v7901_v1 }
 0x276   : > { %4238 = vmatmul.mubr.msk.f32.gmra.mrb[6].mxu0 %vm1667_vm7, %v7189_v46  ;;  %4596 = vmatprep.subr.bf16.mxu1 %v7119_v41 }
 0x277   : > { %4427 = vmatprep.mubr.msk.f32.mxu0 %vm1667_vm7, %v7153_v56 }
 0x278   : > { %4254 = vmatmul.mubr.msk.f32.gmra.mrb[12].mxu1 %vm1667_vm7, %v6738_v17 }
 0x279   : > { %2783 = vmatprep.mubr.f32.mxu1 %v7901_v1 }
 0x27a   : > { %4428 = vmatmul.mubr.msk.f32.vlgmr.msra.gmra.mrb[16].mxu0 %vm1667_vm7, %v7161_v37 }
 0x27b   : > { %4588 = vmatpush3.bf16.msra.mxu0 %v7098_v42  ;;  %4430 = vmatprep.mubr.msk.f32.mxu0 %vm1667_vm7, %v7178_v36 }
 0x27c   : > { %4591 = vmatprep.subr.msk.bf16.mxu0 %vm6412_vm12, %v7117_v18  ;;  %4255 = vmatmul.mubr.msk.f32.gmra.mrb[14].mxu1 %vm1667_vm7, %v6761_v20 }
 0x27d   : > { %2854 = vmatprep.mubr.f32.mxu1 %v7901_v1 }
 0x27e   : > { %4431 = vmatmul.mubr.msk.f32.gmra.mrb[18].mxu0 %vm1667_vm7, %v7189_v46 }
 0x27f   : > { %4594 = vmatpush3.bf16.msk.msra.mxu0 %vm6412_vm12, %v7117_v18  ;;  %4441 = vmatprep.mubr.msk.f32.mxu0 %vm1667_vm7, %v5193_v47 }
 0x280   : > { %4616 = vmatprep.subr.bf16.mxu0 %v7002_v61  ;;  %4258 = vmatmul.mubr.msk.f32.vlgmr.msra.gmra.mrb[16].mxu1 %vm1667_vm7, %v5193_v47 }
 0x281   : > { %4598 = vmatpush1.bf16.msra.mxu1 %v4537_v28  ;;  %2860 = vmatprep.mubr.f32.mxu1 %v7901_v1 }
 0x282   : > { %4442 = vmatmul.mubr.msk.f32.vlgmr.msra.gmra.mrb[20].mxu0 %vm1667_vm7, %v6709_v49  ;;  %4601 = vmatprep.subr.msk.bf16.mxu1 %vm6412_vm12, %v4539_v13  ;;  %v5195_v49 = vld [vmem:[#allocation6 + $0x30] sm:$0xff] }
 0x283   : > { %4618 = vmatpush3.bf16.msra.mxu0 %v7002_v61  ;;  %4444 = vmatprep.mubr.msk.f32.mxu0 %vm1667_vm7, %v6738_v17  ;;  %v7277_v61 = vpop.permute.xlu1 %4904 }
 0x284   : > { %4621 = vmatprep.subr.msk.bf16.mxu0 %vm6412_vm12, %v7042_v57  ;;  %4259 = vmatmul.mubr.msk.f32.gmra.mrb[18].mxu1 %vm1667_vm7, %v5194_v52  ;;  %v4906_v48 = vunpack.i.l.bf16 %v7277_v61 }
 0x285   : > { %4604 = vmatpush1.bf16.msk.msra.mxu1 %vm6412_vm12, %v4542_v9  ;;  %2866 = vmatprep.mubr.f32.mxu1 %v7901_v1 }
 0x286   : > { %4445 = vmatmul.mubr.msk.f32.gmra.mrb[22].mxu0 %vm1667_vm7, %v6761_v20  ;;  %4606 = vmatprep.subr.bf16.mxu1 %v7030_v59  ;;  %v5196_v59 = vld [vmem:[#allocation6 + $0x38] sm:$0x3f] }
 0x287   : > { %4624 = vmatpush3.bf16.msk.msra.mxu0 %vm6412_vm12, %v7042_v57  ;;  %4455 = vmatprep.mubr.msk.f32.mxu0 %vm1667_vm7, %v7070_v58  ;;  %v7279_v57 = vpop.permute.xlu0 %4899 }
 0x288   : > { %4260 = vmatmul.mubr.msk.f32.gmra.mrb[20].mxu1 %vm1667_vm7, %v6738_v17  ;;  %v4907_v17 = vunpack.i.h.bf16 %v7277_v61  ;;  %v4902_v31 = vunpack.i.h.bf16 %v7279_v57  ;;  %v4901_v16 = vunpack.i.l.bf16 %v7279_v57 }
 0x289   : > { %2872 = vmatprep.mubr.f32.mxu1 %v7901_v1 }
 0x28a   : > { %4456 = vmatmul.mubr.msk.f32.vlgmr.msra.gmra.mrb[20].mxu0 %vm1667_vm7, %v7077_v6  ;;  %v3323_v43 = vsel %vm2364_vm0, %v4901_v16, %v4902_v31 }
 0x28b   : > { %4458 = vmatprep.mubr.msk.f32.mxu0 %vm1667_vm7, %v5195_v49  ;;  %v4910_v63 = vpop.permute.xlu0 %4909 }
 0x28c   : > { %4261 = vmatmul.mubr.msk.f32.gmra.mrb[22].mxu1 %vm1667_vm7, %v6761_v20  ;;  %v3327_v20 = vsel %vm2364_vm0, %v4906_v48, %v4907_v17  ;;  %v4912_v33 = vunpack.i.h.bf16 %v4910_v63  ;;  %v4911_v26 = vunpack.i.l.bf16 %v4910_v63 }
 0x28d   : > { %3048 = vmatprep.mubr.f32.mxu1 %v7901_v1  ;;  %v4625_v2 = vpack.c.bf16 %v3327_v20, %v3323_v43 }
 0x28e   : > { %4459 = vmatmul.mubr.msk.f32.gmra.mrb[22].mxu0 %vm1667_vm7, %v5196_v59  ;;  %v3326_v24 = vsel %vm2364_vm0, %v4912_v33, %v4906_v48  ;;  %v3322_v19 = vsel %vm2364_vm0, %v4911_v26, %v4901_v16 }
 0x28f   : > { %4469 = vmatprep.mubr.msk.f32.mxu0 %vm1667_vm7, %v7153_v56  ;;  %v7312_v42 = vpop.permute.xlu0 %4919  ;;  %v4627_v14 = vpack.c.bf16 %v3326_v24, %v3322_v19 }
 0x290   : > { %4269 = vmatmul.mubr.msk.f32.vlgmr.msra.gmra.mrb[8].mxu1 %vm1667_vm7, %v7070_v58  ;;  %v4922_v3 = vunpack.i.h.bf16 %v7312_v42  ;;  %v4921_v55 = vunpack.i.l.bf16 %v7312_v42 }
 0x291   : > { %4608 = vmatpush1.bf16.msra.mxu1 %v7028_v50  ;;  %3054 = vmatprep.mubr.f32.mxu1 %v7901_v1  ;;  %v7310_v50 = vpop.permute.xlu1 %4914 }
 0x292   : > { %4611 = vmatprep.subr.msk.bf16.mxu1 %vm6412_vm12, %v7051_v45  ;;  %v4917_v45 = vunpack.i.h.bf16 %v7310_v50  ;;  %v4916_v40 = vunpack.i.l.bf16 %v7310_v50  ;;  %v3335_v18 = vsel %vm2364_vm0, %v4921_v55, %v4922_v3 }
 0x294   : > { %4270 = vmatmul.mubr.msk.f32.gmra.mrb[10].mxu1 %vm1667_vm7, %v7077_v6  ;;  %v3331_v4 = vsel %vm2364_vm0, %v4916_v40, %v4917_v45 }
 0x295   : > { %4614 = vmatpush1.bf16.msk.msra.mxu1 %vm6412_vm12, %v7146_v30  ;;  %3060 = vmatprep.mubr.f32.mxu1 %v7901_v1  ;;  %v4629_v41 = vpack.c.bf16 %v3335_v18, %v3331_v4 }
 0x296   : > { %4626 = vmatprep.subr.bf16.mxu1 %v4625_v2 }
 0x298   : > { %4271 = vmatmul.mubr.msk.f32.gmra.mrb[12].mxu1 %vm1667_vm7, %v5195_v49 }
 0x299   : > { %3066 = vmatprep.mubr.f32.mxu1 %v7901_v1 }
 0x29c   : > { %4272 = vmatmul.mubr.msk.f32.gmra.mrb[14].mxu1 %vm1667_vm7, %v5196_v59 }
 0x29d   : > { %3137 = vmatprep.mubr.f32.mxu1 %v7901_v1 }
 0x2a0   : > { %4275 = vmatmul.mubr.msk.f32.vlgmr.msra.gmra.mrb[16].mxu1 %vm1667_vm7, %v7070_v58  ;;  %v4930_v58 = vpop.permute.xlu0 %4929 }
 0x2a1   : > { %v4925_v27 = vpop.permute.xlu1 %4924  ;;  %4628 = vmatpush1.bf16.msra.mxu1 %v4627_v14  ;;  %3143 = vmatprep.mubr.f32.mxu1 %v7901_v1  ;;  %v4932_v60 = vunpack.i.h.bf16 %v4930_v58  ;;  %v4931_v10 = vunpack.i.l.bf16 %v4930_v58 }
 0x2a2   : > { %v4927_v39 = vunpack.i.h.bf16 %v4925_v27  ;;  %v4926_v44 = vunpack.i.l.bf16 %v4925_v27  ;;  %4631 = vmatprep.subr.msk.bf16.mxu1 %vm6412_vm12, %v4629_v41 }
 0x2a3   : > { %v3325_v38 = vsel %vm2364_vm0, %v4931_v10, %v4932_v60  ;;  %v3324_v34 = vsel %vm2364_vm0, %v4902_v31, %v4931_v10 }
 0x2a4   : > { %v3334_v7 = vsel %vm2364_vm0, %v4927_v39, %v4921_v55  ;;  %v3330_v5 = vsel %vm2364_vm0, %v4926_v44, %v4916_v40  ;;  %4276 = vmatmul.mubr.msk.f32.gmra.mrb[18].mxu1 %vm1667_vm7, %v7077_v6 }
 0x2a5   : > { %v4632_v11 = vpack.c.bf16 %v3334_v7, %v3330_v5  ;;  %3149 = vmatprep.mubr.f32.mxu1 %v7901_v1 }
 0x2a7   : > { %4634 = vmatpush1.bf16.msk.msra.mxu1 %vm6412_vm12, %v4632_v11 }
 0x2a8   : > { %4277 = vmatmul.mubr.msk.f32.gmra.mrb[20].mxu1 %vm1667_vm7, %v5195_v49 }
 0x2a9   : > { %3155 = vmatprep.mubr.f32.mxu1 %v7901_v1  ;;  %v4940_v53 = vpop.permute.xlu0 %4939 }
 0x2aa   : > { %v4942_v22 = vunpack.i.h.bf16 %v4940_v53  ;;  %v4941_v32 = vunpack.i.l.bf16 %v4940_v53 }
 0x2ac   : > { %4278 = vmatmul.mubr.msk.f32.gmra.mrb[22].mxu1 %vm1667_vm7, %v5196_v59  ;;  %v3333_v15 = vsel %vm2364_vm0, %v4941_v32, %v4942_v22  ;;  %v3332_v9 = vsel %vm2364_vm0, %v4917_v45, %v4941_v32 }
 0x2ad   : > { %3427 = vmatprep.mubr.f32.mxu1 %v7901_v1 }
 0x2b0   : > { %v4935_v62 = vpop.permute.xlu1 %4934  ;;  %4286 = vmatmul.mubr.msk.f32.vlgmr.msra.gmra.mrb[8].mxu1 %vm1667_vm7, %v7153_v56 }
 0x2b1   : > { %v4937_v6 = vunpack.i.h.bf16 %v4935_v62  ;;  %v4936_v29 = vunpack.i.l.bf16 %v4935_v62  ;;  %3433 = vmatprep.mubr.f32.mxu1 %v7901_v1 }
 0x2b3   : > { %v4645_v0 = vpack.c.bf16 %v4937_v6, %v4932_v60  ;;  %v3328_v30 = vsel %vm2364_vm0, %v4907_v17, %v4936_v29  ;;  %v3329_v25 = vsel %vm2364_vm0, %v4936_v29, %v4937_v6 }
 0x2b4   : > { %v4635_v8 = vpack.c.bf16 %v3329_v25, %v3325_v38  ;;  %4287 = vmatmul.mubr.msk.f32.gmra.mrb[10].mxu1 %vm1667_vm7, %v7161_v37  ;;  %v4637_v51 = vpack.c.bf16 %v3328_v30, %v3324_v34 }
 0x2b5   : > { %4646 = vmatprep.subr.bf16.mxu0 %v4645_v0  ;;  %3439 = vmatprep.mubr.f32.mxu1 %v7901_v1 }
 0x2b6   : > { %4648 = vmatpush3.bf16.msra.mxu0 %v4645_v0  ;;  %4636 = vmatprep.subr.bf16.mxu1 %v4635_v8 }
 0x2b7   : > { %4638 = vmatpush1.bf16.msra.mxu1 %v4637_v51 }
 0x2b8   : > { %v4945_v28 = vpop.permute.xlu1 %4944  ;;  %4288 = vmatmul.mubr.msk.f32.gmra.mrb[12].mxu1 %vm1667_vm7, %v7178_v36 }
 0x2b9   : > { %v4947_v35 = vunpack.i.h.bf16 %v4945_v28  ;;  %v4946_v13 = vunpack.i.l.bf16 %v4945_v28  ;;  %3445 = vmatprep.mubr.f32.mxu1 %v7901_v1 }
 0x2ba   : > { %v7395_v31 = vpop.permute.xlu0 %1961 }
 0x2bb   : > { %v4649_v23 = vpack.c.bf16 %v4947_v35, %v4942_v22  ;;  %v3336_v12 = vsel %vm2364_vm0, %v4922_v3, %v4946_v13  ;;  %v3337_v21 = vsel %vm2364_vm0, %v4946_v13, %v4947_v35 }
 0x2bc   : > { %v4639_v47 = vpack.c.bf16 %v3337_v21, %v3333_v15  ;;  %v4642_v52 = vpack.c.bf16 %v3336_v12, %v3332_v9  ;;  %4289 = vmatmul.mubr.msk.f32.gmra.mrb[14].mxu1 %vm1667_vm7, %v7189_v46 }
 0x2bd   : > { %4651 = vmatprep.subr.msk.bf16.mxu0 %vm6412_vm12, %v4649_v23  ;;  %3516 = vmatprep.mubr.f32.mxu1 %v7901_v1 }
 0x2be   : > { %4654 = vmatpush3.bf16.msk.msra.mxu0 %vm6412_vm12, %v4649_v23  ;;  %4641 = vmatprep.subr.msk.bf16.mxu1 %vm6412_vm12, %v4639_v47 }
 0x2bf   : > { %4644 = vmatpush1.bf16.msk.msra.mxu1 %vm6412_vm12, %v4642_v52  ;;  %v7415_v55 = vpop.permute.xlu0 %1976 }
 0x2c1   : > { %4470 = vmatmul.mubr.msk.f32.vlgmr.msra.gmra.mrb[20].mxu0 %vm1667_vm7, %v7161_v37 }
 0x2c2   : > { %4472 = vmatprep.mubr.msk.f32.mxu0 %vm1667_vm7, %v7178_v36  ;;  %4292 = vmatmul.mubr.msk.f32.vlgmr.msra.gmra.mrb[16].mxu1 %vm1667_vm7, %v7153_v56 }
 0x2c3   : > { %3522 = vmatprep.mubr.f32.mxu1 %v7901_v1 }
 0x2c5   : > { %4473 = vmatmul.mubr.msk.f32.gmra.mrb[22].mxu0 %vm1667_vm7, %v7189_v46 }
 0x2c6   : > { %4293 = vmatmul.mubr.msk.f32.gmra.mrb[18].mxu1 %vm1667_vm7, %v7161_v37 }
 0x2c7   : > { %3528 = vmatprep.mubr.f32.mxu1 %v7901_v1  ;;  %v1863_v54 = vpop.f32.mrb[12].mxu0 }
 0x2c8   : > { %v1865_v49 = vpop.f32.mrb[13].mxu0 }
 0x2c9   : > { %v7397_v37 = vpop.permute.xlu1 %1966 }
 0x2ca   : > { %4294 = vmatmul.mubr.msk.f32.gmra.mrb[20].mxu1 %vm1667_vm7, %v7178_v36 }
 0x2cb   : > { %3534 = vmatprep.mubr.f32.mxu1 %v7901_v1  ;;  %v1869_v56 = vpop.f32.mrb[14].mxu0 }
 0x2cc   : > { %v1871_v61 = vpop.f32.mrb[15].mxu0  ;;  %v1996_v41 = vadd.f32 %v7415_v55, %v1869_v56 }
 0x2cd   : > { %v7407_v50 = vpop.permute.xlu1 %1971  ;;  %v1997_v39 = vadd.f32 %v7415_v55, %v1871_v61 }
 0x2ce   : > { %4295 = vmatmul.mubr.msk.f32.gmra.mrb[22].mxu1 %vm1667_vm7, %v7189_v46  ;;  %v1991_v33 = vadd.f32 %v7407_v50, %v1863_v54  ;;  %v1992_v3 = vadd.f32 %v7407_v50, %v1865_v49 }
 0x315   : > { %v2181_v57 = vpop.f32.mrb[8].mxu0 }
 0x316   : > { %v2183_v59 = vpop.f32.mrb[9].mxu0  ;;  %v4667_v16 = vadd.f32 %v2181_v57, %v7395_v31 }
 0x317   : > { %v4669_v36 = vadd.f32 %v2183_v59, %v7395_v31 }
 0x31b   : > { %v2187_v17 = vpop.f32.mrb[10].mxu0 }
 0x31c   : > { %v2189_v48 = vpop.f32.mrb[11].mxu0  ;;  %v4671_v46 = vadd.f32 %v2187_v17, %v7397_v37 }
 0x31d   : > { %v4673_v2 = vadd.f32 %v2189_v48, %v7397_v37 }
 0x333   : > { %v2573_v20 = vpop.f32.mrb[4].mxu1 }
 0x334   : > { %v7401_v1 = vadd.f32 %v4667_v16, %v2573_v20  ;;  %v2575_v63 = vpop.f32.mrb[5].mxu1 }
 0x335   : > { %v7404_v43 = vadd.f32 %v4669_v36, %v2575_v63 }
 0x337   : > { %v2579_v42 = vpop.f32.mrb[6].mxu1 }
 0x338   : > { %v7409_v45 = vadd.f32 %v4671_v46, %v2579_v42  ;;  %v2581_v40 = vpop.f32.mrb[7].mxu1 }
 0x339   : > { %v7412_v26 = vadd.f32 %v4673_v2, %v2581_v40 }
 0x33b   : > { %v2585_v4 = vpop.f32.mrb[0].mxu1 }
 0x33c   : > { %v7417_v19 = vadd.f32 %v2585_v4, %v1991_v33  ;;  %v2587_v18 = vpop.f32.mrb[1].mxu1 }
 0x33d   : > { %v2484_v24 = vpop.f32.mrb[0].mxu0  ;;  %v7420_v27 = vadd.f32 %v2587_v18, %v1992_v3 }
 0x33e   : > { %v2486_v14 = vpop.f32.mrb[1].mxu0  ;;  %v4659_v34 = vadd.f32 %v2484_v24, %v7395_v31 }
 0x33f   : > { %v2591_v7 = vpop.f32.mrb[2].mxu1  ;;  %v4660_v22 = vadd.f32 %v2486_v14, %v7395_v31 }
 0x340   : > { %v7423_v5 = vadd.f32 %v2591_v7, %v1996_v41  ;;  %v2593_v58 = vpop.f32.mrb[3].mxu1 }
 0x341   : > { %v2490_v44 = vpop.f32.mrb[2].mxu0  ;;  %v7425_v60 = vadd.f32 %v2593_v58, %v1997_v39 }
 0x342   : > { %v2492_v11 = vpop.f32.mrb[3].mxu0  ;;  %v4661_v15 = vadd.f32 %v2490_v44, %v7397_v37 }
 0x343   : > { %v4662_v9 = vadd.f32 %v2492_v11, %v7397_v37 }
 0x345   : > { %v2496_v10 = vpop.f32.mrb[4].mxu0 }
 0x346   : > { %v2498_v62 = vpop.f32.mrb[5].mxu0  ;;  %v4663_v59 = vadd.f32 %v2496_v10, %v7407_v50 }
 0x347   : > { %v4664_v36 = vadd.f32 %v2498_v62, %v7407_v50 }
 0x349   : > { %v2502_v6 = vpop.f32.mrb[6].mxu0 }
 0x34a   : > { %v2504_v29 = vpop.f32.mrb[7].mxu0  ;;  %v4665_v3 = vadd.f32 %v2502_v6, %v7415_v55 }
 0x34b   : > { %v4666_v18 = vadd.f32 %v2504_v29, %v7415_v55 }
 0x34d   : > { %v4429_v53 = vpop.f32.mrb[16].mxu0 }
 0x34e   : > { %v2662_v0 = vpop.f32.mrb[17].mxu0  ;;  %v4683_v62 = vadd.f32 %v4429_v53, %v7397_v37 }
 0x351   : > { %v4432_v30 = vpop.f32.mrb[18].mxu0 }
 0x352   : > { %v7427_v38 = vpop.f32.mrb[19].mxu0 }
 0x383   : > { %v3429_v25 = vpop.f32.mrb[8].mxu1 }
 0x384   : > { %v4687_v8 = vadd.f32 %v3429_v25, %v7395_v31  ;;  %v3431_v51 = vpop.f32.mrb[9].mxu1 }
 0x385   : > { %v4688_v32 = vadd.f32 %v3431_v51, %v7395_v31 }
 0x386   : > { %v7433_v28 = vmax.f32 %v4659_v34, %v4687_v8  ;;  %v4684_v8 = vadd.f32 %v2662_v0, %v7395_v31 }
 0x387   : > { %v7435_v35 = vmax.f32 %v4660_v22, %v4688_v32  ;;  %v3435_v13 = vpop.f32.mrb[10].mxu1 }
 0x388   : > { %v3666_v23 = vmin.f32 %v7433_v28, 0.0  ;;  %v4689_v12 = vadd.f32 %v3435_v13, %v7397_v37  ;;  %v3437_v21 = vpop.f32.mrb[11].mxu1  ;;  %v4685_v13 = vadd.f32 %v4432_v30, %v7415_v55  ;;  %vm3766_vm12 = vcmp.gt.f32.partialorder %v7433_v28, 0.0 }
 0x389   : > { %v3667_v47 = vmin.f32 %v7435_v35, 0.0  ;;  %v4690_v52 = vadd.f32 %v3437_v21, %v7397_v37  ;;  %vm3767_vm7 = vcmp.gt.f32.partialorder %v7435_v35, 0.0 }
 0x38a   : > { %v3686_v54 = vmul.f32 1.442695, %v3666_v23  ;;  %v7443_v49 = vmax.f32 %v4661_v15, %v4689_v12  ;;  %v4686_v12 = vadd.f32 %v7427_v38, %v7407_v50 }
 0x38b   : > { %v3688_v56 = vmul.f32 1.442695, %v3667_v47  ;;  %v7445_v61 = vmax.f32 %v4662_v9, %v4690_v52  ;;  %v3441_v57 = vpop.f32.mrb[12].mxu1 }
 0x38c   : > { %5110 = vpow2.f32 %v3686_v54  ;;  %v3671_v17 = vmin.f32 %v7443_v49, 0.0  ;;  %v4691_v48 = vadd.f32 %v3441_v57, %v7407_v50  ;;  %v3443_v16 = vpop.f32.mrb[13].mxu1  ;;  %vm3771_vm9 = vcmp.gt.f32.partialorder %v7443_v49, 0.0 }
 0x38d   : > { %5112 = vpow2.f32 %v3688_v56  ;;  %v3672_v20 = vmin.f32 %v7445_v61, 0.0  ;;  %v4692_v63 = vadd.f32 %v3443_v16, %v7407_v50  ;;  %vm3772_vm10 = vcmp.gt.f32.partialorder %v7445_v61, 0.0 }
 0x38e   : > { %v3696_v46 = vmul.f32 1.442695, %v3671_v17  ;;  %v7453_v2 = vmax.f32 %v4663_v59, %v4691_v48 }
 0x38f   : > { %v3698_v42 = vmul.f32 1.442695, %v3672_v20  ;;  %v7455_v40 = vmax.f32 %v4664_v36, %v4692_v63  ;;  %v3447_v33 = vpop.f32.mrb[14].mxu1 }
 0x390   : > { %5114 = vpow2.f32 %v3696_v46  ;;  %v3676_v24 = vmin.f32 %v7453_v2, 0.0  ;;  %v4693_v4 = vadd.f32 %v3447_v33, %v7415_v55  ;;  %v3449_v14 = vpop.f32.mrb[15].mxu1  ;;  %vm3776_vm11 = vcmp.gt.f32.partialorder %v7453_v2, 0.0 }
 0x391   : > { %v3677_v41 = vmin.f32 %v7455_v40, 0.0  ;;  %v4694_v39 = vadd.f32 %v3449_v14, %v7415_v55  ;;  %5116 = vpow2.f32 %v3698_v42  ;;  %vm3777_vm13 = vcmp.gt.f32.partialorder %v7455_v40, 0.0 }
 0x392   : > { %v3706_v44 = vmul.f32 1.442695, %v3676_v24  ;;  %v7463_v7 = vmax.f32 %v4665_v3, %v4693_v4 }
 0x393   : > { %v3708_v58 = vmul.f32 1.442695, %v3677_v41  ;;  %v7465_v10 = vmax.f32 %v4666_v18, %v4694_v39 }
 0x394   : > { %v4471_v11 = vpop.f32.mrb[20].mxu0  ;;  %5118 = vpow2.f32 %v3706_v44  ;;  %v3681_v29 = vmin.f32 %v7463_v7, 0.0  ;;  %vm3781_vm0 = vcmp.gt.f32.partialorder %v7463_v7, 0.0 }
 0x395   : > { %v4703_v6 = vadd.f32 %v4471_v11, %v7397_v37  ;;  %v3607_v25 = vpop.f32.mrb[21].mxu0  ;;  %v3518_v34 = vpop.f32.mrb[16].mxu1  ;;  %5120 = vpow2.f32 %v3708_v58  ;;  %vm3782_vm6 = vcmp.gt.f32.partialorder %v7465_v10, 0.0 }
 0x396   : > { %v4704_v51 = vadd.f32 %v3607_v25, %v7395_v31  ;;  %v7472_v22 = vpop.f32.mrb[17].mxu1  ;;  %v5111_v32 = vpop.eup %5110  ;;  %v3716_v53 = vmul.f32 1.442695, %v3681_v29 }
 0x397   : > { %v7475_v15 = vmax.f32 %v4683_v62, %v4703_v6  ;;  %v5113_v23 = vpop.eup %5112  ;;  %v4301_v47 = vadd.f32 -1.0, %v5111_v32  ;;  %v4695_v6 = vadd.f32 %v3518_v34, %v7395_v31 }
 0x398   : > { %v7479_v21 = vmax.f32 %v4684_v8, %v4704_v51  ;;  %v4474_v9 = vpop.f32.mrb[22].mxu0  ;;  %v4302_v56 = vadd.f32 -1.0, %v5113_v23  ;;  %5122 = vpow2.f32 %v3716_v53 }
 0x399   : > { %v3675_v0 = vmin.f32 %v7475_v15, 0.0  ;;  %v4705_v52 = vadd.f32 %v4474_v9, %v7415_v55  ;;  %v3617_v54 = vpop.f32.mrb[23].mxu0  ;;  %v7485_v30 = vpop.f32.mrb[18].mxu1  ;;  %v3746_v59 = vmul.f32 1.6732632, %v4301_v47  ;;  %vm3775_vm14 = vcmp.gt.f32.partialorder %v7475_v15, 0.0 }
 0x39a   : > { %v3670_v57 = vmin.f32 %v7479_v21, 0.0  ;;  %v4706_v38 = vadd.f32 %v3617_v54, %v7407_v50  ;;  %v7490_v17 = vpop.f32.mrb[19].mxu1  ;;  %v5115_v48 = vpop.eup %5114  ;;  %v3747_v20 = vmul.f32 1.6732632, %v4302_v56  ;;  %vm3770_vm15 = vcmp.gt.f32.partialorder %v7479_v21, 0.0 }
 0x39b   : > { %v3704_v16 = vmul.f32 1.442695, %v3675_v0  ;;  %v7492_v36 = vmax.f32 %v4685_v13, %v4705_v52  ;;  %v3786_v42 = vsel %vm3766_vm12, %v7433_v28, %v3746_v59  ;;  %v4306_v33 = vadd.f32 -1.0, %v5115_v48  ;;  %v5117_v3 = vpop.eup %5116 }
 0x39c   : > { %v3694_v63 = vmul.f32 1.442695, %v3670_v57  ;;  %v7495_v46 = vmax.f32 %v4686_v12, %v4706_v38  ;;  %v7501_v4 = vmul.f32 1.050701, %v3786_v42  ;;  %v3787_v41 = vsel %vm3767_vm7, %v7435_v35, %v3747_v20 }
 0x39d   : > { %5124 = vpow2.f32 %v3704_v16  ;;  %v3685_v24 = vmin.f32 %v7492_v36, 0.0  ;;  %v7504_v14 = vpop.f32.mrb[20].mxu1  ;;  %v3682_v28 = vmin.f32 %v7465_v10, 0.0  ;;  %v7514_v62 = vmul.f32 1.050701, %v3787_v41 }
 0x39e   : > { %5126 = vpow2.f32 %v3694_v63  ;;  %v3680_v18 = vmin.f32 %v7495_v46, 0.0  ;;  %v7511_v39 = vpop.f32.mrb[21].mxu1  ;;  %v5119_v44 = vpop.eup %5118  ;;  %v3826_v58 = vmin.f32 %v7501_v4, 0.0  ;;  %v3751_v8 = vmul.f32 1.6732632, %v4306_v33 }
 0x39f   : > { %v3724_v11 = vmul.f32 1.442695, %v3685_v24  ;;  %v5121_v25 = vpop.eup %5120  ;;  %v4307_v51 = vadd.f32 -1.0, %v5117_v3  ;;  %v4311_v32 = vadd.f32 -1.0, %v5119_v44  ;;  %v3827_v35 = vmin.f32 %v7514_v62, 0.0 }
 0x3a0   : > { %v3714_v29 = vmul.f32 1.442695, %v3680_v18  ;;  %v3846_v13 = vmul.f32 1.442695, %v3826_v58  ;;  %v3791_v23 = vsel %vm3771_vm9, %v7443_v49, %v3751_v8  ;;  %v4312_v52 = vadd.f32 -1.0, %v5121_v25 }
 0x3a1   : > { %5128 = vpow2.f32 %v3724_v11  ;;  %v7519_v53 = vpop.f32.mrb[22].mxu1  ;;  %v3752_v12 = vmul.f32 1.6732632, %v4307_v51  ;;  %v3756_v34 = vmul.f32 1.6732632, %v4311_v32  ;;  %v7535_v49 = vmax.f32 %v7401_v1, %v4695_v6 }
 0x3a2   : > { %5130 = vpow2.f32 %v3714_v29  ;;  %v7524_v9 = vpop.f32.mrb[23].mxu1  ;;  %v3848_v47 = vmul.f32 1.442695, %v3827_v35  ;;  %v7526_v0 = vmul.f32 1.050701, %v3791_v23  ;;  %v5123_v38 = vpop.eup %5122  ;;  %v4696_v16 = vadd.f32 %v7472_v22, %v7395_v31 }
 0x3a3   : > { %5132 = vpow2.f32 %v3846_v13  ;;  %v3792_v54 = vsel %vm3772_vm10, %v7445_v61, %v3752_v12  ;;  %v3796_v56 = vsel %vm3776_vm11, %v7453_v2, %v3756_v34  ;;  %v3718_v57 = vmul.f32 1.442695, %v3682_v28 }
 0x3a4   : > { %5134 = vpow2.f32 %v3848_v47  ;;  %v3831_v59 = vmin.f32 %v7526_v0, 0.0  ;;  %v7538_v48 = vmul.f32 1.050701, %v3792_v54  ;;  %v7544_v61 = vmul.f32 1.050701, %v3796_v56 }
 0x3a5   : > { %v3757_v2 = vmul.f32 1.6732632, %v4312_v52  ;;  %vm3785_vm1 = vcmp.gt.f32.partialorder %v7492_v36, 0.0  ;;  %v4316_v42 = vadd.f32 -1.0, %v5123_v38  ;;  %5136 = vpow2.f32 %v3718_v57 }
 0x3a6   : > { %v3856_v20 = vmul.f32 1.442695, %v3831_v59  ;;  %v3832_v63 = vmin.f32 %v7538_v48, 0.0  ;;  %v3836_v31 = vmin.f32 %v7544_v61, 0.0  ;;  %vm3780_vm2 = vcmp.gt.f32.partialorder %v7495_v46, 0.0 }
 0x3a7   : > { %v5125_v1 = vpop.eup %5124  ;;  %v3797_v22 = vsel %vm3777_vm13, %v7455_v40, %v3757_v2  ;;  %v7557_v11 = vmax.f32 %v7404_v43, %v4696_v16  ;;  %v3761_v29 = vmul.f32 1.6732632, %v4316_v42  ;;  %vm3926_vm3 = vcmp.gt.f32.partialorder %v7501_v4, 0.0 }
 0x3a8   : > { %v5127_v33 = vpop.eup %5126  ;;  %v4310_v3 = vadd.f32 -1.0, %v5125_v1  ;;  %5138 = vpow2.f32 %v3856_v20  ;;  %v3858_v18 = vmul.f32 1.442695, %v3832_v63  ;;  %v7553_v41 = vmul.f32 1.050701, %v3797_v22 }
 0x3a9   : > { %v4305_v24 = vadd.f32 -1.0, %v5127_v33  ;;  %v3866_v44 = vmul.f32 1.442695, %v3836_v31  ;;  %vm3927_vm4 = vcmp.gt.f32.partialorder %v7514_v62, 0.0  ;;  %v3801_v56 = vsel %vm3781_vm0, %v7463_v7, %v3761_v29 }
 0x3aa   : > { %v3755_v28 = vmul.f32 1.6732632, %v4310_v3  ;;  %5140 = vpow2.f32 %v3858_v18  ;;  %v3837_v25 = vmin.f32 %v7553_v41, 0.0  ;;  %vm3931_vm5 = vcmp.gt.f32.partialorder %v7526_v0, 0.0 }
 0x3ab   : > { %v5129_v58 = vpop.eup %5128  ;;  %v3750_v6 = vmul.f32 1.6732632, %v4305_v24  ;;  %5142 = vpow2.f32 %v3866_v44  ;;  %v3668_v59 = vmin.f32 %v7535_v49, 0.0  ;;  %v7593_v33 = vmul.f32 1.050701, %v3801_v56 }
 0x3ac   : > { %v5131_v40 = vpop.eup %5130  ;;  %v3795_v8 = vsel %vm3775_vm14, %v7475_v15, %v3755_v28  ;;  %v4320_v51 = vadd.f32 -1.0, %v5129_v58  ;;  %v3868_v23 = vmul.f32 1.442695, %v3837_v25  ;;  %vm3932_vm8 = vcmp.gt.f32.partialorder %v7538_v48, 0.0 }
 0x3ad   : > { %v5133_v32 = vpop.eup %5132  ;;  %v7564_v13 = vmul.f32 1.050701, %v3795_v8  ;;  %v3790_v43 = vsel %vm3770_vm15, %v7479_v21, %v3750_v6  ;;  %v4315_v35 = vadd.f32 -1.0, %v5131_v40  ;;  %vm3936_vm12 = vcmp.gt.f32.partialorder %v7544_v61, 0.0 }
 0x3ae   : > { %v7569_v12 = vmul.f32 1.050701, %v3790_v43  ;;  %v3765_v34 = vmul.f32 1.6732632, %v4320_v51  ;;  %v4321_v47 = vadd.f32 -1.0, %v5133_v32  ;;  %v5135_v15 = vpop.eup %5134  ;;  %5144 = vpow2.f32 %v3868_v23 }
 0x3af   : > { %v3835_v52 = vmin.f32 %v7564_v13, 0.0  ;;  %v3760_v54 = vmul.f32 1.6732632, %v4315_v35  ;;  %v4322_v7 = vadd.f32 -1.0, %v5135_v15  ;;  %v5137_v20 = vpop.eup %5136  ;;  %vm3937_vm7 = vcmp.gt.f32.partialorder %v7553_v41, 0.0 }
 0x3b0   : > { %v3830_v21 = vmin.f32 %v7569_v12, 0.0  ;;  %v3805_v57 = vsel %vm3785_vm1, %v7492_v36, %v3765_v34  ;;  %v3906_v38 = vmul.f32 1.6732632, %v4321_v47  ;;  %v3841_v44 = vmin.f32 %v7593_v33, 0.0 }
 0x3b1   : > { %v3864_v16 = vmul.f32 1.442695, %v3835_v52  ;;  %v7583_v2 = vmul.f32 1.050701, %v3805_v57  ;;  %v3800_v1 = vsel %vm3780_vm2, %v7495_v46, %v3760_v54  ;;  %v3669_v58 = vmin.f32 %v7557_v11, 0.0 }
 0x3b2   : > { %v3854_v63 = vmul.f32 1.442695, %v3830_v21  ;;  %v7588_v42 = vmul.f32 1.050701, %v3800_v1  ;;  %v3946_v36 = vsel %vm3926_vm3, %v7501_v4, %v3906_v38  ;;  %v5139_v3 = vpop.eup %5138  ;;  %v3907_v4 = vmul.f32 1.6732632, %v4322_v7 }
 0x3b3   : > { %5146 = vpow2.f32 %v3864_v16  ;;  %v3845_v31 = vmin.f32 %v7583_v2, 0.0  ;;  %v3966_v22 = vmul.f32 1.050701, %v3946_v36  ;;  %v4326_v28 = vadd.f32 -1.0, %v5139_v3 }
 0x3b4   : > { %5148 = vpow2.f32 %v3854_v63  ;;  %v3840_v46 = vmin.f32 %v7588_v42, 0.0  ;;  %v5141_v24 = vpop.eup %5140  ;;  %v3947_v29 = vsel %vm3927_vm4, %v7514_v62, %v3907_v4  ;;  %v4317_v8 = vadd.f32 -1.0, %v5137_v20 }
 0x3b5   : > { %v3884_v18 = vmul.f32 1.442695, %v3845_v31  ;;  %3986 = vst [vmem:[%s7601_s17] sm:$0xff] %v3966_v22  ;;  %v5143_v6 = vpop.eup %5142  ;;  %v4327_v40 = vadd.f32 -1.0, %v5141_v24  ;;  %v3967_v51 = vmul.f32 1.050701, %v3947_v29  ;;  %vm3990_vm9 = vcmask 801792  }
 0x3b6   : > { %v3874_v25 = vmul.f32 1.442695, %v3840_v46  ;;  %v3911_v32 = vmul.f32 1.6732632, %v4326_v28  ;;  %v4331_v43 = vadd.f32 -1.0, %v5143_v6  ;;  %vm3935_vm10 = vcmp.gt.f32.partialorder %v7564_v13, 0.0 }
 0x3b7   : > { %5150 = vpow2.f32 %v3884_v18  ;;  %v3912_v35 = vmul.f32 1.6732632, %v4327_v40  ;;  %v3876_v23 = vmul.f32 1.442695, %v3841_v44  ;;  %v3762_v34 = vmul.f32 1.6732632, %v4317_v8 }
 0x3b8   : > { %5152 = vpow2.f32 %v3874_v25  ;;  %v5145_v47 = vpop.eup %5144  ;;  %3987 = vst [vmem:[%s7601_s17 + $0x8] sm:$0xff] %v3967_v51  ;;  %v3951_v15 = vsel %vm3931_vm5, %v7526_v0, %v3911_v32  ;;  %v3916_v52 = vmul.f32 1.6732632, %v4331_v43  ;;  %v3690_v54 = vmul.f32 1.442695, %v3668_v59 }
 0x3b9   : > { %v3692_v62 = vmul.f32 1.442695, %v3669_v58  ;;  %v3971_v56 = vmul.f32 1.050701, %v3951_v15  ;;  %v3952_v21 = vsel %vm3932_vm8, %v7538_v48, %v3912_v35  ;;  %v4332_v57 = vadd.f32 -1.0, %v5145_v47 }
 0x3ba   : > { %5154 = vpow2.f32 %v3876_v23  ;;  %v3972_v38 = vmul.f32 1.050701, %v3952_v21  ;;  %v3956_v16 = vsel %vm3936_vm12, %v7544_v61, %v3916_v52  ;;  %v3802_v0 = vsel %vm3782_vm6, %v7465_v10, %v3762_v34 }
 0x3bb   : > { %5156 = vpow2.f32 %v3690_v54  ;;  %3992 = vst [vmem:[%s7601_s17 + $0x28] sm:$0xff] %v3971_v56  ;;  %v3976_v59 = vmul.f32 1.050701, %v3956_v16  ;;  %v3917_v1 = vmul.f32 1.6732632, %v4332_v57  ;;  %v4697_v20 = vadd.f32 %v7485_v30, %v7397_v37 }
 0x3bc   : > { %v7626_v7 = vmul.f32 1.050701, %v3802_v0  ;;  %5158 = vpow2.f32 %v3692_v62  ;;  %3993 = vst [vmem:[%s7601_s17 + $0x30] sm:$0xff] %v3972_v38  ;;  %v4698_v61 = vadd.f32 %v7490_v17, %v7397_v37  ;;  %v4699_v10 = vadd.f32 %v7504_v14, %v7407_v50 }
 0x3bd   : > { %v5147_v48 = vpop.eup %5146  ;;  %vm3930_vm11 = vcmp.gt.f32.partialorder %v7569_v12, 0.0  ;;  %vm4006_vm13 = vcmask 799744   ;;  %3997 = vst [vmem:[%s7601_s17 + $0x50] sm:$0xff] %v3976_v59  ;;  %v3957_v3 = vsel %vm3937_vm7, %v7553_v41, %v3917_v1  ;;  %v7643_v37 = vmax.f32 %v7409_v45, %v4697_v20 }
 0x3be   : > { %v5149_v63 = vpop.eup %5148  ;;  %v4330_v36 = vadd.f32 -1.0, %v5147_v48  ;;  %v3842_v31 = vmin.f32 %v7626_v7, 0.0  ;;  %v3977_v22 = vmul.f32 1.050701, %v3957_v3  ;;  %v7646_v17 = vmax.f32 %v7412_v26, %v4698_v61 }
 0x3bf   : > { %v4325_v30 = vadd.f32 -1.0, %v5149_v63  ;;  %v7649_v4 = vmax.f32 %v7417_v19, %v4699_v10  ;;  %v4700_v24 = vadd.f32 %v7511_v39, %v7407_v50  ;;  %vm3945_vm14 = vcmp.gt.f32.partialorder %v7583_v2, 0.0 }
 0x3c0   : > { %v3915_v14 = vmul.f32 1.6732632, %v4330_v36  ;;  %v3878_v46 = vmul.f32 1.442695, %v3842_v31  ;;  %3998 = vst [vmem:[%s7601_s17 + $0x58] sm:$0xff] %v3977_v22  ;;  %vm3768_vm15 = vcmp.gt.f32.partialorder %v7535_v49, 0.0  ;;  %v4701_v21 = vadd.f32 %v7519_v53, %v7415_v55 }
 0x3c1   : > { %v5151_v18 = vpop.eup %5150  ;;  %v3910_v41 = vmul.f32 1.6732632, %v4325_v30  ;;  %v3673_v45 = vmin.f32 %v7643_v37, 0.0  ;;  %v3674_v26 = vmin.f32 %v7646_v17, 0.0  ;;  %vm3940_vm0 = vcmp.gt.f32.partialorder %v7588_v42, 0.0 }
 0x3c2   : > { %v5153_v28 = vpop.eup %5152  ;;  %v3955_v19 = vsel %vm3935_vm10, %v7564_v13, %v3915_v14  ;;  %v4340_v44 = vadd.f32 -1.0, %v5151_v18  ;;  %5160 = vpow2.f32 %v3878_v46  ;;  %v7666_v51 = vmax.f32 %v7420_v27, %v4700_v24 }
 0x3c3   : > { %v3975_v50 = vmul.f32 1.050701, %v3955_v19  ;;  %v3950_v39 = vsel %vm3930_vm11, %v7569_v12, %v3910_v41  ;;  %v4335_v58 = vadd.f32 -1.0, %v5153_v28  ;;  %v3700_v6 = vmul.f32 1.442695, %v3673_v45 }
 0x3c4   : > { %v5155_v25 = vpop.eup %5154  ;;  %v3970_v29 = vmul.f32 1.050701, %v3950_v39  ;;  %v3925_v40 = vmul.f32 1.6732632, %v4340_v44  ;;  %v3702_v8 = vmul.f32 1.442695, %v3674_v26  ;;  %v7693_v53 = vmax.f32 %v7423_v5, %v4701_v21 }
 0x3c5   : > { %v5157_v13 = vpop.eup %5156  ;;  %3996 = vst.msk [vmem:[%s7601_s17 + $0x48] sm:$0xff] %vm3990_vm9, %v3975_v50  ;;  %v3920_v32 = vmul.f32 1.6732632, %v4335_v58  ;;  %v4336_v43 = vadd.f32 -1.0, %v5155_v25  ;;  %5162 = vpow2.f32 %v3700_v6  ;;  %v3678_v35 = vmin.f32 %v7649_v4, 0.0 }
 0x3c6   : > { %v5159_v23 = vpop.eup %5158  ;;  %3991 = vst.msk [vmem:[%s7601_s17 + $0x20] sm:$0xff] %vm3990_vm9, %v3970_v29  ;;  %v3965_v12 = vsel %vm3945_vm14, %v7583_v2, %v3925_v40  ;;  %vm3941_vm1 = vcmp.gt.f32.partialorder %v7593_v33, 0.0  ;;  %v4303_v27 = vadd.f32 -1.0, %v5157_v13  ;;  %5164 = vpow2.f32 %v3702_v8 }
 0x3c7   : > { %v3985_v34 = vmul.f32 1.050701, %v3965_v12  ;;  %v3960_v47 = vsel %vm3940_vm0, %v7588_v42, %v3920_v32  ;;  %v3921_v15 = vmul.f32 1.6732632, %v4336_v43  ;;  %v4304_v52 = vadd.f32 -1.0, %v5159_v23 }
 0x3c8   : > { %v3980_v54 = vmul.f32 1.050701, %v3960_v47  ;;  %v3748_v62 = vmul.f32 1.6732632, %v4303_v27  ;;  %v3710_v56 = vmul.f32 1.442695, %v3678_v35  ;;  %v4702_v1 = vadd.f32 %v7524_v9, %v7415_v55 }
 0x3c9   : > { %4007 = vst.msk [vmem:[%s7601_s17 + $0x98] sm:$0x3f] %vm4006_vm13, %v3985_v34  ;;  %v3961_v2 = vsel %vm3941_vm1, %v7593_v33, %v3921_v15  ;;  %v3749_v57 = vmul.f32 1.6732632, %v4304_v52  ;;  %vm3769_vm2 = vcmp.gt.f32.partialorder %v7557_v11, 0.0  ;;  %v3679_v38 = vmin.f32 %v7666_v51, 0.0 }
 0x3ca   : > { %4001 = vst.msk [vmem:[%s7601_s17 + $0x70] sm:$0xff] %vm3990_vm9, %v3980_v54  ;;  %v3981_v42 = vmul.f32 1.050701, %v3961_v2  ;;  %v3788_v16 = vsel %vm3768_vm15, %v7535_v49, %v3748_v62  ;;  %5166 = vpow2.f32 %v3710_v56  ;;  %v3683_v61 = vmin.f32 %v7693_v53, 0.0 }
 0x3cb   : > { %v7695_v0 = vmul.f32 1.050701, %v3788_v16  ;;  %v3789_v33 = vsel %vm3769_vm2, %v7557_v11, %v3749_v57  ;;  %v3712_v59 = vmul.f32 1.442695, %v3679_v38  ;;  %v7707_v36 = vmax.f32 %v7425_v60, %v4702_v1 }
 0x3cc   : > { %v5161_v48 = vpop.eup %5160  ;;  %4002 = vst [vmem:[%s7601_s17 + $0x78] sm:$0x3f] %v3981_v42  ;;  %v7701_v20 = vmul.f32 1.050701, %v3789_v33  ;;  %v3720_v63 = vmul.f32 1.442695, %v3683_v61 }
 0x3cd   : > { %v4337_v10 = vadd.f32 -1.0, %v5161_v48  ;;  %v3828_v49 = vmin.f32 %v7695_v0, 0.0  ;;  %5168 = vpow2.f32 %v3712_v59  ;;  %vm3942_vm3 = vcmp.gt.f32.partialorder %v7626_v7, 0.0 }
 0x3ce   : > { %v3829_v5 = vmin.f32 %v7701_v20, 0.0  ;;  %5170 = vpow2.f32 %v3720_v63  ;;  %v3684_v22 = vmin.f32 %v7707_v36, 0.0  ;;  %vm3773_vm4 = vcmp.gt.f32.partialorder %v7643_v37, 0.0 }
 0x3cf   : > { %v5163_v11 = vpop.eup %5162  ;;  %v3922_v3 = vmul.f32 1.6732632, %v4337_v10  ;;  %v3850_v55 = vmul.f32 1.442695, %v3828_v49  ;;  %vm3774_vm5 = vcmp.gt.f32.partialorder %v7646_v17, 0.0  ;;  %vm3778_vm6 = vcmp.gt.f32.partialorder %v7649_v4, 0.0 }
 0x3d0   : > { %v5165_v9 = vpop.eup %5164  ;;  %v3852_v31 = vmul.f32 1.442695, %v3829_v5  ;;  %v4308_v30 = vadd.f32 -1.0, %v5163_v11  ;;  %v3722_v18 = vmul.f32 1.442695, %v3684_v22  ;;  %vm3779_vm8 = vcmp.gt.f32.partialorder %v7666_v51, 0.0 }
 0x3d1   : > { %v3962_v14 = vsel %vm3942_vm3, %v7626_v7, %v3922_v3  ;;  %5172 = vpow2.f32 %v3850_v55  ;;  %v4309_v46 = vadd.f32 -1.0, %v5165_v9  ;;  %vm3783_vm12 = vcmp.gt.f32.partialorder %v7693_v53, 0.0 }
 0x3d2   : > { %v3982_v24 = vmul.f32 1.050701, %v3962_v14  ;;  %5174 = vpow2.f32 %v3852_v31  ;;  %v3753_v60 = vmul.f32 1.6732632, %v4308_v30  ;;  %vm3928_vm7 = vcmp.gt.f32.partialorder %v7695_v0, 0.0 }
 0x3d3   : > { %v3754_v41 = vmul.f32 1.6732632, %v4309_v46  ;;  %5176 = vpow2.f32 %v3722_v18  ;;  %vm3929_vm9 = vcmp.gt.f32.partialorder %v7701_v20, 0.0  ;;  %vm3784_vm10 = vcmp.gt.f32.partialorder %v7707_v36, 0.0 }
 0x3d4   : > { %v5167_v45 = vpop.eup %5166  ;;  %4003 = vst [vmem:[%s7601_s17 + $0x80] sm:$0x3f] %v3982_v24  ;;  %v3793_v26 = vsel %vm3773_vm4, %v7643_v37, %v3753_v60 }
 0x3d5   : > { %v7716_v28 = vmul.f32 1.050701, %v3793_v26  ;;  %v3794_v7 = vsel %vm3774_vm5, %v7646_v17, %v3754_v41  ;;  %v4313_v19 = vadd.f32 -1.0, %v5167_v45 }
 0x3d6   : > { %v7719_v44 = vmul.f32 1.050701, %v3794_v7 }
 0x3d7   : > { %v5169_v50 = vpop.eup %5168  ;;  %v3833_v39 = vmin.f32 %v7716_v28, 0.0  ;;  %v3758_v58 = vmul.f32 1.6732632, %v4313_v19  ;;  %vm3933_vm11 = vcmp.gt.f32.partialorder %v7716_v28, 0.0 }
 0x3d8   : > { %v3834_v6 = vmin.f32 %v7719_v44, 0.0  ;;  %v4314_v25 = vadd.f32 -1.0, %v5169_v50  ;;  %v5171_v40 = vpop.eup %5170  ;;  %vm3934_vm13 = vcmp.gt.f32.partialorder %v7719_v44, 0.0 }
 0x3d9   : > { %v3860_v37 = vmul.f32 1.442695, %v3833_v39  ;;  %v3798_v29 = vsel %vm3778_vm6, %v7649_v4, %v3758_v58  ;;  %v4318_v43 = vadd.f32 -1.0, %v5171_v40 }
 0x3da   : > { %v3862_v8 = vmul.f32 1.442695, %v3834_v6  ;;  %v7725_v13 = vmul.f32 1.050701, %v3798_v29  ;;  %v3759_v17 = vmul.f32 1.6732632, %v4314_v25 }
 0x3db   : > { %v5173_v32 = vpop.eup %5172  ;;  %5178 = vpow2.f32 %v3860_v37  ;;  %v3763_v47 = vmul.f32 1.6732632, %v4318_v43 }
 0x3dc   : > { %v5175_v35 = vpop.eup %5174  ;;  %v4323_v23 = vadd.f32 -1.0, %v5173_v32  ;;  %5180 = vpow2.f32 %v3862_v8  ;;  %v3838_v12 = vmin.f32 %v7725_v13, 0.0  ;;  %v3799_v34 = vsel %vm3779_vm8, %v7666_v51, %v3759_v17 }
 0x3dd   : > { %v4324_v27 = vadd.f32 -1.0, %v5175_v35  ;;  %v5177_v4 = vpop.eup %5176  ;;  %v3819_v54 = vmul.f32 1.050701, %v3799_v34  ;;  %v3803_v56 = vsel %vm3783_vm12, %v7693_v53, %v3763_v47  ;;  %vm3938_vm14 = vcmp.gt.f32.partialorder %v7725_v13, 0.0 }
 0x3de   : > { %v3908_v15 = vmul.f32 1.6732632, %v4323_v23  ;;  %v3870_v52 = vmul.f32 1.442695, %v3838_v12  ;;  %v4319_v21 = vadd.f32 -1.0, %v5177_v4 }
 0x3df   : > { %v3909_v62 = vmul.f32 1.6732632, %v4324_v27  ;;  %v3839_v51 = vmin.f32 %v3819_v54, 0.0  ;;  %v3823_v42 = vmul.f32 1.050701, %v3803_v56  ;;  %vm3939_vm15 = vcmp.gt.f32.partialorder %v3819_v54, 0.0 }
 0x3e0   : > { %v3948_v2 = vsel %vm3928_vm7, %v7695_v0, %v3908_v15  ;;  %5182 = vpow2.f32 %v3870_v52  ;;  %v3764_v16 = vmul.f32 1.6732632, %v4319_v21 }
 0x3e1   : > { %v3968_v57 = vmul.f32 1.050701, %v3948_v2  ;;  %v3949_v38 = vsel %vm3929_vm9, %v7701_v20, %v3909_v62  ;;  %v3872_v59 = vmul.f32 1.442695, %v3839_v51  ;;  %v3843_v1 = vmin.f32 %v3823_v42, 0.0 }
 0x3e2   : > { %v3969_v33 = vmul.f32 1.050701, %v3949_v38  ;;  %v3804_v53 = vsel %vm3784_vm10, %v7707_v36, %v3764_v16  ;;  %vm3943_vm0 = vcmp.gt.f32.partialorder %v3823_v42, 0.0 }
 0x3e3   : > { %3988 = vst [vmem:[%s7601_s17 + $0x10] sm:$0xff] %v3968_v57  ;;  %5184 = vpow2.f32 %v3872_v59  ;;  %v3824_v0 = vmul.f32 1.050701, %v3804_v53  ;;  %v3880_v61 = vmul.f32 1.442695, %v3843_v1 }
 0x3e4   : > { %3989 = vst [vmem:[%s7601_s17 + $0x18] sm:$0xff] %v3969_v33 }
 0x3e5   : > { %v5179_v48 = vpop.eup %5178  ;;  %v3844_v5 = vmin.f32 %v3824_v0, 0.0  ;;  %5186 = vpow2.f32 %v3880_v61  ;;  %vm3944_vm1 = vcmp.gt.f32.partialorder %v3824_v0, 0.0 }
 0x3e6   : > { %v5181_v10 = vpop.eup %5180  ;;  %v4328_v49 = vadd.f32 -1.0, %v5179_v48 }
 0x3e7   : > { %v4329_v20 = vadd.f32 -1.0, %v5181_v10  ;;  %v3882_v11 = vmul.f32 1.442695, %v3844_v5 }
 0x3e8   : > { %v3913_v63 = vmul.f32 1.6732632, %v4328_v49 }
 0x3e9   : > { %v3914_v3 = vmul.f32 1.6732632, %v4329_v20  ;;  %5188 = vpow2.f32 %v3882_v11 }
 0x3ea   : > { %v5183_v55 = vpop.eup %5182  ;;  %v3953_v36 = vsel %vm3933_vm11, %v7716_v28, %v3913_v63 }
 0x3eb   : > { %v3973_v9 = vmul.f32 1.050701, %v3953_v36  ;;  %v3954_v31 = vsel %vm3934_vm13, %v7719_v44, %v3914_v3  ;;  %v4333_v30 = vadd.f32 -1.0, %v5183_v55 }
 0x3ec   : > { %v3974_v22 = vmul.f32 1.050701, %v3954_v31 }
 0x3ed   : > { %3994 = vst [vmem:[%s7601_s17 + $0x38] sm:$0xff] %v3973_v9  ;;  %v3918_v14 = vmul.f32 1.6732632, %v4333_v30  ;;  %v5185_v46 = vpop.eup %5184 }
 0x3ee   : > { %3995 = vst [vmem:[%s7601_s17 + $0x40] sm:$0xff] %v3974_v22  ;;  %v4334_v60 = vadd.f32 -1.0, %v5185_v46 }
 0x3ef   : > { %v3958_v24 = vsel %vm3938_vm14, %v7725_v13, %v3918_v14  ;;  %v5187_v41 = vpop.eup %5186 }
 0x3f0   : > { %v3978_v18 = vmul.f32 1.050701, %v3958_v24  ;;  %v3919_v45 = vmul.f32 1.6732632, %v4334_v60  ;;  %v4338_v26 = vadd.f32 -1.0, %v5187_v41 }
 0x3f2   : > { %3999 = vst [vmem:[%s7601_s17 + $0x60] sm:$0xff] %v3978_v18  ;;  %v3959_v28 = vsel %vm3939_vm15, %v3819_v54, %v3919_v45  ;;  %v3923_v44 = vmul.f32 1.6732632, %v4338_v26 }
 0x3f3   : > { %v5189_v7 = vpop.eup %5188  ;;  %v3979_v19 = vmul.f32 1.050701, %v3959_v28 }
 0x3f4   : > { %v4339_v50 = vadd.f32 -1.0, %v5189_v7  ;;  %v3963_v39 = vsel %vm3943_vm0, %v3823_v42, %v3923_v44 }
 0x3f5   : > { %4000 = vst [vmem:[%s7601_s17 + $0x68] sm:$0xff] %v3979_v19  ;;  %v3983_v58 = vmul.f32 1.050701, %v3963_v39 }
 0x3f6   : > { %v3924_v6 = vmul.f32 1.6732632, %v4339_v50 }
 0x3f7   : > { %4004 = vst [vmem:[%s7601_s17 + $0x88] sm:$0x3f] %v3983_v58 }
 0x3f8   : > { %v3964_v25 = vsel %vm3944_vm1, %v3824_v0, %v3924_v6 }
 0x3f9   : > { %v3984_v37 = vmul.f32 1.050701, %v3964_v25 }
 0x3fb   : > { %4005 = vst [vmem:[%s7601_s17 + $0x90] sm:$0x3f] %v3984_v37 }
 0x3fc PF: > { %s18_s18 = sadd.s32 1, %s5327_s18  }
 0x3fd   : > { %p15_p6 = scmp.ge.s32.totalorder %s18_s18, 6  }
 0x3ff   :  { %17 = sbr.rel (!%p15_p6) target bundleno = 3 (0x3), region = 89 }
 0x406   :  { %4029 = vsyncpa [#allocation3], 1 }
 0x407   :  { %4031 = vsyncpa [#allocation3 + $0x1], 1 }
 0x408   :  { %4032 = vsyncpa [#allocation5], 1 }
 0x409   :  { %4033 = vsyncpa [#allocation8], 1 }

// kernel: siamese_forward.7
= control target key start
LH: loop header
LB: loop body
LE: loop exit
PB: predicated region body
PF: predicated region fallthrough
CT: control target
= control target key end

     0   :  { %8 = vsyncpa [#allocation3], 0  ;;  %s9853_s0 = inlined_call_operand.vmem [shape: f32[4,25856], index: 0, kind: input, shape index: {}]   ;;  %s9854_s1 = inlined_call_operand.hbm [shape: f32[32,25856], index: 1, kind: input, shape index: {}]   ;;  %s9855_s2 = inlined_call_operand.hbm [shape: f32[1,32], index: 2, kind: input, shape index: {}]   ;;  %s9856_s3 = inlined_call_operand.vmem [shape: f32[4,32], index: 3, kind: output, shape index: {}]  }
   0x1   :  { %9 = vsyncpa [#allocation5], 0  ;;  %s9499_s12 = smov [#allocation2]   ;;  %s9451_s16 = scalar_lea.hbm %s9854_s1, 103424 }
   0x2   :  { %s17_s13 = sshll.u32 %s9499_s12, 4  ;;  %p9452_p0 = scmp.ne.s32.totalorder %s9854_s1, %s9451_s16  ;;  %s18_s13 = int_to_ptr.vmem [resolvable:$true] %s17_s13 }
   0x3   :  { %p9455_p1 = scmp.lt.u32.totalorder %s9451_s16, %s9854_s1 }
   0x5   :  { %p9457_p2 = pnand %p9455_p1, %p9452_p0 }
   0x7   :  { %9460 = shalt.err (!%p9457_p2)
}
   0x8   :  { %s9461_s21 = scalar_lea.vmem %s18_s13, 103424  ;;  %p9466_p4 = scmp.lt.s32.totalorder %s18_s13, %s18_s13 }
   0x9   :  { %p9462_p3 = scmp.ne.s32.totalorder %s18_s13, %s9461_s21  ;;  %p9467_p5 = scmp.lt.s32.totalorder %s9461_s21, %s9461_s21 }
   0xb   :  { %p9468_p6 = por %p9467_p5, %p9466_p4 }
   0xd   :  { %p9469_p7 = pnand %p9468_p6, %p9462_p3 }
   0xf   :  { %9472 = shalt.err (!%p9469_p7)
}
  0x10   :  { %s9500_s22 = smov 25856   ;;  %s9501_s23 = smov 1616  }
  0x11   :  { %23 = dma.hbm_to_vmem [thread:$0]  %s9854_s1, 103424, %s18_s13, [#allocation3], %s9500_s22, %s9500_s22, %s9501_s23  }
  0x12   :  { %s9502_s26 = smov [#allocation4]   ;;  %s9473_s30 = scalar_lea.hbm %s9855_s2, 16 }
  0x13   :  { %s30_s27 = sshll.u32 %s9502_s26, 4  ;;  %p9474_p8 = scmp.ne.s32.totalorder %s9855_s2, %s9473_s30  ;;  %s31_s27 = int_to_ptr.vmem [resolvable:$true] %s30_s27 }
  0x14   :  { %p9477_p9 = scmp.lt.u32.totalorder %s9473_s30, %s9855_s2 }
  0x16   :  { %p9479_p10 = pnand %p9477_p9, %p9474_p8 }
  0x18   :  { %9482 = shalt.err (!%p9479_p10)
}
  0x19   :  { %s9483_s8 = scalar_lea.vmem %s31_s27, 16  ;;  %s9487_s1 = scalar_lea.vmem %s31_s27, 32 }
  0x1a   :  { %p9484_p11 = scmp.ne.s32.totalorder %s31_s27, %s9483_s8  ;;  %p9488_p12 = scmp.lt.s32.totalorder %s31_s27, %s31_s27 }
  0x1b   :  { %p9489_p13 = scmp.lt.s32.totalorder %s9487_s1, %s9483_s8 }
  0x1d   :  { %p9490_p0 = por %p9489_p13, %p9488_p12 }
  0x1f   :  { %p9491_p1 = pnand %p9490_p0, %p9484_p11 }
  0x21   :  { %9494 = shalt.err (!%p9491_p1)
}
  0x22   :  { %33 = dma.hbm_to_vmem [thread:$0]  %s9855_s2, 16, %s31_s27, [#allocation5]  }
  0x23   :  { %9495 = dma.done.wait [#allocation3], 103424  }
  0x24   :  { %9496 = vsyncadd [#allocation3], 4294863872 }
  0x25   :  { %9497 = dma.done.wait [#allocation5], 16  }
  0x26   :  { %9498 = vsyncadd [#allocation5], 4294967280  ;;  %v142_v0 = vld [vmem:[#allocation2 + $0x8] sm:$0xff]  ;;  %v344_v1 = vld [vmem:[#allocation2 + $0x658] sm:$0xff]  ;;  %vm8329_vm0 = vcmask 257024  }
  0x27   :  { %v242_v2 = vld [vmem:[#allocation2 + $0x328] sm:$0xff]  ;;  %v8338_v3 = vpack.c.bf16 %v344_v1, %v142_v0  ;;  %v444_v4 = vld [vmem:[#allocation2 + $0x978] sm:$0xff]  ;;  %v141_v5 = vld [vmem:[#allocation2] sm:$0xff] }
  0x28   :  { %v343_v6 = vld [vmem:[#allocation2 + $0x650] sm:$0xff]  ;;  %v8738_v7 = vpack.c.bf16 %v444_v4, %v242_v2  ;;  %v241_v9 = vld [vmem:[#allocation2 + $0x320] sm:$0xff]  ;;  %v546_v11 = vld [vmem:[#allocation2 + $0xca8] sm:$0xff] }
  0x29   :  { %v8340_v8 = vpack.c.bf16 %v343_v6, %v141_v5  ;;  %v443_v10 = vld [vmem:[#allocation2 + $0x970] sm:$0xff]  ;;  %8339 = vmatprep.subr.bf16.mxu1 %v8338_v3  ;;  %v748_v13 = vld [vmem:[#allocation2 + $0x12f8] sm:$0xff]  ;;  %v646_v14 = vld [vmem:[#allocation2 + $0xfc8] sm:$0xff] }
  0x2a   :  { %v8740_v12 = vpack.c.bf16 %v443_v10, %v241_v9  ;;  %v848_v15 = vld [vmem:[#allocation2 + $0x1618] sm:$0xff]  ;;  %8739 = vmatprep.subr.bf16.mxu0 %v8738_v7  ;;  %v8342_v16 = vpack.c.bf16 %v748_v13, %v546_v11  ;;  %v545_v18 = vld [vmem:[#allocation2 + $0xca0] sm:$0xff]  ;;  %v747_v19 = vld [vmem:[#allocation2 + $0x12f0] sm:$0xff] }
  0x2b   :  { %8341 = vmatpush1.bf16.xpose.msra.mxu1 %v8340_v8  ;;  %v8742_v17 = vpack.c.bf16 %v848_v15, %v646_v14  ;;  %v645_v20 = vld [vmem:[#allocation2 + $0xfc0] sm:$0xff]  ;;  %v847_v21 = vld [vmem:[#allocation2 + $0x1610] sm:$0xff]  ;;  %v144_v24 = vld [vmem:[#allocation2 + $0x18] sm:$0xff]  ;;  %v8344_v30 = vpack.c.bf16 %v747_v19, %v545_v18 }
  0x2c   :  { %8741 = vmatpush1.bf16.xpose.msra.mxu0 %v8740_v12  ;;  %v40_v22 = vld [vmem:[%s9853_s0] sm:$0xff]  ;;  %8343 = vmatprep.subr.bf16.mxu1 %v8342_v16  ;;  %v346_v25 = vld [vmem:[#allocation2 + $0x668] sm:$0xff]  ;;  %v90_v26 = vld [vmem:[%s9853_s0 + $0x190] sm:$0xff]  ;;  %v8744_v31 = vpack.c.bf16 %v847_v21, %v645_v20 }
  0x2d   :  { %8743 = vmatprep.subr.bf16.mxu0 %v8742_v17  ;;  %v1057_v23 = vcombine.high %v40_v22, %v40_v22  ;;  %v1107_v27 = vcombine.high %v90_v26, %v90_v26  ;;  %v244_v28 = vld [vmem:[#allocation2 + $0x338] sm:$0xff]  ;;  %v446_v29 = vld [vmem:[#allocation2 + $0x988] sm:$0xff]  ;;  %v8346_v32 = vpack.c.bf16 %v346_v25, %v144_v24  ;;  %v143_v34 = vld [vmem:[#allocation2 + $0x10] sm:$0xff] }
  0x2e   :  { %v8746_v33 = vpack.c.bf16 %v446_v29, %v244_v28  ;;  %v345_v35 = vld [vmem:[#allocation2 + $0x660] sm:$0xff]  ;;  %v243_v36 = vld [vmem:[#allocation2 + $0x330] sm:$0xff]  ;;  %v548_v38 = vld [vmem:[#allocation2 + $0xcb8] sm:$0xff] }
  0x2f   :  { %1323 = vmatprep.mubr.f32.mxu1 %v1057_v23  ;;  %4823 = vmatprep.mubr.f32.mxu0 %v1107_v27  ;;  %v445_v37 = vld [vmem:[#allocation2 + $0x980] sm:$0xff]  ;;  %v750_v39 = vld [vmem:[#allocation2 + $0x1308] sm:$0xff]  ;;  %v648_v40 = vld [vmem:[#allocation2 + $0xfd8] sm:$0xff]  ;;  %v8348_v43 = vpack.c.bf16 %v345_v35, %v143_v34 }
  0x30   :  { %v850_v41 = vld [vmem:[#allocation2 + $0x1628] sm:$0xff]  ;;  %v91_v44 = vld [vmem:[%s9853_s0 + $0x198] sm:$0xff]  ;;  %v8748_v45 = vpack.c.bf16 %v445_v37, %v243_v36  ;;  %v8350_v46 = vpack.c.bf16 %v750_v39, %v548_v38  ;;  %v547_v50 = vld [vmem:[#allocation2 + $0xcb0] sm:$0xff] }
  0x31   :  { %v41_v42 = vld [vmem:[%s9853_s0 + $0x8] sm:$0xff]  ;;  %v8750_v47 = vpack.c.bf16 %v850_v41, %v648_v40  ;;  %v1108_v49 = vcombine.high %v91_v44, %v91_v44  ;;  %v749_v51 = vld [vmem:[#allocation2 + $0x1300] sm:$0xff]  ;;  %v647_v52 = vld [vmem:[#allocation2 + $0xfd0] sm:$0xff] }
  0x32   :  { %v1058_v48 = vcombine.high %v41_v42, %v41_v42  ;;  %v849_v53 = vld [vmem:[#allocation2 + $0x1620] sm:$0xff]  ;;  %v146_v54 = vld [vmem:[#allocation2 + $0x28] sm:$0xff]  ;;  %v348_v55 = vld [vmem:[#allocation2 + $0x678] sm:$0xff]  ;;  %v8352_v58 = vpack.c.bf16 %v749_v51, %v547_v50 }
  0x33   :  { %8345 = vmatpush1.bf16.xpose.msra.mxu1 %v8344_v30  ;;  %v246_v56 = vld [vmem:[#allocation2 + $0x348] sm:$0xff]  ;;  %v448_v57 = vld [vmem:[#allocation2 + $0x998] sm:$0xff]  ;;  %v8752_v59 = vpack.c.bf16 %v849_v53, %v647_v52  ;;  %v8354_v60 = vpack.c.bf16 %v348_v55, %v146_v54  ;;  %v145_v62 = vld [vmem:[#allocation2 + $0x20] sm:$0xff] }
  0x34   :  { %8745 = vmatpush1.bf16.xpose.msra.mxu0 %v8744_v31  ;;  %8347 = vmatprep.subr.bf16.mxu1 %v8346_v32  ;;  %v8754_v61 = vpack.c.bf16 %v448_v57, %v246_v56  ;;  %v347_v63 = vld [vmem:[#allocation2 + $0x670] sm:$0xff]  ;;  %v245_v0 = vld [vmem:[#allocation2 + $0x340] sm:$0xff]  ;;  %v550_v2 = vld [vmem:[#allocation2 + $0xcc8] sm:$0xff] }
  0x35   :  { %8747 = vmatprep.subr.bf16.mxu0 %v8746_v33  ;;  %v447_v1 = vld [vmem:[#allocation2 + $0x990] sm:$0xff]  ;;  %v752_v3 = vld [vmem:[#allocation2 + $0x1318] sm:$0xff]  ;;  %v650_v4 = vld [vmem:[#allocation2 + $0xfe8] sm:$0xff]  ;;  %v8356_v7 = vpack.c.bf16 %v347_v63, %v145_v62 }
  0x36   :  { %v852_v5 = vld [vmem:[#allocation2 + $0x1638] sm:$0xff]  ;;  %v42_v6 = vld [vmem:[%s9853_s0 + $0x10] sm:$0xff]  ;;  %v92_v8 = vld [vmem:[%s9853_s0 + $0x1a0] sm:$0xff]  ;;  %v8756_v9 = vpack.c.bf16 %v447_v1, %v245_v0  ;;  %v8358_v10 = vpack.c.bf16 %v752_v3, %v550_v2 }
  0x37   :  { %v8758_v11 = vpack.c.bf16 %v852_v5, %v650_v4  ;;  %v1059_v12 = vcombine.high %v42_v6, %v42_v6  ;;  %v1109_v13 = vcombine.high %v92_v8, %v92_v8  ;;  %v549_v14 = vld [vmem:[#allocation2 + $0xcc0] sm:$0xff]  ;;  %v751_v15 = vld [vmem:[#allocation2 + $0x1310] sm:$0xff]  ;;  %v148_v18 = vld [vmem:[#allocation2 + $0x38] sm:$0xff] }
  0x38   :  { %v649_v16 = vld [vmem:[#allocation2 + $0xfe0] sm:$0xff]  ;;  %v851_v17 = vld [vmem:[#allocation2 + $0x1630] sm:$0xff]  ;;  %v350_v19 = vld [vmem:[#allocation2 + $0x688] sm:$0xff] }
  0x39   :  { %v248_v20 = vld [vmem:[#allocation2 + $0x358] sm:$0xff]  ;;  %v450_v21 = vld [vmem:[#allocation2 + $0x9a8] sm:$0xff]  ;;  %v8760_v23 = vpack.c.bf16 %v851_v17, %v649_v16  ;;  %v8362_v24 = vpack.c.bf16 %v350_v19, %v148_v18  ;;  %v349_v27 = vld [vmem:[#allocation2 + $0x680] sm:$0xff] }
  0x3a   :  { %1324 = vmatmul.mubr.f32.vlgmr.msra.gmra.mrb[0].mxu1 %v40_v22  ;;  %v8360_v22 = vpack.c.bf16 %v751_v15, %v549_v14  ;;  %v8762_v25 = vpack.c.bf16 %v450_v21, %v248_v20  ;;  %v247_v28 = vld [vmem:[#allocation2 + $0x350] sm:$0xff]  ;;  %v449_v29 = vld [vmem:[#allocation2 + $0x9a0] sm:$0xff]  ;;  %v552_v30 = vld [vmem:[#allocation2 + $0xcd8] sm:$0xff] }
  0x3b   :  { %8349 = vmatpush1.bf16.xpose.msra.mxu1 %v8348_v43  ;;  %4824 = vmatmul.mubr.f32.vlgmr.msra.gmra.mrb[0].mxu0 %v90_v26  ;;  %v147_v26 = vld [vmem:[#allocation2 + $0x30] sm:$0xff]  ;;  %v754_v31 = vld [vmem:[#allocation2 + $0x1328] sm:$0xff]  ;;  %v652_v32 = vld [vmem:[#allocation2 + $0xff8] sm:$0xff]  ;;  %v8764_v37 = vpack.c.bf16 %v449_v29, %v247_v28 }
  0x3c   :  { %8749 = vmatpush1.bf16.xpose.msra.mxu0 %v8748_v45  ;;  %8351 = vmatprep.subr.bf16.mxu1 %v8350_v46  ;;  %v854_v33 = vld [vmem:[#allocation2 + $0x1648] sm:$0xff]  ;;  %v43_v34 = vld [vmem:[%s9853_s0 + $0x18] sm:$0xff]  ;;  %v8364_v35 = vpack.c.bf16 %v349_v27, %v147_v26  ;;  %v8366_v38 = vpack.c.bf16 %v754_v31, %v552_v30  ;;  %v753_v43 = vld [vmem:[#allocation2 + $0x1320] sm:$0xff] }
  0x3d   :  { %8751 = vmatprep.subr.bf16.mxu0 %v8750_v47  ;;  %1393 = vmatprep.mubr.f32.mxu1 %v1058_v48  ;;  %v93_v36 = vld [vmem:[%s9853_s0 + $0x1a8] sm:$0xff]  ;;  %v8766_v39 = vpack.c.bf16 %v854_v33, %v652_v32  ;;  %v1060_v40 = vcombine.high %v43_v34, %v43_v34  ;;  %v853_v45 = vld [vmem:[#allocation2 + $0x1640] sm:$0xff]  ;;  %v352_v47 = vld [vmem:[#allocation2 + $0x698] sm:$0xff] }
  0x3e   :  { %4893 = vmatprep.mubr.f32.mxu0 %v1108_v49  ;;  %v1110_v41 = vcombine.high %v93_v36, %v93_v36  ;;  %v150_v46 = vld [vmem:[#allocation2 + $0x48] sm:$0xff]  ;;  %v452_v49 = vld [vmem:[#allocation2 + $0x9b8] sm:$0xff]  ;;  %v149_v54 = vld [vmem:[#allocation2 + $0x40] sm:$0xff] }
  0x3f   :  { %v250_v48 = vld [vmem:[#allocation2 + $0x368] sm:$0xff]  ;;  %v8370_v52 = vpack.c.bf16 %v352_v47, %v150_v46  ;;  %v351_v55 = vld [vmem:[#allocation2 + $0x690] sm:$0xff]  ;;  %v249_v56 = vld [vmem:[#allocation2 + $0x360] sm:$0xff] }
  0x40   :  { %v8770_v53 = vpack.c.bf16 %v452_v49, %v250_v48  ;;  %v451_v57 = vld [vmem:[#allocation2 + $0x9b0] sm:$0xff]  ;;  %v44_v62 = vld [vmem:[%s9853_s0 + $0x20] sm:$0xff]  ;;  %v8372_v63 = vpack.c.bf16 %v351_v55, %v149_v54  ;;  %v45_v26 = vld [vmem:[%s9853_s0 + $0x28] sm:$0xff] }
  0x41   :  { %v94_v0 = vld [vmem:[%s9853_s0 + $0x1b0] sm:$0xff]  ;;  %v8772_v1 = vpack.c.bf16 %v451_v57, %v249_v56  ;;  %v1061_v4 = vcombine.high %v44_v62, %v44_v62  ;;  %v353_v19 = vld [vmem:[#allocation2 + $0x6a0] sm:$0xff]  ;;  %v95_v28 = vld [vmem:[%s9853_s0 + $0x1b8] sm:$0xff]  ;;  %v1062_v32 = vcombine.high %v45_v26, %v45_v26 }
  0x42   :  { %v1111_v5 = vcombine.high %v94_v0, %v94_v0  ;;  %v151_v18 = vld [vmem:[#allocation2 + $0x50] sm:$0xff]  ;;  %v453_v21 = vld [vmem:[#allocation2 + $0x9c0] sm:$0xff]  ;;  %v1112_v33 = vcombine.high %v95_v28, %v95_v28 }
  0x43   :  { %8353 = vmatpush1.bf16.xpose.msra.mxu1 %v8352_v58  ;;  %v554_v58 = vld [vmem:[#allocation2 + $0xce8] sm:$0xff]  ;;  %v251_v20 = vld [vmem:[#allocation2 + $0x370] sm:$0xff]  ;;  %v8380_v27 = vpack.c.bf16 %v353_v19, %v151_v18  ;;  %v153_v46 = vld [vmem:[#allocation2 + $0x60] sm:$0xff] }
  0x44   :  { %8753 = vmatpush1.bf16.xpose.msra.mxu0 %v8752_v59  ;;  %8355 = vmatprep.subr.bf16.mxu1 %v8354_v60  ;;  %v756_v59 = vld [vmem:[#allocation2 + $0x1338] sm:$0xff]  ;;  %v654_v60 = vld [vmem:[#allocation2 + $0x1008] sm:$0xff]  ;;  %v8780_v29 = vpack.c.bf16 %v453_v21, %v251_v20  ;;  %v355_v47 = vld [vmem:[#allocation2 + $0x6b0] sm:$0xff] }
  0x45   :  { %8755 = vmatprep.subr.bf16.mxu0 %v8754_v61  ;;  %v856_v61 = vld [vmem:[#allocation2 + $0x1658] sm:$0xff]  ;;  %v8374_v2 = vpack.c.bf16 %v756_v59, %v554_v58  ;;  %v253_v48 = vld [vmem:[#allocation2 + $0x380] sm:$0xff]  ;;  %v455_v49 = vld [vmem:[#allocation2 + $0x9d0] sm:$0xff]  ;;  %v8388_v55 = vpack.c.bf16 %v355_v47, %v153_v46 }
  0x46   :  { %v8774_v3 = vpack.c.bf16 %v856_v61, %v654_v60  ;;  %v46_v54 = vld [vmem:[%s9853_s0 + $0x30] sm:$0xff]  ;;  %v96_v56 = vld [vmem:[%s9853_s0 + $0x1c0] sm:$0xff]  ;;  %v8788_v57 = vpack.c.bf16 %v455_v49, %v253_v48  ;;  %v47_v18 = vld [vmem:[%s9853_s0 + $0x38] sm:$0xff] }
  0x47   :  { %v1063_v60 = vcombine.high %v46_v54, %v46_v54  ;;  %v1113_v61 = vcombine.high %v96_v56, %v96_v56  ;;  %v97_v20 = vld [vmem:[%s9853_s0 + $0x1c8] sm:$0xff]  ;;  %v48_v46 = vld [vmem:[%s9853_s0 + $0x40] sm:$0xff]  ;;  %v98_v48 = vld [vmem:[%s9853_s0 + $0x1d0] sm:$0xff] }
  0x4a   :  { %1394 = vmatmul.mubr.f32.vlgmr.msra.gmra.mrb[0].mxu1 %v41_v42  ;;  %v551_v42 = vld [vmem:[#allocation2 + $0xcd0] sm:$0xff] }
  0x4b   :  { %8357 = vmatpush1.bf16.xpose.msra.mxu1 %v8356_v7  ;;  %4894 = vmatmul.mubr.f32.vlgmr.msra.gmra.mrb[0].mxu0 %v91_v44  ;;  %v651_v44 = vld [vmem:[#allocation2 + $0xff0] sm:$0xff]  ;;  %v8368_v50 = vpack.c.bf16 %v753_v43, %v551_v42 }
  0x4c   :  { %8757 = vmatpush1.bf16.xpose.msra.mxu0 %v8756_v9  ;;  %8359 = vmatprep.subr.bf16.mxu1 %v8358_v10  ;;  %v8768_v51 = vpack.c.bf16 %v853_v45, %v651_v44  ;;  %v755_v7 = vld [vmem:[#allocation2 + $0x1330] sm:$0xff]  ;;  %v152_v10 = vld [vmem:[#allocation2 + $0x58] sm:$0xff] }
  0x4d   :  { %8759 = vmatprep.subr.bf16.mxu0 %v8758_v11  ;;  %1463 = vmatprep.mubr.f32.mxu1 %v1059_v12  ;;  %v855_v9 = vld [vmem:[#allocation2 + $0x1650] sm:$0xff]  ;;  %v354_v11 = vld [vmem:[#allocation2 + $0x6a8] sm:$0xff]  ;;  %v252_v12 = vld [vmem:[#allocation2 + $0x378] sm:$0xff] }
  0x4e   :  { %4963 = vmatprep.mubr.f32.mxu0 %v1109_v13  ;;  %v454_v13 = vld [vmem:[#allocation2 + $0x9c8] sm:$0xff]  ;;  %v8378_v16 = vpack.c.bf16 %v354_v11, %v152_v10  ;;  %v155_v10 = vld [vmem:[#allocation2 + $0x70] sm:$0xff]  ;;  %v357_v11 = vld [vmem:[#allocation2 + $0x6c0] sm:$0xff] }
  0x4f   :  { %v8778_v17 = vpack.c.bf16 %v454_v13, %v252_v12  ;;  %v255_v12 = vld [vmem:[#allocation2 + $0x390] sm:$0xff]  ;;  %v457_v13 = vld [vmem:[#allocation2 + $0x9e0] sm:$0xff]  ;;  %v8396_v19 = vpack.c.bf16 %v357_v11, %v155_v10  ;;  %v49_v10 = vld [vmem:[%s9853_s0 + $0x48] sm:$0xff] }
  0x50   :  { %v8796_v21 = vpack.c.bf16 %v457_v13, %v255_v12  ;;  %v99_v12 = vld [vmem:[%s9853_s0 + $0x1d8] sm:$0xff] }
  0x53   :  { %8361 = vmatpush1.bf16.xpose.msra.mxu1 %v8360_v22  ;;  %v556_v22 = vld [vmem:[#allocation2 + $0xcf8] sm:$0xff] }
  0x54   :  { %8761 = vmatpush1.bf16.xpose.msra.mxu0 %v8760_v23  ;;  %8363 = vmatprep.subr.bf16.mxu1 %v8362_v24  ;;  %v758_v23 = vld [vmem:[#allocation2 + $0x1348] sm:$0xff]  ;;  %v656_v24 = vld [vmem:[#allocation2 + $0x1018] sm:$0xff] }
  0x55   :  { %8763 = vmatprep.subr.bf16.mxu0 %v8762_v25  ;;  %v858_v25 = vld [vmem:[#allocation2 + $0x1668] sm:$0xff]  ;;  %v8382_v30 = vpack.c.bf16 %v758_v23, %v556_v22 }
  0x56   :  { %v8782_v31 = vpack.c.bf16 %v858_v25, %v656_v24  ;;  %v1064_v24 = vcombine.high %v47_v18, %v47_v18  ;;  %v1114_v25 = vcombine.high %v97_v20, %v97_v20 }
  0x5a   :  { %1464 = vmatmul.mubr.f32.vlgmr.msra.gmra.mrb[0].mxu1 %v42_v6  ;;  %v553_v6 = vld [vmem:[#allocation2 + $0xce0] sm:$0xff] }
  0x5b   :  { %8365 = vmatpush1.bf16.xpose.msra.mxu1 %v8364_v35  ;;  %4964 = vmatmul.mubr.f32.vlgmr.msra.gmra.mrb[0].mxu0 %v92_v8  ;;  %v653_v8 = vld [vmem:[#allocation2 + $0x1000] sm:$0xff]  ;;  %v8376_v14 = vpack.c.bf16 %v755_v7, %v553_v6 }
  0x5c   :  { %8765 = vmatpush1.bf16.xpose.msra.mxu0 %v8764_v37  ;;  %8367 = vmatprep.subr.bf16.mxu1 %v8366_v38  ;;  %v8776_v15 = vpack.c.bf16 %v855_v9, %v653_v8  ;;  %v757_v35 = vld [vmem:[#allocation2 + $0x1340] sm:$0xff]  ;;  %v154_v38 = vld [vmem:[#allocation2 + $0x68] sm:$0xff] }
  0x5d   :  { %8767 = vmatprep.subr.bf16.mxu0 %v8766_v39  ;;  %1533 = vmatprep.mubr.f32.mxu1 %v1060_v40  ;;  %v857_v37 = vld [vmem:[#allocation2 + $0x1660] sm:$0xff]  ;;  %v356_v39 = vld [vmem:[#allocation2 + $0x6b8] sm:$0xff]  ;;  %v254_v40 = vld [vmem:[#allocation2 + $0x388] sm:$0xff] }
  0x5e   :  { %5033 = vmatprep.mubr.f32.mxu0 %v1110_v41  ;;  %v456_v41 = vld [vmem:[#allocation2 + $0x9d8] sm:$0xff]  ;;  %v8386_v44 = vpack.c.bf16 %v356_v39, %v154_v38  ;;  %v157_v38 = vld [vmem:[#allocation2 + $0x80] sm:$0xff]  ;;  %v359_v39 = vld [vmem:[#allocation2 + $0x6d0] sm:$0xff] }
  0x5f   :  { %v8786_v45 = vpack.c.bf16 %v456_v41, %v254_v40  ;;  %v257_v40 = vld [vmem:[#allocation2 + $0x3a0] sm:$0xff]  ;;  %v459_v41 = vld [vmem:[#allocation2 + $0x9f0] sm:$0xff]  ;;  %v8404_v47 = vpack.c.bf16 %v359_v39, %v157_v38 }
  0x60   :  { %v8804_v49 = vpack.c.bf16 %v459_v41, %v257_v40  ;;  %v50_v38 = vld [vmem:[%s9853_s0 + $0x50] sm:$0xff]  ;;  %v100_v40 = vld [vmem:[%s9853_s0 + $0x1e0] sm:$0xff] }
  0x63   :  { %8369 = vmatpush1.bf16.xpose.msra.mxu1 %v8368_v50  ;;  %v558_v50 = vld [vmem:[#allocation2 + $0xd08] sm:$0xff] }
  0x64   :  { %8769 = vmatpush1.bf16.xpose.msra.mxu0 %v8768_v51  ;;  %8371 = vmatprep.subr.bf16.mxu1 %v8370_v52  ;;  %v760_v51 = vld [vmem:[#allocation2 + $0x1358] sm:$0xff]  ;;  %v658_v52 = vld [vmem:[#allocation2 + $0x1028] sm:$0xff] }
  0x65   :  { %8771 = vmatprep.subr.bf16.mxu0 %v8770_v53  ;;  %v860_v53 = vld [vmem:[#allocation2 + $0x1678] sm:$0xff]  ;;  %v8390_v58 = vpack.c.bf16 %v760_v51, %v558_v50 }
  0x66   :  { %v8790_v59 = vpack.c.bf16 %v860_v53, %v658_v52  ;;  %v1065_v52 = vcombine.high %v48_v46, %v48_v46  ;;  %v1115_v53 = vcombine.high %v98_v48, %v98_v48 }
  0x6a   :  { %1534 = vmatmul.mubr.f32.vlgmr.msra.gmra.mrb[0].mxu1 %v43_v34  ;;  %v555_v34 = vld [vmem:[#allocation2 + $0xcf0] sm:$0xff] }
  0x6b   :  { %8373 = vmatpush1.bf16.xpose.msra.mxu1 %v8372_v63  ;;  %5034 = vmatmul.mubr.f32.vlgmr.msra.gmra.mrb[0].mxu0 %v93_v36  ;;  %v655_v36 = vld [vmem:[#allocation2 + $0x1010] sm:$0xff]  ;;  %v8384_v42 = vpack.c.bf16 %v757_v35, %v555_v34 }
  0x6c   :  { %8773 = vmatpush1.bf16.xpose.msra.mxu0 %v8772_v1  ;;  %8375 = vmatprep.subr.bf16.mxu1 %v8374_v2  ;;  %v8784_v43 = vpack.c.bf16 %v857_v37, %v655_v36  ;;  %v759_v63 = vld [vmem:[#allocation2 + $0x1350] sm:$0xff]  ;;  %v156_v2 = vld [vmem:[#allocation2 + $0x78] sm:$0xff] }
  0x6d   :  { %8775 = vmatprep.subr.bf16.mxu0 %v8774_v3  ;;  %1603 = vmatprep.mubr.f32.mxu1 %v1061_v4  ;;  %v859_v1 = vld [vmem:[#allocation2 + $0x1670] sm:$0xff]  ;;  %v358_v3 = vld [vmem:[#allocation2 + $0x6c8] sm:$0xff]  ;;  %v256_v4 = vld [vmem:[#allocation2 + $0x398] sm:$0xff] }
  0x6e   :  { %5103 = vmatprep.mubr.f32.mxu0 %v1111_v5  ;;  %v458_v5 = vld [vmem:[#allocation2 + $0x9e8] sm:$0xff]  ;;  %v8394_v8 = vpack.c.bf16 %v358_v3, %v156_v2  ;;  %v159_v2 = vld [vmem:[#allocation2 + $0x90] sm:$0xff]  ;;  %v361_v3 = vld [vmem:[#allocation2 + $0x6e0] sm:$0xff] }
  0x6f   :  { %v8794_v9 = vpack.c.bf16 %v458_v5, %v256_v4  ;;  %v259_v4 = vld [vmem:[#allocation2 + $0x3b0] sm:$0xff]  ;;  %v461_v5 = vld [vmem:[#allocation2 + $0xa00] sm:$0xff]  ;;  %v8412_v11 = vpack.c.bf16 %v361_v3, %v159_v2  ;;  %v51_v2 = vld [vmem:[%s9853_s0 + $0x58] sm:$0xff] }
  0x70   :  { %v8812_v13 = vpack.c.bf16 %v461_v5, %v259_v4  ;;  %v101_v4 = vld [vmem:[%s9853_s0 + $0x1e8] sm:$0xff] }
  0x73   :  { %8377 = vmatpush1.bf16.xpose.msra.mxu1 %v8376_v14  ;;  %v560_v14 = vld [vmem:[#allocation2 + $0xd18] sm:$0xff] }
  0x74   :  { %8777 = vmatpush1.bf16.xpose.msra.mxu0 %v8776_v15  ;;  %8379 = vmatprep.subr.bf16.mxu1 %v8378_v16  ;;  %v762_v15 = vld [vmem:[#allocation2 + $0x1368] sm:$0xff]  ;;  %v660_v16 = vld [vmem:[#allocation2 + $0x1038] sm:$0xff] }
  0x75   :  { %8779 = vmatprep.subr.bf16.mxu0 %v8778_v17  ;;  %v862_v17 = vld [vmem:[#allocation2 + $0x1688] sm:$0xff]  ;;  %v8398_v22 = vpack.c.bf16 %v762_v15, %v560_v14 }
  0x76   :  { %v8798_v23 = vpack.c.bf16 %v862_v17, %v660_v16  ;;  %v1066_v16 = vcombine.high %v49_v10, %v49_v10  ;;  %v1116_v17 = vcombine.high %v99_v12, %v99_v12 }
  0x7a   :  { %1604 = vmatmul.mubr.f32.vlgmr.msra.gmra.mrb[0].mxu1 %v44_v62  ;;  %v557_v62 = vld [vmem:[#allocation2 + $0xd00] sm:$0xff] }
  0x7b   :  { %8381 = vmatpush1.bf16.xpose.msra.mxu1 %v8380_v27  ;;  %5104 = vmatmul.mubr.f32.vlgmr.msra.gmra.mrb[0].mxu0 %v94_v0  ;;  %v657_v0 = vld [vmem:[#allocation2 + $0x1020] sm:$0xff]  ;;  %v8392_v6 = vpack.c.bf16 %v759_v63, %v557_v62 }
  0x7c   :  { %8781 = vmatpush1.bf16.xpose.msra.mxu0 %v8780_v29  ;;  %8383 = vmatprep.subr.bf16.mxu1 %v8382_v30  ;;  %v8792_v7 = vpack.c.bf16 %v859_v1, %v657_v0  ;;  %v761_v27 = vld [vmem:[#allocation2 + $0x1360] sm:$0xff]  ;;  %v158_v30 = vld [vmem:[#allocation2 + $0x88] sm:$0xff] }
  0x7d   :  { %8783 = vmatprep.subr.bf16.mxu0 %v8782_v31  ;;  %1673 = vmatprep.mubr.f32.mxu1 %v1062_v32  ;;  %v861_v29 = vld [vmem:[#allocation2 + $0x1680] sm:$0xff]  ;;  %v360_v31 = vld [vmem:[#allocation2 + $0x6d8] sm:$0xff]  ;;  %v258_v32 = vld [vmem:[#allocation2 + $0x3a8] sm:$0xff] }
  0x7e   :  { %5173 = vmatprep.mubr.f32.mxu0 %v1112_v33  ;;  %v460_v33 = vld [vmem:[#allocation2 + $0x9f8] sm:$0xff]  ;;  %v8402_v36 = vpack.c.bf16 %v360_v31, %v158_v30  ;;  %v161_v30 = vld [vmem:[#allocation2 + $0xa0] sm:$0xff]  ;;  %v363_v31 = vld [vmem:[#allocation2 + $0x6f0] sm:$0xff] }
  0x7f   :  { %v8802_v37 = vpack.c.bf16 %v460_v33, %v258_v32  ;;  %v261_v32 = vld [vmem:[#allocation2 + $0x3c0] sm:$0xff]  ;;  %v463_v33 = vld [vmem:[#allocation2 + $0xa10] sm:$0xff]  ;;  %v8420_v39 = vpack.c.bf16 %v363_v31, %v161_v30 }
  0x80   :  { %v8820_v41 = vpack.c.bf16 %v463_v33, %v261_v32  ;;  %v52_v30 = vld [vmem:[%s9853_s0 + $0x60] sm:$0xff]  ;;  %v102_v32 = vld [vmem:[%s9853_s0 + $0x1f0] sm:$0xff] }
  0x83   :  { %8385 = vmatpush1.bf16.xpose.msra.mxu1 %v8384_v42  ;;  %v562_v42 = vld [vmem:[#allocation2 + $0xd28] sm:$0xff] }
  0x84   :  { %8785 = vmatpush1.bf16.xpose.msra.mxu0 %v8784_v43  ;;  %8387 = vmatprep.subr.bf16.mxu1 %v8386_v44  ;;  %v764_v43 = vld [vmem:[#allocation2 + $0x1378] sm:$0xff]  ;;  %v662_v44 = vld [vmem:[#allocation2 + $0x1048] sm:$0xff] }
  0x85   :  { %8787 = vmatprep.subr.bf16.mxu0 %v8786_v45  ;;  %v864_v45 = vld [vmem:[#allocation2 + $0x1698] sm:$0xff]  ;;  %v8406_v50 = vpack.c.bf16 %v764_v43, %v562_v42 }
  0x86   :  { %v8806_v51 = vpack.c.bf16 %v864_v45, %v662_v44  ;;  %v1067_v44 = vcombine.high %v50_v38, %v50_v38  ;;  %v1117_v45 = vcombine.high %v100_v40, %v100_v40 }
  0x8a   :  { %1674 = vmatmul.mubr.f32.vlgmr.msra.gmra.mrb[0].mxu1 %v45_v26  ;;  %v559_v26 = vld [vmem:[#allocation2 + $0xd10] sm:$0xff] }
  0x8b   :  { %8389 = vmatpush1.bf16.xpose.msra.mxu1 %v8388_v55  ;;  %5174 = vmatmul.mubr.f32.vlgmr.msra.gmra.mrb[0].mxu0 %v95_v28  ;;  %v659_v28 = vld [vmem:[#allocation2 + $0x1030] sm:$0xff]  ;;  %v8400_v34 = vpack.c.bf16 %v761_v27, %v559_v26 }
  0x8c   :  { %8789 = vmatpush1.bf16.xpose.msra.mxu0 %v8788_v57  ;;  %8391 = vmatprep.subr.bf16.mxu1 %v8390_v58  ;;  %v8800_v35 = vpack.c.bf16 %v861_v29, %v659_v28  ;;  %v763_v55 = vld [vmem:[#allocation2 + $0x1370] sm:$0xff]  ;;  %v160_v58 = vld [vmem:[#allocation2 + $0x98] sm:$0xff] }
  0x8d   :  { %8791 = vmatprep.subr.bf16.mxu0 %v8790_v59  ;;  %1743 = vmatprep.mubr.f32.mxu1 %v1063_v60  ;;  %v863_v57 = vld [vmem:[#allocation2 + $0x1690] sm:$0xff]  ;;  %v362_v59 = vld [vmem:[#allocation2 + $0x6e8] sm:$0xff]  ;;  %v260_v60 = vld [vmem:[#allocation2 + $0x3b8] sm:$0xff] }
  0x8e   :  { %5243 = vmatprep.mubr.f32.mxu0 %v1113_v61  ;;  %v462_v61 = vld [vmem:[#allocation2 + $0xa08] sm:$0xff]  ;;  %v8410_v0 = vpack.c.bf16 %v362_v59, %v160_v58  ;;  %v163_v58 = vld [vmem:[#allocation2 + $0xb0] sm:$0xff]  ;;  %v365_v59 = vld [vmem:[#allocation2 + $0x700] sm:$0xff] }
  0x8f   :  { %v8810_v1 = vpack.c.bf16 %v462_v61, %v260_v60  ;;  %v263_v60 = vld [vmem:[#allocation2 + $0x3d0] sm:$0xff]  ;;  %v465_v61 = vld [vmem:[#allocation2 + $0xa20] sm:$0xff]  ;;  %v8428_v3 = vpack.c.bf16 %v365_v59, %v163_v58  ;;  %v53_v58 = vld [vmem:[%s9853_s0 + $0x68] sm:$0xff] }
  0x90   :  { %v8828_v5 = vpack.c.bf16 %v465_v61, %v263_v60  ;;  %v103_v60 = vld [vmem:[%s9853_s0 + $0x1f8] sm:$0xff] }
  0x93   :  { %8393 = vmatpush1.bf16.xpose.msra.mxu1 %v8392_v6  ;;  %v564_v6 = vld [vmem:[#allocation2 + $0xd38] sm:$0xff] }
  0x94   :  { %8793 = vmatpush1.bf16.xpose.msra.mxu0 %v8792_v7  ;;  %8395 = vmatprep.subr.bf16.mxu1 %v8394_v8  ;;  %v766_v7 = vld [vmem:[#allocation2 + $0x1388] sm:$0xff]  ;;  %v664_v8 = vld [vmem:[#allocation2 + $0x1058] sm:$0xff] }
  0x95   :  { %8795 = vmatprep.subr.bf16.mxu0 %v8794_v9  ;;  %v866_v9 = vld [vmem:[#allocation2 + $0x16a8] sm:$0xff]  ;;  %v8414_v14 = vpack.c.bf16 %v766_v7, %v564_v6 }
  0x96   :  { %v8814_v15 = vpack.c.bf16 %v866_v9, %v664_v8  ;;  %v1068_v8 = vcombine.high %v51_v2, %v51_v2  ;;  %v1118_v9 = vcombine.high %v101_v4, %v101_v4 }
  0x9a   :  { %1744 = vmatmul.mubr.f32.vlgmr.msra.gmra.mrb[0].mxu1 %v46_v54  ;;  %v561_v54 = vld [vmem:[#allocation2 + $0xd20] sm:$0xff] }
  0x9b   :  { %8397 = vmatpush1.bf16.xpose.msra.mxu1 %v8396_v19  ;;  %5244 = vmatmul.mubr.f32.vlgmr.msra.gmra.mrb[0].mxu0 %v96_v56  ;;  %v661_v56 = vld [vmem:[#allocation2 + $0x1040] sm:$0xff]  ;;  %v8408_v62 = vpack.c.bf16 %v763_v55, %v561_v54 }
  0x9c   :  { %8797 = vmatpush1.bf16.xpose.msra.mxu0 %v8796_v21  ;;  %8399 = vmatprep.subr.bf16.mxu1 %v8398_v22  ;;  %v8808_v63 = vpack.c.bf16 %v863_v57, %v661_v56  ;;  %v765_v19 = vld [vmem:[#allocation2 + $0x1380] sm:$0xff]  ;;  %v162_v22 = vld [vmem:[#allocation2 + $0xa8] sm:$0xff] }
  0x9d   :  { %8799 = vmatprep.subr.bf16.mxu0 %v8798_v23  ;;  %1813 = vmatprep.mubr.f32.mxu1 %v1064_v24  ;;  %v865_v21 = vld [vmem:[#allocation2 + $0x16a0] sm:$0xff]  ;;  %v364_v23 = vld [vmem:[#allocation2 + $0x6f8] sm:$0xff]  ;;  %v262_v24 = vld [vmem:[#allocation2 + $0x3c8] sm:$0xff] }
  0x9e   :  { %5313 = vmatprep.mubr.f32.mxu0 %v1114_v25  ;;  %v464_v25 = vld [vmem:[#allocation2 + $0xa18] sm:$0xff]  ;;  %v8418_v28 = vpack.c.bf16 %v364_v23, %v162_v22  ;;  %v165_v22 = vld [vmem:[#allocation2 + $0xc0] sm:$0xff]  ;;  %v367_v23 = vld [vmem:[#allocation2 + $0x710] sm:$0xff] }
  0x9f   :  { %v8818_v29 = vpack.c.bf16 %v464_v25, %v262_v24  ;;  %v265_v24 = vld [vmem:[#allocation2 + $0x3e0] sm:$0xff]  ;;  %v467_v25 = vld [vmem:[#allocation2 + $0xa30] sm:$0xff]  ;;  %v8436_v31 = vpack.c.bf16 %v367_v23, %v165_v22 }
  0xa0   :  { %v8836_v33 = vpack.c.bf16 %v467_v25, %v265_v24  ;;  %v54_v22 = vld [vmem:[%s9853_s0 + $0x70] sm:$0xff]  ;;  %v104_v24 = vld [vmem:[%s9853_s0 + $0x200] sm:$0xff] }
  0xa3   :  { %8401 = vmatpush1.bf16.xpose.msra.mxu1 %v8400_v34  ;;  %v566_v34 = vld [vmem:[#allocation2 + $0xd48] sm:$0xff] }
  0xa4   :  { %8801 = vmatpush1.bf16.xpose.msra.mxu0 %v8800_v35  ;;  %8403 = vmatprep.subr.bf16.mxu1 %v8402_v36  ;;  %v768_v35 = vld [vmem:[#allocation2 + $0x1398] sm:$0xff]  ;;  %v666_v36 = vld [vmem:[#allocation2 + $0x1068] sm:$0xff] }
  0xa5   :  { %8803 = vmatprep.subr.bf16.mxu0 %v8802_v37  ;;  %v868_v37 = vld [vmem:[#allocation2 + $0x16b8] sm:$0xff]  ;;  %v8422_v42 = vpack.c.bf16 %v768_v35, %v566_v34 }
  0xa6   :  { %v8822_v43 = vpack.c.bf16 %v868_v37, %v666_v36  ;;  %v1069_v36 = vcombine.high %v52_v30, %v52_v30  ;;  %v1119_v37 = vcombine.high %v102_v32, %v102_v32 }
  0xaa   :  { %1814 = vmatmul.mubr.f32.vlgmr.msra.gmra.mrb[0].mxu1 %v47_v18  ;;  %v563_v18 = vld [vmem:[#allocation2 + $0xd30] sm:$0xff] }
  0xab   :  { %8405 = vmatpush1.bf16.xpose.msra.mxu1 %v8404_v47  ;;  %5314 = vmatmul.mubr.f32.vlgmr.msra.gmra.mrb[0].mxu0 %v97_v20  ;;  %v663_v20 = vld [vmem:[#allocation2 + $0x1050] sm:$0xff]  ;;  %v8416_v26 = vpack.c.bf16 %v765_v19, %v563_v18 }
  0xac   :  { %8805 = vmatpush1.bf16.xpose.msra.mxu0 %v8804_v49  ;;  %8407 = vmatprep.subr.bf16.mxu1 %v8406_v50  ;;  %v8816_v27 = vpack.c.bf16 %v865_v21, %v663_v20  ;;  %v767_v47 = vld [vmem:[#allocation2 + $0x1390] sm:$0xff]  ;;  %v164_v50 = vld [vmem:[#allocation2 + $0xb8] sm:$0xff] }
  0xad   :  { %8807 = vmatprep.subr.bf16.mxu0 %v8806_v51  ;;  %1883 = vmatprep.mubr.f32.mxu1 %v1065_v52  ;;  %v867_v49 = vld [vmem:[#allocation2 + $0x16b0] sm:$0xff]  ;;  %v366_v51 = vld [vmem:[#allocation2 + $0x708] sm:$0xff]  ;;  %v264_v52 = vld [vmem:[#allocation2 + $0x3d8] sm:$0xff] }
  0xae   :  { %5383 = vmatprep.mubr.f32.mxu0 %v1115_v53  ;;  %v466_v53 = vld [vmem:[#allocation2 + $0xa28] sm:$0xff]  ;;  %v8426_v56 = vpack.c.bf16 %v366_v51, %v164_v50  ;;  %v167_v50 = vld [vmem:[#allocation2 + $0xd0] sm:$0xff]  ;;  %v369_v51 = vld [vmem:[#allocation2 + $0x720] sm:$0xff] }
  0xaf   :  { %v8826_v57 = vpack.c.bf16 %v466_v53, %v264_v52  ;;  %v267_v52 = vld [vmem:[#allocation2 + $0x3f0] sm:$0xff]  ;;  %v469_v53 = vld [vmem:[#allocation2 + $0xa40] sm:$0xff]  ;;  %v8444_v59 = vpack.c.bf16 %v369_v51, %v167_v50  ;;  %v55_v50 = vld [vmem:[%s9853_s0 + $0x78] sm:$0xff] }
  0xb0   :  { %v8844_v61 = vpack.c.bf16 %v469_v53, %v267_v52  ;;  %v105_v52 = vld [vmem:[%s9853_s0 + $0x208] sm:$0xff] }
  0xb3   :  { %8409 = vmatpush1.bf16.xpose.msra.mxu1 %v8408_v62  ;;  %v568_v62 = vld [vmem:[#allocation2 + $0xd58] sm:$0xff] }
  0xb4   :  { %8809 = vmatpush1.bf16.xpose.msra.mxu0 %v8808_v63  ;;  %8411 = vmatprep.subr.bf16.mxu1 %v8410_v0  ;;  %v770_v63 = vld [vmem:[#allocation2 + $0x13a8] sm:$0xff]  ;;  %v668_v0 = vld [vmem:[#allocation2 + $0x1078] sm:$0xff] }
  0xb5   :  { %8811 = vmatprep.subr.bf16.mxu0 %v8810_v1  ;;  %v870_v1 = vld [vmem:[#allocation2 + $0x16c8] sm:$0xff]  ;;  %v8430_v6 = vpack.c.bf16 %v770_v63, %v568_v62 }
  0xb6   :  { %v8830_v7 = vpack.c.bf16 %v870_v1, %v668_v0  ;;  %v1070_v0 = vcombine.high %v53_v58, %v53_v58  ;;  %v1120_v1 = vcombine.high %v103_v60, %v103_v60 }
  0xba   :  { %1884 = vmatmul.mubr.f32.vlgmr.msra.gmra.mrb[0].mxu1 %v48_v46  ;;  %v565_v46 = vld [vmem:[#allocation2 + $0xd40] sm:$0xff] }
  0xbb   :  { %8413 = vmatpush1.bf16.xpose.msra.mxu1 %v8412_v11  ;;  %5384 = vmatmul.mubr.f32.vlgmr.msra.gmra.mrb[0].mxu0 %v98_v48  ;;  %v665_v48 = vld [vmem:[#allocation2 + $0x1060] sm:$0xff]  ;;  %v8424_v54 = vpack.c.bf16 %v767_v47, %v565_v46 }
  0xbc   :  { %8813 = vmatpush1.bf16.xpose.msra.mxu0 %v8812_v13  ;;  %8415 = vmatprep.subr.bf16.mxu1 %v8414_v14  ;;  %v8824_v55 = vpack.c.bf16 %v867_v49, %v665_v48  ;;  %v769_v11 = vld [vmem:[#allocation2 + $0x13a0] sm:$0xff]  ;;  %v166_v14 = vld [vmem:[#allocation2 + $0xc8] sm:$0xff] }
  0xbd   :  { %8815 = vmatprep.subr.bf16.mxu0 %v8814_v15  ;;  %1953 = vmatprep.mubr.f32.mxu1 %v1066_v16  ;;  %v869_v13 = vld [vmem:[#allocation2 + $0x16c0] sm:$0xff]  ;;  %v368_v15 = vld [vmem:[#allocation2 + $0x718] sm:$0xff]  ;;  %v266_v16 = vld [vmem:[#allocation2 + $0x3e8] sm:$0xff] }
  0xbe   :  { %5453 = vmatprep.mubr.f32.mxu0 %v1116_v17  ;;  %v468_v17 = vld [vmem:[#allocation2 + $0xa38] sm:$0xff]  ;;  %v8434_v20 = vpack.c.bf16 %v368_v15, %v166_v14  ;;  %v169_v14 = vld [vmem:[#allocation2 + $0xe0] sm:$0xff]  ;;  %v371_v15 = vld [vmem:[#allocation2 + $0x730] sm:$0xff] }
  0xbf   :  { %v8834_v21 = vpack.c.bf16 %v468_v17, %v266_v16  ;;  %v269_v16 = vld [vmem:[#allocation2 + $0x400] sm:$0xff]  ;;  %v471_v17 = vld [vmem:[#allocation2 + $0xa50] sm:$0xff]  ;;  %v8452_v23 = vpack.c.bf16 %v371_v15, %v169_v14 }
  0xc0   :  { %v8852_v25 = vpack.c.bf16 %v471_v17, %v269_v16  ;;  %v56_v14 = vld [vmem:[%s9853_s0 + $0x80] sm:$0xff]  ;;  %v106_v16 = vld [vmem:[%s9853_s0 + $0x210] sm:$0xff] }
  0xc3   :  { %8417 = vmatpush1.bf16.xpose.msra.mxu1 %v8416_v26  ;;  %v570_v26 = vld [vmem:[#allocation2 + $0xd68] sm:$0xff] }
  0xc4   :  { %8817 = vmatpush1.bf16.xpose.msra.mxu0 %v8816_v27  ;;  %8419 = vmatprep.subr.bf16.mxu1 %v8418_v28  ;;  %v772_v27 = vld [vmem:[#allocation2 + $0x13b8] sm:$0xff]  ;;  %v670_v28 = vld [vmem:[#allocation2 + $0x1088] sm:$0xff] }
  0xc5   :  { %8819 = vmatprep.subr.bf16.mxu0 %v8818_v29  ;;  %v872_v29 = vld [vmem:[#allocation2 + $0x16d8] sm:$0xff]  ;;  %v8438_v34 = vpack.c.bf16 %v772_v27, %v570_v26 }
  0xc6   :  { %v8838_v35 = vpack.c.bf16 %v872_v29, %v670_v28  ;;  %v1071_v28 = vcombine.high %v54_v22, %v54_v22  ;;  %v1121_v29 = vcombine.high %v104_v24, %v104_v24 }
  0xca   :  { %1954 = vmatmul.mubr.f32.vlgmr.msra.gmra.mrb[0].mxu1 %v49_v10  ;;  %v567_v10 = vld [vmem:[#allocation2 + $0xd50] sm:$0xff] }
  0xcb   :  { %8421 = vmatpush1.bf16.xpose.msra.mxu1 %v8420_v39  ;;  %5454 = vmatmul.mubr.f32.vlgmr.msra.gmra.mrb[0].mxu0 %v99_v12  ;;  %v667_v12 = vld [vmem:[#allocation2 + $0x1070] sm:$0xff]  ;;  %v8432_v18 = vpack.c.bf16 %v769_v11, %v567_v10 }
  0xcc   :  { %8821 = vmatpush1.bf16.xpose.msra.mxu0 %v8820_v41  ;;  %8423 = vmatprep.subr.bf16.mxu1 %v8422_v42  ;;  %v8832_v19 = vpack.c.bf16 %v869_v13, %v667_v12  ;;  %v771_v39 = vld [vmem:[#allocation2 + $0x13b0] sm:$0xff]  ;;  %v168_v42 = vld [vmem:[#allocation2 + $0xd8] sm:$0xff] }
  0xcd   :  { %8823 = vmatprep.subr.bf16.mxu0 %v8822_v43  ;;  %2023 = vmatprep.mubr.f32.mxu1 %v1067_v44  ;;  %v871_v41 = vld [vmem:[#allocation2 + $0x16d0] sm:$0xff]  ;;  %v370_v43 = vld [vmem:[#allocation2 + $0x728] sm:$0xff]  ;;  %v268_v44 = vld [vmem:[#allocation2 + $0x3f8] sm:$0xff] }
  0xce   :  { %5523 = vmatprep.mubr.f32.mxu0 %v1117_v45  ;;  %v470_v45 = vld [vmem:[#allocation2 + $0xa48] sm:$0xff]  ;;  %v8442_v48 = vpack.c.bf16 %v370_v43, %v168_v42  ;;  %v171_v42 = vld [vmem:[#allocation2 + $0xf0] sm:$0xff]  ;;  %v373_v43 = vld [vmem:[#allocation2 + $0x740] sm:$0xff] }
  0xcf   :  { %v8842_v49 = vpack.c.bf16 %v470_v45, %v268_v44  ;;  %v271_v44 = vld [vmem:[#allocation2 + $0x410] sm:$0xff]  ;;  %v473_v45 = vld [vmem:[#allocation2 + $0xa60] sm:$0xff]  ;;  %v8460_v51 = vpack.c.bf16 %v373_v43, %v171_v42  ;;  %v57_v42 = vld [vmem:[%s9853_s0 + $0x88] sm:$0xff] }
  0xd0   :  { %v8860_v53 = vpack.c.bf16 %v473_v45, %v271_v44  ;;  %v107_v44 = vld [vmem:[%s9853_s0 + $0x218] sm:$0xff] }
  0xd3   :  { %8425 = vmatpush1.bf16.xpose.msra.mxu1 %v8424_v54  ;;  %v572_v54 = vld [vmem:[#allocation2 + $0xd78] sm:$0xff] }
  0xd4   :  { %8825 = vmatpush1.bf16.xpose.msra.mxu0 %v8824_v55  ;;  %8427 = vmatprep.subr.bf16.mxu1 %v8426_v56  ;;  %v774_v55 = vld [vmem:[#allocation2 + $0x13c8] sm:$0xff]  ;;  %v672_v56 = vld [vmem:[#allocation2 + $0x1098] sm:$0xff] }
  0xd5   :  { %8827 = vmatprep.subr.bf16.mxu0 %v8826_v57  ;;  %v874_v57 = vld [vmem:[#allocation2 + $0x16e8] sm:$0xff]  ;;  %v8446_v62 = vpack.c.bf16 %v774_v55, %v572_v54 }
  0xd6   :  { %v8846_v63 = vpack.c.bf16 %v874_v57, %v672_v56  ;;  %v1072_v56 = vcombine.high %v55_v50, %v55_v50  ;;  %v1122_v57 = vcombine.high %v105_v52, %v105_v52 }
  0xda   :  { %2024 = vmatmul.mubr.f32.vlgmr.msra.gmra.mrb[0].mxu1 %v50_v38  ;;  %v569_v38 = vld [vmem:[#allocation2 + $0xd60] sm:$0xff] }
  0xdb   :  { %8429 = vmatpush1.bf16.xpose.msra.mxu1 %v8428_v3  ;;  %5524 = vmatmul.mubr.f32.vlgmr.msra.gmra.mrb[0].mxu0 %v100_v40  ;;  %v669_v40 = vld [vmem:[#allocation2 + $0x1080] sm:$0xff]  ;;  %v8440_v46 = vpack.c.bf16 %v771_v39, %v569_v38 }
  0xdc   :  { %8829 = vmatpush1.bf16.xpose.msra.mxu0 %v8828_v5  ;;  %8431 = vmatprep.subr.bf16.mxu1 %v8430_v6  ;;  %v8840_v47 = vpack.c.bf16 %v871_v41, %v669_v40  ;;  %v773_v3 = vld [vmem:[#allocation2 + $0x13c0] sm:$0xff]  ;;  %v170_v6 = vld [vmem:[#allocation2 + $0xe8] sm:$0xff] }
  0xdd   :  { %8831 = vmatprep.subr.bf16.mxu0 %v8830_v7  ;;  %2093 = vmatprep.mubr.f32.mxu1 %v1068_v8  ;;  %v873_v5 = vld [vmem:[#allocation2 + $0x16e0] sm:$0xff]  ;;  %v372_v7 = vld [vmem:[#allocation2 + $0x738] sm:$0xff]  ;;  %v270_v8 = vld [vmem:[#allocation2 + $0x408] sm:$0xff] }
  0xde   :  { %5593 = vmatprep.mubr.f32.mxu0 %v1118_v9  ;;  %v472_v9 = vld [vmem:[#allocation2 + $0xa58] sm:$0xff]  ;;  %v8450_v12 = vpack.c.bf16 %v372_v7, %v170_v6  ;;  %v173_v6 = vld [vmem:[#allocation2 + $0x100] sm:$0xff]  ;;  %v375_v7 = vld [vmem:[#allocation2 + $0x750] sm:$0xff] }
  0xdf   :  { %v8850_v13 = vpack.c.bf16 %v472_v9, %v270_v8  ;;  %v273_v8 = vld [vmem:[#allocation2 + $0x420] sm:$0xff]  ;;  %v475_v9 = vld [vmem:[#allocation2 + $0xa70] sm:$0xff]  ;;  %v8468_v15 = vpack.c.bf16 %v375_v7, %v173_v6 }
  0xe0   :  { %v8868_v17 = vpack.c.bf16 %v475_v9, %v273_v8  ;;  %v58_v6 = vld [vmem:[%s9853_s0 + $0x90] sm:$0xff]  ;;  %v108_v8 = vld [vmem:[%s9853_s0 + $0x220] sm:$0xff] }
  0xe3   :  { %8433 = vmatpush1.bf16.xpose.msra.mxu1 %v8432_v18  ;;  %v574_v18 = vld [vmem:[#allocation2 + $0xd88] sm:$0xff] }
  0xe4   :  { %8833 = vmatpush1.bf16.xpose.msra.mxu0 %v8832_v19  ;;  %8435 = vmatprep.subr.bf16.mxu1 %v8434_v20  ;;  %v776_v19 = vld [vmem:[#allocation2 + $0x13d8] sm:$0xff]  ;;  %v674_v20 = vld [vmem:[#allocation2 + $0x10a8] sm:$0xff] }
  0xe5   :  { %8835 = vmatprep.subr.bf16.mxu0 %v8834_v21  ;;  %v876_v21 = vld [vmem:[#allocation2 + $0x16f8] sm:$0xff]  ;;  %v8454_v26 = vpack.c.bf16 %v776_v19, %v574_v18 }
  0xe6   :  { %v8854_v27 = vpack.c.bf16 %v876_v21, %v674_v20  ;;  %v1073_v20 = vcombine.high %v56_v14, %v56_v14  ;;  %v1123_v21 = vcombine.high %v106_v16, %v106_v16 }
  0xea   :  { %2094 = vmatmul.mubr.f32.vlgmr.msra.gmra.mrb[0].mxu1 %v51_v2  ;;  %v571_v2 = vld [vmem:[#allocation2 + $0xd70] sm:$0xff] }
  0xeb   :  { %8437 = vmatpush1.bf16.xpose.msra.mxu1 %v8436_v31  ;;  %5594 = vmatmul.mubr.f32.vlgmr.msra.gmra.mrb[0].mxu0 %v101_v4  ;;  %v671_v4 = vld [vmem:[#allocation2 + $0x1090] sm:$0xff]  ;;  %v8448_v10 = vpack.c.bf16 %v773_v3, %v571_v2 }
  0xec   :  { %8837 = vmatpush1.bf16.xpose.msra.mxu0 %v8836_v33  ;;  %8439 = vmatprep.subr.bf16.mxu1 %v8438_v34  ;;  %v8848_v11 = vpack.c.bf16 %v873_v5, %v671_v4  ;;  %v775_v31 = vld [vmem:[#allocation2 + $0x13d0] sm:$0xff]  ;;  %v172_v34 = vld [vmem:[#allocation2 + $0xf8] sm:$0xff] }
  0xed   :  { %8839 = vmatprep.subr.bf16.mxu0 %v8838_v35  ;;  %2163 = vmatprep.mubr.f32.mxu1 %v1069_v36  ;;  %v875_v33 = vld [vmem:[#allocation2 + $0x16f0] sm:$0xff]  ;;  %v374_v35 = vld [vmem:[#allocation2 + $0x748] sm:$0xff]  ;;  %v272_v36 = vld [vmem:[#allocation2 + $0x418] sm:$0xff] }
  0xee   :  { %5663 = vmatprep.mubr.f32.mxu0 %v1119_v37  ;;  %v474_v37 = vld [vmem:[#allocation2 + $0xa68] sm:$0xff]  ;;  %v8458_v40 = vpack.c.bf16 %v374_v35, %v172_v34  ;;  %v175_v34 = vld [vmem:[#allocation2 + $0x110] sm:$0xff]  ;;  %v377_v35 = vld [vmem:[#allocation2 + $0x760] sm:$0xff] }
  0xef   :  { %v8858_v41 = vpack.c.bf16 %v474_v37, %v272_v36  ;;  %v275_v36 = vld [vmem:[#allocation2 + $0x430] sm:$0xff]  ;;  %v477_v37 = vld [vmem:[#allocation2 + $0xa80] sm:$0xff]  ;;  %v8476_v43 = vpack.c.bf16 %v377_v35, %v175_v34  ;;  %v59_v34 = vld [vmem:[%s9853_s0 + $0x98] sm:$0xff] }
  0xf0   :  { %v8876_v45 = vpack.c.bf16 %v477_v37, %v275_v36  ;;  %v109_v36 = vld [vmem:[%s9853_s0 + $0x228] sm:$0xff] }
  0xf3   :  { %8441 = vmatpush1.bf16.xpose.msra.mxu1 %v8440_v46  ;;  %v576_v46 = vld [vmem:[#allocation2 + $0xd98] sm:$0xff] }
  0xf4   :  { %8841 = vmatpush1.bf16.xpose.msra.mxu0 %v8840_v47  ;;  %8443 = vmatprep.subr.bf16.mxu1 %v8442_v48  ;;  %v778_v47 = vld [vmem:[#allocation2 + $0x13e8] sm:$0xff]  ;;  %v676_v48 = vld [vmem:[#allocation2 + $0x10b8] sm:$0xff] }
  0xf5   :  { %8843 = vmatprep.subr.bf16.mxu0 %v8842_v49  ;;  %v878_v49 = vld [vmem:[#allocation2 + $0x1708] sm:$0xff]  ;;  %v8462_v54 = vpack.c.bf16 %v778_v47, %v576_v46 }
  0xf6   :  { %v8862_v55 = vpack.c.bf16 %v878_v49, %v676_v48  ;;  %v1074_v48 = vcombine.high %v57_v42, %v57_v42  ;;  %v1124_v49 = vcombine.high %v107_v44, %v107_v44 }
  0xfa   :  { %2164 = vmatmul.mubr.f32.vlgmr.msra.gmra.mrb[0].mxu1 %v52_v30  ;;  %v573_v30 = vld [vmem:[#allocation2 + $0xd80] sm:$0xff] }
  0xfb   :  { %8445 = vmatpush1.bf16.xpose.msra.mxu1 %v8444_v59  ;;  %5664 = vmatmul.mubr.f32.vlgmr.msra.gmra.mrb[0].mxu0 %v102_v32  ;;  %v673_v32 = vld [vmem:[#allocation2 + $0x10a0] sm:$0xff]  ;;  %v8456_v38 = vpack.c.bf16 %v775_v31, %v573_v30 }
  0xfc   :  { %8845 = vmatpush1.bf16.xpose.msra.mxu0 %v8844_v61  ;;  %8447 = vmatprep.subr.bf16.mxu1 %v8446_v62  ;;  %v8856_v39 = vpack.c.bf16 %v875_v33, %v673_v32  ;;  %v777_v59 = vld [vmem:[#allocation2 + $0x13e0] sm:$0xff]  ;;  %v174_v62 = vld [vmem:[#allocation2 + $0x108] sm:$0xff] }
  0xfd   :  { %8847 = vmatprep.subr.bf16.mxu0 %v8846_v63  ;;  %2233 = vmatprep.mubr.f32.mxu1 %v1070_v0  ;;  %v877_v61 = vld [vmem:[#allocation2 + $0x1700] sm:$0xff]  ;;  %v376_v63 = vld [vmem:[#allocation2 + $0x758] sm:$0xff]  ;;  %v274_v0 = vld [vmem:[#allocation2 + $0x428] sm:$0xff] }
  0xfe   :  { %5733 = vmatprep.mubr.f32.mxu0 %v1120_v1  ;;  %v476_v1 = vld [vmem:[#allocation2 + $0xa78] sm:$0xff]  ;;  %v8466_v4 = vpack.c.bf16 %v376_v63, %v174_v62  ;;  %v177_v62 = vld [vmem:[#allocation2 + $0x120] sm:$0xff]  ;;  %v379_v63 = vld [vmem:[#allocation2 + $0x770] sm:$0xff] }
  0xff   :  { %v8866_v5 = vpack.c.bf16 %v476_v1, %v274_v0  ;;  %v277_v0 = vld [vmem:[#allocation2 + $0x440] sm:$0xff]  ;;  %v479_v1 = vld [vmem:[#allocation2 + $0xa90] sm:$0xff]  ;;  %v8484_v7 = vpack.c.bf16 %v379_v63, %v177_v62 }
 0x100   :  { %v8884_v9 = vpack.c.bf16 %v479_v1, %v277_v0  ;;  %v60_v62 = vld [vmem:[%s9853_s0 + $0xa0] sm:$0xff]  ;;  %v110_v0 = vld [vmem:[%s9853_s0 + $0x230] sm:$0xff] }
 0x103   :  { %8449 = vmatpush1.bf16.xpose.msra.mxu1 %v8448_v10  ;;  %v578_v10 = vld [vmem:[#allocation2 + $0xda8] sm:$0xff] }
 0x104   :  { %8849 = vmatpush1.bf16.xpose.msra.mxu0 %v8848_v11  ;;  %8451 = vmatprep.subr.bf16.mxu1 %v8450_v12  ;;  %v780_v11 = vld [vmem:[#allocation2 + $0x13f8] sm:$0xff]  ;;  %v678_v12 = vld [vmem:[#allocation2 + $0x10c8] sm:$0xff] }
 0x105   :  { %8851 = vmatprep.subr.bf16.mxu0 %v8850_v13  ;;  %v880_v13 = vld [vmem:[#allocation2 + $0x1718] sm:$0xff]  ;;  %v8470_v18 = vpack.c.bf16 %v780_v11, %v578_v10 }
 0x106   :  { %v8870_v19 = vpack.c.bf16 %v880_v13, %v678_v12  ;;  %v1075_v12 = vcombine.high %v58_v6, %v58_v6  ;;  %v1125_v13 = vcombine.high %v108_v8, %v108_v8 }
 0x10a   :  { %2234 = vmatmul.mubr.f32.vlgmr.msra.gmra.mrb[0].mxu1 %v53_v58  ;;  %v575_v58 = vld [vmem:[#allocation2 + $0xd90] sm:$0xff] }
 0x10b   :  { %8453 = vmatpush1.bf16.xpose.msra.mxu1 %v8452_v23  ;;  %5734 = vmatmul.mubr.f32.vlgmr.msra.gmra.mrb[0].mxu0 %v103_v60  ;;  %v675_v60 = vld [vmem:[#allocation2 + $0x10b0] sm:$0xff]  ;;  %v8464_v2 = vpack.c.bf16 %v777_v59, %v575_v58 }
 0x10c   :  { %8853 = vmatpush1.bf16.xpose.msra.mxu0 %v8852_v25  ;;  %8455 = vmatprep.subr.bf16.mxu1 %v8454_v26  ;;  %v8864_v3 = vpack.c.bf16 %v877_v61, %v675_v60  ;;  %v779_v23 = vld [vmem:[#allocation2 + $0x13f0] sm:$0xff]  ;;  %v176_v26 = vld [vmem:[#allocation2 + $0x118] sm:$0xff] }
 0x10d   :  { %8855 = vmatprep.subr.bf16.mxu0 %v8854_v27  ;;  %2303 = vmatprep.mubr.f32.mxu1 %v1071_v28  ;;  %v879_v25 = vld [vmem:[#allocation2 + $0x1710] sm:$0xff]  ;;  %v378_v27 = vld [vmem:[#allocation2 + $0x768] sm:$0xff]  ;;  %v276_v28 = vld [vmem:[#allocation2 + $0x438] sm:$0xff] }
 0x10e   :  { %5803 = vmatprep.mubr.f32.mxu0 %v1121_v29  ;;  %v478_v29 = vld [vmem:[#allocation2 + $0xa88] sm:$0xff]  ;;  %v8474_v32 = vpack.c.bf16 %v378_v27, %v176_v26  ;;  %v179_v26 = vld [vmem:[#allocation2 + $0x130] sm:$0xff]  ;;  %v381_v27 = vld [vmem:[#allocation2 + $0x780] sm:$0xff] }
 0x10f   :  { %v8874_v33 = vpack.c.bf16 %v478_v29, %v276_v28  ;;  %v279_v28 = vld [vmem:[#allocation2 + $0x450] sm:$0xff]  ;;  %v481_v29 = vld [vmem:[#allocation2 + $0xaa0] sm:$0xff]  ;;  %v8492_v35 = vpack.c.bf16 %v381_v27, %v179_v26  ;;  %v61_v26 = vld [vmem:[%s9853_s0 + $0xa8] sm:$0xff] }
 0x110   :  { %v8892_v37 = vpack.c.bf16 %v481_v29, %v279_v28  ;;  %v111_v28 = vld [vmem:[%s9853_s0 + $0x238] sm:$0xff] }
 0x113   :  { %8457 = vmatpush1.bf16.xpose.msra.mxu1 %v8456_v38  ;;  %v580_v38 = vld [vmem:[#allocation2 + $0xdb8] sm:$0xff] }
 0x114   :  { %8857 = vmatpush1.bf16.xpose.msra.mxu0 %v8856_v39  ;;  %8459 = vmatprep.subr.bf16.mxu1 %v8458_v40  ;;  %v782_v39 = vld [vmem:[#allocation2 + $0x1408] sm:$0xff]  ;;  %v680_v40 = vld [vmem:[#allocation2 + $0x10d8] sm:$0xff] }
 0x115   :  { %8859 = vmatprep.subr.bf16.mxu0 %v8858_v41  ;;  %v882_v41 = vld [vmem:[#allocation2 + $0x1728] sm:$0xff]  ;;  %v8478_v46 = vpack.c.bf16 %v782_v39, %v580_v38 }
 0x116   :  { %v8878_v47 = vpack.c.bf16 %v882_v41, %v680_v40  ;;  %v1076_v40 = vcombine.high %v59_v34, %v59_v34  ;;  %v1126_v41 = vcombine.high %v109_v36, %v109_v36 }
 0x11a   :  { %2304 = vmatmul.mubr.f32.vlgmr.msra.gmra.mrb[0].mxu1 %v54_v22  ;;  %v577_v22 = vld [vmem:[#allocation2 + $0xda0] sm:$0xff] }
 0x11b   :  { %8461 = vmatpush1.bf16.xpose.msra.mxu1 %v8460_v51  ;;  %5804 = vmatmul.mubr.f32.vlgmr.msra.gmra.mrb[0].mxu0 %v104_v24  ;;  %v677_v24 = vld [vmem:[#allocation2 + $0x10c0] sm:$0xff]  ;;  %v8472_v30 = vpack.c.bf16 %v779_v23, %v577_v22 }
 0x11c   :  { %8861 = vmatpush1.bf16.xpose.msra.mxu0 %v8860_v53  ;;  %8463 = vmatprep.subr.bf16.mxu1 %v8462_v54  ;;  %v8872_v31 = vpack.c.bf16 %v879_v25, %v677_v24  ;;  %v781_v51 = vld [vmem:[#allocation2 + $0x1400] sm:$0xff]  ;;  %v178_v54 = vld [vmem:[#allocation2 + $0x128] sm:$0xff] }
 0x11d   :  { %8863 = vmatprep.subr.bf16.mxu0 %v8862_v55  ;;  %2373 = vmatprep.mubr.f32.mxu1 %v1072_v56  ;;  %v881_v53 = vld [vmem:[#allocation2 + $0x1720] sm:$0xff]  ;;  %v380_v55 = vld [vmem:[#allocation2 + $0x778] sm:$0xff]  ;;  %v278_v56 = vld [vmem:[#allocation2 + $0x448] sm:$0xff] }
 0x11e   :  { %5873 = vmatprep.mubr.f32.mxu0 %v1122_v57  ;;  %v480_v57 = vld [vmem:[#allocation2 + $0xa98] sm:$0xff]  ;;  %v8482_v60 = vpack.c.bf16 %v380_v55, %v178_v54  ;;  %v181_v54 = vld [vmem:[#allocation2 + $0x140] sm:$0xff]  ;;  %v383_v55 = vld [vmem:[#allocation2 + $0x790] sm:$0xff] }
 0x11f   :  { %v8882_v61 = vpack.c.bf16 %v480_v57, %v278_v56  ;;  %v281_v56 = vld [vmem:[#allocation2 + $0x460] sm:$0xff]  ;;  %v483_v57 = vld [vmem:[#allocation2 + $0xab0] sm:$0xff]  ;;  %v8500_v63 = vpack.c.bf16 %v383_v55, %v181_v54 }
 0x120   :  { %v8900_v1 = vpack.c.bf16 %v483_v57, %v281_v56  ;;  %v62_v54 = vld [vmem:[%s9853_s0 + $0xb0] sm:$0xff]  ;;  %v112_v56 = vld [vmem:[%s9853_s0 + $0x240] sm:$0xff] }
 0x123   :  { %8465 = vmatpush1.bf16.xpose.msra.mxu1 %v8464_v2  ;;  %v582_v2 = vld [vmem:[#allocation2 + $0xdc8] sm:$0xff] }
 0x124   :  { %8865 = vmatpush1.bf16.xpose.msra.mxu0 %v8864_v3  ;;  %8467 = vmatprep.subr.bf16.mxu1 %v8466_v4  ;;  %v784_v3 = vld [vmem:[#allocation2 + $0x1418] sm:$0xff]  ;;  %v682_v4 = vld [vmem:[#allocation2 + $0x10e8] sm:$0xff] }
 0x125   :  { %8867 = vmatprep.subr.bf16.mxu0 %v8866_v5  ;;  %v884_v5 = vld [vmem:[#allocation2 + $0x1738] sm:$0xff]  ;;  %v8486_v10 = vpack.c.bf16 %v784_v3, %v582_v2 }
 0x126   :  { %v8886_v11 = vpack.c.bf16 %v884_v5, %v682_v4  ;;  %v1077_v4 = vcombine.high %v60_v62, %v60_v62  ;;  %v1127_v5 = vcombine.high %v110_v0, %v110_v0 }
 0x12a   :  { %2374 = vmatmul.mubr.f32.vlgmr.msra.gmra.mrb[0].mxu1 %v55_v50  ;;  %v579_v50 = vld [vmem:[#allocation2 + $0xdb0] sm:$0xff] }
 0x12b   :  { %8469 = vmatpush1.bf16.xpose.msra.mxu1 %v8468_v15  ;;  %5874 = vmatmul.mubr.f32.vlgmr.msra.gmra.mrb[0].mxu0 %v105_v52  ;;  %v679_v52 = vld [vmem:[#allocation2 + $0x10d0] sm:$0xff]  ;;  %v8480_v58 = vpack.c.bf16 %v781_v51, %v579_v50 }
 0x12c   :  { %8869 = vmatpush1.bf16.xpose.msra.mxu0 %v8868_v17  ;;  %8471 = vmatprep.subr.bf16.mxu1 %v8470_v18  ;;  %v8880_v59 = vpack.c.bf16 %v881_v53, %v679_v52  ;;  %v783_v15 = vld [vmem:[#allocation2 + $0x1410] sm:$0xff]  ;;  %v180_v18 = vld [vmem:[#allocation2 + $0x138] sm:$0xff] }
 0x12d   :  { %8871 = vmatprep.subr.bf16.mxu0 %v8870_v19  ;;  %2443 = vmatprep.mubr.f32.mxu1 %v1073_v20  ;;  %v883_v17 = vld [vmem:[#allocation2 + $0x1730] sm:$0xff]  ;;  %v382_v19 = vld [vmem:[#allocation2 + $0x788] sm:$0xff]  ;;  %v280_v20 = vld [vmem:[#allocation2 + $0x458] sm:$0xff] }
 0x12e   :  { %5943 = vmatprep.mubr.f32.mxu0 %v1123_v21  ;;  %v482_v21 = vld [vmem:[#allocation2 + $0xaa8] sm:$0xff]  ;;  %v8490_v24 = vpack.c.bf16 %v382_v19, %v180_v18  ;;  %v183_v18 = vld [vmem:[#allocation2 + $0x150] sm:$0xff]  ;;  %v385_v19 = vld [vmem:[#allocation2 + $0x7a0] sm:$0xff] }
 0x12f   :  { %v8890_v25 = vpack.c.bf16 %v482_v21, %v280_v20  ;;  %v283_v20 = vld [vmem:[#allocation2 + $0x470] sm:$0xff]  ;;  %v485_v21 = vld [vmem:[#allocation2 + $0xac0] sm:$0xff]  ;;  %v8508_v27 = vpack.c.bf16 %v385_v19, %v183_v18  ;;  %v63_v18 = vld [vmem:[%s9853_s0 + $0xb8] sm:$0xff] }
 0x130   :  { %v8908_v29 = vpack.c.bf16 %v485_v21, %v283_v20  ;;  %v113_v20 = vld [vmem:[%s9853_s0 + $0x248] sm:$0xff] }
 0x133   :  { %8473 = vmatpush1.bf16.xpose.msra.mxu1 %v8472_v30  ;;  %v584_v30 = vld [vmem:[#allocation2 + $0xdd8] sm:$0xff] }
 0x134   :  { %8873 = vmatpush1.bf16.xpose.msra.mxu0 %v8872_v31  ;;  %8475 = vmatprep.subr.bf16.mxu1 %v8474_v32  ;;  %v786_v31 = vld [vmem:[#allocation2 + $0x1428] sm:$0xff]  ;;  %v684_v32 = vld [vmem:[#allocation2 + $0x10f8] sm:$0xff] }
 0x135   :  { %8875 = vmatprep.subr.bf16.mxu0 %v8874_v33  ;;  %v886_v33 = vld [vmem:[#allocation2 + $0x1748] sm:$0xff]  ;;  %v8494_v38 = vpack.c.bf16 %v786_v31, %v584_v30 }
 0x136   :  { %v8894_v39 = vpack.c.bf16 %v886_v33, %v684_v32  ;;  %v1078_v32 = vcombine.high %v61_v26, %v61_v26  ;;  %v1128_v33 = vcombine.high %v111_v28, %v111_v28 }
 0x13a   :  { %2444 = vmatmul.mubr.f32.vlgmr.msra.gmra.mrb[0].mxu1 %v56_v14  ;;  %v581_v14 = vld [vmem:[#allocation2 + $0xdc0] sm:$0xff] }
 0x13b   :  { %8477 = vmatpush1.bf16.xpose.msra.mxu1 %v8476_v43  ;;  %5944 = vmatmul.mubr.f32.vlgmr.msra.gmra.mrb[0].mxu0 %v106_v16  ;;  %v681_v16 = vld [vmem:[#allocation2 + $0x10e0] sm:$0xff]  ;;  %v8488_v22 = vpack.c.bf16 %v783_v15, %v581_v14 }
 0x13c   :  { %8877 = vmatpush1.bf16.xpose.msra.mxu0 %v8876_v45  ;;  %8479 = vmatprep.subr.bf16.mxu1 %v8478_v46  ;;  %v8888_v23 = vpack.c.bf16 %v883_v17, %v681_v16  ;;  %v785_v43 = vld [vmem:[#allocation2 + $0x1420] sm:$0xff]  ;;  %v182_v46 = vld [vmem:[#allocation2 + $0x148] sm:$0xff] }
 0x13d   :  { %8879 = vmatprep.subr.bf16.mxu0 %v8878_v47  ;;  %2513 = vmatprep.mubr.f32.mxu1 %v1074_v48  ;;  %v885_v45 = vld [vmem:[#allocation2 + $0x1740] sm:$0xff]  ;;  %v384_v47 = vld [vmem:[#allocation2 + $0x798] sm:$0xff]  ;;  %v282_v48 = vld [vmem:[#allocation2 + $0x468] sm:$0xff] }
 0x13e   :  { %6013 = vmatprep.mubr.f32.mxu0 %v1124_v49  ;;  %v484_v49 = vld [vmem:[#allocation2 + $0xab8] sm:$0xff]  ;;  %v8498_v52 = vpack.c.bf16 %v384_v47, %v182_v46  ;;  %v185_v46 = vld [vmem:[#allocation2 + $0x160] sm:$0xff]  ;;  %v387_v47 = vld [vmem:[#allocation2 + $0x7b0] sm:$0xff] }
 0x13f   :  { %v8898_v53 = vpack.c.bf16 %v484_v49, %v282_v48  ;;  %v285_v48 = vld [vmem:[#allocation2 + $0x480] sm:$0xff]  ;;  %v487_v49 = vld [vmem:[#allocation2 + $0xad0] sm:$0xff]  ;;  %v8516_v55 = vpack.c.bf16 %v387_v47, %v185_v46 }
 0x140   :  { %v8916_v57 = vpack.c.bf16 %v487_v49, %v285_v48  ;;  %v64_v46 = vld [vmem:[%s9853_s0 + $0xc0] sm:$0xff]  ;;  %v114_v48 = vld [vmem:[%s9853_s0 + $0x250] sm:$0xff] }
 0x143   :  { %8481 = vmatpush1.bf16.xpose.msra.mxu1 %v8480_v58  ;;  %v586_v58 = vld [vmem:[#allocation2 + $0xde8] sm:$0xff] }
 0x144   :  { %8881 = vmatpush1.bf16.xpose.msra.mxu0 %v8880_v59  ;;  %8483 = vmatprep.subr.bf16.mxu1 %v8482_v60  ;;  %v788_v59 = vld [vmem:[#allocation2 + $0x1438] sm:$0xff]  ;;  %v686_v60 = vld [vmem:[#allocation2 + $0x1108] sm:$0xff] }
 0x145   :  { %8883 = vmatprep.subr.bf16.mxu0 %v8882_v61  ;;  %v888_v61 = vld [vmem:[#allocation2 + $0x1758] sm:$0xff]  ;;  %v8502_v2 = vpack.c.bf16 %v788_v59, %v586_v58 }
 0x146   :  { %v8902_v3 = vpack.c.bf16 %v888_v61, %v686_v60  ;;  %v1079_v60 = vcombine.high %v62_v54, %v62_v54  ;;  %v1129_v61 = vcombine.high %v112_v56, %v112_v56 }
 0x14a   :  { %2514 = vmatmul.mubr.f32.vlgmr.msra.gmra.mrb[0].mxu1 %v57_v42  ;;  %v583_v42 = vld [vmem:[#allocation2 + $0xdd0] sm:$0xff] }
 0x14b   :  { %8485 = vmatpush1.bf16.xpose.msra.mxu1 %v8484_v7  ;;  %6014 = vmatmul.mubr.f32.vlgmr.msra.gmra.mrb[0].mxu0 %v107_v44  ;;  %v683_v44 = vld [vmem:[#allocation2 + $0x10f0] sm:$0xff]  ;;  %v8496_v50 = vpack.c.bf16 %v785_v43, %v583_v42 }
 0x14c   :  { %8885 = vmatpush1.bf16.xpose.msra.mxu0 %v8884_v9  ;;  %8487 = vmatprep.subr.bf16.mxu1 %v8486_v10  ;;  %v8896_v51 = vpack.c.bf16 %v885_v45, %v683_v44  ;;  %v787_v7 = vld [vmem:[#allocation2 + $0x1430] sm:$0xff]  ;;  %v184_v10 = vld [vmem:[#allocation2 + $0x158] sm:$0xff] }
 0x14d   :  { %8887 = vmatprep.subr.bf16.mxu0 %v8886_v11  ;;  %2583 = vmatprep.mubr.f32.mxu1 %v1075_v12  ;;  %v887_v9 = vld [vmem:[#allocation2 + $0x1750] sm:$0xff]  ;;  %v386_v11 = vld [vmem:[#allocation2 + $0x7a8] sm:$0xff]  ;;  %v284_v12 = vld [vmem:[#allocation2 + $0x478] sm:$0xff] }
 0x14e   :  { %6083 = vmatprep.mubr.f32.mxu0 %v1125_v13  ;;  %v486_v13 = vld [vmem:[#allocation2 + $0xac8] sm:$0xff]  ;;  %v8506_v16 = vpack.c.bf16 %v386_v11, %v184_v10  ;;  %v187_v10 = vld [vmem:[#allocation2 + $0x170] sm:$0xff]  ;;  %v389_v11 = vld [vmem:[#allocation2 + $0x7c0] sm:$0xff] }
 0x14f   :  { %v8906_v17 = vpack.c.bf16 %v486_v13, %v284_v12  ;;  %v287_v12 = vld [vmem:[#allocation2 + $0x490] sm:$0xff]  ;;  %v489_v13 = vld [vmem:[#allocation2 + $0xae0] sm:$0xff]  ;;  %v8524_v19 = vpack.c.bf16 %v389_v11, %v187_v10  ;;  %v65_v10 = vld [vmem:[%s9853_s0 + $0xc8] sm:$0xff] }
 0x150   :  { %v8924_v21 = vpack.c.bf16 %v489_v13, %v287_v12  ;;  %v115_v12 = vld [vmem:[%s9853_s0 + $0x258] sm:$0xff] }
 0x153   :  { %8489 = vmatpush1.bf16.xpose.msra.mxu1 %v8488_v22  ;;  %v588_v22 = vld [vmem:[#allocation2 + $0xdf8] sm:$0xff] }
 0x154   :  { %8889 = vmatpush1.bf16.xpose.msra.mxu0 %v8888_v23  ;;  %8491 = vmatprep.subr.bf16.mxu1 %v8490_v24  ;;  %v790_v23 = vld [vmem:[#allocation2 + $0x1448] sm:$0xff]  ;;  %v688_v24 = vld [vmem:[#allocation2 + $0x1118] sm:$0xff] }
 0x155   :  { %8891 = vmatprep.subr.bf16.mxu0 %v8890_v25  ;;  %v890_v25 = vld [vmem:[#allocation2 + $0x1768] sm:$0xff]  ;;  %v8510_v30 = vpack.c.bf16 %v790_v23, %v588_v22 }
 0x156   :  { %v8910_v31 = vpack.c.bf16 %v890_v25, %v688_v24  ;;  %v1080_v24 = vcombine.high %v63_v18, %v63_v18  ;;  %v1130_v25 = vcombine.high %v113_v20, %v113_v20 }
 0x15a   :  { %2584 = vmatmul.mubr.f32.vlgmr.msra.gmra.mrb[0].mxu1 %v58_v6  ;;  %v585_v6 = vld [vmem:[#allocation2 + $0xde0] sm:$0xff] }
 0x15b   :  { %8493 = vmatpush1.bf16.xpose.msra.mxu1 %v8492_v35  ;;  %6084 = vmatmul.mubr.f32.vlgmr.msra.gmra.mrb[0].mxu0 %v108_v8  ;;  %v685_v8 = vld [vmem:[#allocation2 + $0x1100] sm:$0xff]  ;;  %v8504_v14 = vpack.c.bf16 %v787_v7, %v585_v6 }
 0x15c   :  { %8893 = vmatpush1.bf16.xpose.msra.mxu0 %v8892_v37  ;;  %8495 = vmatprep.subr.bf16.mxu1 %v8494_v38  ;;  %v8904_v15 = vpack.c.bf16 %v887_v9, %v685_v8  ;;  %v789_v35 = vld [vmem:[#allocation2 + $0x1440] sm:$0xff]  ;;  %v186_v38 = vld [vmem:[#allocation2 + $0x168] sm:$0xff] }
 0x15d   :  { %8895 = vmatprep.subr.bf16.mxu0 %v8894_v39  ;;  %2653 = vmatprep.mubr.f32.mxu1 %v1076_v40  ;;  %v889_v37 = vld [vmem:[#allocation2 + $0x1760] sm:$0xff]  ;;  %v388_v39 = vld [vmem:[#allocation2 + $0x7b8] sm:$0xff]  ;;  %v286_v40 = vld [vmem:[#allocation2 + $0x488] sm:$0xff] }
 0x15e   :  { %6153 = vmatprep.mubr.f32.mxu0 %v1126_v41  ;;  %v488_v41 = vld [vmem:[#allocation2 + $0xad8] sm:$0xff]  ;;  %v8514_v44 = vpack.c.bf16 %v388_v39, %v186_v38  ;;  %v189_v38 = vld [vmem:[#allocation2 + $0x180] sm:$0xff]  ;;  %v391_v39 = vld [vmem:[#allocation2 + $0x7d0] sm:$0xff] }
 0x15f   :  { %v8914_v45 = vpack.c.bf16 %v488_v41, %v286_v40  ;;  %v289_v40 = vld [vmem:[#allocation2 + $0x4a0] sm:$0xff]  ;;  %v491_v41 = vld [vmem:[#allocation2 + $0xaf0] sm:$0xff]  ;;  %v8532_v47 = vpack.c.bf16 %v391_v39, %v189_v38 }
 0x160   :  { %v8932_v49 = vpack.c.bf16 %v491_v41, %v289_v40  ;;  %v66_v38 = vld [vmem:[%s9853_s0 + $0xd0] sm:$0xff]  ;;  %v116_v40 = vld [vmem:[%s9853_s0 + $0x260] sm:$0xff] }
 0x163   :  { %8497 = vmatpush1.bf16.xpose.msra.mxu1 %v8496_v50  ;;  %v590_v50 = vld [vmem:[#allocation2 + $0xe08] sm:$0xff] }
 0x164   :  { %8897 = vmatpush1.bf16.xpose.msra.mxu0 %v8896_v51  ;;  %8499 = vmatprep.subr.bf16.mxu1 %v8498_v52  ;;  %v792_v51 = vld [vmem:[#allocation2 + $0x1458] sm:$0xff]  ;;  %v690_v52 = vld [vmem:[#allocation2 + $0x1128] sm:$0xff] }
 0x165   :  { %8899 = vmatprep.subr.bf16.mxu0 %v8898_v53  ;;  %v892_v53 = vld [vmem:[#allocation2 + $0x1778] sm:$0xff]  ;;  %v8518_v58 = vpack.c.bf16 %v792_v51, %v590_v50 }
 0x166   :  { %v8918_v59 = vpack.c.bf16 %v892_v53, %v690_v52  ;;  %v1081_v52 = vcombine.high %v64_v46, %v64_v46  ;;  %v1131_v53 = vcombine.high %v114_v48, %v114_v48 }
 0x16a   :  { %2654 = vmatmul.mubr.f32.vlgmr.msra.gmra.mrb[0].mxu1 %v59_v34  ;;  %v587_v34 = vld [vmem:[#allocation2 + $0xdf0] sm:$0xff] }
 0x16b   :  { %8501 = vmatpush1.bf16.xpose.msra.mxu1 %v8500_v63  ;;  %6154 = vmatmul.mubr.f32.vlgmr.msra.gmra.mrb[0].mxu0 %v109_v36  ;;  %v687_v36 = vld [vmem:[#allocation2 + $0x1110] sm:$0xff]  ;;  %v8512_v42 = vpack.c.bf16 %v789_v35, %v587_v34 }
 0x16c   :  { %8901 = vmatpush1.bf16.xpose.msra.mxu0 %v8900_v1  ;;  %8503 = vmatprep.subr.bf16.mxu1 %v8502_v2  ;;  %v8912_v43 = vpack.c.bf16 %v889_v37, %v687_v36  ;;  %v791_v63 = vld [vmem:[#allocation2 + $0x1450] sm:$0xff]  ;;  %v188_v2 = vld [vmem:[#allocation2 + $0x178] sm:$0xff] }
 0x16d   :  { %8903 = vmatprep.subr.bf16.mxu0 %v8902_v3  ;;  %2723 = vmatprep.mubr.f32.mxu1 %v1077_v4  ;;  %v891_v1 = vld [vmem:[#allocation2 + $0x1770] sm:$0xff]  ;;  %v390_v3 = vld [vmem:[#allocation2 + $0x7c8] sm:$0xff]  ;;  %v288_v4 = vld [vmem:[#allocation2 + $0x498] sm:$0xff] }
 0x16e   :  { %6223 = vmatprep.mubr.f32.mxu0 %v1127_v5  ;;  %v490_v5 = vld [vmem:[#allocation2 + $0xae8] sm:$0xff]  ;;  %v8522_v8 = vpack.c.bf16 %v390_v3, %v188_v2  ;;  %v191_v2 = vld [vmem:[#allocation2 + $0x190] sm:$0xff]  ;;  %v393_v3 = vld [vmem:[#allocation2 + $0x7e0] sm:$0xff] }
 0x16f   :  { %v8922_v9 = vpack.c.bf16 %v490_v5, %v288_v4  ;;  %v291_v4 = vld [vmem:[#allocation2 + $0x4b0] sm:$0xff]  ;;  %v493_v5 = vld [vmem:[#allocation2 + $0xb00] sm:$0xff]  ;;  %v8540_v11 = vpack.c.bf16 %v393_v3, %v191_v2  ;;  %v67_v2 = vld [vmem:[%s9853_s0 + $0xd8] sm:$0xff] }
 0x170   :  { %v8940_v13 = vpack.c.bf16 %v493_v5, %v291_v4  ;;  %v117_v4 = vld [vmem:[%s9853_s0 + $0x268] sm:$0xff] }
 0x173   :  { %8505 = vmatpush1.bf16.xpose.msra.mxu1 %v8504_v14  ;;  %v592_v14 = vld [vmem:[#allocation2 + $0xe18] sm:$0xff] }
 0x174   :  { %8905 = vmatpush1.bf16.xpose.msra.mxu0 %v8904_v15  ;;  %8507 = vmatprep.subr.bf16.mxu1 %v8506_v16  ;;  %v794_v15 = vld [vmem:[#allocation2 + $0x1468] sm:$0xff]  ;;  %v692_v16 = vld [vmem:[#allocation2 + $0x1138] sm:$0xff] }
 0x175   :  { %8907 = vmatprep.subr.bf16.mxu0 %v8906_v17  ;;  %v894_v17 = vld [vmem:[#allocation2 + $0x1788] sm:$0xff]  ;;  %v8526_v22 = vpack.c.bf16 %v794_v15, %v592_v14 }
 0x176   :  { %v8926_v23 = vpack.c.bf16 %v894_v17, %v692_v16  ;;  %v1082_v16 = vcombine.high %v65_v10, %v65_v10  ;;  %v1132_v17 = vcombine.high %v115_v12, %v115_v12 }
 0x17a   :  { %2724 = vmatmul.mubr.f32.vlgmr.msra.gmra.mrb[0].mxu1 %v60_v62  ;;  %v589_v62 = vld [vmem:[#allocation2 + $0xe00] sm:$0xff] }
 0x17b   :  { %8509 = vmatpush1.bf16.xpose.msra.mxu1 %v8508_v27  ;;  %6224 = vmatmul.mubr.f32.vlgmr.msra.gmra.mrb[0].mxu0 %v110_v0  ;;  %v689_v0 = vld [vmem:[#allocation2 + $0x1120] sm:$0xff]  ;;  %v8520_v6 = vpack.c.bf16 %v791_v63, %v589_v62 }
 0x17c   :  { %8909 = vmatpush1.bf16.xpose.msra.mxu0 %v8908_v29  ;;  %8511 = vmatprep.subr.bf16.mxu1 %v8510_v30  ;;  %v8920_v7 = vpack.c.bf16 %v891_v1, %v689_v0  ;;  %v793_v27 = vld [vmem:[#allocation2 + $0x1460] sm:$0xff]  ;;  %v190_v30 = vld [vmem:[#allocation2 + $0x188] sm:$0xff] }
 0x17d   :  { %8911 = vmatprep.subr.bf16.mxu0 %v8910_v31  ;;  %2793 = vmatprep.mubr.f32.mxu1 %v1078_v32  ;;  %v893_v29 = vld [vmem:[#allocation2 + $0x1780] sm:$0xff]  ;;  %v392_v31 = vld [vmem:[#allocation2 + $0x7d8] sm:$0xff]  ;;  %v290_v32 = vld [vmem:[#allocation2 + $0x4a8] sm:$0xff] }
 0x17e   :  { %6293 = vmatprep.mubr.f32.mxu0 %v1128_v33  ;;  %v492_v33 = vld [vmem:[#allocation2 + $0xaf8] sm:$0xff]  ;;  %v8530_v36 = vpack.c.bf16 %v392_v31, %v190_v30  ;;  %v193_v30 = vld [vmem:[#allocation2 + $0x1a0] sm:$0xff]  ;;  %v395_v31 = vld [vmem:[#allocation2 + $0x7f0] sm:$0xff] }
 0x17f   :  { %v8930_v37 = vpack.c.bf16 %v492_v33, %v290_v32  ;;  %v293_v32 = vld [vmem:[#allocation2 + $0x4c0] sm:$0xff]  ;;  %v495_v33 = vld [vmem:[#allocation2 + $0xb10] sm:$0xff]  ;;  %v8548_v39 = vpack.c.bf16 %v395_v31, %v193_v30 }
 0x180   :  { %v8948_v41 = vpack.c.bf16 %v495_v33, %v293_v32  ;;  %v68_v30 = vld [vmem:[%s9853_s0 + $0xe0] sm:$0xff]  ;;  %v118_v32 = vld [vmem:[%s9853_s0 + $0x270] sm:$0xff] }
 0x183   :  { %8513 = vmatpush1.bf16.xpose.msra.mxu1 %v8512_v42  ;;  %v594_v42 = vld [vmem:[#allocation2 + $0xe28] sm:$0xff] }
 0x184   :  { %8913 = vmatpush1.bf16.xpose.msra.mxu0 %v8912_v43  ;;  %8515 = vmatprep.subr.bf16.mxu1 %v8514_v44  ;;  %v796_v43 = vld [vmem:[#allocation2 + $0x1478] sm:$0xff]  ;;  %v694_v44 = vld [vmem:[#allocation2 + $0x1148] sm:$0xff] }
 0x185   :  { %8915 = vmatprep.subr.bf16.mxu0 %v8914_v45  ;;  %v896_v45 = vld [vmem:[#allocation2 + $0x1798] sm:$0xff]  ;;  %v8534_v50 = vpack.c.bf16 %v796_v43, %v594_v42 }
 0x186   :  { %v8934_v51 = vpack.c.bf16 %v896_v45, %v694_v44  ;;  %v1083_v44 = vcombine.high %v66_v38, %v66_v38  ;;  %v1133_v45 = vcombine.high %v116_v40, %v116_v40 }
 0x18a   :  { %2794 = vmatmul.mubr.f32.vlgmr.msra.gmra.mrb[0].mxu1 %v61_v26  ;;  %v591_v26 = vld [vmem:[#allocation2 + $0xe10] sm:$0xff] }
 0x18b   :  { %8517 = vmatpush1.bf16.xpose.msra.mxu1 %v8516_v55  ;;  %6294 = vmatmul.mubr.f32.vlgmr.msra.gmra.mrb[0].mxu0 %v111_v28  ;;  %v691_v28 = vld [vmem:[#allocation2 + $0x1130] sm:$0xff]  ;;  %v8528_v34 = vpack.c.bf16 %v793_v27, %v591_v26 }
 0x18c   :  { %8917 = vmatpush1.bf16.xpose.msra.mxu0 %v8916_v57  ;;  %8519 = vmatprep.subr.bf16.mxu1 %v8518_v58  ;;  %v8928_v35 = vpack.c.bf16 %v893_v29, %v691_v28  ;;  %v795_v55 = vld [vmem:[#allocation2 + $0x1470] sm:$0xff]  ;;  %v192_v58 = vld [vmem:[#allocation2 + $0x198] sm:$0xff] }
 0x18d   :  { %8919 = vmatprep.subr.bf16.mxu0 %v8918_v59  ;;  %2863 = vmatprep.mubr.f32.mxu1 %v1079_v60  ;;  %v895_v57 = vld [vmem:[#allocation2 + $0x1790] sm:$0xff]  ;;  %v394_v59 = vld [vmem:[#allocation2 + $0x7e8] sm:$0xff]  ;;  %v292_v60 = vld [vmem:[#allocation2 + $0x4b8] sm:$0xff] }
 0x18e   :  { %6363 = vmatprep.mubr.f32.mxu0 %v1129_v61  ;;  %v494_v61 = vld [vmem:[#allocation2 + $0xb08] sm:$0xff]  ;;  %v8538_v0 = vpack.c.bf16 %v394_v59, %v192_v58  ;;  %v195_v58 = vld [vmem:[#allocation2 + $0x1b0] sm:$0xff]  ;;  %v397_v59 = vld [vmem:[#allocation2 + $0x800] sm:$0xff] }
 0x18f   :  { %v8938_v1 = vpack.c.bf16 %v494_v61, %v292_v60  ;;  %v295_v60 = vld [vmem:[#allocation2 + $0x4d0] sm:$0xff]  ;;  %v497_v61 = vld [vmem:[#allocation2 + $0xb20] sm:$0xff]  ;;  %v8556_v3 = vpack.c.bf16 %v397_v59, %v195_v58  ;;  %v69_v58 = vld [vmem:[%s9853_s0 + $0xe8] sm:$0xff] }
 0x190   :  { %v8956_v5 = vpack.c.bf16 %v497_v61, %v295_v60  ;;  %v119_v60 = vld [vmem:[%s9853_s0 + $0x278] sm:$0xff] }
 0x193   :  { %8521 = vmatpush1.bf16.xpose.msra.mxu1 %v8520_v6  ;;  %v596_v6 = vld [vmem:[#allocation2 + $0xe38] sm:$0xff] }
 0x194   :  { %8921 = vmatpush1.bf16.xpose.msra.mxu0 %v8920_v7  ;;  %8523 = vmatprep.subr.bf16.mxu1 %v8522_v8  ;;  %v798_v7 = vld [vmem:[#allocation2 + $0x1488] sm:$0xff]  ;;  %v696_v8 = vld [vmem:[#allocation2 + $0x1158] sm:$0xff] }
 0x195   :  { %8923 = vmatprep.subr.bf16.mxu0 %v8922_v9  ;;  %v898_v9 = vld [vmem:[#allocation2 + $0x17a8] sm:$0xff]  ;;  %v8542_v14 = vpack.c.bf16 %v798_v7, %v596_v6 }
 0x196   :  { %v8942_v15 = vpack.c.bf16 %v898_v9, %v696_v8  ;;  %v1084_v8 = vcombine.high %v67_v2, %v67_v2  ;;  %v1134_v9 = vcombine.high %v117_v4, %v117_v4 }
 0x19a   :  { %2864 = vmatmul.mubr.f32.vlgmr.msra.gmra.mrb[0].mxu1 %v62_v54  ;;  %v593_v54 = vld [vmem:[#allocation2 + $0xe20] sm:$0xff] }
 0x19b   :  { %8525 = vmatpush1.bf16.xpose.msra.mxu1 %v8524_v19  ;;  %6364 = vmatmul.mubr.f32.vlgmr.msra.gmra.mrb[0].mxu0 %v112_v56  ;;  %v693_v56 = vld [vmem:[#allocation2 + $0x1140] sm:$0xff]  ;;  %v8536_v62 = vpack.c.bf16 %v795_v55, %v593_v54 }
 0x19c   :  { %8925 = vmatpush1.bf16.xpose.msra.mxu0 %v8924_v21  ;;  %8527 = vmatprep.subr.bf16.mxu1 %v8526_v22  ;;  %v8936_v63 = vpack.c.bf16 %v895_v57, %v693_v56  ;;  %v797_v19 = vld [vmem:[#allocation2 + $0x1480] sm:$0xff]  ;;  %v194_v22 = vld [vmem:[#allocation2 + $0x1a8] sm:$0xff] }
 0x19d   :  { %8927 = vmatprep.subr.bf16.mxu0 %v8926_v23  ;;  %2933 = vmatprep.mubr.f32.mxu1 %v1080_v24  ;;  %v897_v21 = vld [vmem:[#allocation2 + $0x17a0] sm:$0xff]  ;;  %v396_v23 = vld [vmem:[#allocation2 + $0x7f8] sm:$0xff]  ;;  %v294_v24 = vld [vmem:[#allocation2 + $0x4c8] sm:$0xff] }
 0x19e   :  { %6433 = vmatprep.mubr.f32.mxu0 %v1130_v25  ;;  %v496_v25 = vld [vmem:[#allocation2 + $0xb18] sm:$0xff]  ;;  %v8546_v28 = vpack.c.bf16 %v396_v23, %v194_v22  ;;  %v197_v22 = vld [vmem:[#allocation2 + $0x1c0] sm:$0xff]  ;;  %v399_v23 = vld [vmem:[#allocation2 + $0x810] sm:$0xff] }
 0x19f   :  { %v8946_v29 = vpack.c.bf16 %v496_v25, %v294_v24  ;;  %v297_v24 = vld [vmem:[#allocation2 + $0x4e0] sm:$0xff]  ;;  %v499_v25 = vld [vmem:[#allocation2 + $0xb30] sm:$0xff]  ;;  %v8564_v31 = vpack.c.bf16 %v399_v23, %v197_v22 }
 0x1a0   :  { %v8964_v33 = vpack.c.bf16 %v499_v25, %v297_v24  ;;  %v70_v22 = vld [vmem:[%s9853_s0 + $0xf0] sm:$0xff]  ;;  %v120_v24 = vld [vmem:[%s9853_s0 + $0x280] sm:$0xff] }
 0x1a3   :  { %8529 = vmatpush1.bf16.xpose.msra.mxu1 %v8528_v34  ;;  %v598_v34 = vld [vmem:[#allocation2 + $0xe48] sm:$0xff] }
 0x1a4   :  { %8929 = vmatpush1.bf16.xpose.msra.mxu0 %v8928_v35  ;;  %8531 = vmatprep.subr.bf16.mxu1 %v8530_v36  ;;  %v800_v35 = vld [vmem:[#allocation2 + $0x1498] sm:$0xff]  ;;  %v698_v36 = vld [vmem:[#allocation2 + $0x1168] sm:$0xff] }
 0x1a5   :  { %8931 = vmatprep.subr.bf16.mxu0 %v8930_v37  ;;  %v900_v37 = vld [vmem:[#allocation2 + $0x17b8] sm:$0xff]  ;;  %v8550_v42 = vpack.c.bf16 %v800_v35, %v598_v34 }
 0x1a6   :  { %v8950_v43 = vpack.c.bf16 %v900_v37, %v698_v36  ;;  %v1085_v36 = vcombine.high %v68_v30, %v68_v30  ;;  %v1135_v37 = vcombine.high %v118_v32, %v118_v32 }
 0x1aa   :  { %2934 = vmatmul.mubr.f32.vlgmr.msra.gmra.mrb[0].mxu1 %v63_v18  ;;  %v595_v18 = vld [vmem:[#allocation2 + $0xe30] sm:$0xff] }
 0x1ab   :  { %8533 = vmatpush1.bf16.xpose.msra.mxu1 %v8532_v47  ;;  %6434 = vmatmul.mubr.f32.vlgmr.msra.gmra.mrb[0].mxu0 %v113_v20  ;;  %v695_v20 = vld [vmem:[#allocation2 + $0x1150] sm:$0xff]  ;;  %v8544_v26 = vpack.c.bf16 %v797_v19, %v595_v18 }
 0x1ac   :  { %8933 = vmatpush1.bf16.xpose.msra.mxu0 %v8932_v49  ;;  %8535 = vmatprep.subr.bf16.mxu1 %v8534_v50  ;;  %v8944_v27 = vpack.c.bf16 %v897_v21, %v695_v20  ;;  %v799_v47 = vld [vmem:[#allocation2 + $0x1490] sm:$0xff]  ;;  %v196_v50 = vld [vmem:[#allocation2 + $0x1b8] sm:$0xff] }
 0x1ad   :  { %8935 = vmatprep.subr.bf16.mxu0 %v8934_v51  ;;  %3003 = vmatprep.mubr.f32.mxu1 %v1081_v52  ;;  %v899_v49 = vld [vmem:[#allocation2 + $0x17b0] sm:$0xff]  ;;  %v398_v51 = vld [vmem:[#allocation2 + $0x808] sm:$0xff]  ;;  %v296_v52 = vld [vmem:[#allocation2 + $0x4d8] sm:$0xff] }
 0x1ae   :  { %6503 = vmatprep.mubr.f32.mxu0 %v1131_v53  ;;  %v498_v53 = vld [vmem:[#allocation2 + $0xb28] sm:$0xff]  ;;  %v8554_v56 = vpack.c.bf16 %v398_v51, %v196_v50  ;;  %v199_v50 = vld [vmem:[#allocation2 + $0x1d0] sm:$0xff]  ;;  %v401_v51 = vld [vmem:[#allocation2 + $0x820] sm:$0xff] }
 0x1af   :  { %v8954_v57 = vpack.c.bf16 %v498_v53, %v296_v52  ;;  %v299_v52 = vld [vmem:[#allocation2 + $0x4f0] sm:$0xff]  ;;  %v501_v53 = vld [vmem:[#allocation2 + $0xb40] sm:$0xff]  ;;  %v8572_v59 = vpack.c.bf16 %v401_v51, %v199_v50  ;;  %v71_v50 = vld [vmem:[%s9853_s0 + $0xf8] sm:$0xff] }
 0x1b0   :  { %v8972_v61 = vpack.c.bf16 %v501_v53, %v299_v52  ;;  %v121_v52 = vld [vmem:[%s9853_s0 + $0x288] sm:$0xff] }
 0x1b3   :  { %8537 = vmatpush1.bf16.xpose.msra.mxu1 %v8536_v62  ;;  %v600_v62 = vld [vmem:[#allocation2 + $0xe58] sm:$0xff] }
 0x1b4   :  { %8937 = vmatpush1.bf16.xpose.msra.mxu0 %v8936_v63  ;;  %8539 = vmatprep.subr.bf16.mxu1 %v8538_v0  ;;  %v802_v63 = vld [vmem:[#allocation2 + $0x14a8] sm:$0xff]  ;;  %v700_v0 = vld [vmem:[#allocation2 + $0x1178] sm:$0xff] }
 0x1b5   :  { %8939 = vmatprep.subr.bf16.mxu0 %v8938_v1  ;;  %v902_v1 = vld [vmem:[#allocation2 + $0x17c8] sm:$0xff]  ;;  %v8558_v6 = vpack.c.bf16 %v802_v63, %v600_v62 }
 0x1b6   :  { %v8958_v7 = vpack.c.bf16 %v902_v1, %v700_v0  ;;  %v1086_v0 = vcombine.high %v69_v58, %v69_v58  ;;  %v1136_v1 = vcombine.high %v119_v60, %v119_v60 }
 0x1ba   :  { %3004 = vmatmul.mubr.f32.vlgmr.msra.gmra.mrb[0].mxu1 %v64_v46  ;;  %v597_v46 = vld [vmem:[#allocation2 + $0xe40] sm:$0xff] }
 0x1bb   :  { %8541 = vmatpush1.bf16.xpose.msra.mxu1 %v8540_v11  ;;  %6504 = vmatmul.mubr.f32.vlgmr.msra.gmra.mrb[0].mxu0 %v114_v48  ;;  %v697_v48 = vld [vmem:[#allocation2 + $0x1160] sm:$0xff]  ;;  %v8552_v54 = vpack.c.bf16 %v799_v47, %v597_v46 }
 0x1bc   :  { %8941 = vmatpush1.bf16.xpose.msra.mxu0 %v8940_v13  ;;  %8543 = vmatprep.subr.bf16.mxu1 %v8542_v14  ;;  %v8952_v55 = vpack.c.bf16 %v899_v49, %v697_v48  ;;  %v801_v11 = vld [vmem:[#allocation2 + $0x14a0] sm:$0xff]  ;;  %v198_v14 = vld [vmem:[#allocation2 + $0x1c8] sm:$0xff] }
 0x1bd   :  { %8943 = vmatprep.subr.bf16.mxu0 %v8942_v15  ;;  %3073 = vmatprep.mubr.f32.mxu1 %v1082_v16  ;;  %v901_v13 = vld [vmem:[#allocation2 + $0x17c0] sm:$0xff]  ;;  %v400_v15 = vld [vmem:[#allocation2 + $0x818] sm:$0xff]  ;;  %v298_v16 = vld [vmem:[#allocation2 + $0x4e8] sm:$0xff] }
 0x1be   :  { %6573 = vmatprep.mubr.f32.mxu0 %v1132_v17  ;;  %v500_v17 = vld [vmem:[#allocation2 + $0xb38] sm:$0xff]  ;;  %v8562_v20 = vpack.c.bf16 %v400_v15, %v198_v14  ;;  %v201_v14 = vld [vmem:[#allocation2 + $0x1e0] sm:$0xff]  ;;  %v403_v15 = vld [vmem:[#allocation2 + $0x830] sm:$0xff] }
 0x1bf   :  { %v8962_v21 = vpack.c.bf16 %v500_v17, %v298_v16  ;;  %v301_v16 = vld [vmem:[#allocation2 + $0x500] sm:$0xff]  ;;  %v503_v17 = vld [vmem:[#allocation2 + $0xb50] sm:$0xff]  ;;  %v8580_v23 = vpack.c.bf16 %v403_v15, %v201_v14 }
 0x1c0   :  { %v8980_v25 = vpack.c.bf16 %v503_v17, %v301_v16  ;;  %v72_v14 = vld [vmem:[%s9853_s0 + $0x100] sm:$0xff]  ;;  %v122_v16 = vld [vmem:[%s9853_s0 + $0x290] sm:$0xff] }
 0x1c3   :  { %8545 = vmatpush1.bf16.xpose.msra.mxu1 %v8544_v26  ;;  %v602_v26 = vld [vmem:[#allocation2 + $0xe68] sm:$0xff] }
 0x1c4   :  { %8945 = vmatpush1.bf16.xpose.msra.mxu0 %v8944_v27  ;;  %8547 = vmatprep.subr.bf16.mxu1 %v8546_v28  ;;  %v804_v27 = vld [vmem:[#allocation2 + $0x14b8] sm:$0xff]  ;;  %v702_v28 = vld [vmem:[#allocation2 + $0x1188] sm:$0xff] }
 0x1c5   :  { %8947 = vmatprep.subr.bf16.mxu0 %v8946_v29  ;;  %v904_v29 = vld [vmem:[#allocation2 + $0x17d8] sm:$0xff]  ;;  %v8566_v34 = vpack.c.bf16 %v804_v27, %v602_v26 }
 0x1c6   :  { %v8966_v35 = vpack.c.bf16 %v904_v29, %v702_v28  ;;  %v1087_v28 = vcombine.high %v70_v22, %v70_v22  ;;  %v1137_v29 = vcombine.high %v120_v24, %v120_v24 }
 0x1ca   :  { %3074 = vmatmul.mubr.f32.vlgmr.msra.gmra.mrb[0].mxu1 %v65_v10  ;;  %v599_v10 = vld [vmem:[#allocation2 + $0xe50] sm:$0xff] }
 0x1cb   :  { %8549 = vmatpush1.bf16.xpose.msra.mxu1 %v8548_v39  ;;  %6574 = vmatmul.mubr.f32.vlgmr.msra.gmra.mrb[0].mxu0 %v115_v12  ;;  %v699_v12 = vld [vmem:[#allocation2 + $0x1170] sm:$0xff]  ;;  %v8560_v18 = vpack.c.bf16 %v801_v11, %v599_v10 }
 0x1cc   :  { %8949 = vmatpush1.bf16.xpose.msra.mxu0 %v8948_v41  ;;  %8551 = vmatprep.subr.bf16.mxu1 %v8550_v42  ;;  %v8960_v19 = vpack.c.bf16 %v901_v13, %v699_v12  ;;  %v803_v39 = vld [vmem:[#allocation2 + $0x14b0] sm:$0xff]  ;;  %v200_v42 = vld [vmem:[#allocation2 + $0x1d8] sm:$0xff] }
 0x1cd   :  { %8951 = vmatprep.subr.bf16.mxu0 %v8950_v43  ;;  %3143 = vmatprep.mubr.f32.mxu1 %v1083_v44  ;;  %v903_v41 = vld [vmem:[#allocation2 + $0x17d0] sm:$0xff]  ;;  %v402_v43 = vld [vmem:[#allocation2 + $0x828] sm:$0xff]  ;;  %v300_v44 = vld [vmem:[#allocation2 + $0x4f8] sm:$0xff] }
 0x1ce   :  { %6643 = vmatprep.mubr.f32.mxu0 %v1133_v45  ;;  %v502_v45 = vld [vmem:[#allocation2 + $0xb48] sm:$0xff]  ;;  %v8570_v48 = vpack.c.bf16 %v402_v43, %v200_v42  ;;  %v203_v42 = vld [vmem:[#allocation2 + $0x1f0] sm:$0xff]  ;;  %v405_v43 = vld [vmem:[#allocation2 + $0x840] sm:$0xff] }
 0x1cf   :  { %v8970_v49 = vpack.c.bf16 %v502_v45, %v300_v44  ;;  %v303_v44 = vld [vmem:[#allocation2 + $0x510] sm:$0xff]  ;;  %v505_v45 = vld [vmem:[#allocation2 + $0xb60] sm:$0xff]  ;;  %v8588_v51 = vpack.c.bf16 %v405_v43, %v203_v42  ;;  %v73_v42 = vld [vmem:[%s9853_s0 + $0x108] sm:$0xff] }
 0x1d0   :  { %v8988_v53 = vpack.c.bf16 %v505_v45, %v303_v44  ;;  %v123_v44 = vld [vmem:[%s9853_s0 + $0x298] sm:$0xff] }
 0x1d3   :  { %8553 = vmatpush1.bf16.xpose.msra.mxu1 %v8552_v54  ;;  %v604_v54 = vld [vmem:[#allocation2 + $0xe78] sm:$0xff] }
 0x1d4   :  { %8953 = vmatpush1.bf16.xpose.msra.mxu0 %v8952_v55  ;;  %8555 = vmatprep.subr.bf16.mxu1 %v8554_v56  ;;  %v806_v55 = vld [vmem:[#allocation2 + $0x14c8] sm:$0xff]  ;;  %v704_v56 = vld [vmem:[#allocation2 + $0x1198] sm:$0xff] }
 0x1d5   :  { %8955 = vmatprep.subr.bf16.mxu0 %v8954_v57  ;;  %v906_v57 = vld [vmem:[#allocation2 + $0x17e8] sm:$0xff]  ;;  %v8574_v62 = vpack.c.bf16 %v806_v55, %v604_v54 }
 0x1d6   :  { %v8974_v63 = vpack.c.bf16 %v906_v57, %v704_v56  ;;  %v1088_v56 = vcombine.high %v71_v50, %v71_v50  ;;  %v1138_v57 = vcombine.high %v121_v52, %v121_v52 }
 0x1da   :  { %3144 = vmatmul.mubr.f32.vlgmr.msra.gmra.mrb[0].mxu1 %v66_v38  ;;  %v601_v38 = vld [vmem:[#allocation2 + $0xe60] sm:$0xff] }
 0x1db   :  { %8557 = vmatpush1.bf16.xpose.msra.mxu1 %v8556_v3  ;;  %6644 = vmatmul.mubr.f32.vlgmr.msra.gmra.mrb[0].mxu0 %v116_v40  ;;  %v701_v40 = vld [vmem:[#allocation2 + $0x1180] sm:$0xff]  ;;  %v8568_v46 = vpack.c.bf16 %v803_v39, %v601_v38 }
 0x1dc   :  { %8957 = vmatpush1.bf16.xpose.msra.mxu0 %v8956_v5  ;;  %8559 = vmatprep.subr.bf16.mxu1 %v8558_v6  ;;  %v8968_v47 = vpack.c.bf16 %v903_v41, %v701_v40  ;;  %v805_v3 = vld [vmem:[#allocation2 + $0x14c0] sm:$0xff]  ;;  %v202_v6 = vld [vmem:[#allocation2 + $0x1e8] sm:$0xff] }
 0x1dd   :  { %8959 = vmatprep.subr.bf16.mxu0 %v8958_v7  ;;  %3213 = vmatprep.mubr.f32.mxu1 %v1084_v8  ;;  %v905_v5 = vld [vmem:[#allocation2 + $0x17e0] sm:$0xff]  ;;  %v404_v7 = vld [vmem:[#allocation2 + $0x838] sm:$0xff]  ;;  %v302_v8 = vld [vmem:[#allocation2 + $0x508] sm:$0xff] }
 0x1de   :  { %6713 = vmatprep.mubr.f32.mxu0 %v1134_v9  ;;  %v504_v9 = vld [vmem:[#allocation2 + $0xb58] sm:$0xff]  ;;  %v8578_v12 = vpack.c.bf16 %v404_v7, %v202_v6  ;;  %v205_v6 = vld [vmem:[#allocation2 + $0x200] sm:$0xff]  ;;  %v407_v7 = vld [vmem:[#allocation2 + $0x850] sm:$0xff] }
 0x1df   :  { %v8978_v13 = vpack.c.bf16 %v504_v9, %v302_v8  ;;  %v305_v8 = vld [vmem:[#allocation2 + $0x520] sm:$0xff]  ;;  %v507_v9 = vld [vmem:[#allocation2 + $0xb70] sm:$0xff]  ;;  %v8596_v15 = vpack.c.bf16 %v407_v7, %v205_v6 }
 0x1e0   :  { %v8996_v17 = vpack.c.bf16 %v507_v9, %v305_v8  ;;  %v74_v6 = vld [vmem:[%s9853_s0 + $0x110] sm:$0xff]  ;;  %v124_v8 = vld [vmem:[%s9853_s0 + $0x2a0] sm:$0xff] }
 0x1e3   :  { %8561 = vmatpush1.bf16.xpose.msra.mxu1 %v8560_v18  ;;  %v606_v18 = vld [vmem:[#allocation2 + $0xe88] sm:$0xff] }
 0x1e4   :  { %8961 = vmatpush1.bf16.xpose.msra.mxu0 %v8960_v19  ;;  %8563 = vmatprep.subr.bf16.mxu1 %v8562_v20  ;;  %v808_v19 = vld [vmem:[#allocation2 + $0x14d8] sm:$0xff]  ;;  %v706_v20 = vld [vmem:[#allocation2 + $0x11a8] sm:$0xff] }
 0x1e5   :  { %8963 = vmatprep.subr.bf16.mxu0 %v8962_v21  ;;  %v908_v21 = vld [vmem:[#allocation2 + $0x17f8] sm:$0xff]  ;;  %v8582_v26 = vpack.c.bf16 %v808_v19, %v606_v18 }
 0x1e6   :  { %v8982_v27 = vpack.c.bf16 %v908_v21, %v706_v20  ;;  %v1089_v20 = vcombine.high %v72_v14, %v72_v14  ;;  %v1139_v21 = vcombine.high %v122_v16, %v122_v16 }
 0x1ea   :  { %3214 = vmatmul.mubr.f32.vlgmr.msra.gmra.mrb[0].mxu1 %v67_v2  ;;  %v603_v2 = vld [vmem:[#allocation2 + $0xe70] sm:$0xff] }
 0x1eb   :  { %8565 = vmatpush1.bf16.xpose.msra.mxu1 %v8564_v31  ;;  %6714 = vmatmul.mubr.f32.vlgmr.msra.gmra.mrb[0].mxu0 %v117_v4  ;;  %v703_v4 = vld [vmem:[#allocation2 + $0x1190] sm:$0xff]  ;;  %v8576_v10 = vpack.c.bf16 %v805_v3, %v603_v2 }
 0x1ec   :  { %8965 = vmatpush1.bf16.xpose.msra.mxu0 %v8964_v33  ;;  %8567 = vmatprep.subr.bf16.mxu1 %v8566_v34  ;;  %v8976_v11 = vpack.c.bf16 %v905_v5, %v703_v4  ;;  %v807_v31 = vld [vmem:[#allocation2 + $0x14d0] sm:$0xff]  ;;  %v204_v34 = vld [vmem:[#allocation2 + $0x1f8] sm:$0xff] }
 0x1ed   :  { %8967 = vmatprep.subr.bf16.mxu0 %v8966_v35  ;;  %3283 = vmatprep.mubr.f32.mxu1 %v1085_v36  ;;  %v907_v33 = vld [vmem:[#allocation2 + $0x17f0] sm:$0xff]  ;;  %v406_v35 = vld [vmem:[#allocation2 + $0x848] sm:$0xff]  ;;  %v304_v36 = vld [vmem:[#allocation2 + $0x518] sm:$0xff] }
 0x1ee   :  { %6783 = vmatprep.mubr.f32.mxu0 %v1135_v37  ;;  %v506_v37 = vld [vmem:[#allocation2 + $0xb68] sm:$0xff]  ;;  %v8586_v40 = vpack.c.bf16 %v406_v35, %v204_v34  ;;  %v207_v34 = vld [vmem:[#allocation2 + $0x210] sm:$0xff]  ;;  %v409_v35 = vld [vmem:[#allocation2 + $0x860] sm:$0xff] }
 0x1ef   :  { %v8986_v41 = vpack.c.bf16 %v506_v37, %v304_v36  ;;  %v307_v36 = vld [vmem:[#allocation2 + $0x530] sm:$0xff]  ;;  %v509_v37 = vld [vmem:[#allocation2 + $0xb80] sm:$0xff]  ;;  %v8604_v43 = vpack.c.bf16 %v409_v35, %v207_v34  ;;  %v75_v34 = vld [vmem:[%s9853_s0 + $0x118] sm:$0xff] }
 0x1f0   :  { %v9004_v45 = vpack.c.bf16 %v509_v37, %v307_v36  ;;  %v125_v36 = vld [vmem:[%s9853_s0 + $0x2a8] sm:$0xff] }
 0x1f3   :  { %8569 = vmatpush1.bf16.xpose.msra.mxu1 %v8568_v46  ;;  %v608_v46 = vld [vmem:[#allocation2 + $0xe98] sm:$0xff] }
 0x1f4   :  { %8969 = vmatpush1.bf16.xpose.msra.mxu0 %v8968_v47  ;;  %8571 = vmatprep.subr.bf16.mxu1 %v8570_v48  ;;  %v810_v47 = vld [vmem:[#allocation2 + $0x14e8] sm:$0xff]  ;;  %v708_v48 = vld [vmem:[#allocation2 + $0x11b8] sm:$0xff] }
 0x1f5   :  { %8971 = vmatprep.subr.bf16.mxu0 %v8970_v49  ;;  %v910_v49 = vld [vmem:[#allocation2 + $0x1808] sm:$0xff]  ;;  %v8590_v54 = vpack.c.bf16 %v810_v47, %v608_v46 }
 0x1f6   :  { %v8990_v55 = vpack.c.bf16 %v910_v49, %v708_v48  ;;  %v1090_v48 = vcombine.high %v73_v42, %v73_v42  ;;  %v1140_v49 = vcombine.high %v123_v44, %v123_v44 }
 0x1fa   :  { %3284 = vmatmul.mubr.f32.vlgmr.msra.gmra.mrb[0].mxu1 %v68_v30  ;;  %v605_v30 = vld [vmem:[#allocation2 + $0xe80] sm:$0xff] }
 0x1fb   :  { %8573 = vmatpush1.bf16.xpose.msra.mxu1 %v8572_v59  ;;  %6784 = vmatmul.mubr.f32.vlgmr.msra.gmra.mrb[0].mxu0 %v118_v32  ;;  %v705_v32 = vld [vmem:[#allocation2 + $0x11a0] sm:$0xff]  ;;  %v8584_v38 = vpack.c.bf16 %v807_v31, %v605_v30 }
 0x1fc   :  { %8973 = vmatpush1.bf16.xpose.msra.mxu0 %v8972_v61  ;;  %8575 = vmatprep.subr.bf16.mxu1 %v8574_v62  ;;  %v8984_v39 = vpack.c.bf16 %v907_v33, %v705_v32  ;;  %v809_v59 = vld [vmem:[#allocation2 + $0x14e0] sm:$0xff]  ;;  %v206_v62 = vld [vmem:[#allocation2 + $0x208] sm:$0xff] }
 0x1fd   :  { %8975 = vmatprep.subr.bf16.mxu0 %v8974_v63  ;;  %3353 = vmatprep.mubr.f32.mxu1 %v1086_v0  ;;  %v909_v61 = vld [vmem:[#allocation2 + $0x1800] sm:$0xff]  ;;  %v408_v63 = vld [vmem:[#allocation2 + $0x858] sm:$0xff]  ;;  %v306_v0 = vld [vmem:[#allocation2 + $0x528] sm:$0xff] }
 0x1fe   :  { %6853 = vmatprep.mubr.f32.mxu0 %v1136_v1  ;;  %v508_v1 = vld [vmem:[#allocation2 + $0xb78] sm:$0xff]  ;;  %v8594_v4 = vpack.c.bf16 %v408_v63, %v206_v62  ;;  %v209_v62 = vld [vmem:[#allocation2 + $0x220] sm:$0xff]  ;;  %v411_v63 = vld [vmem:[#allocation2 + $0x870] sm:$0xff] }
 0x1ff   :  { %v8994_v5 = vpack.c.bf16 %v508_v1, %v306_v0  ;;  %v309_v0 = vld [vmem:[#allocation2 + $0x540] sm:$0xff]  ;;  %v511_v1 = vld [vmem:[#allocation2 + $0xb90] sm:$0xff]  ;;  %v8612_v7 = vpack.c.bf16 %v411_v63, %v209_v62 }
 0x200   :  { %v9012_v9 = vpack.c.bf16 %v511_v1, %v309_v0  ;;  %v76_v62 = vld [vmem:[%s9853_s0 + $0x120] sm:$0xff]  ;;  %v126_v0 = vld [vmem:[%s9853_s0 + $0x2b0] sm:$0xff] }
 0x203   :  { %8577 = vmatpush1.bf16.xpose.msra.mxu1 %v8576_v10  ;;  %v610_v10 = vld [vmem:[#allocation2 + $0xea8] sm:$0xff] }
 0x204   :  { %8977 = vmatpush1.bf16.xpose.msra.mxu0 %v8976_v11  ;;  %8579 = vmatprep.subr.bf16.mxu1 %v8578_v12  ;;  %v812_v11 = vld [vmem:[#allocation2 + $0x14f8] sm:$0xff]  ;;  %v710_v12 = vld [vmem:[#allocation2 + $0x11c8] sm:$0xff] }
 0x205   :  { %8979 = vmatprep.subr.bf16.mxu0 %v8978_v13  ;;  %v912_v13 = vld [vmem:[#allocation2 + $0x1818] sm:$0xff]  ;;  %v8598_v18 = vpack.c.bf16 %v812_v11, %v610_v10 }
 0x206   :  { %v8998_v19 = vpack.c.bf16 %v912_v13, %v710_v12  ;;  %v1091_v12 = vcombine.high %v74_v6, %v74_v6  ;;  %v1141_v13 = vcombine.high %v124_v8, %v124_v8 }
 0x20a   :  { %3354 = vmatmul.mubr.f32.vlgmr.msra.gmra.mrb[0].mxu1 %v69_v58  ;;  %v607_v58 = vld [vmem:[#allocation2 + $0xe90] sm:$0xff] }
 0x20b   :  { %8581 = vmatpush1.bf16.xpose.msra.mxu1 %v8580_v23  ;;  %6854 = vmatmul.mubr.f32.vlgmr.msra.gmra.mrb[0].mxu0 %v119_v60  ;;  %v707_v60 = vld [vmem:[#allocation2 + $0x11b0] sm:$0xff]  ;;  %v8592_v2 = vpack.c.bf16 %v809_v59, %v607_v58 }
 0x20c   :  { %8981 = vmatpush1.bf16.xpose.msra.mxu0 %v8980_v25  ;;  %8583 = vmatprep.subr.bf16.mxu1 %v8582_v26  ;;  %v8992_v3 = vpack.c.bf16 %v909_v61, %v707_v60  ;;  %v811_v23 = vld [vmem:[#allocation2 + $0x14f0] sm:$0xff]  ;;  %v208_v26 = vld [vmem:[#allocation2 + $0x218] sm:$0xff] }
 0x20d   :  { %8983 = vmatprep.subr.bf16.mxu0 %v8982_v27  ;;  %3423 = vmatprep.mubr.f32.mxu1 %v1087_v28  ;;  %v911_v25 = vld [vmem:[#allocation2 + $0x1810] sm:$0xff]  ;;  %v410_v27 = vld [vmem:[#allocation2 + $0x868] sm:$0xff]  ;;  %v308_v28 = vld [vmem:[#allocation2 + $0x538] sm:$0xff] }
 0x20e   :  { %6923 = vmatprep.mubr.f32.mxu0 %v1137_v29  ;;  %v510_v29 = vld [vmem:[#allocation2 + $0xb88] sm:$0xff]  ;;  %v8602_v32 = vpack.c.bf16 %v410_v27, %v208_v26  ;;  %v211_v26 = vld [vmem:[#allocation2 + $0x230] sm:$0xff]  ;;  %v413_v27 = vld [vmem:[#allocation2 + $0x880] sm:$0xff] }
 0x20f   :  { %v9002_v33 = vpack.c.bf16 %v510_v29, %v308_v28  ;;  %v311_v28 = vld [vmem:[#allocation2 + $0x550] sm:$0xff]  ;;  %v513_v29 = vld [vmem:[#allocation2 + $0xba0] sm:$0xff]  ;;  %v8620_v35 = vpack.c.bf16 %v413_v27, %v211_v26  ;;  %v77_v26 = vld [vmem:[%s9853_s0 + $0x128] sm:$0xff] }
 0x210   :  { %v9020_v37 = vpack.c.bf16 %v513_v29, %v311_v28  ;;  %v127_v28 = vld [vmem:[%s9853_s0 + $0x2b8] sm:$0xff] }
 0x213   :  { %8585 = vmatpush1.bf16.xpose.msra.mxu1 %v8584_v38  ;;  %v612_v38 = vld [vmem:[#allocation2 + $0xeb8] sm:$0xff] }
 0x214   :  { %8985 = vmatpush1.bf16.xpose.msra.mxu0 %v8984_v39  ;;  %8587 = vmatprep.subr.bf16.mxu1 %v8586_v40  ;;  %v814_v39 = vld [vmem:[#allocation2 + $0x1508] sm:$0xff]  ;;  %v712_v40 = vld [vmem:[#allocation2 + $0x11d8] sm:$0xff] }
 0x215   :  { %8987 = vmatprep.subr.bf16.mxu0 %v8986_v41  ;;  %v914_v41 = vld [vmem:[#allocation2 + $0x1828] sm:$0xff]  ;;  %v8606_v46 = vpack.c.bf16 %v814_v39, %v612_v38 }
 0x216   :  { %v9006_v47 = vpack.c.bf16 %v914_v41, %v712_v40  ;;  %v1092_v40 = vcombine.high %v75_v34, %v75_v34  ;;  %v1142_v41 = vcombine.high %v125_v36, %v125_v36 }
 0x21a   :  { %3424 = vmatmul.mubr.f32.vlgmr.msra.gmra.mrb[0].mxu1 %v70_v22  ;;  %v609_v22 = vld [vmem:[#allocation2 + $0xea0] sm:$0xff] }
 0x21b   :  { %8589 = vmatpush1.bf16.xpose.msra.mxu1 %v8588_v51  ;;  %6924 = vmatmul.mubr.f32.vlgmr.msra.gmra.mrb[0].mxu0 %v120_v24  ;;  %v709_v24 = vld [vmem:[#allocation2 + $0x11c0] sm:$0xff]  ;;  %v8600_v30 = vpack.c.bf16 %v811_v23, %v609_v22 }
 0x21c   :  { %8989 = vmatpush1.bf16.xpose.msra.mxu0 %v8988_v53  ;;  %8591 = vmatprep.subr.bf16.mxu1 %v8590_v54  ;;  %v9000_v31 = vpack.c.bf16 %v911_v25, %v709_v24  ;;  %v813_v51 = vld [vmem:[#allocation2 + $0x1500] sm:$0xff]  ;;  %v210_v54 = vld [vmem:[#allocation2 + $0x228] sm:$0xff] }
 0x21d   :  { %8991 = vmatprep.subr.bf16.mxu0 %v8990_v55  ;;  %3493 = vmatprep.mubr.f32.mxu1 %v1088_v56  ;;  %v913_v53 = vld [vmem:[#allocation2 + $0x1820] sm:$0xff]  ;;  %v412_v55 = vld [vmem:[#allocation2 + $0x878] sm:$0xff]  ;;  %v310_v56 = vld [vmem:[#allocation2 + $0x548] sm:$0xff] }
 0x21e   :  { %6993 = vmatprep.mubr.f32.mxu0 %v1138_v57  ;;  %v512_v57 = vld [vmem:[#allocation2 + $0xb98] sm:$0xff]  ;;  %v8610_v60 = vpack.c.bf16 %v412_v55, %v210_v54  ;;  %v213_v54 = vld [vmem:[#allocation2 + $0x240] sm:$0xff]  ;;  %v415_v55 = vld [vmem:[#allocation2 + $0x890] sm:$0xff] }
 0x21f   :  { %v9010_v61 = vpack.c.bf16 %v512_v57, %v310_v56  ;;  %v313_v56 = vld [vmem:[#allocation2 + $0x560] sm:$0xff]  ;;  %v515_v57 = vld [vmem:[#allocation2 + $0xbb0] sm:$0xff]  ;;  %v8628_v63 = vpack.c.bf16 %v415_v55, %v213_v54 }
 0x220   :  { %v9028_v1 = vpack.c.bf16 %v515_v57, %v313_v56  ;;  %v78_v54 = vld [vmem:[%s9853_s0 + $0x130] sm:$0xff]  ;;  %v128_v56 = vld [vmem:[%s9853_s0 + $0x2c0] sm:$0xff] }
 0x223   :  { %8593 = vmatpush1.bf16.xpose.msra.mxu1 %v8592_v2  ;;  %v614_v2 = vld [vmem:[#allocation2 + $0xec8] sm:$0xff] }
 0x224   :  { %8993 = vmatpush1.bf16.xpose.msra.mxu0 %v8992_v3  ;;  %8595 = vmatprep.subr.bf16.mxu1 %v8594_v4  ;;  %v816_v3 = vld [vmem:[#allocation2 + $0x1518] sm:$0xff]  ;;  %v714_v4 = vld [vmem:[#allocation2 + $0x11e8] sm:$0xff] }
 0x225   :  { %8995 = vmatprep.subr.bf16.mxu0 %v8994_v5  ;;  %v916_v5 = vld [vmem:[#allocation2 + $0x1838] sm:$0xff]  ;;  %v8614_v10 = vpack.c.bf16 %v816_v3, %v614_v2 }
 0x226   :  { %v9014_v11 = vpack.c.bf16 %v916_v5, %v714_v4  ;;  %v1093_v4 = vcombine.high %v76_v62, %v76_v62  ;;  %v1143_v5 = vcombine.high %v126_v0, %v126_v0 }
 0x22a   :  { %3494 = vmatmul.mubr.f32.vlgmr.msra.gmra.mrb[0].mxu1 %v71_v50  ;;  %v611_v50 = vld [vmem:[#allocation2 + $0xeb0] sm:$0xff] }
 0x22b   :  { %8597 = vmatpush1.bf16.xpose.msra.mxu1 %v8596_v15  ;;  %6994 = vmatmul.mubr.f32.vlgmr.msra.gmra.mrb[0].mxu0 %v121_v52  ;;  %v711_v52 = vld [vmem:[#allocation2 + $0x11d0] sm:$0xff]  ;;  %v8608_v58 = vpack.c.bf16 %v813_v51, %v611_v50 }
 0x22c   :  { %8997 = vmatpush1.bf16.xpose.msra.mxu0 %v8996_v17  ;;  %8599 = vmatprep.subr.bf16.mxu1 %v8598_v18  ;;  %v9008_v59 = vpack.c.bf16 %v913_v53, %v711_v52  ;;  %v815_v15 = vld [vmem:[#allocation2 + $0x1510] sm:$0xff]  ;;  %v212_v18 = vld [vmem:[#allocation2 + $0x238] sm:$0xff] }
 0x22d   :  { %8999 = vmatprep.subr.bf16.mxu0 %v8998_v19  ;;  %3563 = vmatprep.mubr.f32.mxu1 %v1089_v20  ;;  %v915_v17 = vld [vmem:[#allocation2 + $0x1830] sm:$0xff]  ;;  %v414_v19 = vld [vmem:[#allocation2 + $0x888] sm:$0xff]  ;;  %v312_v20 = vld [vmem:[#allocation2 + $0x558] sm:$0xff] }
 0x22e   :  { %7063 = vmatprep.mubr.f32.mxu0 %v1139_v21  ;;  %v514_v21 = vld [vmem:[#allocation2 + $0xba8] sm:$0xff]  ;;  %v8618_v24 = vpack.c.bf16 %v414_v19, %v212_v18  ;;  %v215_v18 = vld [vmem:[#allocation2 + $0x250] sm:$0xff]  ;;  %v417_v19 = vld [vmem:[#allocation2 + $0x8a0] sm:$0xff] }
 0x22f   :  { %v9018_v25 = vpack.c.bf16 %v514_v21, %v312_v20  ;;  %v315_v20 = vld [vmem:[#allocation2 + $0x570] sm:$0xff]  ;;  %v517_v21 = vld [vmem:[#allocation2 + $0xbc0] sm:$0xff]  ;;  %v8636_v27 = vpack.c.bf16 %v417_v19, %v215_v18  ;;  %v79_v18 = vld [vmem:[%s9853_s0 + $0x138] sm:$0xff] }
 0x230   :  { %v9036_v29 = vpack.c.bf16 %v517_v21, %v315_v20  ;;  %v129_v20 = vld [vmem:[%s9853_s0 + $0x2c8] sm:$0xff] }
 0x233   :  { %8601 = vmatpush1.bf16.xpose.msra.mxu1 %v8600_v30  ;;  %v616_v30 = vld [vmem:[#allocation2 + $0xed8] sm:$0xff] }
 0x234   :  { %9001 = vmatpush1.bf16.xpose.msra.mxu0 %v9000_v31  ;;  %8603 = vmatprep.subr.bf16.mxu1 %v8602_v32  ;;  %v818_v31 = vld [vmem:[#allocation2 + $0x1528] sm:$0xff]  ;;  %v716_v32 = vld [vmem:[#allocation2 + $0x11f8] sm:$0xff] }
 0x235   :  { %9003 = vmatprep.subr.bf16.mxu0 %v9002_v33  ;;  %v918_v33 = vld [vmem:[#allocation2 + $0x1848] sm:$0xff]  ;;  %v8622_v38 = vpack.c.bf16 %v818_v31, %v616_v30 }
 0x236   :  { %v9022_v39 = vpack.c.bf16 %v918_v33, %v716_v32  ;;  %v1094_v32 = vcombine.high %v77_v26, %v77_v26  ;;  %v1144_v33 = vcombine.high %v127_v28, %v127_v28 }
 0x23a   :  { %3564 = vmatmul.mubr.f32.vlgmr.msra.gmra.mrb[0].mxu1 %v72_v14  ;;  %v613_v14 = vld [vmem:[#allocation2 + $0xec0] sm:$0xff] }
 0x23b   :  { %8605 = vmatpush1.bf16.xpose.msra.mxu1 %v8604_v43  ;;  %7064 = vmatmul.mubr.f32.vlgmr.msra.gmra.mrb[0].mxu0 %v122_v16  ;;  %v713_v16 = vld [vmem:[#allocation2 + $0x11e0] sm:$0xff]  ;;  %v8616_v22 = vpack.c.bf16 %v815_v15, %v613_v14 }
 0x23c   :  { %9005 = vmatpush1.bf16.xpose.msra.mxu0 %v9004_v45  ;;  %8607 = vmatprep.subr.bf16.mxu1 %v8606_v46  ;;  %v9016_v23 = vpack.c.bf16 %v915_v17, %v713_v16  ;;  %v817_v43 = vld [vmem:[#allocation2 + $0x1520] sm:$0xff]  ;;  %v214_v46 = vld [vmem:[#allocation2 + $0x248] sm:$0xff] }
 0x23d   :  { %9007 = vmatprep.subr.bf16.mxu0 %v9006_v47  ;;  %3633 = vmatprep.mubr.f32.mxu1 %v1090_v48  ;;  %v917_v45 = vld [vmem:[#allocation2 + $0x1840] sm:$0xff]  ;;  %v416_v47 = vld [vmem:[#allocation2 + $0x898] sm:$0xff]  ;;  %v314_v48 = vld [vmem:[#allocation2 + $0x568] sm:$0xff] }
 0x23e   :  { %7133 = vmatprep.mubr.f32.mxu0 %v1140_v49  ;;  %v516_v49 = vld [vmem:[#allocation2 + $0xbb8] sm:$0xff]  ;;  %v8626_v52 = vpack.c.bf16 %v416_v47, %v214_v46  ;;  %v217_v46 = vld [vmem:[#allocation2 + $0x260] sm:$0xff]  ;;  %v419_v47 = vld [vmem:[#allocation2 + $0x8b0] sm:$0xff] }
 0x23f   :  { %v9026_v53 = vpack.c.bf16 %v516_v49, %v314_v48  ;;  %v317_v48 = vld [vmem:[#allocation2 + $0x580] sm:$0xff]  ;;  %v519_v49 = vld [vmem:[#allocation2 + $0xbd0] sm:$0xff]  ;;  %v8644_v55 = vpack.c.bf16 %v419_v47, %v217_v46 }
 0x240   :  { %v9044_v57 = vpack.c.bf16 %v519_v49, %v317_v48  ;;  %v80_v46 = vld [vmem:[%s9853_s0 + $0x140] sm:$0xff]  ;;  %v130_v48 = vld [vmem:[%s9853_s0 + $0x2d0] sm:$0xff] }
 0x243   :  { %8609 = vmatpush1.bf16.xpose.msra.mxu1 %v8608_v58  ;;  %v618_v58 = vld [vmem:[#allocation2 + $0xee8] sm:$0xff] }
 0x244   :  { %9009 = vmatpush1.bf16.xpose.msra.mxu0 %v9008_v59  ;;  %8611 = vmatprep.subr.bf16.mxu1 %v8610_v60  ;;  %v820_v59 = vld [vmem:[#allocation2 + $0x1538] sm:$0xff]  ;;  %v718_v60 = vld [vmem:[#allocation2 + $0x1208] sm:$0xff] }
 0x245   :  { %9011 = vmatprep.subr.bf16.mxu0 %v9010_v61  ;;  %v920_v61 = vld [vmem:[#allocation2 + $0x1858] sm:$0xff]  ;;  %v8630_v2 = vpack.c.bf16 %v820_v59, %v618_v58 }
 0x246   :  { %v9030_v3 = vpack.c.bf16 %v920_v61, %v718_v60  ;;  %v1095_v60 = vcombine.high %v78_v54, %v78_v54  ;;  %v1145_v61 = vcombine.high %v128_v56, %v128_v56 }
 0x24a   :  { %3634 = vmatmul.mubr.f32.vlgmr.msra.gmra.mrb[0].mxu1 %v73_v42  ;;  %v615_v42 = vld [vmem:[#allocation2 + $0xed0] sm:$0xff] }
 0x24b   :  { %8613 = vmatpush1.bf16.xpose.msra.mxu1 %v8612_v7  ;;  %7134 = vmatmul.mubr.f32.vlgmr.msra.gmra.mrb[0].mxu0 %v123_v44  ;;  %v715_v44 = vld [vmem:[#allocation2 + $0x11f0] sm:$0xff]  ;;  %v8624_v50 = vpack.c.bf16 %v817_v43, %v615_v42 }
 0x24c   :  { %9013 = vmatpush1.bf16.xpose.msra.mxu0 %v9012_v9  ;;  %8615 = vmatprep.subr.bf16.mxu1 %v8614_v10  ;;  %v9024_v51 = vpack.c.bf16 %v917_v45, %v715_v44  ;;  %v819_v7 = vld [vmem:[#allocation2 + $0x1530] sm:$0xff]  ;;  %v216_v10 = vld [vmem:[#allocation2 + $0x258] sm:$0xff] }
 0x24d   :  { %9015 = vmatprep.subr.bf16.mxu0 %v9014_v11  ;;  %3703 = vmatprep.mubr.f32.mxu1 %v1091_v12  ;;  %v919_v9 = vld [vmem:[#allocation2 + $0x1850] sm:$0xff]  ;;  %v418_v11 = vld [vmem:[#allocation2 + $0x8a8] sm:$0xff]  ;;  %v316_v12 = vld [vmem:[#allocation2 + $0x578] sm:$0xff] }
 0x24e   :  { %7203 = vmatprep.mubr.f32.mxu0 %v1141_v13  ;;  %v518_v13 = vld [vmem:[#allocation2 + $0xbc8] sm:$0xff]  ;;  %v8634_v16 = vpack.c.bf16 %v418_v11, %v216_v10  ;;  %v219_v10 = vld [vmem:[#allocation2 + $0x270] sm:$0xff]  ;;  %v421_v11 = vld [vmem:[#allocation2 + $0x8c0] sm:$0xff] }
 0x24f   :  { %v9034_v17 = vpack.c.bf16 %v518_v13, %v316_v12  ;;  %v319_v12 = vld [vmem:[#allocation2 + $0x590] sm:$0xff]  ;;  %v521_v13 = vld [vmem:[#allocation2 + $0xbe0] sm:$0xff]  ;;  %v8652_v19 = vpack.c.bf16 %v421_v11, %v219_v10  ;;  %v81_v10 = vld [vmem:[%s9853_s0 + $0x148] sm:$0xff] }
 0x250   :  { %v9052_v21 = vpack.c.bf16 %v521_v13, %v319_v12  ;;  %v131_v12 = vld [vmem:[%s9853_s0 + $0x2d8] sm:$0xff] }
 0x253   :  { %8617 = vmatpush1.bf16.xpose.msra.mxu1 %v8616_v22  ;;  %v620_v22 = vld [vmem:[#allocation2 + $0xef8] sm:$0xff] }
 0x254   :  { %9017 = vmatpush1.bf16.xpose.msra.mxu0 %v9016_v23  ;;  %8619 = vmatprep.subr.bf16.mxu1 %v8618_v24  ;;  %v822_v23 = vld [vmem:[#allocation2 + $0x1548] sm:$0xff]  ;;  %v720_v24 = vld [vmem:[#allocation2 + $0x1218] sm:$0xff] }
 0x255   :  { %9019 = vmatprep.subr.bf16.mxu0 %v9018_v25  ;;  %v922_v25 = vld [vmem:[#allocation2 + $0x1868] sm:$0xff]  ;;  %v8638_v30 = vpack.c.bf16 %v822_v23, %v620_v22 }
 0x256   :  { %v9038_v31 = vpack.c.bf16 %v922_v25, %v720_v24  ;;  %v1096_v24 = vcombine.high %v79_v18, %v79_v18  ;;  %v1146_v25 = vcombine.high %v129_v20, %v129_v20 }
 0x25a   :  { %3704 = vmatmul.mubr.f32.vlgmr.msra.gmra.mrb[0].mxu1 %v74_v6  ;;  %v617_v6 = vld [vmem:[#allocation2 + $0xee0] sm:$0xff] }
 0x25b   :  { %8621 = vmatpush1.bf16.xpose.msra.mxu1 %v8620_v35  ;;  %7204 = vmatmul.mubr.f32.vlgmr.msra.gmra.mrb[0].mxu0 %v124_v8  ;;  %v717_v8 = vld [vmem:[#allocation2 + $0x1200] sm:$0xff]  ;;  %v8632_v14 = vpack.c.bf16 %v819_v7, %v617_v6 }
 0x25c   :  { %9021 = vmatpush1.bf16.xpose.msra.mxu0 %v9020_v37  ;;  %8623 = vmatprep.subr.bf16.mxu1 %v8622_v38  ;;  %v9032_v15 = vpack.c.bf16 %v919_v9, %v717_v8  ;;  %v821_v35 = vld [vmem:[#allocation2 + $0x1540] sm:$0xff]  ;;  %v218_v38 = vld [vmem:[#allocation2 + $0x268] sm:$0xff] }
 0x25d   :  { %9023 = vmatprep.subr.bf16.mxu0 %v9022_v39  ;;  %3773 = vmatprep.mubr.f32.mxu1 %v1092_v40  ;;  %v921_v37 = vld [vmem:[#allocation2 + $0x1860] sm:$0xff]  ;;  %v420_v39 = vld [vmem:[#allocation2 + $0x8b8] sm:$0xff]  ;;  %v318_v40 = vld [vmem:[#allocation2 + $0x588] sm:$0xff] }
 0x25e   :  { %7273 = vmatprep.mubr.f32.mxu0 %v1142_v41  ;;  %v520_v41 = vld [vmem:[#allocation2 + $0xbd8] sm:$0xff]  ;;  %v8642_v44 = vpack.c.bf16 %v420_v39, %v218_v38  ;;  %v221_v38 = vld [vmem:[#allocation2 + $0x280] sm:$0xff]  ;;  %v423_v39 = vld [vmem:[#allocation2 + $0x8d0] sm:$0xff] }
 0x25f   :  { %v9042_v45 = vpack.c.bf16 %v520_v41, %v318_v40  ;;  %v321_v40 = vld [vmem:[#allocation2 + $0x5a0] sm:$0xff]  ;;  %v523_v41 = vld [vmem:[#allocation2 + $0xbf0] sm:$0xff]  ;;  %v8660_v47 = vpack.c.bf16 %v423_v39, %v221_v38 }
 0x260   :  { %v9060_v49 = vpack.c.bf16 %v523_v41, %v321_v40  ;;  %v82_v38 = vld [vmem:[%s9853_s0 + $0x150] sm:$0xff]  ;;  %v132_v40 = vld [vmem:[%s9853_s0 + $0x2e0] sm:$0xff] }
 0x263   :  { %8625 = vmatpush1.bf16.xpose.msra.mxu1 %v8624_v50  ;;  %v622_v50 = vld [vmem:[#allocation2 + $0xf08] sm:$0xff] }
 0x264   :  { %9025 = vmatpush1.bf16.xpose.msra.mxu0 %v9024_v51  ;;  %8627 = vmatprep.subr.bf16.mxu1 %v8626_v52  ;;  %v824_v51 = vld [vmem:[#allocation2 + $0x1558] sm:$0xff]  ;;  %v722_v52 = vld [vmem:[#allocation2 + $0x1228] sm:$0xff] }
 0x265   :  { %9027 = vmatprep.subr.bf16.mxu0 %v9026_v53  ;;  %v924_v53 = vld [vmem:[#allocation2 + $0x1878] sm:$0xff]  ;;  %v8646_v58 = vpack.c.bf16 %v824_v51, %v622_v50 }
 0x266   :  { %v9046_v59 = vpack.c.bf16 %v924_v53, %v722_v52  ;;  %v1097_v52 = vcombine.high %v80_v46, %v80_v46  ;;  %v1147_v53 = vcombine.high %v130_v48, %v130_v48 }
 0x26a   :  { %3774 = vmatmul.mubr.f32.vlgmr.msra.gmra.mrb[0].mxu1 %v75_v34  ;;  %v619_v34 = vld [vmem:[#allocation2 + $0xef0] sm:$0xff] }
 0x26b   :  { %8629 = vmatpush1.bf16.xpose.msra.mxu1 %v8628_v63  ;;  %7274 = vmatmul.mubr.f32.vlgmr.msra.gmra.mrb[0].mxu0 %v125_v36  ;;  %v719_v36 = vld [vmem:[#allocation2 + $0x1210] sm:$0xff]  ;;  %v8640_v42 = vpack.c.bf16 %v821_v35, %v619_v34 }
 0x26c   :  { %9029 = vmatpush1.bf16.xpose.msra.mxu0 %v9028_v1  ;;  %8631 = vmatprep.subr.bf16.mxu1 %v8630_v2  ;;  %v9040_v43 = vpack.c.bf16 %v921_v37, %v719_v36  ;;  %v823_v63 = vld [vmem:[#allocation2 + $0x1550] sm:$0xff]  ;;  %v220_v2 = vld [vmem:[#allocation2 + $0x278] sm:$0xff] }
 0x26d   :  { %9031 = vmatprep.subr.bf16.mxu0 %v9030_v3  ;;  %3843 = vmatprep.mubr.f32.mxu1 %v1093_v4  ;;  %v923_v1 = vld [vmem:[#allocation2 + $0x1870] sm:$0xff]  ;;  %v422_v3 = vld [vmem:[#allocation2 + $0x8c8] sm:$0xff]  ;;  %v320_v4 = vld [vmem:[#allocation2 + $0x598] sm:$0xff] }
 0x26e   :  { %7343 = vmatprep.mubr.f32.mxu0 %v1143_v5  ;;  %v522_v5 = vld [vmem:[#allocation2 + $0xbe8] sm:$0xff]  ;;  %v8650_v8 = vpack.c.bf16 %v422_v3, %v220_v2  ;;  %v223_v2 = vld [vmem:[#allocation2 + $0x290] sm:$0xff]  ;;  %v425_v3 = vld [vmem:[#allocation2 + $0x8e0] sm:$0xff] }
 0x26f   :  { %v9050_v9 = vpack.c.bf16 %v522_v5, %v320_v4  ;;  %v323_v4 = vld [vmem:[#allocation2 + $0x5b0] sm:$0xff]  ;;  %v525_v5 = vld [vmem:[#allocation2 + $0xc00] sm:$0xff]  ;;  %v8668_v11 = vpack.c.bf16 %v425_v3, %v223_v2  ;;  %v83_v2 = vld [vmem:[%s9853_s0 + $0x158] sm:$0xff] }
 0x270   :  { %v9068_v13 = vpack.c.bf16 %v525_v5, %v323_v4  ;;  %v133_v4 = vld [vmem:[%s9853_s0 + $0x2e8] sm:$0xff] }
 0x273   :  { %8633 = vmatpush1.bf16.xpose.msra.mxu1 %v8632_v14  ;;  %v624_v14 = vld [vmem:[#allocation2 + $0xf18] sm:$0xff] }
 0x274   :  { %9033 = vmatpush1.bf16.xpose.msra.mxu0 %v9032_v15  ;;  %8635 = vmatprep.subr.bf16.mxu1 %v8634_v16  ;;  %v826_v15 = vld [vmem:[#allocation2 + $0x1568] sm:$0xff]  ;;  %v724_v16 = vld [vmem:[#allocation2 + $0x1238] sm:$0xff] }
 0x275   :  { %9035 = vmatprep.subr.bf16.mxu0 %v9034_v17  ;;  %v926_v17 = vld [vmem:[#allocation2 + $0x1888] sm:$0xff]  ;;  %v8654_v22 = vpack.c.bf16 %v826_v15, %v624_v14 }
 0x276   :  { %v9054_v23 = vpack.c.bf16 %v926_v17, %v724_v16  ;;  %v1098_v16 = vcombine.high %v81_v10, %v81_v10  ;;  %v1148_v17 = vcombine.high %v131_v12, %v131_v12 }
 0x27a   :  { %3844 = vmatmul.mubr.f32.vlgmr.msra.gmra.mrb[0].mxu1 %v76_v62  ;;  %v621_v62 = vld [vmem:[#allocation2 + $0xf00] sm:$0xff] }
 0x27b   :  { %8637 = vmatpush1.bf16.xpose.msra.mxu1 %v8636_v27  ;;  %7344 = vmatmul.mubr.f32.vlgmr.msra.gmra.mrb[0].mxu0 %v126_v0  ;;  %v721_v0 = vld [vmem:[#allocation2 + $0x1220] sm:$0xff]  ;;  %v8648_v6 = vpack.c.bf16 %v823_v63, %v621_v62 }
 0x27c   :  { %9037 = vmatpush1.bf16.xpose.msra.mxu0 %v9036_v29  ;;  %8639 = vmatprep.subr.bf16.mxu1 %v8638_v30  ;;  %v9048_v7 = vpack.c.bf16 %v923_v1, %v721_v0  ;;  %v825_v27 = vld [vmem:[#allocation2 + $0x1560] sm:$0xff]  ;;  %v222_v30 = vld [vmem:[#allocation2 + $0x288] sm:$0xff] }
 0x27d   :  { %9039 = vmatprep.subr.bf16.mxu0 %v9038_v31  ;;  %3913 = vmatprep.mubr.f32.mxu1 %v1094_v32  ;;  %v925_v29 = vld [vmem:[#allocation2 + $0x1880] sm:$0xff]  ;;  %v424_v31 = vld [vmem:[#allocation2 + $0x8d8] sm:$0xff]  ;;  %v322_v32 = vld [vmem:[#allocation2 + $0x5a8] sm:$0xff] }
 0x27e   :  { %7413 = vmatprep.mubr.f32.mxu0 %v1144_v33  ;;  %v524_v33 = vld [vmem:[#allocation2 + $0xbf8] sm:$0xff]  ;;  %v8658_v36 = vpack.c.bf16 %v424_v31, %v222_v30  ;;  %v225_v30 = vld [vmem:[#allocation2 + $0x2a0] sm:$0xff]  ;;  %v427_v31 = vld [vmem:[#allocation2 + $0x8f0] sm:$0xff] }
 0x27f   :  { %v9058_v37 = vpack.c.bf16 %v524_v33, %v322_v32  ;;  %v325_v32 = vld [vmem:[#allocation2 + $0x5c0] sm:$0xff]  ;;  %v527_v33 = vld [vmem:[#allocation2 + $0xc10] sm:$0xff]  ;;  %v8676_v39 = vpack.c.bf16 %v427_v31, %v225_v30 }
 0x280   :  { %v9076_v41 = vpack.c.bf16 %v527_v33, %v325_v32  ;;  %v84_v30 = vld [vmem:[%s9853_s0 + $0x160] sm:$0xff]  ;;  %v134_v32 = vld [vmem:[%s9853_s0 + $0x2f0] sm:$0xff] }
 0x283   :  { %8641 = vmatpush1.bf16.xpose.msra.mxu1 %v8640_v42  ;;  %v626_v42 = vld [vmem:[#allocation2 + $0xf28] sm:$0xff] }
 0x284   :  { %9041 = vmatpush1.bf16.xpose.msra.mxu0 %v9040_v43  ;;  %8643 = vmatprep.subr.bf16.mxu1 %v8642_v44  ;;  %v828_v43 = vld [vmem:[#allocation2 + $0x1578] sm:$0xff]  ;;  %v726_v44 = vld [vmem:[#allocation2 + $0x1248] sm:$0xff] }
 0x285   :  { %9043 = vmatprep.subr.bf16.mxu0 %v9042_v45  ;;  %v928_v45 = vld [vmem:[#allocation2 + $0x1898] sm:$0xff]  ;;  %v8662_v50 = vpack.c.bf16 %v828_v43, %v626_v42 }
 0x286   :  { %v9062_v51 = vpack.c.bf16 %v928_v45, %v726_v44  ;;  %v1099_v44 = vcombine.high %v82_v38, %v82_v38  ;;  %v1149_v45 = vcombine.high %v132_v40, %v132_v40 }
 0x28a   :  { %3914 = vmatmul.mubr.f32.vlgmr.msra.gmra.mrb[0].mxu1 %v77_v26  ;;  %v623_v26 = vld [vmem:[#allocation2 + $0xf10] sm:$0xff] }
 0x28b   :  { %8645 = vmatpush1.bf16.xpose.msra.mxu1 %v8644_v55  ;;  %7414 = vmatmul.mubr.f32.vlgmr.msra.gmra.mrb[0].mxu0 %v127_v28  ;;  %v723_v28 = vld [vmem:[#allocation2 + $0x1230] sm:$0xff]  ;;  %v8656_v34 = vpack.c.bf16 %v825_v27, %v623_v26 }
 0x28c   :  { %9045 = vmatpush1.bf16.xpose.msra.mxu0 %v9044_v57  ;;  %8647 = vmatprep.subr.bf16.mxu1 %v8646_v58  ;;  %v9056_v35 = vpack.c.bf16 %v925_v29, %v723_v28  ;;  %v827_v55 = vld [vmem:[#allocation2 + $0x1570] sm:$0xff]  ;;  %v224_v58 = vld [vmem:[#allocation2 + $0x298] sm:$0xff] }
 0x28d   :  { %9047 = vmatprep.subr.bf16.mxu0 %v9046_v59  ;;  %3983 = vmatprep.mubr.f32.mxu1 %v1095_v60  ;;  %v927_v57 = vld [vmem:[#allocation2 + $0x1890] sm:$0xff]  ;;  %v426_v59 = vld [vmem:[#allocation2 + $0x8e8] sm:$0xff]  ;;  %v324_v60 = vld [vmem:[#allocation2 + $0x5b8] sm:$0xff] }
 0x28e   :  { %7483 = vmatprep.mubr.f32.mxu0 %v1145_v61  ;;  %v526_v61 = vld [vmem:[#allocation2 + $0xc08] sm:$0xff]  ;;  %v8666_v0 = vpack.c.bf16 %v426_v59, %v224_v58  ;;  %v227_v58 = vld [vmem:[#allocation2 + $0x2b0] sm:$0xff]  ;;  %v429_v59 = vld [vmem:[#allocation2 + $0x900] sm:$0xff] }
 0x28f   :  { %v9066_v1 = vpack.c.bf16 %v526_v61, %v324_v60  ;;  %v327_v60 = vld [vmem:[#allocation2 + $0x5d0] sm:$0xff]  ;;  %v529_v61 = vld [vmem:[#allocation2 + $0xc20] sm:$0xff]  ;;  %v8684_v3 = vpack.c.bf16 %v429_v59, %v227_v58  ;;  %v85_v58 = vld [vmem:[%s9853_s0 + $0x168] sm:$0xff] }
 0x290   :  { %v9084_v5 = vpack.c.bf16 %v529_v61, %v327_v60  ;;  %v135_v60 = vld [vmem:[%s9853_s0 + $0x2f8] sm:$0xff] }
 0x293   :  { %8649 = vmatpush1.bf16.xpose.msra.mxu1 %v8648_v6  ;;  %v628_v6 = vld [vmem:[#allocation2 + $0xf38] sm:$0xff] }
 0x294   :  { %9049 = vmatpush1.bf16.xpose.msra.mxu0 %v9048_v7  ;;  %8651 = vmatprep.subr.bf16.mxu1 %v8650_v8  ;;  %v830_v7 = vld [vmem:[#allocation2 + $0x1588] sm:$0xff]  ;;  %v728_v8 = vld [vmem:[#allocation2 + $0x1258] sm:$0xff] }
 0x295   :  { %9051 = vmatprep.subr.bf16.mxu0 %v9050_v9  ;;  %v930_v9 = vld [vmem:[#allocation2 + $0x18a8] sm:$0xff]  ;;  %v8670_v14 = vpack.c.bf16 %v830_v7, %v628_v6 }
 0x296   :  { %v9070_v15 = vpack.c.bf16 %v930_v9, %v728_v8  ;;  %v1100_v8 = vcombine.high %v83_v2, %v83_v2  ;;  %v1150_v9 = vcombine.high %v133_v4, %v133_v4 }
 0x29a   :  { %3984 = vmatmul.mubr.f32.vlgmr.msra.gmra.mrb[0].mxu1 %v78_v54  ;;  %v625_v54 = vld [vmem:[#allocation2 + $0xf20] sm:$0xff] }
 0x29b   :  { %8653 = vmatpush1.bf16.xpose.msra.mxu1 %v8652_v19  ;;  %7484 = vmatmul.mubr.f32.vlgmr.msra.gmra.mrb[0].mxu0 %v128_v56  ;;  %v725_v56 = vld [vmem:[#allocation2 + $0x1240] sm:$0xff]  ;;  %v8664_v62 = vpack.c.bf16 %v827_v55, %v625_v54 }
 0x29c   :  { %9053 = vmatpush1.bf16.xpose.msra.mxu0 %v9052_v21  ;;  %8655 = vmatprep.subr.bf16.mxu1 %v8654_v22  ;;  %v9064_v63 = vpack.c.bf16 %v927_v57, %v725_v56  ;;  %v829_v19 = vld [vmem:[#allocation2 + $0x1580] sm:$0xff]  ;;  %v226_v22 = vld [vmem:[#allocation2 + $0x2a8] sm:$0xff] }
 0x29d   :  { %9055 = vmatprep.subr.bf16.mxu0 %v9054_v23  ;;  %4053 = vmatprep.mubr.f32.mxu1 %v1096_v24  ;;  %v929_v21 = vld [vmem:[#allocation2 + $0x18a0] sm:$0xff]  ;;  %v428_v23 = vld [vmem:[#allocation2 + $0x8f8] sm:$0xff]  ;;  %v326_v24 = vld [vmem:[#allocation2 + $0x5c8] sm:$0xff] }
 0x29e   :  { %7553 = vmatprep.mubr.f32.mxu0 %v1146_v25  ;;  %v528_v25 = vld [vmem:[#allocation2 + $0xc18] sm:$0xff]  ;;  %v8674_v28 = vpack.c.bf16 %v428_v23, %v226_v22  ;;  %v229_v22 = vld [vmem:[#allocation2 + $0x2c0] sm:$0xff]  ;;  %v431_v23 = vld [vmem:[#allocation2 + $0x910] sm:$0xff] }
 0x29f   :  { %v9074_v29 = vpack.c.bf16 %v528_v25, %v326_v24  ;;  %v329_v24 = vld [vmem:[#allocation2 + $0x5e0] sm:$0xff]  ;;  %v531_v25 = vld [vmem:[#allocation2 + $0xc30] sm:$0xff]  ;;  %v8692_v31 = vpack.c.bf16 %v431_v23, %v229_v22 }
 0x2a0   :  { %v9092_v33 = vpack.c.bf16 %v531_v25, %v329_v24  ;;  %v86_v22 = vld [vmem:[%s9853_s0 + $0x170] sm:$0xff]  ;;  %v136_v24 = vld [vmem:[%s9853_s0 + $0x300] sm:$0xff] }
 0x2a3   :  { %8657 = vmatpush1.bf16.xpose.msra.mxu1 %v8656_v34  ;;  %v630_v34 = vld [vmem:[#allocation2 + $0xf48] sm:$0xff] }
 0x2a4   :  { %9057 = vmatpush1.bf16.xpose.msra.mxu0 %v9056_v35  ;;  %8659 = vmatprep.subr.bf16.mxu1 %v8658_v36  ;;  %v832_v35 = vld [vmem:[#allocation2 + $0x1598] sm:$0xff]  ;;  %v730_v36 = vld [vmem:[#allocation2 + $0x1268] sm:$0xff] }
 0x2a5   :  { %9059 = vmatprep.subr.bf16.mxu0 %v9058_v37  ;;  %v932_v37 = vld [vmem:[#allocation2 + $0x18b8] sm:$0xff]  ;;  %v8678_v42 = vpack.c.bf16 %v832_v35, %v630_v34 }
 0x2a6   :  { %v9078_v43 = vpack.c.bf16 %v932_v37, %v730_v36  ;;  %v1101_v36 = vcombine.high %v84_v30, %v84_v30  ;;  %v1151_v37 = vcombine.high %v134_v32, %v134_v32 }
 0x2aa   :  { %4054 = vmatmul.mubr.f32.vlgmr.msra.gmra.mrb[0].mxu1 %v79_v18  ;;  %v627_v18 = vld [vmem:[#allocation2 + $0xf30] sm:$0xff] }
 0x2ab   :  { %8661 = vmatpush1.bf16.xpose.msra.mxu1 %v8660_v47  ;;  %7554 = vmatmul.mubr.f32.vlgmr.msra.gmra.mrb[0].mxu0 %v129_v20  ;;  %v727_v20 = vld [vmem:[#allocation2 + $0x1250] sm:$0xff]  ;;  %v8672_v26 = vpack.c.bf16 %v829_v19, %v627_v18 }
 0x2ac   :  { %9061 = vmatpush1.bf16.xpose.msra.mxu0 %v9060_v49  ;;  %8663 = vmatprep.subr.bf16.mxu1 %v8662_v50  ;;  %v9072_v27 = vpack.c.bf16 %v929_v21, %v727_v20  ;;  %v831_v47 = vld [vmem:[#allocation2 + $0x1590] sm:$0xff]  ;;  %v228_v50 = vld [vmem:[#allocation2 + $0x2b8] sm:$0xff] }
 0x2ad   :  { %9063 = vmatprep.subr.bf16.mxu0 %v9062_v51  ;;  %4123 = vmatprep.mubr.f32.mxu1 %v1097_v52  ;;  %v931_v49 = vld [vmem:[#allocation2 + $0x18b0] sm:$0xff]  ;;  %v430_v51 = vld [vmem:[#allocation2 + $0x908] sm:$0xff]  ;;  %v328_v52 = vld [vmem:[#allocation2 + $0x5d8] sm:$0xff] }
 0x2ae   :  { %7623 = vmatprep.mubr.f32.mxu0 %v1147_v53  ;;  %v530_v53 = vld [vmem:[#allocation2 + $0xc28] sm:$0xff]  ;;  %v8682_v56 = vpack.c.bf16 %v430_v51, %v228_v50  ;;  %v231_v50 = vld [vmem:[#allocation2 + $0x2d0] sm:$0xff]  ;;  %v433_v51 = vld [vmem:[#allocation2 + $0x920] sm:$0xff] }
 0x2af   :  { %v9082_v57 = vpack.c.bf16 %v530_v53, %v328_v52  ;;  %v331_v52 = vld [vmem:[#allocation2 + $0x5f0] sm:$0xff]  ;;  %v533_v53 = vld [vmem:[#allocation2 + $0xc40] sm:$0xff]  ;;  %v8700_v59 = vpack.c.bf16 %v433_v51, %v231_v50  ;;  %v87_v50 = vld [vmem:[%s9853_s0 + $0x178] sm:$0xff] }
 0x2b0   :  { %v9100_v61 = vpack.c.bf16 %v533_v53, %v331_v52  ;;  %v137_v52 = vld [vmem:[%s9853_s0 + $0x308] sm:$0xff] }
 0x2b3   :  { %8665 = vmatpush1.bf16.xpose.msra.mxu1 %v8664_v62  ;;  %v632_v62 = vld [vmem:[#allocation2 + $0xf58] sm:$0xff] }
 0x2b4   :  { %9065 = vmatpush1.bf16.xpose.msra.mxu0 %v9064_v63  ;;  %8667 = vmatprep.subr.bf16.mxu1 %v8666_v0  ;;  %v834_v63 = vld [vmem:[#allocation2 + $0x15a8] sm:$0xff]  ;;  %v732_v0 = vld [vmem:[#allocation2 + $0x1278] sm:$0xff] }
 0x2b5   :  { %9067 = vmatprep.subr.bf16.mxu0 %v9066_v1  ;;  %v934_v1 = vld [vmem:[#allocation2 + $0x18c8] sm:$0xff]  ;;  %v8686_v6 = vpack.c.bf16 %v834_v63, %v632_v62 }
 0x2b6   :  { %v9086_v7 = vpack.c.bf16 %v934_v1, %v732_v0  ;;  %v1102_v0 = vcombine.high %v85_v58, %v85_v58  ;;  %v1152_v1 = vcombine.high %v135_v60, %v135_v60 }
 0x2ba   :  { %4124 = vmatmul.mubr.f32.vlgmr.msra.gmra.mrb[0].mxu1 %v80_v46  ;;  %v629_v46 = vld [vmem:[#allocation2 + $0xf40] sm:$0xff] }
 0x2bb   :  { %8669 = vmatpush1.bf16.xpose.msra.mxu1 %v8668_v11  ;;  %7624 = vmatmul.mubr.f32.vlgmr.msra.gmra.mrb[0].mxu0 %v130_v48  ;;  %v729_v48 = vld [vmem:[#allocation2 + $0x1260] sm:$0xff]  ;;  %v8680_v54 = vpack.c.bf16 %v831_v47, %v629_v46 }
 0x2bc   :  { %9069 = vmatpush1.bf16.xpose.msra.mxu0 %v9068_v13  ;;  %8671 = vmatprep.subr.bf16.mxu1 %v8670_v14  ;;  %v9080_v55 = vpack.c.bf16 %v931_v49, %v729_v48  ;;  %v833_v11 = vld [vmem:[#allocation2 + $0x15a0] sm:$0xff]  ;;  %v230_v14 = vld [vmem:[#allocation2 + $0x2c8] sm:$0xff] }
 0x2bd   :  { %9071 = vmatprep.subr.bf16.mxu0 %v9070_v15  ;;  %4193 = vmatprep.mubr.f32.mxu1 %v1098_v16  ;;  %v933_v13 = vld [vmem:[#allocation2 + $0x18c0] sm:$0xff]  ;;  %v432_v15 = vld [vmem:[#allocation2 + $0x918] sm:$0xff]  ;;  %v330_v16 = vld [vmem:[#allocation2 + $0x5e8] sm:$0xff] }
 0x2be   :  { %7693 = vmatprep.mubr.f32.mxu0 %v1148_v17  ;;  %v532_v17 = vld [vmem:[#allocation2 + $0xc38] sm:$0xff]  ;;  %v8690_v20 = vpack.c.bf16 %v432_v15, %v230_v14  ;;  %v233_v14 = vld [vmem:[#allocation2 + $0x2e0] sm:$0xff]  ;;  %v435_v15 = vld [vmem:[#allocation2 + $0x930] sm:$0xff] }
 0x2bf   :  { %v9090_v21 = vpack.c.bf16 %v532_v17, %v330_v16  ;;  %v333_v16 = vld [vmem:[#allocation2 + $0x600] sm:$0xff]  ;;  %v535_v17 = vld [vmem:[#allocation2 + $0xc50] sm:$0xff]  ;;  %v8708_v23 = vpack.c.bf16 %v435_v15, %v233_v14 }
 0x2c0   :  { %v9108_v25 = vpack.c.bf16 %v535_v17, %v333_v16  ;;  %v88_v14 = vld [vmem:[%s9853_s0 + $0x180] sm:$0xff]  ;;  %v138_v16 = vld [vmem:[%s9853_s0 + $0x310] sm:$0xff] }
 0x2c3   :  { %8673 = vmatpush1.bf16.xpose.msra.mxu1 %v8672_v26  ;;  %v634_v26 = vld [vmem:[#allocation2 + $0xf68] sm:$0xff] }
 0x2c4   :  { %9073 = vmatpush1.bf16.xpose.msra.mxu0 %v9072_v27  ;;  %8675 = vmatprep.subr.bf16.mxu1 %v8674_v28  ;;  %v836_v27 = vld [vmem:[#allocation2 + $0x15b8] sm:$0xff]  ;;  %v734_v28 = vld [vmem:[#allocation2 + $0x1288] sm:$0xff] }
 0x2c5   :  { %9075 = vmatprep.subr.bf16.mxu0 %v9074_v29  ;;  %v936_v29 = vld [vmem:[#allocation2 + $0x18d8] sm:$0xff]  ;;  %v8694_v34 = vpack.c.bf16 %v836_v27, %v634_v26 }
 0x2c6   :  { %v9094_v35 = vpack.c.bf16 %v936_v29, %v734_v28  ;;  %v1103_v28 = vcombine.high %v86_v22, %v86_v22  ;;  %v1153_v29 = vcombine.high %v136_v24, %v136_v24 }
 0x2ca   :  { %4194 = vmatmul.mubr.f32.vlgmr.msra.gmra.mrb[0].mxu1 %v81_v10  ;;  %v631_v10 = vld [vmem:[#allocation2 + $0xf50] sm:$0xff] }
 0x2cb   :  { %8677 = vmatpush1.bf16.xpose.msra.mxu1 %v8676_v39  ;;  %7694 = vmatmul.mubr.f32.vlgmr.msra.gmra.mrb[0].mxu0 %v131_v12  ;;  %v731_v12 = vld [vmem:[#allocation2 + $0x1270] sm:$0xff]  ;;  %v8688_v18 = vpack.c.bf16 %v833_v11, %v631_v10 }
 0x2cc   :  { %9077 = vmatpush1.bf16.xpose.msra.mxu0 %v9076_v41  ;;  %8679 = vmatprep.subr.bf16.mxu1 %v8678_v42  ;;  %v9088_v19 = vpack.c.bf16 %v933_v13, %v731_v12  ;;  %v835_v39 = vld [vmem:[#allocation2 + $0x15b0] sm:$0xff]  ;;  %v232_v42 = vld [vmem:[#allocation2 + $0x2d8] sm:$0xff] }
 0x2cd   :  { %9079 = vmatprep.subr.bf16.mxu0 %v9078_v43  ;;  %4263 = vmatprep.mubr.f32.mxu1 %v1099_v44  ;;  %v935_v41 = vld [vmem:[#allocation2 + $0x18d0] sm:$0xff]  ;;  %v434_v43 = vld [vmem:[#allocation2 + $0x928] sm:$0xff]  ;;  %v332_v44 = vld [vmem:[#allocation2 + $0x5f8] sm:$0xff] }
 0x2ce   :  { %7763 = vmatprep.mubr.f32.mxu0 %v1149_v45  ;;  %v534_v45 = vld [vmem:[#allocation2 + $0xc48] sm:$0xff]  ;;  %v8698_v48 = vpack.c.bf16 %v434_v43, %v232_v42  ;;  %v235_v42 = vld [vmem:[#allocation2 + $0x2f0] sm:$0xff]  ;;  %v437_v43 = vld [vmem:[#allocation2 + $0x940] sm:$0xff] }
 0x2cf   :  { %v9098_v49 = vpack.c.bf16 %v534_v45, %v332_v44  ;;  %v335_v44 = vld [vmem:[#allocation2 + $0x610] sm:$0xff]  ;;  %v537_v45 = vld [vmem:[#allocation2 + $0xc60] sm:$0xff]  ;;  %v8716_v51 = vpack.c.bf16 %v437_v43, %v235_v42  ;;  %v89_v42 = vld [vmem:[%s9853_s0 + $0x188] sm:$0xff] }
 0x2d0   :  { %v9116_v53 = vpack.c.bf16 %v537_v45, %v335_v44  ;;  %v139_v44 = vld [vmem:[%s9853_s0 + $0x318] sm:$0xff] }
 0x2d3   :  { %8681 = vmatpush1.bf16.xpose.msra.mxu1 %v8680_v54  ;;  %v636_v54 = vld [vmem:[#allocation2 + $0xf78] sm:$0xff] }
 0x2d4   :  { %9081 = vmatpush1.bf16.xpose.msra.mxu0 %v9080_v55  ;;  %8683 = vmatprep.subr.bf16.mxu1 %v8682_v56  ;;  %v838_v55 = vld [vmem:[#allocation2 + $0x15c8] sm:$0xff]  ;;  %v736_v56 = vld [vmem:[#allocation2 + $0x1298] sm:$0xff] }
 0x2d5   :  { %9083 = vmatprep.subr.bf16.mxu0 %v9082_v57  ;;  %v938_v57 = vld [vmem:[#allocation2 + $0x18e8] sm:$0xff]  ;;  %v8702_v62 = vpack.c.bf16 %v838_v55, %v636_v54 }
 0x2d6   :  { %v9102_v63 = vpack.c.bf16 %v938_v57, %v736_v56  ;;  %v1104_v56 = vcombine.high %v87_v50, %v87_v50  ;;  %v1154_v57 = vcombine.high %v137_v52, %v137_v52 }
 0x2da   :  { %4264 = vmatmul.mubr.f32.vlgmr.msra.gmra.mrb[0].mxu1 %v82_v38  ;;  %v633_v38 = vld [vmem:[#allocation2 + $0xf60] sm:$0xff] }
 0x2db   :  { %8685 = vmatpush1.bf16.xpose.msra.mxu1 %v8684_v3  ;;  %7764 = vmatmul.mubr.f32.vlgmr.msra.gmra.mrb[0].mxu0 %v132_v40  ;;  %v733_v40 = vld [vmem:[#allocation2 + $0x1280] sm:$0xff]  ;;  %v8696_v46 = vpack.c.bf16 %v835_v39, %v633_v38 }
 0x2dc   :  { %9085 = vmatpush1.bf16.xpose.msra.mxu0 %v9084_v5  ;;  %8687 = vmatprep.subr.bf16.mxu1 %v8686_v6  ;;  %v9096_v47 = vpack.c.bf16 %v935_v41, %v733_v40  ;;  %v837_v3 = vld [vmem:[#allocation2 + $0x15c0] sm:$0xff]  ;;  %v234_v6 = vld [vmem:[#allocation2 + $0x2e8] sm:$0xff] }
 0x2dd   :  { %9087 = vmatprep.subr.bf16.mxu0 %v9086_v7  ;;  %4333 = vmatprep.mubr.f32.mxu1 %v1100_v8  ;;  %v937_v5 = vld [vmem:[#allocation2 + $0x18e0] sm:$0xff]  ;;  %v436_v7 = vld [vmem:[#allocation2 + $0x938] sm:$0xff]  ;;  %v334_v8 = vld [vmem:[#allocation2 + $0x608] sm:$0xff] }
 0x2de   :  { %7833 = vmatprep.mubr.f32.mxu0 %v1150_v9  ;;  %v536_v9 = vld [vmem:[#allocation2 + $0xc58] sm:$0xff]  ;;  %v8706_v12 = vpack.c.bf16 %v436_v7, %v234_v6  ;;  %v237_v6 = vld [vmem:[#allocation2 + $0x300] sm:$0xff]  ;;  %v439_v7 = vld [vmem:[#allocation2 + $0x950] sm:$0xff] }
 0x2df   :  { %v9106_v13 = vpack.c.bf16 %v536_v9, %v334_v8  ;;  %v337_v8 = vld [vmem:[#allocation2 + $0x620] sm:$0xff]  ;;  %v539_v9 = vld [vmem:[#allocation2 + $0xc70] sm:$0xff]  ;;  %v8724_v15 = vpack.c.bf16 %v439_v7, %v237_v6 }
 0x2e0   :  { %v9124_v17 = vpack.c.bf16 %v539_v9, %v337_v8  ;;  %v8337_v8 = vld [vmem:[#allocation4] ss:$0 sm:$0xff] }
 0x2e3   :  { %8689 = vmatpush1.bf16.xpose.msra.mxu1 %v8688_v18  ;;  %v638_v18 = vld [vmem:[#allocation2 + $0xf88] sm:$0xff] }
 0x2e4   :  { %9089 = vmatpush1.bf16.xpose.msra.mxu0 %v9088_v19  ;;  %8691 = vmatprep.subr.bf16.mxu1 %v8690_v20  ;;  %v840_v19 = vld [vmem:[#allocation2 + $0x15d8] sm:$0xff]  ;;  %v738_v20 = vld [vmem:[#allocation2 + $0x12a8] sm:$0xff] }
 0x2e5   :  { %9091 = vmatprep.subr.bf16.mxu0 %v9090_v21  ;;  %v940_v21 = vld [vmem:[#allocation2 + $0x18f8] sm:$0xff]  ;;  %v8710_v26 = vpack.c.bf16 %v840_v19, %v638_v18 }
 0x2e6   :  { %v9110_v27 = vpack.c.bf16 %v940_v21, %v738_v20  ;;  %v1105_v20 = vcombine.high %v88_v14, %v88_v14  ;;  %v1155_v21 = vcombine.high %v138_v16, %v138_v16 }
 0x2ea   :  { %4334 = vmatmul.mubr.f32.vlgmr.msra.gmra.mrb[0].mxu1 %v83_v2  ;;  %v635_v2 = vld [vmem:[#allocation2 + $0xf70] sm:$0xff] }
 0x2eb   :  { %8693 = vmatpush1.bf16.xpose.msra.mxu1 %v8692_v31  ;;  %7834 = vmatmul.mubr.f32.vlgmr.msra.gmra.mrb[0].mxu0 %v133_v4  ;;  %v735_v4 = vld [vmem:[#allocation2 + $0x1290] sm:$0xff]  ;;  %v8704_v10 = vpack.c.bf16 %v837_v3, %v635_v2 }
 0x2ec   :  { %9093 = vmatpush1.bf16.xpose.msra.mxu0 %v9092_v33  ;;  %8695 = vmatprep.subr.bf16.mxu1 %v8694_v34  ;;  %v9104_v11 = vpack.c.bf16 %v937_v5, %v735_v4  ;;  %v839_v31 = vld [vmem:[#allocation2 + $0x15d0] sm:$0xff]  ;;  %v236_v34 = vld [vmem:[#allocation2 + $0x2f8] sm:$0xff] }
 0x2ed   :  { %9095 = vmatprep.subr.bf16.mxu0 %v9094_v35  ;;  %4403 = vmatprep.mubr.f32.mxu1 %v1101_v36  ;;  %v939_v33 = vld [vmem:[#allocation2 + $0x18f0] sm:$0xff]  ;;  %v438_v35 = vld [vmem:[#allocation2 + $0x948] sm:$0xff]  ;;  %v336_v36 = vld [vmem:[#allocation2 + $0x618] sm:$0xff] }
 0x2ee   :  { %7903 = vmatprep.mubr.f32.mxu0 %v1151_v37  ;;  %v538_v37 = vld [vmem:[#allocation2 + $0xc68] sm:$0xff]  ;;  %v8714_v40 = vpack.c.bf16 %v438_v35, %v236_v34  ;;  %v239_v34 = vld [vmem:[#allocation2 + $0x310] sm:$0xff]  ;;  %v441_v35 = vld [vmem:[#allocation2 + $0x960] sm:$0xff] }
 0x2ef   :  { %v9114_v41 = vpack.c.bf16 %v538_v37, %v336_v36  ;;  %v339_v36 = vld [vmem:[#allocation2 + $0x630] sm:$0xff]  ;;  %v541_v37 = vld [vmem:[#allocation2 + $0xc80] sm:$0xff]  ;;  %v8732_v43 = vpack.c.bf16 %v441_v35, %v239_v34 }
 0x2f0   :  { %v9132_v45 = vpack.c.bf16 %v541_v37, %v339_v36 }
 0x2f3   :  { %8697 = vmatpush1.bf16.xpose.msra.mxu1 %v8696_v46  ;;  %v640_v46 = vld [vmem:[#allocation2 + $0xf98] sm:$0xff] }
 0x2f4   :  { %9097 = vmatpush1.bf16.xpose.msra.mxu0 %v9096_v47  ;;  %8699 = vmatprep.subr.bf16.mxu1 %v8698_v48  ;;  %v842_v47 = vld [vmem:[#allocation2 + $0x15e8] sm:$0xff]  ;;  %v740_v48 = vld [vmem:[#allocation2 + $0x12b8] sm:$0xff] }
 0x2f5   :  { %9099 = vmatprep.subr.bf16.mxu0 %v9098_v49  ;;  %v942_v49 = vld [vmem:[#allocation2 + $0x1908] sm:$0xff]  ;;  %v8718_v54 = vpack.c.bf16 %v842_v47, %v640_v46 }
 0x2f6   :  { %v9118_v55 = vpack.c.bf16 %v942_v49, %v740_v48  ;;  %v1106_v48 = vcombine.high %v89_v42, %v89_v42  ;;  %v1156_v49 = vcombine.high %v139_v44, %v139_v44 }
 0x2fa   :  { %4404 = vmatmul.mubr.f32.vlgmr.msra.gmra.mrb[0].mxu1 %v84_v30  ;;  %v637_v30 = vld [vmem:[#allocation2 + $0xf80] sm:$0xff] }
 0x2fb   :  { %8701 = vmatpush1.bf16.xpose.msra.mxu1 %v8700_v59  ;;  %7904 = vmatmul.mubr.f32.vlgmr.msra.gmra.mrb[0].mxu0 %v134_v32  ;;  %v737_v32 = vld [vmem:[#allocation2 + $0x12a0] sm:$0xff]  ;;  %v8712_v38 = vpack.c.bf16 %v839_v31, %v637_v30 }
 0x2fc   :  { %9101 = vmatpush1.bf16.xpose.msra.mxu0 %v9100_v61  ;;  %8703 = vmatprep.subr.bf16.mxu1 %v8702_v62  ;;  %v9112_v39 = vpack.c.bf16 %v939_v33, %v737_v32  ;;  %v841_v59 = vld [vmem:[#allocation2 + $0x15e0] sm:$0xff]  ;;  %v238_v62 = vld [vmem:[#allocation2 + $0x308] sm:$0xff] }
 0x2fd   :  { %9103 = vmatprep.subr.bf16.mxu0 %v9102_v63  ;;  %4473 = vmatprep.mubr.f32.mxu1 %v1102_v0  ;;  %v941_v61 = vld [vmem:[#allocation2 + $0x1900] sm:$0xff]  ;;  %v440_v63 = vld [vmem:[#allocation2 + $0x958] sm:$0xff]  ;;  %v338_v0 = vld [vmem:[#allocation2 + $0x628] sm:$0xff] }
 0x2fe   :  { %7973 = vmatprep.mubr.f32.mxu0 %v1152_v1  ;;  %v540_v1 = vld [vmem:[#allocation2 + $0xc78] sm:$0xff]  ;;  %v8722_v4 = vpack.c.bf16 %v440_v63, %v238_v62  ;;  %v746_v62 = vld [vmem:[#allocation2 + $0x12e8] sm:$0xff] }
 0x2ff   :  { %v9122_v5 = vpack.c.bf16 %v540_v1, %v338_v0  ;;  %v948_v63 = vld [vmem:[#allocation2 + $0x1938] sm:$0xff] }
 0x303   :  { %8705 = vmatpush1.bf16.xpose.msra.mxu1 %v8704_v10  ;;  %v642_v10 = vld [vmem:[#allocation2 + $0xfa8] sm:$0xff] }
 0x304   :  { %9105 = vmatpush1.bf16.xpose.msra.mxu0 %v9104_v11  ;;  %8707 = vmatprep.subr.bf16.mxu1 %v8706_v12  ;;  %v844_v11 = vld [vmem:[#allocation2 + $0x15f8] sm:$0xff]  ;;  %v742_v12 = vld [vmem:[#allocation2 + $0x12c8] sm:$0xff] }
 0x305   :  { %9107 = vmatprep.subr.bf16.mxu0 %v9106_v13  ;;  %v944_v13 = vld [vmem:[#allocation2 + $0x1918] sm:$0xff]  ;;  %v8726_v18 = vpack.c.bf16 %v844_v11, %v642_v10 }
 0x306   :  { %v9126_v19 = vpack.c.bf16 %v944_v13, %v742_v12 }
 0x30a   :  { %4474 = vmatmul.mubr.f32.vlgmr.msra.gmra.mrb[0].mxu1 %v85_v58  ;;  %v639_v58 = vld [vmem:[#allocation2 + $0xf90] sm:$0xff] }
 0x30b   :  { %8709 = vmatpush1.bf16.xpose.msra.mxu1 %v8708_v23  ;;  %7974 = vmatmul.mubr.f32.vlgmr.msra.gmra.mrb[0].mxu0 %v135_v60  ;;  %v739_v60 = vld [vmem:[#allocation2 + $0x12b0] sm:$0xff]  ;;  %v8720_v2 = vpack.c.bf16 %v841_v59, %v639_v58  ;;  %v341_v59 = vld [vmem:[#allocation2 + $0x640] sm:$0xff] }
 0x30c   :  { %9109 = vmatpush1.bf16.xpose.msra.mxu0 %v9108_v25  ;;  %8711 = vmatprep.subr.bf16.mxu1 %v8710_v26  ;;  %v9120_v3 = vpack.c.bf16 %v941_v61, %v739_v60  ;;  %v843_v23 = vld [vmem:[#allocation2 + $0x15f0] sm:$0xff]  ;;  %v240_v26 = vld [vmem:[#allocation2 + $0x318] sm:$0xff]  ;;  %v140_v61 = vld [vmem:[%s9853_s0 + $0x320] sm:$0xff] }
 0x30d   :  { %9111 = vmatprep.subr.bf16.mxu0 %v9110_v27  ;;  %4543 = vmatprep.mubr.f32.mxu1 %v1103_v28  ;;  %v943_v25 = vld [vmem:[#allocation2 + $0x1910] sm:$0xff]  ;;  %v442_v27 = vld [vmem:[#allocation2 + $0x968] sm:$0xff]  ;;  %v340_v28 = vld [vmem:[#allocation2 + $0x638] sm:$0xff]  ;;  %v1157_v1 = vcombine.high %v140_v61, %v140_v61 }
 0x30e   :  { %8043 = vmatprep.mubr.f32.mxu0 %v1153_v29  ;;  %v542_v29 = vld [vmem:[#allocation2 + $0xc88] sm:$0xff]  ;;  %v8730_v32 = vpack.c.bf16 %v442_v27, %v240_v26  ;;  %v543_v60 = vld [vmem:[#allocation2 + $0xc90] sm:$0xff] }
 0x30f   :  { %v9130_v33 = vpack.c.bf16 %v542_v29, %v340_v28  ;;  %v9140_v0 = vpack.c.bf16 %v543_v60, %v341_v59 }
 0x313   :  { %8713 = vmatpush1.bf16.xpose.msra.mxu1 %v8712_v38  ;;  %v644_v38 = vld [vmem:[#allocation2 + $0xfb8] sm:$0xff] }
 0x314   :  { %9113 = vmatpush1.bf16.xpose.msra.mxu0 %v9112_v39  ;;  %8715 = vmatprep.subr.bf16.mxu1 %v8714_v40  ;;  %v846_v39 = vld [vmem:[#allocation2 + $0x1608] sm:$0xff]  ;;  %v744_v40 = vld [vmem:[#allocation2 + $0x12d8] sm:$0xff] }
 0x315   :  { %9115 = vmatprep.subr.bf16.mxu0 %v9114_v41  ;;  %v946_v41 = vld [vmem:[#allocation2 + $0x1928] sm:$0xff]  ;;  %v8734_v46 = vpack.c.bf16 %v846_v39, %v644_v38 }
 0x316   :  { %v9134_v47 = vpack.c.bf16 %v946_v41, %v744_v40 }
 0x31a   :  { %4544 = vmatmul.mubr.f32.vlgmr.msra.gmra.mrb[0].mxu1 %v86_v22  ;;  %v641_v22 = vld [vmem:[#allocation2 + $0xfa0] sm:$0xff] }
 0x31b   :  { %8717 = vmatpush1.bf16.xpose.msra.mxu1 %v8716_v51  ;;  %8044 = vmatmul.mubr.f32.vlgmr.msra.gmra.mrb[0].mxu0 %v136_v24  ;;  %v741_v24 = vld [vmem:[#allocation2 + $0x12c0] sm:$0xff]  ;;  %v8728_v30 = vpack.c.bf16 %v843_v23, %v641_v22 }
 0x31c   :  { %9117 = vmatpush1.bf16.xpose.msra.mxu0 %v9116_v53  ;;  %8719 = vmatprep.subr.bf16.mxu1 %v8718_v54  ;;  %v9128_v31 = vpack.c.bf16 %v943_v25, %v741_v24  ;;  %v845_v51 = vld [vmem:[#allocation2 + $0x1600] sm:$0xff]  ;;  %v342_v54 = vld [vmem:[#allocation2 + $0x648] sm:$0xff] }
 0x31d   :  { %9119 = vmatprep.subr.bf16.mxu0 %v9118_v55  ;;  %4613 = vmatprep.mubr.f32.mxu1 %v1104_v56  ;;  %v945_v53 = vld [vmem:[#allocation2 + $0x1920] sm:$0xff]  ;;  %v544_v55 = vld [vmem:[#allocation2 + $0xc98] sm:$0xff] }
 0x31e   :  { %8113 = vmatprep.mubr.f32.mxu0 %v1154_v57  ;;  %v9138_v58 = vpack.c.bf16 %v544_v55, %v342_v54 }
 0x323   :  { %8721 = vmatpush1.bf16.xpose.msra.mxu1 %v8720_v2  ;;  %v9142_v2 = vpack.c.bf16 %v948_v63, %v746_v62 }
 0x324   :  { %9121 = vmatpush1.bf16.xpose.msra.mxu0 %v9120_v3  ;;  %8723 = vmatprep.subr.bf16.mxu1 %v8722_v4  ;;  %v745_v3 = vld [vmem:[#allocation2 + $0x12e0] sm:$0xff]  ;;  %v947_v4 = vld [vmem:[#allocation2 + $0x1930] sm:$0xff] }
 0x325   :  { %9123 = vmatprep.subr.bf16.mxu0 %v9122_v5  ;;  %v9144_v5 = vpack.c.bf16 %v947_v4, %v745_v3 }
 0x32a   :  { %4614 = vmatmul.mubr.f32.vlgmr.msra.gmra.mrb[0].mxu1 %v87_v50  ;;  %v643_v50 = vld [vmem:[#allocation2 + $0xfb0] sm:$0xff] }
 0x32b   :  { %8725 = vmatpush1.bf16.xpose.msra.mxu1 %v8724_v15  ;;  %8114 = vmatmul.mubr.f32.vlgmr.msra.gmra.mrb[0].mxu0 %v137_v52  ;;  %v743_v52 = vld [vmem:[#allocation2 + $0x12d0] sm:$0xff]  ;;  %v8736_v56 = vpack.c.bf16 %v845_v51, %v643_v50 }
 0x32c   :  { %9125 = vmatpush1.bf16.xpose.msra.mxu0 %v9124_v17  ;;  %8727 = vmatprep.subr.bf16.mxu1 %v8726_v18  ;;  %v9136_v57 = vpack.c.bf16 %v945_v53, %v743_v52 }
 0x32d   :  { %9127 = vmatprep.subr.bf16.mxu0 %v9126_v19  ;;  %4683 = vmatprep.mubr.f32.mxu1 %v1105_v20 }
 0x32e   :  { %8183 = vmatprep.mubr.f32.mxu0 %v1155_v21 }
 0x333   :  { %8729 = vmatpush1.bf16.xpose.msra.mxu1 %v8728_v30 }
 0x334   :  { %9129 = vmatpush1.bf16.xpose.msra.mxu0 %v9128_v31  ;;  %8731 = vmatprep.subr.bf16.mxu1 %v8730_v32 }
 0x335   :  { %9131 = vmatprep.subr.bf16.mxu0 %v9130_v33 }
 0x33a   :  { %4684 = vmatmul.mubr.f32.vlgmr.msra.gmra.mrb[0].mxu1 %v88_v14 }
 0x33b   :  { %8733 = vmatpush1.bf16.xpose.msra.mxu1 %v8732_v43  ;;  %8184 = vmatmul.mubr.f32.vlgmr.msra.gmra.mrb[0].mxu0 %v138_v16 }
 0x33c   :  { %9133 = vmatpush1.bf16.xpose.msra.mxu0 %v9132_v45  ;;  %8735 = vmatprep.subr.bf16.mxu1 %v8734_v46 }
 0x33d   :  { %9135 = vmatprep.subr.bf16.mxu0 %v9134_v47  ;;  %4753 = vmatprep.mubr.f32.mxu1 %v1106_v48 }
 0x33e   :  { %8253 = vmatprep.mubr.f32.mxu0 %v1156_v49 }
 0x343   :  { %8737 = vmatpush1.bf16.xpose.msra.mxu1 %v8736_v56 }
 0x344   :  { %9137 = vmatpush1.bf16.xpose.msra.mxu0 %v9136_v57 }
 0x345   :  { %9139 = vmatprep.subr.bf16.mxu0 %v9138_v58 }
 0x34a   :  { %4754 = vmatmul.mubr.f32.vlgmr.msra.gmra.mrb[0].mxu1 %v89_v42 }
 0x34b   :  { %8254 = vmatmul.mubr.f32.vlgmr.msra.gmra.mrb[0].mxu0 %v139_v44 }
 0x34c   :  { %9141 = vmatpush1.bf16.xpose.msra.mxu0 %v9140_v0  ;;  %8323 = vmatprep.mubr.f32.mxu0 %v1157_v1 }
 0x34d   :  { %9143 = vmatprep.subr.bf16.mxu0 %v9142_v2 }
 0x354   :  { %9145 = vmatpush1.bf16.xpose.msra.mxu0 %v9144_v5 }
 0x35b   :  { %8324 = vmatmul.mubr.f32.vlgmr.msra.gmra.mrb[0].mxu0 %v140_v61 }
 0x41d   :  { %v4755_v6 = vpop.f32.mrb[0].mxu1 }
 0x41e   :  { %v4757_v7 = vpop.f32.mrb[1].mxu1  ;;  %v9146_v9 = vadd.f32 %v8337_v8, %v4755_v6 }
 0x42e   :  { %v8325_v10 = vpop.f32.mrb[0].mxu0 }
 0x42f   :  { %v9147_v11 = vadd.f32 %v9146_v9, %v8325_v10  ;;  %v8327_v12 = vpop.f32.mrb[1].mxu0 }
 0x431   :  { %8330 = vst.msk [vmem:[%s9856_s3] sm:$0xf] %vm8329_vm0, %v9147_v11 }
 0x432   :  { %8335 = vsyncpa [#allocation3], 1 }
 0x433   :  { %8336 = vsyncpa [#allocation5], 1 }

</bundles_post_ra>
